<compile_context>
chip_gen: v7x
topology: tpu7x:2x2x1
jax: 0.10.0
libtpu: 0.0.40
codegen_flags: <defaults>
</compile_context>

<pallas_src>
import numpy as np
import jax
import jax.numpy as jnp
from jax.experimental import pallas as pl
from jax.experimental.pallas import tpu as pltpu


_LANES = 128


# ---------------------------------------------------------------------------
# In-kernel helpers
# ---------------------------------------------------------------------------
def _shift_w(v, direction):
    """Shift v by +-1 along W (axis 2, the sublane axis); vacated column is zero.

    direction=+1 : out[..., x, :] = v[..., x-1, :]   (zero at x == 0)
    direction=-1 : out[..., x, :] = v[..., x+1, :]   (zero at x == W-1)
    The rotate rides the XLU slot; the edge fix-up is one VPU select.
    """
    W = v.shape[2]
    rolled = pltpu.roll(v, direction % W, axis=2)
    edge = 0 if direction > 0 else W - 1
    col = jax.lax.broadcasted_iota(jnp.int32, v.shape, 2)
    return jnp.where(col == edge, jnp.zeros_like(v), rolled)


def _avgpool2x2(v):
    """2x2 average pool of (NB, H, W, C) using only VPU adds.

    H (an outer axis) is pooled first -- the reshape/index there is layout-free --
    so the W-pair retile only touches half the data."""
    NB, H, W, C = v.shape
    v = v.reshape(NB, H // 2, 2, W, C)
    v = v[:, :, 0, :, :] + v[:, :, 1, :, :]          # (NB, H/2, W, C)
    v = v.reshape(NB, H // 2, W // 2, 2, C)
    v = v[:, :, :, 0, :] + v[:, :, :, 1, :]          # (NB, H/2, W/2, C)
    return v * 0.25


# ---------------------------------------------------------------------------
# Kernel
# ---------------------------------------------------------------------------
def _dis_block_kernel(x_ref, w1_ref, b1_ref, w2_ref, b2_ref, wsc_ref, bsc_ref,
                      out_ref, xp_ref, hp_ref):
    NB, H, W, Cin = x_ref.shape
    Cp = out_ref.shape[-1]
    M = NB * H * W

    # Zero the 1-row top/bottom halo of both packed staging buffers.  Interior rows are
    # fully overwritten every step; the halo rows are thin (O(W)) so re-zeroing them each
    # step is cheap and stays correct when the grid is sharded across TensorCores.
    xp_ref[:, 0:1, :, :] = jnp.zeros((NB, 1, W, 3 * Cin), xp_ref.dtype)
    xp_ref[:, H + 1:H + 2, :, :] = jnp.zeros((NB, 1, W, 3 * Cin), xp_ref.dtype)
    hp_ref[:, 0:1, :, :] = jnp.zeros((NB, 1, W, 3 * Cp), hp_ref.dtype)
    hp_ref[:, H + 1:H + 2, :, :] = jnp.zeros((NB, 1, W, 3 * Cp), hp_ref.dtype)

    x = x_ref[...]                                           # (NB, H, W, Cin) f32

    # ---- conv1: dx-channel-packed staging, 3 dots with K = 3*Cin ----------------------
    xpk = jnp.concatenate([_shift_w(x, +1), x, _shift_w(x, -1)], axis=-1)
    xp_ref[:, 1:H + 1, :, :] = xpk.astype(xp_ref.dtype)      # single aligned bf16 store

    acc1 = jnp.zeros((M, Cp), jnp.float32)
    for dy in range(3):
        lhs = xp_ref[:, dy:dy + H, :, :].reshape(M, 3 * Cin)
        acc1 = acc1 + jnp.dot(lhs, w1_ref[dy], preferred_element_type=jnp.float32)
    h1 = jnp.maximum(acc1 + b1_ref[...], 0.0)                # ReLU, (M, Cp) f32

    # ---- conv2: same packing, 3 dots with K = 3*Cp = 384 (feeds v6e/v7x MXU depth) ----
    h1 = h1.reshape(NB, H, W, Cp)
    hpk = jnp.concatenate([_shift_w(h1, +1), h1, _shift_w(h1, -1)], axis=-1)
    hp_ref[:, 1:H + 1, :, :] = hpk.astype(hp_ref.dtype)      # bf16 staging: half the bytes

    acc2 = jnp.zeros((M, Cp), jnp.float32)
    for dy in range(3):
        lhs = hp_ref[:, dy:dy + H, :, :].reshape(M, 3 * Cp)
        acc2 = acc2 + jnp.dot(lhs, w2_ref[dy], preferred_element_type=jnp.float32)
    h2 = (acc2 + b2_ref[...]).reshape(NB, H, W, Cp)

    # ---- residual branch: 2x2 avg-pool on the VPU ----
    res = _avgpool2x2(h2)                                    # (NB, H/2, W/2, Cp) f32

    # ---- shortcut branch: avg-pool(x) in f32, then 1x1 conv on the MXU ----
    xpool = _avgpool2x2(x)                                   # (NB, H/2, W/2, Cin) f32
    Mh = NB * (H // 2) * (W // 2)
    sc = jnp.dot(xpool.reshape(Mh, Cin).astype(jnp.bfloat16), wsc_ref[...],
                 preferred_element_type=jnp.float32) + bsc_ref[...]

    out_ref[...] = (res + sc.reshape(res.shape)).astype(out_ref.dtype)


# ---------------------------------------------------------------------------
# VMEM sizing / batch blocking (generation-aware)
# ---------------------------------------------------------------------------
def _weight_bytes(cin, cp):
    # bf16 packed weights + f32 biases, x2 for pipeline double-buffering.
    return 2 * ((3 * 3 * cin * cp + 3 * 3 * cp * cp + cin * cp) * 2 + 3 * cp * 4)


def _step_bytes(nb, h, w, cin, cp):
    m = nb * h * w
    scratch = nb * (h + 2) * w * 3 * (cin + cp) * 2                       # bf16 staging
    io = 2 * (nb * h * w * cin * 4 + nb * (h // 2) * (w // 2) * cp * 4)   # 2x-buffered I/O
    live = 6 * m * cp * 4                                                 # acc/h1/h2/packed temps
    return scratch + io + live


def _vmem_capacity_bytes():
    try:
        return int(pltpu.get_tpu_info().vmem_capacity_bytes)
    except Exception:
        return 64 << 20          # conservative (v7x-sized) default


def _pick_batch_block(n, h, w, cin, cp, vmem_cap):
    # Per-step working-set budget: up to 32 MiB on 128-MiB chips (v5e/v6e), tighter on
    # v7x (64 MiB physical) so scratch + double-buffered I/O + weights keep headroom.
    budget = min(32 << 20, int(vmem_cap * 0.8) - _weight_bytes(cin, cp))
    budget = max(budget, 4 << 20)
    fits = [d for d in range(1, n + 1)
            if n % d == 0 and _step_bytes(d, h, w, cin, cp) <= budget]
    if not fits:
        # TODO(synk): spatial (H-row) tiling fallback when even NB=1 does not fit.
        return 1
    nb = max(fits)
    # Prefer an even grid length (v7x shards the "parallel" axis over 2 TensorCores),
    # but only while the MXU M-dim stays well fed (>= 512 rows per step).
    even = [d for d in fits if (n // d) % 2 == 0 and d * h * w >= 512]
    if even:
        nb = max(even)
    return nb


# ---------------------------------------------------------------------------
# Host-side wrappers
# ---------------------------------------------------------------------------
def prepare_params(params, lanes=_LANES):
    """One-time weight re-layout: pad Cout to a lane multiple, pack the 3 dx taps along
    the contraction axis ((dy, 3*C, Cp)), cast MXU operands to bf16."""
    w1, b1, w2, b2, wsc, bsc = (params[k] for k in ("w1", "b1", "w2", "b2", "wsc", "bsc"))
    cin, cout = w1.shape[2], w1.shape[3]
    cp = ((cout + lanes - 1) // lanes) * lanes

    def pad_last(a):
        return jnp.pad(a, [(0, 0)] * (a.ndim - 1) + [(0, cp - cout)])

    w1k = pad_last(w1).reshape(3, 3 * cin, cp).astype(jnp.bfloat16)
    w2k = jnp.pad(w2, ((0, 0), (0, 0), (0, cp - cout), (0, cp - cout))
                  ).reshape(3, 3 * cp, cp).astype(jnp.bfloat16)
    wsck = pad_last(wsc).astype(jnp.bfloat16)
    b1k, b2k, bsck = (pad_last(b).reshape(1, cp).astype(jnp.float32)
                      for b in (b1, b2, bsc))
    return dict(w1=w1k, b1=b1k, w2=w2k, b2=b2k, wsc=wsck, bsc=bsck)


def dis_block_padded(x_nhwc, prepped):
    """x_nhwc: (N, H, W, Cin) f32 -> (N, H//2, W//2, Cp) f32 with Cp = Cout padded to 128
    lanes (padded channels are exactly zero; slice them off lazily if needed)."""
    n, h, w, cin = x_nhwc.shape
    assert h % 2 == 0 and w % 2 == 0, "OptimizedDisBlock pooling assumes even H and W"
    cp = prepped["w2"].shape[-1]
    assert prepped["w1"].shape == (3, 3 * cin, cp)
    hh, wh = h // 2, w // 2

    vmem_cap = _vmem_capacity_bytes()
    nb = _pick_batch_block(n, h, w, cin, cp, vmem_cap)
    grid = (n // nb,)

    # scratch + double-buffered I/O blocks + weights + margin (no double counting).
    need = _step_bytes(nb, h, w, cin, cp) + _weight_bytes(cin, cp) + (2 << 20)
    vmem_limit = int(min(vmem_cap - (8 << 20), max(32 << 20, need)))

    return pl.pallas_call(
        _dis_block_kernel,
        out_shape=jax.ShapeDtypeStruct((n, hh, wh, cp), jnp.float32),
        grid_spec=pltpu.PrefetchScalarGridSpec(
            num_scalar_prefetch=0,
            grid=grid,
            in_specs=[
                pl.BlockSpec((nb, h, w, cin), lambda i: (i, 0, 0, 0)),
                pl.BlockSpec((3, 3 * cin, cp), lambda i: (0, 0, 0)),
                pl.BlockSpec((1, cp), lambda i: (0, 0)),
                pl.BlockSpec((3, 3 * cp, cp), lambda i: (0, 0, 0)),
                pl.BlockSpec((1, cp), lambda i: (0, 0)),
                pl.BlockSpec((cin, cp), lambda i: (0, 0)),
                pl.BlockSpec((1, cp), lambda i: (0, 0)),
            ],
            out_specs=pl.BlockSpec((nb, hh, wh, cp), lambda i: (i, 0, 0, 0)),
            scratch_shapes=[
                pltpu.VMEM((nb, h + 2, w, 3 * cin), jnp.bfloat16),  # dx-packed x staging
                pltpu.VMEM((nb, h + 2, w, 3 * cp), jnp.bfloat16),   # dx-packed h1 staging
            ],
        ),
        compiler_params=pltpu.CompilerParams(
            dimension_semantics=("parallel",),
            vmem_limit_bytes=vmem_limit,
        ),
    )(x_nhwc, prepped["w1"], prepped["b1"], prepped["w2"], prepped["b2"],
      prepped["wsc"], prepped["bsc"])


def optimized_dis_block(x_nhwc, params):
    """Convenience wrapper (per-call weight prep + compact-channel slice).  For repeated
    use, call prepare_params() once and keep the padded output from dis_block_padded()."""
    cout = params["b1"].shape[0]
    return dis_block_padded(x_nhwc, prepare_params(params))[..., :cout]


# ---------------------------------------------------------------------------
# Deterministic parameter init (PyTorch-Conv2d-style uniform bounds) + JAX reference
# ---------------------------------------------------------------------------
def init_params(key, cin, cout):
    ks = jax.random.split(key, 6)

    def u(k, shape, fan_in):
        b = 1.0 / float(np.sqrt(fan_in))
        return jax.random.uniform(k, shape, jnp.float32, -b, b)

    return dict(
        w1=u(ks[0], (3, 3, cin, cout), 9 * cin),   # HWIO
        b1=u(ks[1], (cout,), 9 * cin),
        w2=u(ks[2], (3, 3, cout, cout), 9 * cout),
        b2=u(ks[3], (cout,), 9 * cout),
        wsc=u(ks[4], (cin, cout), cin),            # 1x1 conv, stored (Cin, Cout)
        bsc=u(ks[5], (cout,), cin),
    )


def _avgpool2_ref(x):
    N, H, W, C = x.shape
    return x.reshape(N, H // 2, 2, W // 2, 2, C).mean(axis=(2, 4))


def reference_forward(x_nhwc, params):
    dn = ('NHWC', 'HWIO', 'NHWC')
    h = jax.lax.conv_general_dilated(x_nhwc, params["w1"], (1, 1), 'SAME',
                                     dimension_numbers=dn) + params["b1"]
    h = jnp.maximum(h, 0.0)
    h = jax.lax.conv_general_dilated(h, params["w2"], (1, 1), 'SAME',
                                     dimension_numbers=dn) + params["b2"]
    h = _avgpool2_ref(h)
    s = _avgpool2_ref(x_nhwc)
    cin, cout = params["wsc"].shape
    wsc4 = params["wsc"].reshape(1, 1, cin, cout)
    s = jax.lax.conv_general_dilated(s, wsc4, (1, 1), 'VALID',
                                     dimension_numbers=dn) + params["bsc"]
    return h + s


if __name__ == "__main__":
    N, Cin, Cout, H, W = 2, 4, 8, 16, 16
    key = jax.random.PRNGKey(0)
    kx, kp = jax.random.split(key)

    # PyTorch-style NCHW input, transposed to the kernel's NHWC layout.
    x_nchw = jax.random.normal(kx, (N, Cin, H, W), jnp.float32)
    x_nhwc = jnp.transpose(x_nchw, (0, 2, 3, 1))
    params = init_params(kp, Cin, Cout)

    prepped = prepare_params(params)                 # one-time weight re-layout
    fwd = jax.jit(dis_block_padded)
    out_padded = jax.block_until_ready(fwd(x_nhwc, prepped))
    out = out_padded[..., :Cout]                     # compact channels for the check

    ref = reference_forward(x_nhwc, params)
    if out.shape != (N, H // 2, W // 2, Cout):
        raise AssertionError(f"bad output shape {out.shape}")
    if not jnp.allclose(out, ref, atol=5e-2, rtol=5e-2):
        err = float(jnp.max(jnp.abs(out - ref)))
        raise AssertionError(f"Pallas kernel result does not match JAX reference (max err {err})")
    # padded channels must be exactly zero
    if Cout < out_padded.shape[-1] and float(jnp.max(jnp.abs(out_padded[..., Cout:]))) != 0.0:
        raise AssertionError("padded output channels are not zero")

    print("KERNEL_OK")
</pallas_src>

<mosaic_0001>
module attributes {stable_mosaic.version = 11 : i64} {
  func.func @_dis_block_kernel(%arg0: i32, %arg1: memref<2x16x16x4xf32, #tpu.memory_space<vmem>>, %arg2: memref<3x12x128xbf16, #tpu.memory_space<vmem>>, %arg3: memref<1x128xf32, #tpu.memory_space<vmem>>, %arg4: memref<3x384x128xbf16, #tpu.memory_space<vmem>>, %arg5: memref<1x128xf32, #tpu.memory_space<vmem>>, %arg6: memref<4x128xbf16, #tpu.memory_space<vmem>>, %arg7: memref<1x128xf32, #tpu.memory_space<vmem>>, %arg8: memref<2x8x8x128xf32, #tpu.memory_space<vmem>>, %arg9: memref<2x18x16x12xbf16, #tpu.memory_space<vmem>>, %arg10: memref<2x18x16x384xbf16, #tpu.memory_space<vmem>>) attributes {dimension_semantics = [#tpu.dimension_semantics<parallel>], iteration_bounds = array<i64: 1>, scalar_prefetch = 0 : i64, scratch_operands = 2 : i64, tpu.core_type = #tpu.core_type<tc>, window_params = [{transform_indices = @transform_0, window_bounds = array<i64: 2, 16, 16, 4>}, {pipeline_mode = #tpu.pipeline_mode<synchronous>, transform_indices = @transform_1, window_bounds = array<i64: 3, 12, 128>}, {pipeline_mode = #tpu.pipeline_mode<synchronous>, transform_indices = @transform_2, window_bounds = array<i64: 1, 128>}, {pipeline_mode = #tpu.pipeline_mode<synchronous>, transform_indices = @transform_3, window_bounds = array<i64: 3, 384, 128>}, {pipeline_mode = #tpu.pipeline_mode<synchronous>, transform_indices = @transform_4, window_bounds = array<i64: 1, 128>}, {pipeline_mode = #tpu.pipeline_mode<synchronous>, transform_indices = @transform_5, window_bounds = array<i64: 4, 128>}, {pipeline_mode = #tpu.pipeline_mode<synchronous>, transform_indices = @transform_6, window_bounds = array<i64: 1, 128>}, {transform_indices = @transform_7, window_bounds = array<i64: 2, 8, 8, 128>}]} {
    %cst = arith.constant 0.000000e+00 : bf16
    %0 = vector.broadcast %cst : bf16 to vector<2x1x16x12xbf16>
    %c0 = arith.constant 0 : index
    %c0_0 = arith.constant 0 : index
    %c0_1 = arith.constant 0 : index
    %c0_2 = arith.constant 0 : index
    %1 = vector.load %arg9[%c0, %c0_0, %c0_1, %c0_2] : memref<2x18x16x12xbf16, #tpu.memory_space<vmem>>, vector<2x1x16x12xbf16>
    tpu.vector_store %arg9[%c0, %c0_0, %c0_1, %c0_2], %0 {strides = array<i32>} : memref<2x18x16x12xbf16, #tpu.memory_space<vmem>>, vector<2x1x16x12xbf16>,
    %cst_3 = arith.constant 0.000000e+00 : bf16
    %2 = vector.broadcast %cst_3 : bf16 to vector<2x1x16x12xbf16>
    %c0_4 = arith.constant 0 : index
    %c17 = arith.constant 17 : index
    %c0_5 = arith.constant 0 : index
    %c0_6 = arith.constant 0 : index
    %3 = vector.load %arg9[%c0_4, %c17, %c0_5, %c0_6] : memref<2x18x16x12xbf16, #tpu.memory_space<vmem>>, vector<2x1x16x12xbf16>
    tpu.vector_store %arg9[%c0_4, %c17, %c0_5, %c0_6], %2 {strides = array<i32>} : memref<2x18x16x12xbf16, #tpu.memory_space<vmem>>, vector<2x1x16x12xbf16>,
    %cst_7 = arith.constant 0.000000e+00 : bf16
    %4 = vector.broadcast %cst_7 : bf16 to vector<2x1x16x384xbf16>
    %c0_8 = arith.constant 0 : index
    %c0_9 = arith.constant 0 : index
    %c0_10 = arith.constant 0 : index
    %c0_11 = arith.constant 0 : index
    %5 = vector.load %arg10[%c0_8, %c0_9, %c0_10, %c0_11] : memref<2x18x16x384xbf16, #tpu.memory_space<vmem>>, vector<2x1x16x384xbf16>
    tpu.vector_store %arg10[%c0_8, %c0_9, %c0_10, %c0_11], %4 {strides = array<i32>} : memref<2x18x16x384xbf16, #tpu.memory_space<vmem>>, vector<2x1x16x384xbf16>,
    %cst_12 = arith.constant 0.000000e+00 : bf16
    %6 = vector.broadcast %cst_12 : bf16 to vector<2x1x16x384xbf16>
    %c0_13 = arith.constant 0 : index
    %c17_14 = arith.constant 17 : index
    %c0_15 = arith.constant 0 : index
    %c0_16 = arith.constant 0 : index
    %7 = vector.load %arg10[%c0_13, %c17_14, %c0_15, %c0_16] : memref<2x18x16x384xbf16, #tpu.memory_space<vmem>>, vector<2x1x16x384xbf16>
    tpu.vector_store %arg10[%c0_13, %c17_14, %c0_15, %c0_16], %6 {strides = array<i32>} : memref<2x18x16x384xbf16, #tpu.memory_space<vmem>>, vector<2x1x16x384xbf16>,
    %c0_17 = arith.constant 0 : index
    %c0_18 = arith.constant 0 : index
    %c0_19 = arith.constant 0 : index
    %c0_20 = arith.constant 0 : index
    %8 = vector.load %arg1[%c0_17, %c0_18, %c0_19, %c0_20] : memref<2x16x16x4xf32, #tpu.memory_space<vmem>>, vector<2x16x16x4xf32>
    %c1_i32 = arith.constant 1 : i32
    %9 = tpu.dynamic_rotate %8 by %c1_i32 dim 2 : vector<2x16x16x4xf32>, i32 -> vector<2x16x16x4xf32>
    %10 = tpu.iota {dimensions = array<i32: 2>} : vector<2x16x16x4xi32>
    %c0_i32 = arith.constant 0 : i32
    %11 = vector.broadcast %c0_i32 : i32 to vector<2x16x16x4xi32>
    %12 = arith.cmpi eq, %10, %11 : vector<2x16x16x4xi32>
    %cst_21 = arith.constant 0.000000e+00 : f32
    %13 = vector.broadcast %cst_21 : f32 to vector<2x16x16x4xf32>
    %14 = arith.select %12, %13, %9 : vector<2x16x16x4xi1>, vector<2x16x16x4xf32>
    %c15_i32 = arith.constant 15 : i32
    %15 = tpu.dynamic_rotate %8 by %c15_i32 dim 2 : vector<2x16x16x4xf32>, i32 -> vector<2x16x16x4xf32>
    %16 = tpu.iota {dimensions = array<i32: 2>} : vector<2x16x16x4xi32>
    %c15_i32_22 = arith.constant 15 : i32
    %17 = vector.broadcast %c15_i32_22 : i32 to vector<2x16x16x4xi32>
    %18 = arith.cmpi eq, %16, %17 : vector<2x16x16x4xi32>
    %cst_23 = arith.constant 0.000000e+00 : f32
    %19 = vector.broadcast %cst_23 : f32 to vector<2x16x16x4xf32>
    %20 = arith.select %18, %19, %15 : vector<2x16x16x4xi1>, vector<2x16x16x4xf32>
    %21 = tpu.concatenate %14, %8, %20 in 3 : vector<2x16x16x4xf32>, vector<2x16x16x4xf32>, vector<2x16x16x4xf32> -> vector<2x16x16x12xf32>
    %22 = arith.truncf %21 : vector<2x16x16x12xf32> to vector<2x16x16x12xbf16>
    %c0_24 = arith.constant 0 : index
    %c1 = arith.constant 1 : index
    %c0_25 = arith.constant 0 : index
    %c0_26 = arith.constant 0 : index
    %23 = vector.load %arg9[%c0_24, %c1, %c0_25, %c0_26] : memref<2x18x16x12xbf16, #tpu.memory_space<vmem>>, vector<2x16x16x12xbf16>
    tpu.vector_store %arg9[%c0_24, %c1, %c0_25, %c0_26], %22 {strides = array<i32>} : memref<2x18x16x12xbf16, #tpu.memory_space<vmem>>, vector<2x16x16x12xbf16>,
    %cst_27 = arith.constant 0.000000e+00 : f32
    %24 = vector.broadcast %cst_27 : f32 to vector<512x128xf32>
    %c0_28 = arith.constant 0 : index
    %c0_29 = arith.constant 0 : index
    %c0_30 = arith.constant 0 : index
    %c0_31 = arith.constant 0 : index
    %25 = vector.load %arg9[%c0_28, %c0_29, %c0_30, %c0_31] : memref<2x18x16x12xbf16, #tpu.memory_space<vmem>>, vector<2x16x16x12xbf16>
    %26 = vector.shape_cast %25 : vector<2x16x16x12xbf16> to vector<512x12xbf16>
    %c0_32 = arith.constant 0 : index
    %c0_33 = arith.constant 0 : index
    %c0_34 = arith.constant 0 : index
    %27 = vector.load %arg2[%c0_32, %c0_33, %c0_34] : memref<3x12x128xbf16, #tpu.memory_space<vmem>>, vector<1x12x128xbf16>
    %28 = vector.shape_cast %27 : vector<1x12x128xbf16> to vector<12x128xbf16>
    %cst_35 = arith.constant dense<0.000000e+00> : vector<512x128xf32>
    %29 = tpu.matmul %26, %28, %cst_35 {dimension_numbers = #tpu.dot_dimension_numbers<[1], [0], [0], [1], [0, 0, 1, 1], [], []>} : vector<512x12xbf16>, vector<12x128xbf16>, vector<512x128xf32> -> vector<512x128xf32>
    %30 = arith.addf %24, %29 : vector<512x128xf32>
    %c0_36 = arith.constant 0 : index
    %c1_37 = arith.constant 1 : index
    %c0_38 = arith.constant 0 : index
    %c0_39 = arith.constant 0 : index
    %31 = vector.load %arg9[%c0_36, %c1_37, %c0_38, %c0_39] : memref<2x18x16x12xbf16, #tpu.memory_space<vmem>>, vector<2x16x16x12xbf16>
    %32 = vector.shape_cast %31 : vector<2x16x16x12xbf16> to vector<512x12xbf16>
    %c1_40 = arith.constant 1 : index
    %c0_41 = arith.constant 0 : index
    %c0_42 = arith.constant 0 : index
    %33 = vector.load %arg2[%c1_40, %c0_41, %c0_42] : memref<3x12x128xbf16, #tpu.memory_space<vmem>>, vector<1x12x128xbf16>
    %34 = vector.shape_cast %33 : vector<1x12x128xbf16> to vector<12x128xbf16>
    %cst_43 = arith.constant dense<0.000000e+00> : vector<512x128xf32>
    %35 = tpu.matmul %32, %34, %cst_43 {dimension_numbers = #tpu.dot_dimension_numbers<[1], [0], [0], [1], [0, 0, 1, 1], [], []>} : vector<512x12xbf16>, vector<12x128xbf16>, vector<512x128xf32> -> vector<512x128xf32>
    %36 = arith.addf %30, %35 : vector<512x128xf32>
    %c0_44 = arith.constant 0 : index
    %c2 = arith.constant 2 : index
    %c0_45 = arith.constant 0 : index
    %c0_46 = arith.constant 0 : index
    %37 = vector.load %arg9[%c0_44, %c2, %c0_45, %c0_46] : memref<2x18x16x12xbf16, #tpu.memory_space<vmem>>, vector<2x16x16x12xbf16>
    %38 = vector.shape_cast %37 : vector<2x16x16x12xbf16> to vector<512x12xbf16>
    %c2_47 = arith.constant 2 : index
    %c0_48 = arith.constant 0 : index
    %c0_49 = arith.constant 0 : index
    %39 = vector.load %arg2[%c2_47, %c0_48, %c0_49] : memref<3x12x128xbf16, #tpu.memory_space<vmem>>, vector<1x12x128xbf16>
    %40 = vector.shape_cast %39 : vector<1x12x128xbf16> to vector<12x128xbf16>
    %cst_50 = arith.constant dense<0.000000e+00> : vector<512x128xf32>
    %41 = tpu.matmul %38, %40, %cst_50 {dimension_numbers = #tpu.dot_dimension_numbers<[1], [0], [0], [1], [0, 0, 1, 1], [], []>} : vector<512x12xbf16>, vector<12x128xbf16>, vector<512x128xf32> -> vector<512x128xf32>
    %42 = arith.addf %36, %41 : vector<512x128xf32>
    %c0_51 = arith.constant 0 : index
    %c0_52 = arith.constant 0 : index
    %43 = vector.load %arg3[%c0_51, %c0_52] : memref<1x128xf32, #tpu.memory_space<vmem>>, vector<1x128xf32>
    %44 = vector.broadcast %43 : vector<1x128xf32> to vector<512x128xf32>
    %45 = arith.addf %42, %44 : vector<512x128xf32>
    %cst_53 = arith.constant 0.000000e+00 : f32
    %46 = vector.broadcast %cst_53 : f32 to vector<512x128xf32>
    %47 = arith.maximumf %45, %46 : vector<512x128xf32>
    %48 = vector.shape_cast %47 : vector<512x128xf32> to vector<2x16x16x128xf32>
    %c1_i32_54 = arith.constant 1 : i32
    %49 = tpu.dynamic_rotate %48 by %c1_i32_54 dim 2 : vector<2x16x16x128xf32>, i32 -> vector<2x16x16x128xf32>
    %50 = tpu.iota {dimensions = array<i32: 2>} : vector<2x16x16x128xi32>
    %c0_i32_55 = arith.constant 0 : i32
    %51 = vector.broadcast %c0_i32_55 : i32 to vector<2x16x16x128xi32>
    %52 = arith.cmpi eq, %50, %51 : vector<2x16x16x128xi32>
    %cst_56 = arith.constant 0.000000e+00 : f32
    %53 = vector.broadcast %cst_56 : f32 to vector<2x16x16x128xf32>
    %54 = arith.select %52, %53, %49 : vector<2x16x16x128xi1>, vector<2x16x16x128xf32>
    %c15_i32_57 = arith.constant 15 : i32
    %55 = tpu.dynamic_rotate %48 by %c15_i32_57 dim 2 : vector<2x16x16x128xf32>, i32 -> vector<2x16x16x128xf32>
    %56 = tpu.iota {dimensions = array<i32: 2>} : vector<2x16x16x128xi32>
    %c15_i32_58 = arith.constant 15 : i32
    %57 = vector.broadcast %c15_i32_58 : i32 to vector<2x16x16x128xi32>
    %58 = arith.cmpi eq, %56, %57 : vector<2x16x16x128xi32>
    %cst_59 = arith.constant 0.000000e+00 : f32
    %59 = vector.broadcast %cst_59 : f32 to vector<2x16x16x128xf32>
    %60 = arith.select %58, %59, %55 : vector<2x16x16x128xi1>, vector<2x16x16x128xf32>
    %61 = tpu.concatenate %54, %48, %60 in 3 : vector<2x16x16x128xf32>, vector<2x16x16x128xf32>, vector<2x16x16x128xf32> -> vector<2x16x16x384xf32>
    %62 = arith.truncf %61 : vector<2x16x16x384xf32> to vector<2x16x16x384xbf16>
    %c0_60 = arith.constant 0 : index
    %c1_61 = arith.constant 1 : index
    %c0_62 = arith.constant 0 : index
    %c0_63 = arith.constant 0 : index
    %63 = vector.load %arg10[%c0_60, %c1_61, %c0_62, %c0_63] : memref<2x18x16x384xbf16, #tpu.memory_space<vmem>>, vector<2x16x16x384xbf16>
    tpu.vector_store %arg10[%c0_60, %c1_61, %c0_62, %c0_63], %62 {strides = array<i32>} : memref<2x18x16x384xbf16, #tpu.memory_space<vmem>>, vector<2x16x16x384xbf16>,
    %cst_64 = arith.constant 0.000000e+00 : f32
    %64 = vector.broadcast %cst_64 : f32 to vector<512x128xf32>
    %c0_65 = arith.constant 0 : index
    %c0_66 = arith.constant 0 : index
    %c0_67 = arith.constant 0 : index
    %c0_68 = arith.constant 0 : index
    %65 = vector.load %arg10[%c0_65, %c0_66, %c0_67, %c0_68] : memref<2x18x16x384xbf16, #tpu.memory_space<vmem>>, vector<2x16x16x384xbf16>
    %66 = vector.shape_cast %65 : vector<2x16x16x384xbf16> to vector<512x384xbf16>
    %c0_69 = arith.constant 0 : index
    %c0_70 = arith.constant 0 : index
    %c0_71 = arith.constant 0 : index
    %67 = vector.load %arg4[%c0_69, %c0_70, %c0_71] : memref<3x384x128xbf16, #tpu.memory_space<vmem>>, vector<1x384x128xbf16>
    %68 = vector.shape_cast %67 : vector<1x384x128xbf16> to vector<384x128xbf16>
    %cst_72 = arith.constant dense<0.000000e+00> : vector<512x128xf32>
    %69 = tpu.matmul %66, %68, %cst_72 {dimension_numbers = #tpu.dot_dimension_numbers<[1], [0], [0], [1], [0, 0, 1, 1], [], []>} : vector<512x384xbf16>, vector<384x128xbf16>, vector<512x128xf32> -> vector<512x128xf32>
    %70 = arith.addf %64, %69 : vector<512x128xf32>
    %c0_73 = arith.constant 0 : index
    %c1_74 = arith.constant 1 : index
    %c0_75 = arith.constant 0 : index
    %c0_76 = arith.constant 0 : index
    %71 = vector.load %arg10[%c0_73, %c1_74, %c0_75, %c0_76] : memref<2x18x16x384xbf16, #tpu.memory_space<vmem>>, vector<2x16x16x384xbf16>
    %72 = vector.shape_cast %71 : vector<2x16x16x384xbf16> to vector<512x384xbf16>
    %c1_77 = arith.constant 1 : index
    %c0_78 = arith.constant 0 : index
    %c0_79 = arith.constant 0 : index
    %73 = vector.load %arg4[%c1_77, %c0_78, %c0_79] : memref<3x384x128xbf16, #tpu.memory_space<vmem>>, vector<1x384x128xbf16>
    %74 = vector.shape_cast %73 : vector<1x384x128xbf16> to vector<384x128xbf16>
    %cst_80 = arith.constant dense<0.000000e+00> : vector<512x128xf32>
    %75 = tpu.matmul %72, %74, %cst_80 {dimension_numbers = #tpu.dot_dimension_numbers<[1], [0], [0], [1], [0, 0, 1, 1], [], []>} : vector<512x384xbf16>, vector<384x128xbf16>, vector<512x128xf32> -> vector<512x128xf32>
    %76 = arith.addf %70, %75 : vector<512x128xf32>
    %c0_81 = arith.constant 0 : index
    %c2_82 = arith.constant 2 : index
    %c0_83 = arith.constant 0 : index
    %c0_84 = arith.constant 0 : index
    %77 = vector.load %arg10[%c0_81, %c2_82, %c0_83, %c0_84] : memref<2x18x16x384xbf16, #tpu.memory_space<vmem>>, vector<2x16x16x384xbf16>
    %78 = vector.shape_cast %77 : vector<2x16x16x384xbf16> to vector<512x384xbf16>
    %c2_85 = arith.constant 2 : index
    %c0_86 = arith.constant 0 : index
    %c0_87 = arith.constant 0 : index
    %79 = vector.load %arg4[%c2_85, %c0_86, %c0_87] : memref<3x384x128xbf16, #tpu.memory_space<vmem>>, vector<1x384x128xbf16>
    %80 = vector.shape_cast %79 : vector<1x384x128xbf16> to vector<384x128xbf16>
    %cst_88 = arith.constant dense<0.000000e+00> : vector<512x128xf32>
    %81 = tpu.matmul %78, %80, %cst_88 {dimension_numbers = #tpu.dot_dimension_numbers<[1], [0], [0], [1], [0, 0, 1, 1], [], []>} : vector<512x384xbf16>, vector<384x128xbf16>, vector<512x128xf32> -> vector<512x128xf32>
    %82 = arith.addf %76, %81 : vector<512x128xf32>
    %c0_89 = arith.constant 0 : index
    %c0_90 = arith.constant 0 : index
    %83 = vector.load %arg5[%c0_89, %c0_90] : memref<1x128xf32, #tpu.memory_space<vmem>>, vector<1x128xf32>
    %84 = vector.broadcast %83 : vector<1x128xf32> to vector<512x128xf32>
    %85 = arith.addf %82, %84 : vector<512x128xf32>
    %86 = vector.shape_cast %85 : vector<512x128xf32> to vector<2x16x16x128xf32>
    %87 = vector.shape_cast %86 : vector<2x16x16x128xf32> to vector<2x8x2x16x128xf32>
    %88 = vector.extract_strided_slice %87 {offsets = [0, 0, 0, 0, 0], sizes = [2, 8, 1, 16, 128], strides = [1, 1, 1, 1, 1]} : vector<2x8x2x16x128xf32> to vector<2x8x1x16x128xf32>
    %89 = vector.shape_cast %88 : vector<2x8x1x16x128xf32> to vector<2x8x16x128xf32>
    %90 = vector.extract_strided_slice %87 {offsets = [0, 0, 1, 0, 0], sizes = [2, 8, 1, 16, 128], strides = [1, 1, 1, 1, 1]} : vector<2x8x2x16x128xf32> to vector<2x8x1x16x128xf32>
    %91 = vector.shape_cast %90 : vector<2x8x1x16x128xf32> to vector<2x8x16x128xf32>
    %92 = arith.addf %89, %91 : vector<2x8x16x128xf32>
    %93 = vector.shape_cast %92 : vector<2x8x16x128xf32> to vector<2x8x8x2x128xf32>
    %94 = vector.extract_strided_slice %93 {offsets = [0, 0, 0, 0, 0], sizes = [2, 8, 8, 1, 128], strides = [1, 1, 1, 1, 1]} : vector<2x8x8x2x128xf32> to vector<2x8x8x1x128xf32>
    %95 = vector.shape_cast %94 : vector<2x8x8x1x128xf32> to vector<2x8x8x128xf32>
    %96 = vector.extract_strided_slice %93 {offsets = [0, 0, 0, 1, 0], sizes = [2, 8, 8, 1, 128], strides = [1, 1, 1, 1, 1]} : vector<2x8x8x2x128xf32> to vector<2x8x8x1x128xf32>
    %97 = vector.shape_cast %96 : vector<2x8x8x1x128xf32> to vector<2x8x8x128xf32>
    %98 = arith.addf %95, %97 : vector<2x8x8x128xf32>
    %cst_91 = arith.constant 2.500000e-01 : f32
    %99 = vector.broadcast %cst_91 : f32 to vector<2x8x8x128xf32>
    %100 = arith.mulf %98, %99 : vector<2x8x8x128xf32>
    %101 = vector.shape_cast %8 : vector<2x16x16x4xf32> to vector<2x8x2x16x4xf32>
    %102 = vector.extract_strided_slice %101 {offsets = [0, 0, 0, 0, 0], sizes = [2, 8, 1, 16, 4], strides = [1, 1, 1, 1, 1]} : vector<2x8x2x16x4xf32> to vector<2x8x1x16x4xf32>
    %103 = vector.shape_cast %102 : vector<2x8x1x16x4xf32> to vector<2x8x16x4xf32>
    %104 = vector.extract_strided_slice %101 {offsets = [0, 0, 1, 0, 0], sizes = [2, 8, 1, 16, 4], strides = [1, 1, 1, 1, 1]} : vector<2x8x2x16x4xf32> to vector<2x8x1x16x4xf32>
    %105 = vector.shape_cast %104 : vector<2x8x1x16x4xf32> to vector<2x8x16x4xf32>
    %106 = arith.addf %103, %105 : vector<2x8x16x4xf32>
    %107 = vector.shape_cast %106 : vector<2x8x16x4xf32> to vector<2x8x8x2x4xf32>
    %108 = vector.extract_strided_slice %107 {offsets = [0, 0, 0, 0, 0], sizes = [2, 8, 8, 1, 4], strides = [1, 1, 1, 1, 1]} : vector<2x8x8x2x4xf32> to vector<2x8x8x1x4xf32>
    %109 = vector.shape_cast %108 : vector<2x8x8x1x4xf32> to vector<2x8x8x4xf32>
    %110 = vector.extract_strided_slice %107 {offsets = [0, 0, 0, 1, 0], sizes = [2, 8, 8, 1, 4], strides = [1, 1, 1, 1, 1]} : vector<2x8x8x2x4xf32> to vector<2x8x8x1x4xf32>
    %111 = vector.shape_cast %110 : vector<2x8x8x1x4xf32> to vector<2x8x8x4xf32>
    %112 = arith.addf %109, %111 : vector<2x8x8x4xf32>
    %cst_92 = arith.constant 2.500000e-01 : f32
    %113 = vector.broadcast %cst_92 : f32 to vector<2x8x8x4xf32>
    %114 = arith.mulf %112, %113 : vector<2x8x8x4xf32>
    %115 = vector.shape_cast %114 : vector<2x8x8x4xf32> to vector<128x4xf32>
    %116 = arith.truncf %115 : vector<128x4xf32> to vector<128x4xbf16>
    %c0_93 = arith.constant 0 : index
    %c0_94 = arith.constant 0 : index
    %117 = vector.load %arg6[%c0_93, %c0_94] : memref<4x128xbf16, #tpu.memory_space<vmem>>, vector<4x128xbf16>
    %cst_95 = arith.constant dense<0.000000e+00> : vector<128x128xf32>
    %118 = tpu.matmul %116, %117, %cst_95 {dimension_numbers = #tpu.dot_dimension_numbers<[1], [0], [0], [1], [0, 0, 1, 1], [], []>} : vector<128x4xbf16>, vector<4x128xbf16>, vector<128x128xf32> -> vector<128x128xf32>
    %c0_96 = arith.constant 0 : index
    %c0_97 = arith.constant 0 : index
    %119 = vector.load %arg7[%c0_96, %c0_97] : memref<1x128xf32, #tpu.memory_space<vmem>>, vector<1x128xf32>
    %120 = vector.broadcast %119 : vector<1x128xf32> to vector<128x128xf32>
    %121 = arith.addf %118, %120 : vector<128x128xf32>
    %122 = vector.shape_cast %121 : vector<128x128xf32> to vector<2x8x8x128xf32>
    %123 = arith.addf %100, %122 : vector<2x8x8x128xf32>
    %c0_98 = arith.constant 0 : index
    %c0_99 = arith.constant 0 : index
    %c0_100 = arith.constant 0 : index
    %c0_101 = arith.constant 0 : index
    %124 = vector.load %arg8[%c0_98, %c0_99, %c0_100, %c0_101] : memref<2x8x8x128xf32, #tpu.memory_space<vmem>>, vector<2x8x8x128xf32>
    tpu.vector_store %arg8[%c0_98, %c0_99, %c0_100, %c0_101], %123 {strides = array<i32>} : memref<2x8x8x128xf32, #tpu.memory_space<vmem>>, vector<2x8x8x128xf32>,
    return
  }
  func.func @transform_0(%arg0: i32) -> (i32, i32, i32, i32) {
    %c0_i32 = arith.constant 0 : i32
    %c0_i32_0 = arith.constant 0 : i32
    %c0_i32_1 = arith.constant 0 : i32
    %c0_i32_2 = arith.constant 0 : i32
    return %arg0, %c0_i32, %c0_i32_0, %c0_i32_1 : i32, i32, i32, i32
  }
  func.func @transform_1(%arg0: i32) -> (i32, i32, i32) {
    %c0_i32 = arith.constant 0 : i32
    %c0_i32_0 = arith.constant 0 : i32
    %c0_i32_1 = arith.constant 0 : i32
    %c0_i32_2 = arith.constant 0 : i32
    return %c0_i32, %c0_i32_0, %c0_i32_1 : i32, i32, i32
  }
  func.func @transform_2(%arg0: i32) -> (i32, i32) {
    %c0_i32 = arith.constant 0 : i32
    %c0_i32_0 = arith.constant 0 : i32
    %c0_i32_1 = arith.constant 0 : i32
    return %c0_i32, %c0_i32_0 : i32, i32
  }
  func.func @transform_3(%arg0: i32) -> (i32, i32, i32) {
    %c0_i32 = arith.constant 0 : i32
    %c0_i32_0 = arith.constant 0 : i32
    %c0_i32_1 = arith.constant 0 : i32
    %c0_i32_2 = arith.constant 0 : i32
    return %c0_i32, %c0_i32_0, %c0_i32_1 : i32, i32, i32
  }
  func.func @transform_4(%arg0: i32) -> (i32, i32) {
    %c0_i32 = arith.constant 0 : i32
    %c0_i32_0 = arith.constant 0 : i32
    %c0_i32_1 = arith.constant 0 : i32
    return %c0_i32, %c0_i32_0 : i32, i32
  }
  func.func @transform_5(%arg0: i32) -> (i32, i32) {
    %c0_i32 = arith.constant 0 : i32
    %c0_i32_0 = arith.constant 0 : i32
    %c0_i32_1 = arith.constant 0 : i32
    return %c0_i32, %c0_i32_0 : i32, i32
  }
  func.func @transform_6(%arg0: i32) -> (i32, i32) {
    %c0_i32 = arith.constant 0 : i32
    %c0_i32_0 = arith.constant 0 : i32
    %c0_i32_1 = arith.constant 0 : i32
    return %c0_i32, %c0_i32_0 : i32, i32
  }
  func.func @transform_7(%arg0: i32) -> (i32, i32, i32, i32) {
    %c0_i32 = arith.constant 0 : i32
    %c0_i32_0 = arith.constant 0 : i32
    %c0_i32_1 = arith.constant 0 : i32
    %c0_i32_2 = arith.constant 0 : i32
    return %arg0, %c0_i32, %c0_i32_0, %c0_i32_1 : i32, i32, i32, i32
  }
}

</mosaic_0001>

<bundles_post_ra>
// kernel: dis_block_padded.1
= control target key start
LH: loop header
LB: loop body
LE: loop exit
PB: predicated region body
PF: predicated region fallthrough
CT: control target
= control target key end

     0   :  { %v175_v3 = vlaneseq  ;;  %s13467_s9 = smov 4   ;;  %s13468_s16 = smov 8   ;;  %v13469_v44 = vmov 1983009808   ;;  %vm9153_vm2 = vcmask 1041409   ;;  %vm9156_vm3 = vcmask 1042434   ;;  %s19388_s0 = inlined_call_operand.vmem [shape: f32[2,16,16,4], index: 0, kind: input, shape index: {}]   ;;  %s19389_s1 = inlined_call_operand.vmem [shape: bf16[3,12,128], index: 1, kind: input, shape index: {}]   ;;  %s19390_s2 = inlined_call_operand.vmem [shape: f32[1,128], index: 2, kind: input, shape index: {}]   ;;  %s19391_s3 = inlined_call_operand.vmem [shape: bf16[3,384,128], index: 3, kind: input, shape index: {}]   ;;  %s19392_s4 = inlined_call_operand.vmem [shape: f32[1,128], index: 4, kind: input, shape index: {}]   ;;  %s19393_s5 = inlined_call_operand.vmem [shape: bf16[4,128], index: 5, kind: input, shape index: {}]   ;;  %s19394_s6 = inlined_call_operand.vmem [shape: f32[1,128], index: 6, kind: input, shape index: {}]   ;;  %s19395_s7 = inlined_call_operand.hbm [shape: f32[2,8,8,128], index: 7, kind: output, shape index: {}]  }
   0x1   :  { %v47_v0 = vld [vmem:[%s19388_s0] sm:$0xff]  ;;  %v48_v1 = vld [vmem:[%s19388_s0 + $0x8] sm:$0xff]  ;;  %v49_v2 = vld [vmem:[%s19388_s0 + $0x10] sm:$0xff]  ;;  %v6074_v45 = vunpack.c.l.s4 %v13469_v44  ;;  %vm9159_vm4 = vcmask 1043459   ;;  %vm9162_vm5 = vcmask 1044484   ;;  %vm9165_vm6 = vcmask 1045509  }
   0x2   :  { %v13021_v4 = vpack.i.bf16 %v48_v1, %v47_v0  ;;  %v50_v5 = vld [vmem:[%s19388_s0 + $0x18] sm:$0xff]  ;;  %v13526_v6 = vshrl.u32 %v175_v3, 7  ;;  %v13531_v9 = vadd.f32 %v49_v2, %v47_v0  ;;  %v309_v10 = vrot.slane %v47_v0, 1  ;;  %v51_v13 = vld [vmem:[%s19388_s0 + $0x20] sm:$0xff]  ;;  %v52_v14 = vld [vmem:[%s19388_s0 + $0x28] sm:$0xff] }
   0x3   :  { %v13026_v7 = vpack.i.bf16 %v50_v5, %v49_v2  ;;  %v13529_v8 = vadd.f32 %v50_v5, %v48_v1  ;;  %v341_v12 = vrot.slane %v48_v1, 1  ;;  %v13031_v18 = vpack.i.bf16 %v52_v14, %v51_v13  ;;  %v53_v22 = vld [vmem:[%s19388_s0 + $0x30] sm:$0xff]  ;;  %v54_v26 = vld [vmem:[%s19388_s0 + $0x38] sm:$0xff]  ;;  %v55_v34 = vld [vmem:[%s19388_s0 + $0x40] sm:$0xff] }
   0x4   :  { %19648 = vst [vmem:[#allocation7_spill] sm:$0xff] %v13526_v6  ;;  %13022 = vrot.lane.b32.xlu0 %v13021_v4, %s13467_s9  ;;  %19650 = vst [vmem:[#allocation9_spill] sm:$0xff] %v13531_v9  ;;  %v13534_v11 = vadd.s32 8, %v13526_v6  ;;  %vm373_vm0 = vcmp.lt.s32.totalorder %v13526_v6, 7  ;;  %v310_v19 = vrot.slane %v49_v2, 1  ;;  %v342_v21 = vrot.slane %v50_v5, 1 }
   0x5   :  { %19649 = vst [vmem:[#allocation8_spill] sm:$0xff] %v13529_v8  ;;  %v406_v15 = vsel %vm373_vm0, %v341_v12, %v309_v10  ;;  %v374_v16 = vsel %vm373_vm0, %v309_v10, %v341_v12  ;;  %v311_v28 = vrot.slane %v51_v13, 1  ;;  %v343_v29 = vrot.slane %v52_v14, 1  ;;  %v56_v35 = vld [vmem:[%s19388_s0 + $0x48] sm:$0xff]  ;;  %v57_v54 = vld [vmem:[%s19388_s0 + $0x50] sm:$0xff]  ;;  %v58_v55 = vld [vmem:[%s19388_s0 + $0x58] sm:$0xff] }
   0x6   :  { %vm439_vm1 = vcmp.eq.s32.totalorder %v13534_v11, 15  ;;  %v375_v23 = vsel %vm373_vm0, %v310_v19, %v342_v21  ;;  %v407_v24 = vsel %vm373_vm0, %v342_v21, %v310_v19  ;;  %v13046_v30 = vpack.i.bf16 %v54_v26, %v53_v22  ;;  %v13607_v57 = vld [vmem:[%s19388_s0 + $0x60] sm:$0xff]  ;;  %v13615_v59 = vld [vmem:[%s19388_s0 + $0x68] sm:$0xff] }
   0x7   :  { %v441_v17 = vsel %vm439_vm1, 0.0, %v406_v15  ;;  %v443_v25 = vsel %vm439_vm1, 0.0, %v407_v24  ;;  %v376_v31 = vsel %vm373_vm0, %v311_v28, %v343_v29  ;;  %v408_v32 = vsel %vm373_vm0, %v343_v29, %v311_v28 }
   0x8   :  { %13027 = vrot.lane.b32.xlu0 %v13026_v7, %s13467_s9  ;;  %v13036_v20 = vpack.i.bf16 %v441_v17, %v374_v16  ;;  %v13041_v27 = vpack.i.bf16 %v443_v25, %v375_v23  ;;  %v445_v33 = vsel %vm439_vm1, 0.0, %v408_v32  ;;  %v13578_v37 = vadd.f32 %v53_v22, %v51_v13 }
   0x9   :  { %v13051_v36 = vpack.i.bf16 %v445_v33, %v376_v31  ;;  %v13580_v38 = vadd.f32 %v54_v26, %v52_v14  ;;  %v13061_v39 = vpack.i.bf16 %v56_v35, %v55_v34  ;;  %v312_v40 = vrot.slane %v53_v22, 1 }
   0xa   :  { %13037 = vrot.lane.b32.xlu1 %v13036_v20, %s13468_s16  ;;  %19651 = vst [vmem:[#allocation10_spill] sm:$0xff] %v13578_v37  ;;  %v344_v41 = vrot.slane %v54_v26, 1  ;;  %v313_v43 = vrot.slane %v55_v34, 1  ;;  %v345_v48 = vrot.slane %v56_v35, 1  ;;  %v6075_v51 = vunpack.c.0.s8 %v6074_v45 }
   0xb   :  { %19652 = vst [vmem:[#allocation11_spill] sm:$0xff] %v13580_v38  ;;  %v13066_v60 = vpack.i.bf16 %v58_v55, %v57_v54  ;;  %v7388_v61 = vadd.f32 %v57_v54, %v55_v34  ;;  %v7389_v62 = vadd.f32 %v58_v55, %v56_v35  ;;  %v13081_v63 = vpack.i.bf16 %v13615_v59, %v13607_v57 }
   0xc   :  { %13032 = vrot.lane.b32.xlu0 %v13031_v18, %s13467_s9  ;;  %v409_v42 = vsel %vm373_vm0, %v344_v41, %v312_v40  ;;  %v377_v46 = vsel %vm373_vm0, %v312_v40, %v344_v41  ;;  %v410_v50 = vsel %vm373_vm0, %v345_v48, %v313_v43  ;;  %v378_v52 = vsel %vm373_vm0, %v313_v43, %v345_v48 }
   0xd   :  { %v447_v47 = vsel %vm439_vm1, 0.0, %v409_v42  ;;  %v449_v53 = vsel %vm439_vm1, 0.0, %v410_v50  ;;  %v13610_v58 = vsub.s32 %v6075_v51, %v13526_v6  ;;  %v314_v0 = vrot.slane %v57_v54, 1 }
   0xe   :  { %13042 = vrot.lane.b32.xlu1 %v13041_v27, %s13468_s16  ;;  %v13056_v49 = vpack.i.bf16 %v447_v47, %v377_v46  ;;  %v13071_v56 = vpack.i.bf16 %v449_v53, %v378_v52  ;;  %v7516_v1 = vcombine.high %v7388_v61, %v7388_v61  ;;  %v7533_v3 = vcombine.high %v7389_v62, %v7389_v62 }
   0xf   :  { %19653 = vst [vmem:[#allocation12_spill] sm:$0xff] %v13610_v58  ;;  %v7523_v2 = vrot.slane %v7388_v61, %v13610_v58  ;;  %v7540_v4 = vrot.slane %v7389_v62, %v13610_v58  ;;  %v346_v5 = vrot.slane %v58_v55, 1  ;;  %v315_v7 = vrot.slane %v13607_v57, 1 }
  0x10   :  { %13052 = vrot.lane.b32.xlu0 %v13051_v36, %s13468_s16  ;;  %v347_v10 = vrot.slane %v13615_v59, 1  ;;  %v7530_v12 = vrot.slane %v7516_v1, %v13610_v58  ;;  %v7547_v14 = vrot.slane %v7533_v3, %v13610_v58  ;;  %vm9168_vm7 = vcmask 1046534   ;;  %v13644_v1 = vld [vmem:[%s19388_s0 + $0x78] sm:$0xff] }
  0x11   :  { %v7531_v13 = vcombine.high %v7523_v2, %v7523_v2  ;;  %v7548_v15 = vcombine.high %v7540_v4, %v7540_v4  ;;  %v11341_v16 = vrot.slane %v7523_v2, 9  ;;  %v11345_v17 = vrot.slane %v7540_v4, 9 }
  0x12   :  { %13047 = vrot.lane.b32.xlu1 %v13046_v30, %s13467_s9  ;;  %v13630_v18 = vsel %vm373_vm0, %v314_v0, %v346_v5  ;;  %v411_v19 = vsel %vm373_vm0, %v346_v5, %v314_v0  ;;  %v7532_v20 = vcombine.high %v7530_v12, %v7530_v12  ;;  %v7549_v21 = vcombine.high %v7547_v14, %v7547_v14  ;;  %v13639_v0 = vld [vmem:[%s19388_s0 + $0x70] sm:$0xff] }
  0x13   :  { %v11342_v22 = vrot.slane %v7531_v13, 9  ;;  %v11343_v23 = vrot.slane %v7530_v12, 9  ;;  %v11346_v24 = vrot.slane %v7548_v15, 9  ;;  %v11347_v25 = vrot.slane %v7547_v14, 9 }
  0x14   :  { %13062 = vrot.lane.b32.xlu0 %v13061_v39, %s13467_s9  ;;  %v8520_v26 = vadd.f32 %v11341_v16, %v7523_v2  ;;  %v8524_v27 = vadd.f32 %v11345_v17, %v7540_v4  ;;  %v11344_v28 = vrot.slane %v7532_v20, 9  ;;  %v11348_v29 = vrot.slane %v7549_v21, 9 }
  0x15   :  { %v8521_v30 = vadd.f32 %v11342_v22, %v7531_v13  ;;  %v8522_v31 = vadd.f32 %v11343_v23, %v7530_v12  ;;  %v8525_v32 = vadd.f32 %v11346_v24, %v7548_v15  ;;  %v8526_v33 = vadd.f32 %v11347_v25, %v7547_v14  ;;  %v13649_v12 = vld [vmem:[%s19388_s0 + $0x80] sm:$0xff]  ;;  %v13654_v13 = vld [vmem:[%s19388_s0 + $0x88] sm:$0xff] }
  0x16   :  { %13057 = vrot.lane.b32.xlu1 %v13056_v49, %s13468_s16  ;;  %v8648_v34 = vmul.f32 0.25, %v8520_v26  ;;  %v8652_v35 = vmul.f32 0.25, %v8524_v27  ;;  %v8523_v36 = vadd.f32 %v11344_v28, %v7532_v20  ;;  %v8527_v39 = vadd.f32 %v11348_v29, %v7549_v21 }
  0x17   :  { %v8649_v40 = vmul.f32 0.25, %v8521_v30  ;;  %v8650_v41 = vmul.f32 0.25, %v8522_v31  ;;  %v8653_v42 = vmul.f32 0.25, %v8525_v32  ;;  %v8654_v43 = vmul.f32 0.25, %v8526_v33 }
  0x18   :  { %13072 = vrot.lane.b32.xlu0 %v13071_v56, %s13468_s16  ;;  %v8776_v44 = vpack.c.bf16 %v8648_v34, %v8648_v34  ;;  %v8780_v45 = vpack.c.bf16 %v8652_v35, %v8652_v35  ;;  %v8651_v46 = vmul.f32 0.25, %v8523_v36  ;;  %v8655_v47 = vmul.f32 0.25, %v8527_v39 }
  0x19   :  { %v8777_v48 = vpack.c.bf16 %v8649_v40, %v8649_v40  ;;  %v8778_v49 = vpack.c.bf16 %v8650_v41, %v8650_v41  ;;  %v8781_v50 = vpack.c.bf16 %v8653_v42, %v8653_v42  ;;  %v8782_v51 = vpack.c.bf16 %v8654_v43, %v8654_v43 }
  0x1a   :  { %13067 = vrot.lane.b32.xlu1 %v13066_v60, %s13467_s9  ;;  %v9040_v52 = vunpack.c.l.b16 %v8776_v44  ;;  %v9044_v53 = vunpack.c.l.b16 %v8780_v45  ;;  %v8779_v54 = vpack.c.bf16 %v8651_v46, %v8651_v46  ;;  %v8783_v55 = vpack.c.bf16 %v8655_v47, %v8655_v47 }
  0x1b   :  { %v9041_v56 = vunpack.c.l.b16 %v8777_v48  ;;  %v9042_v60 = vunpack.c.l.b16 %v8778_v49  ;;  %v9045_v61 = vunpack.c.l.b16 %v8781_v50  ;;  %v9046_v62 = vunpack.c.l.b16 %v8782_v51 }
  0x1c   :  { %13082 = vrot.lane.b32.xlu0 %v13081_v63, %s13467_s9  ;;  %v451_v63 = vsel %vm439_vm1, 0.0, %v411_v19  ;;  %v9043_v2 = vunpack.c.l.b16 %v8779_v54  ;;  %v9047_v3 = vunpack.c.l.b16 %v8783_v55  ;;  %v9193_v14 = vrot.slane %v9044_v53, 4 }
  0x1d   :  { %v9187_v4 = vrot.slane %v9041_v56, 7  ;;  %v9189_v5 = vrot.slane %v9042_v60, 6  ;;  %v9195_v15 = vrot.slane %v9045_v61, 3  ;;  %v13076_v16 = vpack.i.bf16 %v451_v63, %v13630_v18 }
  0x1e   :  { %v380_v17 = vsel %vm373_vm0, %v315_v7, %v347_v10  ;;  %v9191_v20 = vrot.slane %v9043_v2, 5  ;;  %v9197_v21 = vrot.slane %v9046_v62, 2  ;;  %v412_v22 = vsel %vm373_vm0, %v347_v10, %v315_v7 }
  0x1f   :  { %v9188_v19 = vsel %vm9153_vm2, %v9187_v4, %v9040_v52  ;;  %v9199_v23 = vrot.slane %v9047_v3, 1  ;;  %13077 = vrot.lane.b32.xlu1 %v13076_v16, %s13468_s16  ;;  %v453_v24 = vsel %vm439_vm1, 0.0, %v412_v22  ;;  %v13086_v25 = vpack.i.bf16 %v13644_v1, %v13639_v0 }
  0x20   :  { %v9190_v18 = vsel %vm9156_vm3, %v9189_v5, %v9188_v19  ;;  %v13091_v27 = vpack.i.bf16 %v453_v24, %v380_v17  ;;  %v7390_v28 = vadd.f32 %v13639_v0, %v13607_v57  ;;  %v7391_v7 = vadd.f32 %v13644_v1, %v13615_v59 }
  0x21   :  { %v9192_v26 = vsel %vm9159_vm4, %v9191_v20, %v9190_v18  ;;  %vm9171_vm8 = vcmask 1047559   ;;  %v13101_v29 = vpack.i.bf16 %v13654_v13, %v13649_v12  ;;  %v316_v59 = vrot.slane %v13639_v0, 1 }
  0x22   :  { %v9194_v10 = vsel %vm9162_vm5, %v9193_v14, %v9192_v26  ;;  %13092 = vrot.lane.b32.xlu0 %v13091_v27, %s13468_s16  ;;  %v7550_v31 = vcombine.high %v7390_v28, %v7390_v28  ;;  %v7557_v32 = vrot.slane %v7390_v28, %v13610_v58  ;;  %v7567_v33 = vcombine.high %v7391_v7, %v7391_v7 }
  0x23   :  { %v9196_v30 = vsel %vm9165_vm6, %v9195_v15, %v9194_v10  ;;  %v7574_v57 = vrot.slane %v7391_v7, %v13610_v58  ;;  %13087 = vrot.lane.b32.xlu1 %v13086_v25, %s13467_s9  ;;  %v348_v35 = vrot.slane %v13644_v1, 1 }
  0x24   :  { %v9198_v34 = vsel %vm9168_vm7, %v9197_v21, %v9196_v30  ;;  %v7564_v39 = vrot.slane %v7550_v31, %v13610_v58  ;;  %v7565_v40 = vcombine.high %v7557_v32, %v7557_v32  ;;  %v7581_v41 = vrot.slane %v7567_v33, %v13610_v58  ;;  %v65_v30 = vld [vmem:[%s19388_s0 + $0x90] sm:$0xff]  ;;  %v66_v31 = vld [vmem:[%s19388_s0 + $0x98] sm:$0xff] }
  0x25   :  { %v13693_v36 = vsel %vm9171_vm8, %v9199_v23, %v9198_v34  ;;  %v7582_v42 = vcombine.high %v7574_v57, %v7574_v57  ;;  %v11349_v43 = vrot.slane %v7557_v32, 9  ;;  %v11353_v44 = vrot.slane %v7574_v57, 9 }
  0x26   :  { %19654 = vst [vmem:[#allocation13_spill] sm:$0xff] %v13693_v36  ;;  %v7566_v45 = vcombine.high %v7564_v39, %v7564_v39  ;;  %v7583_v46 = vcombine.high %v7581_v41, %v7581_v41  ;;  %v11350_v47 = vrot.slane %v7565_v40, 9  ;;  %v11351_v48 = vrot.slane %v7564_v39, 9  ;;  %13102 = vrot.lane.b32.xlu0 %v13101_v29, %s13467_s9 }
  0x27   :  { %v11354_v49 = vrot.slane %v7582_v42, 9  ;;  %v11355_v50 = vrot.slane %v7581_v41, 9  ;;  %v8528_v51 = vadd.f32 %v11349_v43, %v7557_v32  ;;  %v8532_v52 = vadd.f32 %v11353_v44, %v7574_v57 }
  0x28   :  { %v11352_v53 = vrot.slane %v7566_v45, 9  ;;  %v11356_v54 = vrot.slane %v7583_v46, 9  ;;  %v8529_v55 = vadd.f32 %v11350_v47, %v7565_v40  ;;  %v8530_v56 = vadd.f32 %v11351_v48, %v7564_v39 }
  0x29   :  { %v8533_v60 = vadd.f32 %v11354_v49, %v7582_v42  ;;  %v8534_v61 = vadd.f32 %v11355_v50, %v7581_v41  ;;  %v8656_v62 = vmul.f32 0.25, %v8528_v51  ;;  %v8660_v63 = vmul.f32 0.25, %v8532_v52 }
  0x2a   :  { %v8531_v0 = vadd.f32 %v11352_v53, %v7566_v45  ;;  %v8535_v1 = vadd.f32 %v11356_v54, %v7583_v46  ;;  %v8657_v2 = vmul.f32 0.25, %v8529_v55  ;;  %v8658_v3 = vmul.f32 0.25, %v8530_v56 }
  0x2b   :  { %v8661_v4 = vmul.f32 0.25, %v8533_v60  ;;  %v8662_v5 = vmul.f32 0.25, %v8534_v61  ;;  %v8784_v14 = vpack.c.bf16 %v8656_v62, %v8656_v62  ;;  %v8788_v15 = vpack.c.bf16 %v8660_v63, %v8660_v63  ;;  %v68_v62 = vld [vmem:[%s19388_s0 + $0xa8] sm:$0xff] }
  0x2c   :  { %v8659_v16 = vmul.f32 0.25, %v8531_v0  ;;  %v8663_v17 = vmul.f32 0.25, %v8535_v1  ;;  %v8785_v19 = vpack.c.bf16 %v8657_v2, %v8657_v2  ;;  %v8786_v20 = vpack.c.bf16 %v8658_v3, %v8658_v3 }
  0x2d   :  { %v8789_v21 = vpack.c.bf16 %v8661_v4, %v8661_v4  ;;  %v8790_v22 = vpack.c.bf16 %v8662_v5, %v8662_v5  ;;  %v9048_v18 = vunpack.c.l.b16 %v8784_v14  ;;  %v9052_v23 = vunpack.c.l.b16 %v8788_v15  ;;  %v13752_v15 = vld [vmem:[%s19388_s0 + $0xb0] sm:$0xff] }
  0x2e   :  { %v8787_v24 = vpack.c.bf16 %v8659_v16, %v8659_v16  ;;  %v8791_v25 = vpack.c.bf16 %v8663_v17, %v8663_v17  ;;  %v9049_v26 = vunpack.c.l.b16 %v8785_v19  ;;  %v9050_v27 = vunpack.c.l.b16 %v8786_v20  ;;  %19658 = vst [vmem:[#allocation17_spill] sm:$0xff] %v13752_v15  ;;  %v13757_v16 = vld [vmem:[%s19388_s0 + $0xb8] sm:$0xff] }
  0x2f   :  { %v9053_v28 = vunpack.c.l.b16 %v8789_v21  ;;  %v9054_v7 = vunpack.c.l.b16 %v8790_v22  ;;  %v381_v10 = vsel %vm373_vm0, %v316_v59, %v348_v35  ;;  %v413_v29 = vsel %vm373_vm0, %v348_v35, %v316_v59  ;;  %v13768_v21 = vld [vmem:[%s19388_s0 + $0xc0] sm:$0xff] }
  0x30   :  { %v9051_v32 = vunpack.c.l.b16 %v8787_v24  ;;  %v9055_v33 = vunpack.c.l.b16 %v8791_v25  ;;  %v9201_v34 = vrot.slane %v9049_v26, 7  ;;  %v9203_v57 = vrot.slane %v9050_v27, 6  ;;  %19659 = vst [vmem:[#allocation18_spill] sm:$0xff] %v13768_v21 }
  0x31   :  { %v9207_v39 = vrot.slane %v9052_v23, 4  ;;  %v9209_v40 = vrot.slane %v9053_v28, 3  ;;  %v455_v41 = vsel %vm439_vm1, 0.0, %v413_v29  ;;  %v317_v42 = vrot.slane %v13649_v12, 1  ;;  %v13775_v23 = vld [vmem:[%s19388_s0 + $0xc8] sm:$0xff] }
  0x32   :  { %v9202_v59 = vsel %vm9153_vm2, %v9201_v34, %v9048_v18  ;;  %v9205_v35 = vrot.slane %v9051_v32, 5  ;;  %v9211_v43 = vrot.slane %v9054_v7, 2  ;;  %v13096_v44 = vpack.i.bf16 %v455_v41, %v381_v10  ;;  %19660 = vst [vmem:[#allocation19_spill] sm:$0xff] %v13775_v23 }
  0x33   :  { %v9204_v45 = vsel %vm9156_vm3, %v9203_v57, %v9202_v59  ;;  %v9213_v46 = vrot.slane %v9055_v33, 1  ;;  %v349_v47 = vrot.slane %v13654_v13, 1  ;;  %v13106_v49 = vpack.i.bf16 %v66_v31, %v65_v30 }
  0x34   :  { %v9206_v48 = vsel %vm9159_vm4, %v9205_v35, %v9204_v45  ;;  %13097 = vrot.lane.b32.xlu1 %v13096_v44, %s13468_s16  ;;  %v13717_v50 = vadd.f32 %v65_v30, %v13649_v12  ;;  %v13720_v51 = vadd.f32 %v66_v31, %v13654_v13  ;;  %v67_v12 = vld [vmem:[%s19388_s0 + $0xa0] sm:$0xff]  ;;  %v318_v1 = vrot.slane %v65_v30, 1 }
  0x35   :  { %v9208_v52 = vsel %vm9162_vm5, %v9207_v39, %v9206_v48  ;;  %v382_v53 = vsel %vm373_vm0, %v317_v42, %v349_v47  ;;  %v414_v54 = vsel %vm373_vm0, %v349_v47, %v317_v42  ;;  %v13121_v0 = vpack.i.bf16 %v68_v62, %v67_v12 }
  0x36   :  { %19655 = vst [vmem:[#allocation14_spill] sm:$0xff] %v13717_v50  ;;  %19656 = vst [vmem:[#allocation15_spill] sm:$0xff] %v13720_v51  ;;  %v9210_v55 = vsel %vm9165_vm6, %v9209_v40, %v9208_v52  ;;  %v457_v56 = vsel %vm439_vm1, 0.0, %v414_v54  ;;  %v350_v2 = vrot.slane %v66_v31, 1  ;;  %v319_v3 = vrot.slane %v67_v12, 1 }
  0x37   :  { %v9212_v13 = vsel %vm9168_vm7, %v9211_v43, %v9210_v55  ;;  %v13111_v60 = vpack.i.bf16 %v457_v56, %v382_v53  ;;  %v351_v14 = vrot.slane %v68_v62, 1 }
  0x38   :  { %v13735_v61 = vsel %vm9171_vm8, %v9213_v46, %v9212_v13  ;;  %13107 = vrot.lane.b32.xlu1 %v13106_v49, %s13467_s9  ;;  %v383_v4 = vsel %vm373_vm0, %v318_v1, %v350_v2  ;;  %v415_v5 = vsel %vm373_vm0, %v350_v2, %v318_v1 }
  0x39   :  { %19657 = vst [vmem:[#allocation16_spill] sm:$0xff] %v13735_v61  ;;  %13112 = vrot.lane.b32.xlu0 %v13111_v60, %s13468_s16  ;;  %v459_v17 = vsel %vm439_vm1, 0.0, %v415_v5  ;;  %v384_v19 = vsel %vm373_vm0, %v319_v3, %v351_v14  ;;  %v416_v20 = vsel %vm373_vm0, %v351_v14, %v319_v3 }
  0x3a   :  { %v13116_v22 = vpack.i.bf16 %v459_v17, %v383_v4  ;;  %v461_v18 = vsel %vm439_vm1, 0.0, %v416_v20 }
  0x3b   :  { %v13131_v24 = vpack.i.bf16 %v461_v18, %v384_v19 }
  0x3d   :  { %13122 = vrot.lane.b32.xlu0 %v13121_v0, %s13467_s9 }
  0x3e   :  { %12 = vsyncpa [#allocation5], 0  ;;  %13117 = vrot.lane.b32.xlu1 %v13116_v22, %s13468_s16  ;;  %v13126_v25 = vpack.i.bf16 %v13757_v16, %v13752_v15  ;;  %v13781_v26 = vadd.f32 %v13752_v15, %v67_v12  ;;  %v13784_v27 = vadd.f32 %v13757_v16, %v68_v62  ;;  %v13141_v28 = vpack.i.bf16 %v13775_v23, %v13768_v21  ;;  %v13804_v34 = vld [vmem:[%s19388_s0 + $0xd0] sm:$0xff]  ;;  %v13809_v57 = vld [vmem:[%s19388_s0 + $0xd8] sm:$0xff] }
  0x3f   :  { %v320_v7 = vrot.slane %v13752_v15, 1  ;;  %v352_v10 = vrot.slane %v13757_v16, 1  ;;  %v321_v29 = vrot.slane %v13768_v21, 1  ;;  %v353_v30 = vrot.slane %v13775_v23, 1  ;;  %19663 = vst [vmem:[#allocation22_spill] sm:$0xff] %v13804_v34  ;;  %19664 = vst [vmem:[#allocation23_spill] sm:$0xff] %v13809_v57 }
  0x40   :  { %19661 = vst [vmem:[#allocation20_spill] sm:$0xff] %v13781_v26  ;;  %19662 = vst [vmem:[#allocation21_spill] sm:$0xff] %v13784_v27  ;;  %v13146_v59 = vpack.i.bf16 %v13809_v57, %v13804_v34  ;;  %v7396_v43 = vadd.f32 %v13804_v34, %v13768_v21  ;;  %v13825_v44 = vld [vmem:[%s19388_s0 + $0xe0] sm:$0xff]  ;;  %v13830_v45 = vld [vmem:[%s19388_s0 + $0xe8] sm:$0xff]  ;;  %v7397_v46 = vadd.f32 %v13809_v57, %v13775_v23  ;;  %v322_v2 = vrot.slane %v13804_v34, 1 }
  0x41   :  { %13132 = vrot.lane.b32.xlu0 %v13131_v24, %s13468_s16  ;;  %v385_v31 = vsel %vm373_vm0, %v320_v7, %v352_v10  ;;  %v417_v32 = vsel %vm373_vm0, %v352_v10, %v320_v7  ;;  %v386_v40 = vsel %vm373_vm0, %v321_v29, %v353_v30  ;;  %v418_v41 = vsel %vm373_vm0, %v353_v30, %v321_v29 }
  0x42   :  { %13127 = vrot.lane.b32.xlu1 %v13126_v25, %s13467_s9  ;;  %v463_v33 = vsel %vm439_vm1, 0.0, %v417_v32  ;;  %v465_v42 = vsel %vm439_vm1, 0.0, %v418_v41  ;;  %19665 = vst [vmem:[#allocation24_spill] sm:$0xff] %v13825_v44  ;;  %19666 = vst [vmem:[#allocation25_spill] sm:$0xff] %v13830_v45  ;;  %v7652_v47 = vcombine.high %v7396_v43, %v7396_v43  ;;  %v7659_v48 = vrot.slane %v7396_v43, %v13610_v58 }
  0x43   :  { %v13136_v39 = vpack.i.bf16 %v463_v33, %v385_v31  ;;  %v13151_v35 = vpack.i.bf16 %v465_v42, %v386_v40  ;;  %v7669_v49 = vcombine.high %v7397_v46, %v7397_v46  ;;  %v7676_v52 = vrot.slane %v7397_v46, %v13610_v58 }
  0x44   :  { %v13161_v53 = vpack.i.bf16 %v13830_v45, %v13825_v44  ;;  %v7666_v54 = vrot.slane %v7652_v47, %v13610_v58  ;;  %v7667_v55 = vcombine.high %v7659_v48, %v7659_v48  ;;  %v11373_v13 = vrot.slane %v7659_v48, 9 }
  0x45   :  { %13142 = vrot.lane.b32.xlu0 %v13141_v28, %s13467_s9  ;;  %v7683_v56 = vrot.slane %v7669_v49, %v13610_v58  ;;  %v7684_v12 = vcombine.high %v7676_v52, %v7676_v52  ;;  %v11377_v60 = vrot.slane %v7676_v52, 9  ;;  %vm177_vm9 = vcmp.lt.s32.totalorder %v13526_v6, 1 }
  0x46   :  { %13137 = vrot.lane.b32.xlu1 %v13136_v39, %s13468_s16  ;;  %v7668_v62 = vcombine.high %v7666_v54, %v7666_v54  ;;  %v11374_v0 = vrot.slane %v7667_v55, 9  ;;  %v11375_v1 = vrot.slane %v7666_v54, 9  ;;  %v8552_v14 = vadd.f32 %v11373_v13, %v7659_v48 }
  0x47   :  { %v7685_v3 = vcombine.high %v7683_v56, %v7683_v56  ;;  %v11378_v4 = vrot.slane %v7684_v12, 9  ;;  %v11379_v5 = vrot.slane %v7683_v56, 9  ;;  %v8556_v22 = vadd.f32 %v11377_v60, %v7676_v52 }
  0x48   :  { %v11376_v17 = vrot.slane %v7668_v62, 9  ;;  %v8553_v19 = vadd.f32 %v11374_v0, %v7667_v55  ;;  %v8554_v20 = vadd.f32 %v11375_v1, %v7666_v54  ;;  %v8680_v28 = vmul.f32 0.25, %v8552_v14 }
  0x49   :  { %13152 = vrot.lane.b32.xlu0 %v13151_v35, %s13468_s16  ;;  %v11380_v18 = vrot.slane %v7685_v3, 9  ;;  %v8557_v24 = vadd.f32 %v11378_v4, %v7684_v12  ;;  %v8558_v25 = vadd.f32 %v11379_v5, %v7683_v56  ;;  %v8684_v30 = vmul.f32 0.25, %v8556_v22  ;;  %v13859_v22 = vld [vmem:[%s19388_s0 + $0xf8] sm:$0xff] }
  0x4a   :  { %13147 = vrot.lane.b32.xlu1 %v13146_v59, %s13467_s9  ;;  %v8555_v7 = vadd.f32 %v11376_v17, %v7668_v62  ;;  %v8681_v10 = vmul.f32 0.25, %v8553_v19  ;;  %v8682_v29 = vmul.f32 0.25, %v8554_v20  ;;  %v8808_v39 = vpack.c.bf16 %v8680_v28, %v8680_v28  ;;  %v13854_v20 = vld [vmem:[%s19388_s0 + $0xf0] sm:$0xff]  ;;  %19668 = vst [vmem:[#allocation27_spill] sm:$0xff] %v13859_v22 }
  0x4b   :  { %v8559_v31 = vadd.f32 %v11380_v18, %v7685_v3  ;;  %v8685_v32 = vmul.f32 0.25, %v8557_v24  ;;  %v8686_v33 = vmul.f32 0.25, %v8558_v25  ;;  %v8812_v59 = vpack.c.bf16 %v8684_v30, %v8684_v30  ;;  %19667 = vst [vmem:[#allocation26_spill] sm:$0xff] %v13854_v20 }
  0x4c   :  { %v8683_v40 = vmul.f32 0.25, %v8555_v7  ;;  %v8809_v41 = vpack.c.bf16 %v8681_v10, %v8681_v10  ;;  %v8810_v42 = vpack.c.bf16 %v8682_v29, %v8682_v29  ;;  %v9072_v47 = vunpack.c.l.b16 %v8808_v39 }
  0x4d   :  { %13162 = vrot.lane.b32.xlu0 %v13161_v53, %s13467_s9  ;;  %v8687_v35 = vmul.f32 0.25, %v8559_v31  ;;  %v8813_v43 = vpack.c.bf16 %v8685_v32, %v8685_v32  ;;  %v8814_v46 = vpack.c.bf16 %v8686_v33, %v8686_v33  ;;  %v9076_v53 = vunpack.c.l.b16 %v8812_v59  ;;  %v13889_v59 = vld [vmem:[%s19388_s0 + $0x108] sm:$0xff] }
  0x4e   :  { %v8811_v48 = vpack.c.bf16 %v8683_v40, %v8683_v40  ;;  %v9073_v49 = vunpack.c.l.b16 %v8809_v41  ;;  %v9074_v52 = vunpack.c.l.b16 %v8810_v42  ;;  %v354_v12 = vrot.slane %v13809_v57, 1  ;;  %v13884_v42 = vld [vmem:[%s19388_s0 + $0x100] sm:$0xff]  ;;  %19670 = vst [vmem:[#allocation29_spill] sm:$0xff] %v13889_v59 }
  0x4f   :  { %v8815_v54 = vpack.c.bf16 %v8687_v35, %v8687_v35  ;;  %v9077_v55 = vunpack.c.l.b16 %v8813_v43  ;;  %v9078_v56 = vunpack.c.l.b16 %v8814_v46  ;;  %v9249_v1 = vrot.slane %v9076_v53, 4  ;;  %19669 = vst [vmem:[#allocation28_spill] sm:$0xff] %v13884_v42 }
  0x50   :  { %v9075_v13 = vunpack.c.l.b16 %v8811_v48  ;;  %v9243_v60 = vrot.slane %v9073_v49, 7  ;;  %v9245_v62 = vrot.slane %v9074_v52, 6  ;;  %v387_v4 = vsel %vm373_vm0, %v322_v2, %v354_v12 }
  0x51   :  { %v9079_v0 = vunpack.c.l.b16 %v8815_v54  ;;  %v9251_v3 = vrot.slane %v9077_v55, 3  ;;  %v419_v17 = vsel %vm373_vm0, %v354_v12, %v322_v2  ;;  %v323_v19 = vrot.slane %v13825_v44, 1 }
  0x52   :  { %v9244_v5 = vsel %vm9153_vm2, %v9243_v60, %v9072_v47  ;;  %v9247_v14 = vrot.slane %v9075_v13, 5  ;;  %v9253_v24 = vrot.slane %v9078_v56, 2  ;;  %v467_v25 = vsel %vm439_vm1, 0.0, %v419_v17 }
  0x53   :  { %v9246_v18 = vsel %vm9156_vm3, %v9245_v62, %v9244_v5  ;;  %v355_v2 = vrot.slane %v13830_v45, 1  ;;  %v9255_v7 = vrot.slane %v9079_v0, 1  ;;  %v13156_v10 = vpack.i.bf16 %v467_v25, %v387_v4 }
  0x54   :  { %v9248_v28 = vsel %vm9159_vm4, %v9247_v14, %v9246_v18  ;;  %v13166_v32 = vpack.i.bf16 %v13859_v22, %v13854_v20  ;;  %v7398_v40 = vadd.f32 %v13854_v20, %v13825_v44  ;;  %v7399_v41 = vadd.f32 %v13859_v22, %v13830_v45 }
  0x55   :  { %v9250_v29 = vsel %vm9162_vm5, %v9249_v1, %v9248_v28  ;;  %v388_v30 = vsel %vm373_vm0, %v323_v19, %v355_v2  ;;  %v420_v31 = vsel %vm373_vm0, %v355_v2, %v323_v19  ;;  %13157 = vrot.lane.b32.xlu1 %v13156_v10, %s13468_s16  ;;  %v13181_v53 = vpack.i.bf16 %v13889_v59, %v13884_v42 }
  0x56   :  { %v9252_v33 = vsel %vm9165_vm6, %v9251_v3, %v9250_v29  ;;  %v469_v39 = vsel %vm439_vm1, 0.0, %v420_v31  ;;  %v7686_v47 = vcombine.high %v7398_v40, %v7398_v40  ;;  %v7693_v48 = vrot.slane %v7398_v40, %v13610_v58 }
  0x57   :  { %v9254_v35 = vsel %vm9168_vm7, %v9253_v24, %v9252_v33  ;;  %v13171_v43 = vpack.i.bf16 %v469_v39, %v388_v30  ;;  %v7703_v49 = vcombine.high %v7399_v41, %v7399_v41  ;;  %v7710_v52 = vrot.slane %v7399_v41, %v13610_v58 }
  0x58   :  { %v13893_v46 = vsel %vm9171_vm8, %v9255_v7, %v9254_v35  ;;  %v324_v54 = vrot.slane %v13854_v20, 1  ;;  %v356_v55 = vrot.slane %v13859_v22, 1  ;;  %v7700_v56 = vrot.slane %v7686_v47, %v13610_v58 }
  0x59   :  { %19671 = vst [vmem:[#allocation30_spill] sm:$0xff] %v13893_v46  ;;  %13172 = vrot.lane.b32.xlu0 %v13171_v43, %s13468_s16  ;;  %v7701_v12 = vcombine.high %v7693_v48, %v7693_v48  ;;  %v7717_v13 = vrot.slane %v7703_v49, %v13610_v58  ;;  %v11381_v60 = vrot.slane %v7693_v48, 9  ;;  %13167 = vrot.lane.b32.xlu1 %v13166_v32, %s13467_s9  ;;  %v11385_v0 = vrot.slane %v7710_v52, 9 }
  0x5a   :  { %v7718_v62 = vcombine.high %v7710_v52, %v7710_v52  ;;  %v389_v1 = vsel %vm373_vm0, %v324_v54, %v356_v55  ;;  %v421_v3 = vsel %vm373_vm0, %v356_v55, %v324_v54  ;;  %v7702_v4 = vcombine.high %v7700_v56, %v7700_v56 }
  0x5b   :  { %v7719_v5 = vcombine.high %v7717_v13, %v7717_v13  ;;  %v11382_v14 = vrot.slane %v7701_v12, 9  ;;  %v11383_v17 = vrot.slane %v7700_v56, 9  ;;  %v11387_v18 = vrot.slane %v7717_v13, 9 }
  0x5c   :  { %v11386_v19 = vrot.slane %v7718_v62, 9  ;;  %v8560_v24 = vadd.f32 %v11381_v60, %v7693_v48  ;;  %v8564_v25 = vadd.f32 %v11385_v0, %v7710_v52  ;;  %v11384_v2 = vrot.slane %v7702_v4, 9 }
  0x5d   :  { %13182 = vrot.lane.b32.xlu0 %v13181_v53, %s13467_s9  ;;  %v11388_v28 = vrot.slane %v7719_v5, 9  ;;  %v8561_v7 = vadd.f32 %v11382_v14, %v7701_v12  ;;  %v8562_v10 = vadd.f32 %v11383_v17, %v7700_v56  ;;  %v8566_v30 = vadd.f32 %v11387_v18, %v7717_v13 }
  0x5e   :  { %v8565_v29 = vadd.f32 %v11386_v19, %v7718_v62  ;;  %v8688_v31 = vmul.f32 0.25, %v8560_v24  ;;  %v8692_v32 = vmul.f32 0.25, %v8564_v25  ;;  %v8563_v33 = vadd.f32 %v11384_v2, %v7702_v4  ;;  %v13915_v2 = vld [vmem:[%s19388_s0 + $0x110] sm:$0xff] }
  0x5f   :  { %v8567_v39 = vadd.f32 %v11388_v28, %v7719_v5  ;;  %v8689_v40 = vmul.f32 0.25, %v8561_v7  ;;  %v8690_v41 = vmul.f32 0.25, %v8562_v10  ;;  %v8694_v43 = vmul.f32 0.25, %v8566_v30  ;;  %19672 = vst [vmem:[#allocation31_spill] sm:$0xff] %v13915_v2  ;;  %v13920_v28 = vld [vmem:[%s19388_s0 + $0x118] sm:$0xff] }
  0x60   :  { %v8693_v35 = vmul.f32 0.25, %v8565_v29  ;;  %v8816_v47 = vpack.c.bf16 %v8688_v31, %v8688_v31  ;;  %v8820_v49 = vpack.c.bf16 %v8692_v32, %v8692_v32  ;;  %v8691_v48 = vmul.f32 0.25, %v8563_v33  ;;  %19673 = vst [vmem:[#allocation32_spill] sm:$0xff] %v13920_v28 }
  0x61   :  { %v8695_v52 = vmul.f32 0.25, %v8567_v39  ;;  %v8817_v54 = vpack.c.bf16 %v8689_v40, %v8689_v40  ;;  %v8818_v53 = vpack.c.bf16 %v8690_v41, %v8690_v41  ;;  %v8822_v60 = vpack.c.bf16 %v8694_v43, %v8694_v43 }
  0x62   :  { %v8821_v55 = vpack.c.bf16 %v8693_v35, %v8693_v35  ;;  %v9080_v12 = vunpack.c.l.b16 %v8816_v47  ;;  %v9084_v56 = vunpack.c.l.b16 %v8820_v49  ;;  %v8819_v62 = vpack.c.bf16 %v8691_v48, %v8691_v48 }
  0x63   :  { %v8823_v13 = vpack.c.bf16 %v8695_v52, %v8695_v52  ;;  %v9081_v0 = vunpack.c.l.b16 %v8817_v54  ;;  %v9082_v14 = vunpack.c.l.b16 %v8818_v53  ;;  %v9086_v5 = vunpack.c.l.b16 %v8822_v60  ;;  %v13948_v54 = vld [vmem:[%s19388_s0 + $0x120] sm:$0xff]  ;;  %v13953_v53 = vld [vmem:[%s19388_s0 + $0x128] sm:$0xff] }
  0x64   :  { %v9085_v4 = vunpack.c.l.b16 %v8821_v55  ;;  %v471_v17 = vsel %vm439_vm1, 0.0, %v421_v3  ;;  %v9083_v19 = vunpack.c.l.b16 %v8819_v62  ;;  %v9263_v7 = vrot.slane %v9084_v56, 4  ;;  %19676 = vst [vmem:[#allocation35_spill] sm:$0xff] %v13948_v54  ;;  %19677 = vst [vmem:[#allocation36_spill] sm:$0xff] %v13953_v53 }
  0x65   :  { %v9087_v18 = vunpack.c.l.b16 %v8823_v13  ;;  %v9257_v24 = vrot.slane %v9081_v0, 7  ;;  %v9259_v25 = vrot.slane %v9082_v14, 6  ;;  %v13176_v10 = vpack.i.bf16 %v471_v17, %v389_v1 }
  0x66   :  { %v325_v29 = vrot.slane %v13884_v42, 1  ;;  %v9261_v30 = vrot.slane %v9083_v19, 5  ;;  %v9265_v31 = vrot.slane %v9085_v4, 3  ;;  %v357_v32 = vrot.slane %v13889_v59, 1 }
  0x67   :  { %v9258_v3 = vsel %vm9153_vm2, %v9257_v24, %v9080_v12  ;;  %v9267_v39 = vrot.slane %v9086_v5, 2  ;;  %v9269_v40 = vrot.slane %v9087_v18, 1  ;;  %13177 = vrot.lane.b32.xlu1 %v13176_v10, %s13468_s16  ;;  %v13186_v41 = vpack.i.bf16 %v13920_v28, %v13915_v2  ;;  %v13989_v10 = vld [vmem:[%s19388_s0 + $0x138] sm:$0xff] }
  0x68   :  { %v9260_v33 = vsel %vm9156_vm3, %v9259_v25, %v9258_v3  ;;  %v390_v1 = vsel %vm373_vm0, %v325_v29, %v357_v32  ;;  %v422_v43 = vsel %vm373_vm0, %v357_v32, %v325_v29  ;;  %v13936_v47 = vadd.f32 %v13915_v2, %v13884_v42  ;;  %19680 = vst [vmem:[#allocation39_spill] sm:$0xff] %v13989_v10 }
  0x69   :  { %v9262_v35 = vsel %vm9159_vm4, %v9261_v30, %v9260_v33  ;;  %v473_v48 = vsel %vm439_vm1, 0.0, %v422_v43  ;;  %v13943_v52 = vadd.f32 %v13920_v28, %v13889_v59  ;;  %v13201_v62 = vpack.i.bf16 %v13953_v53, %v13948_v54  ;;  %v13996_v30 = vld [vmem:[%s19388_s0 + $0x140] sm:$0xff] }
  0x6a   :  { %19674 = vst [vmem:[#allocation33_spill] sm:$0xff] %v13936_v47  ;;  %v9264_v49 = vsel %vm9162_vm5, %v9263_v7, %v9262_v35  ;;  %v13191_v60 = vpack.i.bf16 %v473_v48, %v390_v1  ;;  %v326_v0 = vrot.slane %v13915_v2, 1  ;;  %v358_v14 = vrot.slane %v13920_v28, 1  ;;  %v13984_v7 = vld [vmem:[%s19388_s0 + $0x130] sm:$0xff]  ;;  %19681 = vst [vmem:[#allocation40_spill] sm:$0xff] %v13996_v30 }
  0x6b   :  { %19675 = vst [vmem:[#allocation34_spill] sm:$0xff] %v13943_v52  ;;  %v9266_v55 = vsel %vm9165_vm6, %v9265_v31, %v9264_v49  ;;  %13187 = vrot.lane.b32.xlu1 %v13186_v41, %s13467_s9  ;;  %v327_v4 = vrot.slane %v13948_v54, 1  ;;  %v359_v5 = vrot.slane %v13953_v53, 1  ;;  %19679 = vst [vmem:[#allocation38_spill] sm:$0xff] %v13984_v7  ;;  %v14001_v31 = vld [vmem:[%s19388_s0 + $0x148] sm:$0xff]  ;;  %v14005_v33 = vadd.f32 %v13984_v7, %v13948_v54 }
  0x6c   :  { %v9268_v12 = vsel %vm9168_vm7, %v9267_v39, %v9266_v55  ;;  %13192 = vrot.lane.b32.xlu0 %v13191_v60, %s13468_s16  ;;  %v391_v17 = vsel %vm373_vm0, %v326_v0, %v358_v14  ;;  %v423_v19 = vsel %vm373_vm0, %v358_v14, %v326_v0  ;;  %19682 = vst [vmem:[#allocation41_spill] sm:$0xff] %v14001_v31  ;;  %v328_v35 = vrot.slane %v13984_v7, 1  ;;  %v14036_v0 = vld [vmem:[%s19388_s0 + $0x150] sm:$0xff]  ;;  %v14041_v14 = vld [vmem:[%s19388_s0 + $0x158] sm:$0xff] }
  0x6d   :  { %v13959_v56 = vsel %vm9171_vm8, %v9269_v40, %v9268_v12  ;;  %v392_v18 = vsel %vm373_vm0, %v327_v4, %v359_v5  ;;  %v475_v24 = vsel %vm439_vm1, 0.0, %v423_v19  ;;  %v424_v25 = vsel %vm373_vm0, %v359_v5, %v327_v4  ;;  %19683 = vst [vmem:[#allocation42_spill] sm:$0xff] %v14005_v33  ;;  %19685 = vst [vmem:[#allocation44_spill] sm:$0xff] %v14036_v0  ;;  %v14053_v19 = vld [vmem:[%s19388_s0 + $0x168] sm:$0xff] }
  0x6e   :  { %19678 = vst [vmem:[#allocation37_spill] sm:$0xff] %v13959_v56  ;;  %v13196_v29 = vpack.i.bf16 %v475_v24, %v391_v17  ;;  %v477_v3 = vsel %vm439_vm1, 0.0, %v424_v25  ;;  %v13206_v39 = vpack.i.bf16 %v13989_v10, %v13984_v7  ;;  %v14012_v40 = vadd.f32 %v13989_v10, %v13953_v53  ;;  %19686 = vst [vmem:[#allocation45_spill] sm:$0xff] %v14041_v14  ;;  %v14048_v17 = vld [vmem:[%s19388_s0 + $0x160] sm:$0xff] }
  0x6f   :  { %v13211_v32 = vpack.i.bf16 %v477_v3, %v392_v18  ;;  %v13221_v41 = vpack.i.bf16 %v14001_v31, %v13996_v30  ;;  %v360_v1 = vrot.slane %v13989_v10, 1  ;;  %v329_v43 = vrot.slane %v13996_v30, 1  ;;  %19687 = vst [vmem:[#allocation46_spill] sm:$0xff] %v14048_v17  ;;  %19688 = vst [vmem:[#allocation47_spill] sm:$0xff] %v14053_v19 }
  0x70   :  { %13202 = vrot.lane.b32.xlu0 %v13201_v62, %s13467_s9  ;;  %13197 = vrot.lane.b32.xlu1 %v13196_v29, %s13468_s16  ;;  %19684 = vst [vmem:[#allocation43_spill] sm:$0xff] %v14012_v40  ;;  %v361_v48 = vrot.slane %v14001_v31, 1  ;;  %v13226_v24 = vpack.i.bf16 %v14041_v14, %v14036_v0  ;;  %v7404_v25 = vadd.f32 %v14036_v0, %v13996_v30  ;;  %vm243_vm10 = vcmp.eq.s32.totalorder %v13526_v6, 0 }
  0x71   :  { %v425_v49 = vsel %vm373_vm0, %v360_v1, %v328_v35  ;;  %v393_v55 = vsel %vm373_vm0, %v328_v35, %v360_v1  ;;  %v7405_v29 = vadd.f32 %v14041_v14, %v14001_v31  ;;  %v13241_v3 = vpack.i.bf16 %v14053_v19, %v14048_v17  ;;  %vm15795_vm15 = vmneg %vm243_vm10 }
  0x72   :  { %v479_v60 = vsel %vm439_vm1, 0.0, %v425_v49  ;;  %v426_v12 = vsel %vm373_vm0, %v361_v48, %v329_v43  ;;  %v394_v62 = vsel %vm373_vm0, %v329_v43, %v361_v48  ;;  %v362_v43 = vrot.slane %v14041_v14, 1 }
  0x73   :  { %v13216_v4 = vpack.i.bf16 %v479_v60, %v393_v55  ;;  %v481_v5 = vsel %vm439_vm1, 0.0, %v426_v12  ;;  %v7805_v35 = vcombine.high %v7405_v29, %v7405_v29  ;;  %v7812_v1 = vrot.slane %v7405_v29, %v13610_v58 }
  0x74   :  { %13212 = vrot.lane.b32.xlu0 %v13211_v32, %s13468_s16  ;;  %13207 = vrot.lane.b32.xlu1 %v13206_v39, %s13467_s9  ;;  %v13231_v18 = vpack.i.bf16 %v481_v5, %v394_v62  ;;  %v330_v32 = vrot.slane %v14036_v0, 1  ;;  %v7788_v39 = vcombine.high %v7404_v25, %v7404_v25  ;;  %v363_v12 = vrot.slane %v14053_v19, 1 }
  0x75   :  { %v7819_v62 = vrot.slane %v7805_v35, %v13610_v58  ;;  %v11409_v5 = vrot.slane %v7812_v1, 9  ;;  %vm1016_vm11 = vcmask 31744   ;;  %vm1081_vm12 = vcmask 64512  }
  0x76   :  { %v7802_v48 = vrot.slane %v7788_v39, %v13610_v58  ;;  %vm28_vm13 = vcmask 97280   ;;  %vm1381_vm14 = vcmask 1045504  }
  0x77   :  { %v7821_v63 = vcombine.high %v7819_v62, %v7819_v62  ;;  %v11411_v39 = vrot.slane %v7819_v62, 9  ;;  %v8588_v40 = vadd.f32 %v11409_v5, %v7812_v1 }
  0x78   :  { %13222 = vrot.lane.b32.xlu0 %v13221_v41, %s13467_s9  ;;  %13217 = vrot.lane.b32.xlu1 %v13216_v4, %s13468_s16  ;;  %v7795_v41 = vrot.slane %v7404_v25, %v13610_v58  ;;  %v7820_v4 = vcombine.high %v7812_v1, %v7812_v1  ;;  %v11407_v29 = vrot.slane %v7802_v48, 9 }
  0x79   :  { %v11412_v35 = vrot.slane %v7821_v63, 9  ;;  %v8590_v27 = vadd.f32 %v11411_v39, %v7819_v62  ;;  %v8716_v51 = vmul.f32 0.25, %v8588_v40  ;;  %v19691_v40 = vrot.slane %v14048_v17, 1  ;;  %v14107_v39 = vld [vmem:[%s19388_s0 + $0x180] sm:$0xff] }
  0x7a   :  { %v7803_v55 = vcombine.high %v7795_v41, %v7795_v41  ;;  %v11405_v60 = vrot.slane %v7795_v41, 9  ;;  %v11410_v49 = vrot.slane %v7820_v4, 9  ;;  %v8586_v47 = vadd.f32 %v11407_v29, %v7802_v48  ;;  %19693 = vst [vmem:[#allocation50_spill] sm:$0xff] %v14107_v39 }
  0x7b   :  { %v8591_v61 = vadd.f32 %v11412_v35, %v7821_v63  ;;  %v8718_v8 = vmul.f32 0.25, %v8590_v27  ;;  %v14112_v35 = vld [vmem:[%s19388_s0 + $0x188] sm:$0xff] }
  0x7c   :  { %13232 = vrot.lane.b32.xlu0 %v13231_v18, %s13468_s16  ;;  %13227 = vrot.lane.b32.xlu1 %v13226_v24, %s13467_s9  ;;  %v395_v18 = vsel %vm373_vm0, %v330_v32, %v362_v43  ;;  %v7804_v24 = vcombine.high %v7802_v48, %v7802_v48  ;;  %v11406_v25 = vrot.slane %v7803_v55, 9  ;;  %v8584_v13 = vadd.f32 %v11405_v60, %v7795_v41 }
  0x7d   :  { %v8589_v56 = vadd.f32 %v11410_v49, %v7820_v4  ;;  %v8714_v50 = vmul.f32 0.25, %v8586_v47  ;;  %v8844_v41 = vpack.c.bf16 %v8716_v51, %v8716_v51  ;;  %v8719_v5 = vmul.f32 0.25, %v8591_v61  ;;  %19694 = vst [vmem:[#allocation51_spill] sm:$0xff] %v14112_v35 }
  0x7e   :  { %v11408_v52 = vrot.slane %v7804_v24, 9  ;;  %v8585_v33 = vadd.f32 %v11406_v25, %v7803_v55  ;;  %v8712_v46 = vmul.f32 0.25, %v8584_v13  ;;  %v8846_v48 = vpack.c.bf16 %v8718_v8, %v8718_v8 }
  0x7f   :  { %v8717_v38 = vmul.f32 0.25, %v8589_v56  ;;  %v8842_v9 = vpack.c.bf16 %v8714_v50, %v8714_v50  ;;  %v9108_v13 = vunpack.c.l.b16 %v8844_v41  ;;  %v8847_v47 = vpack.c.bf16 %v8719_v5, %v8719_v5 }
  0x80   :  { %13242 = vrot.lane.b32.xlu0 %v13241_v3, %s13467_s9  ;;  %v8587_v3 = vadd.f32 %v11408_v52, %v7804_v24  ;;  %v8713_v26 = vmul.f32 0.25, %v8585_v33  ;;  %v8840_v36 = vpack.c.bf16 %v8712_v46, %v8712_v46  ;;  %v427_v52 = vsel %vm373_vm0, %v362_v43, %v330_v32 }
  0x81   :  { %v8845_v55 = vpack.c.bf16 %v8717_v38, %v8717_v38  ;;  %v9106_v62 = vunpack.c.l.b16 %v8842_v9  ;;  %v9110_v63 = vunpack.c.l.b16 %v8846_v48  ;;  %v483_v50 = vsel %vm439_vm1, 0.0, %v427_v52  ;;  %v14084_v9 = vld [vmem:[%s19388_s0 + $0x170] sm:$0xff] }
  0x82   :  { %v8715_v60 = vmul.f32 0.25, %v8587_v3  ;;  %v8841_v37 = vpack.c.bf16 %v8713_v26, %v8713_v26  ;;  %v9104_v1 = vunpack.c.l.b16 %v8840_v36  ;;  %v9111_v36 = vunpack.c.l.b16 %v8847_v47  ;;  %19689 = vst [vmem:[#allocation48_spill] sm:$0xff] %v14084_v9  ;;  %v14114_v3 = vpop.permute.xlu0 %13022 }
  0x83   :  { %v9109_v46 = vunpack.c.l.b16 %v8845_v55  ;;  %v9301_v51 = vrot.slane %v9106_v62, 6  ;;  %v9305_v61 = vrot.slane %v9108_v13, 4  ;;  %v13236_v8 = vpack.i.bf16 %v483_v50, %v395_v18  ;;  %19695 = vst [vmem:[#allocation52_spill] sm:$0xff] %v14114_v3 }
  0x84   :  { %v8843_v25 = vpack.c.bf16 %v8715_v60, %v8715_v60  ;;  %v9105_v49 = vunpack.c.l.b16 %v8841_v37  ;;  %v14089_v37 = vld [vmem:[%s19388_s0 + $0x178] sm:$0xff]  ;;  %v396_v32 = vsel %vm373_vm0, %v19691_v40, %v363_v12  ;;  %v19692_v43 = vmov %v19691_v40 }
  0x85   :  { %v9307_v38 = vrot.slane %v9109_v46, 3  ;;  %19690 = vst [vmem:[#allocation49_spill] sm:$0xff] %v14089_v37  ;;  %v428_v4 = vsel %vm373_vm0, %v363_v12, %v19692_v43  ;;  %v9309_v24 = vrot.slane %v9110_v63, 2  ;;  %13237 = vrot.lane.b32.xlu1 %v13236_v8, %s13468_s16  ;;  %v9311_v41 = vrot.slane %v9111_v36, 1 }
  0x86   :  { %v9107_v56 = vunpack.c.l.b16 %v8843_v25  ;;  %v9299_v27 = vrot.slane %v9105_v49, 7  ;;  %v485_v29 = vsel %vm439_vm1, 0.0, %v428_v4  ;;  %v7406_v55 = vadd.f32 %v14084_v9, %v14048_v17 }
  0x87   :  { %v13251_v60 = vpack.i.bf16 %v485_v29, %v396_v32  ;;  %v7407_v48 = vadd.f32 %v14089_v37, %v14053_v19  ;;  %v13261_v25 = vpack.i.bf16 %v14112_v35, %v14107_v39  ;;  %v332_v49 = vrot.slane %v14084_v9, 1 }
  0x88   :  { %v9300_v26 = vsel %vm9153_vm2, %v9299_v27, %v9104_v1  ;;  %v9303_v33 = vrot.slane %v9107_v56, 5  ;;  %v13246_v1 = vpack.i.bf16 %v14089_v37, %v14084_v9  ;;  %v7822_v52 = vcombine.high %v7406_v55, %v7406_v55 }
  0x89   :  { %v9302_v18 = vsel %vm9156_vm3, %v9301_v51, %v9300_v26  ;;  %13252 = vrot.lane.b32.xlu0 %v13251_v60, %s13468_s16  ;;  %v7829_v47 = vrot.slane %v7406_v55, %v13610_v58  ;;  %v7839_v46 = vcombine.high %v7407_v48, %v7407_v48  ;;  %v7846_v56 = vrot.slane %v7407_v48, %v13610_v58 }
  0x8a   :  { %v9304_v12 = vsel %vm9159_vm4, %v9303_v33, %v9302_v18  ;;  %13247 = vrot.lane.b32.xlu1 %v13246_v1, %s13467_s9  ;;  %v364_v27 = vrot.slane %v14089_v37, 1  ;;  %v7836_v51 = vrot.slane %v7822_v52, %v13610_v58  ;;  %v14146_v52 = vpop.permute.xlu1 %13037 }
  0x8b   :  { %v9306_v5 = vsel %vm9162_vm5, %v9305_v61, %v9304_v12  ;;  %v7837_v50 = vcombine.high %v7829_v47, %v7829_v47  ;;  %v7853_v36 = vrot.slane %v7839_v46, %v13610_v58  ;;  %v11413_v61 = vrot.slane %v7829_v47, 9 }
  0x8c   :  { %v9308_v13 = vsel %vm9165_vm6, %v9307_v38, %v9306_v5  ;;  %v14139_v38 = vpop.permute.xlu0 %13027  ;;  %v7854_v8 = vcombine.high %v7846_v56, %v7846_v56  ;;  %v11417_v26 = vrot.slane %v7846_v56, 9  ;;  %v397_v33 = vsel %vm373_vm0, %v332_v49, %v364_v27 }
  0x8d   :  { %v9310_v62 = vsel %vm9168_vm7, %v9309_v24, %v9308_v13  ;;  %19697 = vst [vmem:[#allocation54_spill] sm:$0xff] %v14139_v38  ;;  %13262 = vrot.lane.b32.xlu0 %v13261_v25, %s13467_s9  ;;  %v429_v40 = vsel %vm373_vm0, %v364_v27, %v332_v49  ;;  %v7838_v32 = vcombine.high %v7836_v51, %v7836_v51  ;;  %v11414_v4 = vrot.slane %v7837_v50, 9 }
  0x8e   :  { %v14133_v63 = vsel %vm9171_vm8, %v9311_v41, %v9310_v62  ;;  %v7855_v43 = vcombine.high %v7853_v36, %v7853_v36  ;;  %v11415_v18 = vrot.slane %v7836_v51, 9  ;;  %v11418_v24 = vrot.slane %v7854_v8, 9 }
  0x8f   :  { %19696 = vst [vmem:[#allocation53_spill] sm:$0xff] %v14133_v63  ;;  %v11419_v29 = vrot.slane %v7853_v36, 9  ;;  %v8592_v12 = vadd.f32 %v11413_v61, %v7829_v47  ;;  %v8596_v41 = vadd.f32 %v11417_v26, %v7846_v56  ;;  %v11416_v60 = vrot.slane %v7838_v32, 9  ;;  %v14316_v63 = vld [vmem:[%s19388_s0 + $0x78] sm:$0xff] }
  0x90   :  { %v11420_v1 = vrot.slane %v7855_v43, 9  ;;  %v8593_v5 = vadd.f32 %v11414_v4, %v7837_v50  ;;  %v8594_v55 = vadd.f32 %v11415_v18, %v7836_v51  ;;  %v8597_v48 = vadd.f32 %v11418_v24, %v7854_v8  ;;  %v14148_v58 = vpop.permute.xlu0 %13032  ;;  %19712 = vst [vmem:[#allocation69_spill] sm:$0xff] %v14316_v63 }
  0x91   :  { %v8598_v13 = vadd.f32 %v11419_v29, %v7853_v36  ;;  %v8720_v25 = vmul.f32 0.25, %v8592_v12  ;;  %v8724_v62 = vmul.f32 0.25, %v8596_v41  ;;  %v8595_v46 = vadd.f32 %v11416_v60, %v7838_v32 }
  0x92   :  { %v8599_v49 = vadd.f32 %v11420_v1, %v7855_v43  ;;  %v8721_v27 = vmul.f32 0.25, %v8593_v5  ;;  %v8722_v38 = vmul.f32 0.25, %v8594_v55  ;;  %v8725_v3 = vmul.f32 0.25, %v8597_v48  ;;  %v14153_v5 = vpop.permute.xlu1 %13042 }
  0x93   :  { %v8726_v9 = vmul.f32 0.25, %v8598_v13  ;;  %v8848_v47 = vpack.c.bf16 %v8720_v25, %v8720_v25  ;;  %v8852_v56 = vpack.c.bf16 %v8724_v62, %v8724_v62  ;;  %v8723_v61 = vmul.f32 0.25, %v8595_v46  ;;  %v14163_v13 = vld [vmem:[%s19388_s0 + $0x198] sm:$0xff] }
  0x94   :  { %v8727_v26 = vmul.f32 0.25, %v8599_v49  ;;  %v8849_v50 = vpack.c.bf16 %v8721_v27, %v8721_v27  ;;  %v8850_v51 = vpack.c.bf16 %v8722_v38, %v8722_v38  ;;  %v8853_v8 = vpack.c.bf16 %v8725_v3, %v8725_v3  ;;  %19699 = vst [vmem:[#allocation56_spill] sm:$0xff] %v14163_v13  ;;  %v14165_v25 = vpop.permute.xlu0 %13052 }
  0x95   :  { %v8854_v36 = vpack.c.bf16 %v8726_v9, %v8726_v9  ;;  %v9112_v4 = vunpack.c.l.b16 %v8848_v47  ;;  %v9116_v18 = vunpack.c.l.b16 %v8852_v56  ;;  %v8851_v24 = vpack.c.bf16 %v8723_v61, %v8723_v61  ;;  %v14158_v9 = vld [vmem:[%s19388_s0 + $0x190] sm:$0xff] }
  0x96   :  { %v8855_v29 = vpack.c.bf16 %v8727_v26, %v8727_v26  ;;  %v9113_v32 = vunpack.c.l.b16 %v8849_v50  ;;  %v9114_v43 = vunpack.c.l.b16 %v8850_v51  ;;  %v9117_v12 = vunpack.c.l.b16 %v8853_v8  ;;  %19698 = vst [vmem:[#allocation55_spill] sm:$0xff] %v14158_v9 }
  0x97   :  { %v9118_v41 = vunpack.c.l.b16 %v8854_v36  ;;  %v487_v60 = vsel %vm439_vm1, 0.0, %v429_v40  ;;  %v333_v1 = vrot.slane %v14107_v39, 1  ;;  %v9115_v55 = vunpack.c.l.b16 %v8851_v24  ;;  %v14192_v24 = vld [vmem:[%s19388_s0 + $0x1a8] sm:$0xff] }
  0x98   :  { %v9119_v48 = vunpack.c.l.b16 %v8855_v29  ;;  %v9313_v38 = vrot.slane %v9113_v32, 7  ;;  %v9315_v3 = vrot.slane %v9114_v43, 6  ;;  %v9319_v40 = vrot.slane %v9116_v18, 4  ;;  %v14187_v18 = vld [vmem:[%s19388_s0 + $0x1a0] sm:$0xff]  ;;  %19702 = vst [vmem:[#allocation59_spill] sm:$0xff] %v14192_v24 }
  0x99   :  { %v13256_v62 = vpack.i.bf16 %v487_v60, %v397_v33  ;;  %v365_v46 = vrot.slane %v14112_v35, 1  ;;  %v9317_v27 = vrot.slane %v9115_v55, 5  ;;  %v9321_v47 = vrot.slane %v9117_v12, 3  ;;  %19701 = vst [vmem:[#allocation58_spill] sm:$0xff] %v14187_v18  ;;  %v14199_v12 = vpop.permute.xlu1 %13047  ;;  %v14202_v60 = vpop.permute.xlu0 %13062 }
  0x9a   :  { %v9314_v49 = vsel %vm9153_vm2, %v9313_v38, %v9112_v4  ;;  %v9323_v56 = vrot.slane %v9118_v41, 2  ;;  %v13266_v33 = vpack.i.bf16 %v14163_v13, %v14158_v9  ;;  %v9325_v8 = vrot.slane %v9119_v48, 1  ;;  %19704 = vst [vmem:[#allocation61_spill] sm:$0xff] %v14202_v60  ;;  %v14269_v38 = vld [vmem:[%s19388_s0 + $0x30] sm:$0xff] }
  0x9b   :  { %v9316_v61 = vsel %vm9156_vm3, %v9315_v3, %v9314_v49  ;;  %13257 = vrot.lane.b32.xlu1 %v13256_v62, %s13468_s16  ;;  %v398_v26 = vsel %vm373_vm0, %v333_v1, %v365_v46  ;;  %v430_v50 = vsel %vm373_vm0, %v365_v46, %v333_v1  ;;  %v14182_v4 = vadd.f32 %v14158_v9, %v14107_v39  ;;  %v14222_v46 = vld [vmem:[%s19388_s0 + $0x8] sm:$0xff]  ;;  %v14332_v49 = vld [vmem:[%s19388_s0 + $0x70] sm:$0xff] }
  0x9c   :  { %v9318_v51 = vsel %vm9159_vm4, %v9317_v27, %v9316_v61  ;;  %v489_v36 = vsel %vm439_vm1, 0.0, %v430_v50  ;;  %v14197_v43 = vadd.f32 %v14163_v13, %v14112_v35  ;;  %v13281_v55 = vpack.i.bf16 %v14192_v24, %v14187_v18  ;;  %v14228_v27 = vld [vmem:[%s19388_s0] sm:$0xff]  ;;  %19715 = vst [vmem:[#allocation72_spill] sm:$0xff] %v14332_v49  ;;  %v14388_v49 = vld [vmem:[%s19388_s0 + $0x90] sm:$0xff] }
  0x9d   :  { %19700 = vst [vmem:[#allocation57_spill] sm:$0xff] %v14182_v4  ;;  %v9320_v29 = vsel %vm9162_vm5, %v9319_v40, %v9318_v51  ;;  %v13271_v32 = vpack.i.bf16 %v489_v36, %v398_v26  ;;  %v334_v3 = vrot.slane %v14158_v9, 1  ;;  %v366_v40 = vrot.slane %v14163_v13, 1  ;;  %v14217_v62 = vpop.permute.xlu1 %13057  ;;  %v14240_v26 = vld [vmem:[%s19388_s0 + $0x10] sm:$0xff]  ;;  %v14248_v51 = vld [vmem:[%s19388_s0 + $0x28] sm:$0xff]  ;;  %v14254_v36 = vld [vmem:[%s19388_s0 + $0x20] sm:$0xff] }
  0x9e   :  { %19703 = vst [vmem:[#allocation60_spill] sm:$0xff] %v14197_v43  ;;  %v9322_v41 = vsel %vm9165_vm6, %v9321_v47, %v9320_v29  ;;  %19706 = vst [vmem:[#allocation63_spill] sm:$0xff] %v14217_v62  ;;  %v14275_v29 = vld [vmem:[%s19388_s0 + $0x48] sm:$0xff]  ;;  %v367_v43 = vrot.slane %v14192_v24, 1  ;;  %v14327_v4 = vld [vmem:[%s19388_s0 + $0x1b8] sm:$0xff] }
  0x9f   :  { %v9324_v1 = vsel %vm9168_vm7, %v9323_v56, %v9322_v41  ;;  %13272 = vrot.lane.b32.xlu0 %v13271_v32, %s13468_s16  ;;  %13267 = vrot.lane.b32.xlu1 %v13266_v33, %s13467_s9  ;;  %v14234_v56 = vld [vmem:[%s19388_s0 + $0x18] sm:$0xff]  ;;  %v14243_v33 = vpop.permute.xlu0 %13072  ;;  %v431_v32 = vsel %vm373_vm0, %v366_v40, %v334_v3  ;;  %v335_v41 = vrot.slane %v14187_v18, 1  ;;  %v399_v61 = vsel %vm373_vm0, %v334_v3, %v366_v40  ;;  %v14298_v3 = vld [vmem:[%s19388_s0 + $0x50] sm:$0xff] }
  0xa0   :  { %v14210_v48 = vsel %vm9171_vm8, %v9325_v8, %v9324_v1  ;;  %19707 = vst [vmem:[#allocation64_spill] sm:$0xff] %v14243_v33  ;;  %v14263_v1 = vld [vmem:[%s19388_s0 + $0x38] sm:$0xff]  ;;  %v491_v50 = vsel %vm439_vm1, 0.0, %v431_v32  ;;  %19709 = vst [vmem:[#allocation66_spill] sm:$0xff] %v14298_v3  ;;  %v14304_v47 = vld [vmem:[%s19388_s0 + $0x68] sm:$0xff] }
  0xa1   :  { %19705 = vst [vmem:[#allocation62_spill] sm:$0xff] %v14210_v48  ;;  %v14289_v8 = vld [vmem:[%s19388_s0 + $0x58] sm:$0xff]  ;;  %19710 = vst [vmem:[#allocation67_spill] sm:$0xff] %v14304_v47  ;;  %v14310_v32 = vld [vmem:[%s19388_s0 + $0x60] sm:$0xff]  ;;  %v13276_v47 = vpack.i.bf16 %v491_v50, %v399_v61  ;;  %v400_v40 = vsel %vm373_vm0, %v335_v41, %v367_v43  ;;  %v432_v63 = vsel %vm373_vm0, %v367_v43, %v335_v41  ;;  %v14339_v3 = vpop.permute.xlu1 %13067 }
  0xa2   :  { %19708 = vst [vmem:[#allocation65_spill] sm:$0xff] %v14289_v8  ;;  %19711 = vst [vmem:[#allocation68_spill] sm:$0xff] %v14310_v32  ;;  %v14322_v48 = vld [vmem:[%s19388_s0 + $0x1b0] sm:$0xff]  ;;  %v14345_v8 = vld [vmem:[%s19388_s0 + $0x88] sm:$0xff]  ;;  %v493_v32 = vsel %vm439_vm1, 0.0, %v432_v63 }
  0xa3   :  { %13282 = vrot.lane.b32.xlu0 %v13281_v55, %s13467_s9  ;;  %v14283_v55 = vld [vmem:[%s19388_s0 + $0x40] sm:$0xff]  ;;  %19713 = vst [vmem:[#allocation70_spill] sm:$0xff] %v14322_v48  ;;  %19714 = vst [vmem:[#allocation71_spill] sm:$0xff] %v14327_v4  ;;  %v14357_v43 = vld [vmem:[%s19388_s0 + $0x98] sm:$0xff]  ;;  %v14372_v50 = vpop.permute.xlu0 %13082  ;;  %13277 = vrot.lane.b32.xlu1 %v13276_v47, %s13468_s16  ;;  %v13286_v41 = vpack.i.bf16 %v14327_v4, %v14322_v48  ;;  %v14379_v63 = vadd.f32 %v14322_v48, %v14187_v18  ;;  %v336_v60 = vrot.slane %v14322_v48, 1 }
  0xa4   :  { %19716 = vst [vmem:[#allocation73_spill] sm:$0xff] %v14339_v3  ;;  %19717 = vst [vmem:[#allocation74_spill] sm:$0xff] %v14345_v8  ;;  %v14351_v61 = vld [vmem:[%s19388_s0 + $0x80] sm:$0xff]  ;;  %v14370_v8 = vld [vmem:[%s19388_s0 + $0x1c8] sm:$0xff] }
  0xa5   :  { %19718 = vst [vmem:[#allocation75_spill] sm:$0xff] %v14351_v61  ;;  %19719 = vst [vmem:[#allocation76_spill] sm:$0xff] %v14357_v43  ;;  %v14365_v33 = vld [vmem:[%s19388_s0 + $0x1c0] sm:$0xff]  ;;  %v13291_v61 = vpack.i.bf16 %v493_v32, %v400_v40  ;;  %v14383_v43 = vadd.f32 %v14327_v4, %v14192_v24  ;;  %v14394_v47 = vld [vmem:[%s19388_s0 + $0xa8] sm:$0xff]  ;;  %v369_v24 = vrot.slane %v14370_v8, 1 }
  0xa6   :  { %19720 = vst [vmem:[#allocation77_spill] sm:$0xff] %v14365_v33  ;;  %19721 = vst [vmem:[#allocation78_spill] sm:$0xff] %v14370_v8  ;;  %v14400_v32 = vld [vmem:[%s19388_s0 + $0xa0] sm:$0xff]  ;;  %v13301_v40 = vpack.i.bf16 %v14370_v8, %v14365_v33 }
  0xa7   :  { %19722 = vst [vmem:[#allocation79_spill] sm:$0xff] %v14372_v50  ;;  %19723 = vst [vmem:[#allocation80_spill] sm:$0xff] %v14379_v63  ;;  %13292 = vrot.lane.b32.xlu0 %v13291_v61, %s13468_s16  ;;  %13287 = vrot.lane.b32.xlu1 %v13286_v41, %s13467_s9  ;;  %v14419_v61 = vpop.permute.xlu1 %13077  ;;  %v14427_v45 = vpop.permute.xlu0 %13092  ;;  %v19729_v50 = vrot.slane %v14222_v46, 7 }
  0xa8   :  { %19724 = vst [vmem:[#allocation81_spill] sm:$0xff] %v14383_v43  ;;  %19725 = vst [vmem:[#allocation82_spill] sm:$0xff] %v14388_v49  ;;  %v368_v43 = vrot.slane %v14327_v4, 1 }
  0xa9   :  { %19726 = vst [vmem:[#allocation83_spill] sm:$0xff] %v14394_v47 }
  0xaa   :  { %v401_v34 = vsel %vm373_vm0, %v336_v60, %v368_v43  ;;  %v433_v63 = vsel %vm373_vm0, %v368_v43, %v336_v60 }
  0xab   :  { %13302 = vrot.lane.b32.xlu0 %v13301_v40, %s13467_s9  ;;  %v495_v60 = vsel %vm439_vm1, 0.0, %v433_v63  ;;  %v19728_v63 = vld [vmem:[#allocation52_spill] sm:$0xff]  ;;  %v14456_v40 = vpop.permute.xlu1 %13087  ;;  %v14466_v49 = vpop.permute.xlu0 %13102 }
  0xac   :  { %v13296_v41 = vpack.i.bf16 %v495_v60, %v401_v34  ;;  %v13025_v43 = vunpack.i.h.bf16 %v19728_v63  ;;  %v19730_v34 = vrot.slane %v14228_v27, 7  ;;  %v13024_v42 = vunpack.i.l.bf16 %v19728_v63  ;;  %v14476_v27 = vld [vmem:[%s19388_s0 + $0x1d0] sm:$0xff] }
  0xae   :  { %13297 = vrot.lane.b32.xlu1 %v13296_v41, %s13468_s16  ;;  %v178_v60 = vsel %vm177_vm9, %v19730_v34, %v19729_v50  ;;  %v19731_v31 = vmov %v19730_v34  ;;  %v19732_v41 = vmov %v19729_v50  ;;  %v337_v34 = vrot.slane %v14365_v33, 1 }
  0xaf   :  { %v210_v3 = vsel %vm177_vm9, %v19732_v41, %v19731_v31  ;;  %v14481_v31 = vld [vmem:[%s19388_s0 + $0x1d8] sm:$0xff]  ;;  %v14490_v35 = vsel %vm1016_vm11, %v178_v60, %v13025_v43  ;;  %v7412_v41 = vadd.f32 %v14476_v27, %v14365_v33  ;;  %v19733_v33 = vld [vmem:[#allocation12_spill] sm:$0xff] }
  0xb0   :  { %v245_v62 = vsel %vm243_vm10, 0.0, %v210_v3  ;;  %v13306_v46 = vpack.i.bf16 %v14481_v31, %v14476_v27  ;;  %v7413_v63 = vadd.f32 %v14481_v31, %v14370_v8  ;;  %v402_v50 = vsel %vm373_vm0, %v337_v34, %v369_v24  ;;  %v14514_v8 = vpop.permute.xlu0 %13112 }
  0xb1   :  { %v14494_v9 = vsel %vm1016_vm11, %v245_v62, %v13024_v42  ;;  %v434_v43 = vsel %vm373_vm0, %v369_v24, %v337_v34  ;;  %v14508_v62 = vpop.permute.xlu1 %13097  ;;  %v7924_v48 = vcombine.high %v7412_v41, %v7412_v41  ;;  %v7931_v4 = vrot.slane %v7412_v41, %v19733_v33 }
  0xb2   :  { %v497_v3 = vsel %vm439_vm1, 0.0, %v434_v43  ;;  %v7941_v18 = vcombine.high %v7413_v63, %v7413_v63  ;;  %13307 = vrot.lane.b32.xlu1 %v13306_v46, %s13467_s9  ;;  %v7948_v24 = vrot.slane %v7413_v63, %v19733_v33  ;;  %v19734_v34 = vrot.slane %v14234_v56, 7 }
  0xb3   :  { %v13311_v13 = vpack.i.bf16 %v497_v3, %v402_v50  ;;  %v19735_v42 = vrot.slane %v14240_v26, 7  ;;  %v7938_v46 = vrot.slane %v7924_v48, %v19733_v33  ;;  %v7939_v47 = vcombine.high %v7931_v4, %v7931_v4 }
  0xb4   :  { %v19737_v39 = vmov %v19734_v34  ;;  %v7955_v50 = vrot.slane %v7941_v18, %v19733_v33  ;;  %v11437_v63 = vrot.slane %v7931_v4, 9  ;;  %v7956_v3 = vcombine.high %v7948_v24, %v7948_v24  ;;  %v14537_v54 = vpop.permute.xlu0 %13122 }
  0xb5   :  { %v179_v60 = vsel %vm177_vm9, %v19735_v42, %v19734_v34  ;;  %v19736_v43 = vmov %v19735_v42  ;;  %13312 = vrot.lane.b32.xlu0 %v13311_v13, %s13468_s16  ;;  %v11441_v37 = vrot.slane %v7948_v24, 9  ;;  %v19738_v34 = vld [vmem:[#allocation54_spill] sm:$0xff]  ;;  %v7940_v17 = vcombine.high %v7938_v46, %v7938_v46  ;;  %v14535_v30 = vpop.permute.xlu1 %13107 }
  0xb6   :  { %v211_v41 = vsel %vm177_vm9, %v19737_v39, %v19736_v43  ;;  %v13030_v26 = vunpack.i.h.bf16 %v19738_v34  ;;  %v7957_v56 = vcombine.high %v7955_v50, %v7955_v50  ;;  %v11438_v19 = vrot.slane %v7939_v47, 9 }
  0xb7   :  { %v247_v42 = vsel %vm243_vm10, 0.0, %v211_v41  ;;  %v11439_v0 = vrot.slane %v7938_v46, 9  ;;  %v11442_v39 = vrot.slane %v7956_v3, 9  ;;  %v11443_v43 = vrot.slane %v7955_v50, 9 }
  0xb8   :  { %v8616_v48 = vadd.f32 %v11437_v63, %v7931_v4  ;;  %v8620_v14 = vadd.f32 %v11441_v37, %v7948_v24  ;;  %v11440_v18 = vrot.slane %v7940_v17, 9  ;;  %v11444_v7 = vrot.slane %v7957_v56, 9 }
  0xb9   :  { %v8617_v13 = vadd.f32 %v11438_v19, %v7939_v47  ;;  %v8618_v10 = vadd.f32 %v11439_v0, %v7938_v46  ;;  %v8621_v53 = vadd.f32 %v11442_v39, %v7956_v3  ;;  %v8622_v41 = vadd.f32 %v11443_v43, %v7955_v50  ;;  %v14539_v3 = vpop.permute.xlu1 %13117 }
  0xba   :  { %v8744_v2 = vmul.f32 0.25, %v8616_v48  ;;  %v8748_v28 = vmul.f32 0.25, %v8620_v14  ;;  %v8619_v59 = vadd.f32 %v11440_v18, %v7940_v17  ;;  %v8623_v20 = vadd.f32 %v11444_v7, %v7957_v56  ;;  %v14541_v56 = vpop.permute.xlu0 %13132 }
  0xbb   :  { %v8745_v22 = vmul.f32 0.25, %v8617_v13  ;;  %v8746_v44 = vmul.f32 0.25, %v8618_v10  ;;  %v8749_v57 = vmul.f32 0.25, %v8621_v53  ;;  %v8750_v21 = vmul.f32 0.25, %v8622_v41 }
  0xbc   :  { %v8872_v4 = vpack.c.bf16 %v8744_v2, %v8744_v2  ;;  %v8876_v37 = vpack.c.bf16 %v8748_v28, %v8748_v28  ;;  %v8747_v24 = vmul.f32 0.25, %v8619_v59  ;;  %v8751_v63 = vmul.f32 0.25, %v8623_v20 }
  0xbd   :  { %v8873_v23 = vpack.c.bf16 %v8745_v22, %v8745_v22  ;;  %v8874_v15 = vpack.c.bf16 %v8746_v44, %v8746_v44  ;;  %v8877_v19 = vpack.c.bf16 %v8749_v57, %v8749_v57  ;;  %v8878_v0 = vpack.c.bf16 %v8750_v21, %v8750_v21  ;;  %v14560_v41 = vpop.permute.xlu1 %13127 }
  0xbe   :  { %v9136_v47 = vunpack.c.l.b16 %v8872_v4  ;;  %v9140_v46 = vunpack.c.l.b16 %v8876_v37  ;;  %v8875_v50 = vpack.c.bf16 %v8747_v24, %v8747_v24  ;;  %v8879_v14 = vpack.c.bf16 %v8751_v63, %v8751_v63 }
  0xbf   :  { %v9137_v17 = vunpack.c.l.b16 %v8873_v23  ;;  %v9138_v7 = vunpack.c.l.b16 %v8874_v15  ;;  %v9141_v53 = vunpack.c.l.b16 %v8877_v19  ;;  %v9142_v10 = vunpack.c.l.b16 %v8878_v0  ;;  %v14548_v15 = vld [vmem:[%s19388_s0 + $0x1e0] sm:$0xff]  ;;  %v14553_v23 = vld [vmem:[%s19388_s0 + $0x1e8] sm:$0xff]  ;;  %v14568_v19 = vpop.permute.xlu0 %13142 }
  0xc0   :  { %v9361_v2 = vrot.slane %v9140_v46, 4  ;;  %v1020_v59 = vsel %vm1016_vm11, %v179_v60, %v13030_v26  ;;  %v9139_v20 = vunpack.c.l.b16 %v8875_v50  ;;  %v9143_v22 = vunpack.c.l.b16 %v8879_v14 }
  0xc1   :  { %v9355_v44 = vrot.slane %v9137_v17, 7  ;;  %v9357_v57 = vrot.slane %v9138_v7, 6  ;;  %v9363_v21 = vrot.slane %v9141_v53, 3  ;;  %v9365_v28 = vrot.slane %v9142_v10, 2 }
  0xc2   :  { %v13029_v39 = vunpack.i.l.bf16 %v19738_v34  ;;  %v9359_v26 = vrot.slane %v9139_v20, 5  ;;  %v9367_v43 = vrot.slane %v9143_v22, 1  ;;  %v13040_v48 = vunpack.i.h.bf16 %v14146_v52 }
  0xc3   :  { %v9356_v60 = vsel %vm9153_vm2, %v9355_v44, %v9136_v47  ;;  %v13039_v13 = vunpack.i.l.bf16 %v14146_v52  ;;  %v13321_v63 = vpack.i.bf16 %v14553_v23, %v14548_v15  ;;  %v338_v47 = vrot.slane %v14476_v27, 1 }
  0xc4   :  { %v9358_v18 = vsel %vm9156_vm3, %v9357_v57, %v9356_v60  ;;  %v1019_v34 = vsel %vm1016_vm11, %v247_v42, %v13029_v39  ;;  %v1083_v37 = vsel %vm1081_vm12, %v14490_v35, %v13040_v48  ;;  %v370_v35 = vrot.slane %v14481_v31, 1 }
  0xc5   :  { %v9360_v4 = vsel %vm9159_vm4, %v9359_v26, %v9358_v18  ;;  %v1082_v52 = vsel %vm1081_vm12, %v14494_v9, %v13039_v13  ;;  %13322 = vrot.lane.b32.xlu0 %v13321_v63, %s13467_s9  ;;  %v19739_v14 = vrot.slane %v14248_v51, 7  ;;  %v19740_v17 = vrot.slane %v14254_v36, 7 }
  0xc6   :  { %v9362_v0 = vsel %vm9162_vm5, %v9361_v2, %v9360_v4  ;;  %v1146_v50 = vpack.c.bf16 %v1083_v37, %v1082_v52  ;;  %v13035_v20 = vunpack.i.h.bf16 %v14148_v58  ;;  %v13034_v22 = vunpack.i.l.bf16 %v14148_v58  ;;  %v14611_v58 = vld [vmem:[%s19388_s0 + $0x1f8] sm:$0xff]  ;;  %v14623_v37 = vpop.permute.xlu0 %13152 }
  0xc7   :  { %v9364_v46 = vsel %vm9165_vm6, %v9363_v21, %v9362_v0  ;;  %v180_v7 = vsel %vm177_vm9, %v19740_v17, %v19739_v14  ;;  %v19741_v53 = vmov %v19740_v17  ;;  %v19742_v10 = vmov %v19739_v14  ;;  %v14606_v21 = vld [vmem:[%s19388_s0 + $0x1f0] sm:$0xff] }
  0xc8   :  { %v9366_v9 = vsel %vm9168_vm7, %v9365_v28, %v9364_v46  ;;  %v212_v2 = vsel %vm177_vm9, %v19742_v10, %v19741_v53  ;;  %1179 = vst.msk [vmem:[#allocation2 + $0x8] sm:$0xff] %vm28_vm13, %v1146_v50  ;;  %v403_v57 = vsel %vm373_vm0, %v338_v47, %v370_v35  ;;  %v435_v36 = vsel %vm373_vm0, %v370_v35, %v338_v47 }
  0xc9   :  { %v14594_v44 = vsel %vm9171_vm8, %v9367_v43, %v9366_v9  ;;  %v249_v51 = vsel %vm243_vm10, 0.0, %v212_v2  ;;  %v499_v28 = vsel %vm439_vm1, 0.0, %v435_v36  ;;  %v1022_v39 = vsel %vm1016_vm11, %v180_v7, %v13035_v20  ;;  %v14618_v43 = vpop.permute.xlu1 %13137 }
  0xca   :  { %19743 = vst [vmem:[#allocation52_spill] sm:$0xff] %v14594_v44  ;;  %v1021_v60 = vsel %vm1016_vm11, %v249_v51, %v13034_v22  ;;  %v13045_v26 = vunpack.i.h.bf16 %v14153_v5  ;;  %v13316_v48 = vpack.i.bf16 %v499_v28, %v403_v57  ;;  %v13044_v18 = vunpack.i.l.bf16 %v14153_v5 }
  0xcb   :  { %v339_v13 = vrot.slane %v14548_v15, 1  ;;  %v371_v4 = vrot.slane %v14553_v23, 1  ;;  %v13326_v52 = vpack.i.bf16 %v14611_v58, %v14606_v21  ;;  %v7415_v17 = vadd.f32 %v14611_v58, %v14553_v23 }
  0xcc   :  { %v1085_v63 = vsel %vm1081_vm12, %v1020_v59, %v13045_v26  ;;  %13317 = vrot.lane.b32.xlu1 %v13316_v48, %s13468_s16  ;;  %v1084_v46 = vsel %vm1081_vm12, %v1019_v34, %v13044_v18  ;;  %v7414_v59 = vadd.f32 %v14606_v21, %v14548_v15  ;;  %v13055_v7 = vunpack.i.h.bf16 %v14165_v25 }
  0xcd   :  { %v404_v5 = vsel %vm373_vm0, %v339_v13, %v371_v4  ;;  %v436_v50 = vsel %vm373_vm0, %v371_v4, %v339_v13  ;;  %v1147_v35 = vpack.c.bf16 %v1085_v63, %v1084_v46  ;;  %v13054_v10 = vunpack.i.l.bf16 %v14165_v25  ;;  %v14656_v26 = vpop.permute.xlu1 %13147  ;;  %v14662_v13 = vpop.permute.xlu0 %13162 }
  0xce   :  { %v501_v14 = vsel %vm439_vm1, 0.0, %v436_v50  ;;  %v7958_v34 = vcombine.high %v7414_v59, %v7414_v59  ;;  %v7965_v53 = vrot.slane %v7414_v59, %v19733_v33  ;;  %v7975_v2 = vcombine.high %v7415_v17, %v7415_v17 }
  0xcf   :  { %v13331_v9 = vpack.i.bf16 %v501_v14, %v404_v5  ;;  %1180 = vst.msk [vmem:[#allocation2 + $0x10] sm:$0xff] %vm28_vm13, %v1147_v35  ;;  %v7982_v20 = vrot.slane %v7415_v17, %v19733_v33  ;;  %v1087_v22 = vsel %vm1081_vm12, %v1022_v39, %v13055_v7  ;;  %v19744_v57 = vrot.slane %v14263_v1, 7  ;;  %v1245_v28 = vld [vmem:[#allocation2 + $0x8] sm:$0xff] }
  0xd0   :  { %v19745_v36 = vrot.slane %v14269_v38, 7  ;;  %v7972_v25 = vrot.slane %v7958_v34, %v19733_v33  ;;  %v7973_v48 = vcombine.high %v7965_v53, %v7965_v53  ;;  %v11445_v18 = vrot.slane %v7965_v53, 9  ;;  %13327 = vrot.lane.b32.xlu1 %v13326_v52, %s13467_s9  ;;  %12428 = vmatprep.mubr.msk.bf16.mxu0 %vm28_vm13, %v1245_v28 }
  0xd1   :  { %13332 = vrot.lane.b32.xlu0 %v13331_v9, %s13468_s16  ;;  %v1086_v39 = vsel %vm1081_vm12, %v1021_v60, %v13054_v10  ;;  %v7989_v4 = vrot.slane %v7975_v2, %v19733_v33  ;;  %v7990_v63 = vcombine.high %v7982_v20, %v7982_v20  ;;  %v11449_v46 = vrot.slane %v7982_v20, 9 }
  0xd2   :  { %v14654_v51 = vsel %vm177_vm9, %v19745_v36, %v19744_v57  ;;  %v1148_v5 = vpack.c.bf16 %v1087_v22, %v1086_v39  ;;  %v7974_v50 = vcombine.high %v7972_v25, %v7972_v25  ;;  %v11446_v59 = vrot.slane %v7973_v48, 9  ;;  %v14667_v39 = vpop.permute.xlu1 %13157 }
  0xd3   :  { %v11447_v35 = vrot.slane %v7972_v25, 9  ;;  %v8624_v14 = vadd.f32 %v11445_v18, %v7965_v53  ;;  %v7991_v17 = vcombine.high %v7989_v4, %v7989_v4  ;;  %v11450_v7 = vrot.slane %v7990_v63, 9  ;;  %v14669_v18 = vpop.permute.xlu0 %13172 }
  0xd4   :  { %v11451_v9 = vrot.slane %v7989_v4, 9  ;;  %v8628_v34 = vadd.f32 %v11449_v46, %v7982_v20  ;;  %1181 = vst.msk [vmem:[#allocation2 + $0x18] sm:$0xff] %vm28_vm13, %v1148_v5  ;;  %v11448_v60 = vrot.slane %v7974_v50, 9  ;;  %v8625_v52 = vadd.f32 %v11446_v59, %v7973_v48 }
  0xd5   :  { %v8626_v10 = vadd.f32 %v11447_v35, %v7972_v25  ;;  %v8752_v57 = vmul.f32 0.25, %v8624_v14  ;;  %v11452_v2 = vrot.slane %v7991_v17, 9  ;;  %v8629_v36 = vadd.f32 %v11450_v7, %v7990_v63 }
  0xd6   :  { %v8630_v47 = vadd.f32 %v11451_v9, %v7989_v4  ;;  %v8756_v22 = vmul.f32 0.25, %v8628_v34  ;;  %v8627_v28 = vadd.f32 %v11448_v60, %v7974_v50  ;;  %v8753_v0 = vmul.f32 0.25, %v8625_v52 }
  0xd7   :  { %v8754_v42 = vmul.f32 0.25, %v8626_v10  ;;  %v8880_v53 = vpack.c.bf16 %v8752_v57, %v8752_v57  ;;  %v8631_v24 = vadd.f32 %v11452_v2, %v7991_v17  ;;  %v8757_v20 = vmul.f32 0.25, %v8629_v36  ;;  %v14681_v36 = vpop.permute.xlu0 %13182 }
  0xd8   :  { %v8758_v46 = vmul.f32 0.25, %v8630_v47  ;;  %v8884_v5 = vpack.c.bf16 %v8756_v22, %v8756_v22  ;;  %v8755_v33 = vmul.f32 0.25, %v8627_v28  ;;  %v8881_v48 = vpack.c.bf16 %v8753_v0, %v8753_v0 }
  0xd9   :  { %v8882_v25 = vpack.c.bf16 %v8754_v42, %v8754_v42  ;;  %v9144_v59 = vunpack.c.l.b16 %v8880_v53  ;;  %v8759_v35 = vmul.f32 0.25, %v8631_v24  ;;  %v8885_v63 = vpack.c.bf16 %v8757_v20, %v8757_v20  ;;  %v14677_v42 = vpop.permute.xlu1 %13167 }
  0xda   :  { %v8886_v4 = vpack.c.bf16 %v8758_v46, %v8758_v46  ;;  %v9148_v14 = vunpack.c.l.b16 %v8884_v5  ;;  %v8883_v7 = vpack.c.bf16 %v8755_v33, %v8755_v33  ;;  %v9145_v9 = vunpack.c.l.b16 %v8881_v48 }
  0xdb   :  { %v9146_v50 = vunpack.c.l.b16 %v8882_v25  ;;  %v19746_v34 = vrot.slane %v14269_v38, 7  ;;  %v19747_v60 = vrot.slane %v14263_v1, 7  ;;  %v8887_v47 = vpack.c.bf16 %v8759_v35, %v8759_v35 }
  0xdc   :  { %v9149_v52 = vunpack.c.l.b16 %v8885_v63  ;;  %v9150_v10 = vunpack.c.l.b16 %v8886_v4  ;;  %v9375_v0 = vrot.slane %v9148_v14, 4  ;;  %v9147_v24 = vunpack.c.l.b16 %v8883_v7 }
  0xdd   :  { %v213_v17 = vsel %vm177_vm9, %v19747_v60, %v19746_v34  ;;  %v9369_v57 = vrot.slane %v9145_v9, 7  ;;  %v9371_v2 = vrot.slane %v9146_v50, 6  ;;  %v9151_v38 = vunpack.c.l.b16 %v8887_v47 }
  0xde   :  { %v251_v33 = vsel %vm243_vm10, 0.0, %v213_v17  ;;  %v9377_v22 = vrot.slane %v9149_v52, 3  ;;  %v9379_v1 = vrot.slane %v9150_v10, 2  ;;  %v13050_v28 = vunpack.i.h.bf16 %v14199_v12  ;;  %v14715_v52 = vpop.permute.xlu1 %13177 }
  0xdf   :  { %v9370_v53 = vsel %vm9153_vm2, %v9369_v57, %v9144_v59  ;;  %v9373_v20 = vrot.slane %v9147_v24, 5  ;;  %v13049_v46 = vunpack.i.l.bf16 %v14199_v12  ;;  %v340_v5 = vrot.slane %v14606_v21, 1 }
  0xe0   :  { %v9372_v48 = vsel %vm9156_vm3, %v9371_v2, %v9370_v53  ;;  %v9381_v25 = vrot.slane %v9151_v38, 1  ;;  %v1024_v35 = vsel %vm1016_vm11, %v14654_v51, %v13050_v28  ;;  %v372_v63 = vrot.slane %v14611_v58, 1  ;;  %v14722_v2 = vpop.permute.xlu0 %13192  ;;  %v19753_v28 = vld [vmem:[#allocation63_spill] sm:$0xff] }
  0xe1   :  { %v9374_v4 = vsel %vm9159_vm4, %v9373_v20, %v9372_v48  ;;  %v1023_v14 = vsel %vm1016_vm11, %v251_v33, %v13049_v46  ;;  %v19748_v7 = vrot.slane %v14275_v29, 7  ;;  %v19749_v59 = vrot.slane %v14283_v55, 7  ;;  %v13341_v55 = vld [vmem:[%s19389_s1 + $0x8] sm:$0x3f]  }
  0xe2   :  { %v9376_v34 = vsel %vm9162_vm5, %v9375_v0, %v9374_v4  ;;  %v405_v60 = vsel %vm373_vm0, %v340_v5, %v372_v63  ;;  %v437_v17 = vsel %vm373_vm0, %v372_v63, %v340_v5  ;;  %v19752_v0 = vld [vmem:[#allocation61_spill] sm:$0xff]  ;;  %v13060_v53 = vunpack.i.h.bf16 %v19753_v28  ;;  %13010 = vmatprep.subr.msk.bf16.mxu0 %vm1381_vm14, %v13341_v55 }
  0xe3   :  { %v182_v12 = vsel %vm177_vm9, %v19749_v59, %v19748_v7  ;;  %v19750_v9 = vmov %v19749_v59  ;;  %v19751_v50 = vmov %v19748_v7  ;;  %v9378_v29 = vsel %vm9165_vm6, %v9377_v22, %v9376_v34  ;;  %v13342_v22 = vld [vmem:[%s19389_s1] sm:$0x3f]   ;;  %v19755_v59 = vld [vmem:[#allocation64_spill] sm:$0xff]  ;;  %v19758_v34 = vld [vmem:[#allocation66_spill] sm:$0xff] }
  0xe4   :  { %v214_v51 = vsel %vm177_vm9, %v19751_v50, %v19750_v9  ;;  %v503_v10 = vsel %vm439_vm1, 0.0, %v437_v17  ;;  %v13065_v24 = vunpack.i.h.bf16 %v19752_v0  ;;  %v13064_v57 = vunpack.i.l.bf16 %v19752_v0  ;;  %v19756_v50 = vld [vmem:[#allocation65_spill] sm:$0xff] }
  0xe5   :  { %v253_v47 = vsel %vm243_vm10, 0.0, %v214_v51  ;;  %v9380_v33 = vsel %vm9168_vm7, %v9379_v1, %v9378_v29  ;;  %v13336_v38 = vpack.i.bf16 %v503_v10, %v405_v60  ;;  %v13059_v20 = vunpack.i.l.bf16 %v19753_v28  ;;  %v19762_v29 = vld [vmem:[#allocation73_spill] sm:$0xff] }
  0xe6   :  { %v14731_v46 = vsel %vm9171_vm8, %v9381_v25, %v9380_v33  ;;  %v1026_v5 = vsel %vm1016_vm11, %v182_v12, %v13065_v24  ;;  %v1025_v48 = vsel %vm1016_vm11, %v253_v47, %v13064_v57  ;;  %v1089_v4 = vsel %vm1081_vm12, %v1024_v35, %v13060_v53  ;;  %v14762_v57 = vld [vmem:[#allocation2 + $0x18] sm:$0xff]  ;;  %v14764_v33 = vpop.permute.xlu1 %13187 }
  0xe7   :  { %19754 = vst [vmem:[#allocation54_spill] sm:$0xff] %v14731_v46  ;;  %13337 = vrot.lane.b32.xlu1 %v13336_v38, %s13468_s16  ;;  %v1088_v63 = vsel %vm1081_vm12, %v1023_v14, %v13059_v20  ;;  %v1383_v7 = vsel %vm1381_vm14, %v13341_v55, 0  ;;  %v13075_v12 = vunpack.i.h.bf16 %v19755_v59  ;;  %v13074_v9 = vunpack.i.l.bf16 %v19755_v59  ;;  %v14750_v14 = vld [vmem:[#allocation2 + $0x10] sm:$0xff] }
  0xe8   :  { %v1149_v25 = vpack.c.bf16 %v1089_v4, %v1088_v63  ;;  %12427 = vmatpush3.bf16.msra.mxu0 %v1383_v7  ;;  %v19757_v51 = vrot.slane %v19756_v50, 7  ;;  %v19759_v60 = vrot.slane %v19758_v34, 7  ;;  %v13070_v10 = vunpack.i.h.bf16 %v19762_v29  ;;  %v14769_v38 = vld [vmem:[%s19389_s1 + $0x10] sm:$0x3f]   ;;  %v19763_v63 = vld [vmem:[#allocation67_spill] sm:$0xff]  ;;  %v19765_v4 = vld [vmem:[#allocation68_spill] sm:$0xff]  ;;  %v14782_v50 = vpop.permute.xlu0 %13202 }
  0xe9   :  { %v13069_v0 = vunpack.i.l.bf16 %v19762_v29  ;;  %13011 = vmatprep.subr.msk.bf16.mxu0 %vm1381_vm14, %v13342_v22  ;;  %v1776_v24 = vsel %vm1381_vm14, %v13342_v22, 0  ;;  %v1090_v28 = vsel %vm1081_vm12, %v1025_v48, %v13074_v9  ;;  %v1091_v53 = vsel %vm1081_vm12, %v1026_v5, %v13075_v12 }
  0xea   :  { %v183_v17 = vsel %vm177_vm9, %v19759_v60, %v19757_v51  ;;  %v19760_v35 = vmov %v19759_v60  ;;  %v19761_v47 = vmov %v19757_v51  ;;  %1182 = vst.msk [vmem:[#allocation2 + $0x20] sm:$0xff] %vm28_vm13, %v1149_v25  ;;  %v19764_v22 = vrot.slane %v19763_v63, 7  ;;  %v19769_v60 = vld [vmem:[#allocation79_spill] sm:$0xff] }
  0xeb   :  { %v215_v55 = vsel %vm177_vm9, %v19761_v47, %v19760_v35  ;;  %v19766_v7 = vrot.slane %v19765_v4, 7  ;;  %v1150_v51 = vpack.c.bf16 %v1091_v53, %v1090_v28  ;;  %v1028_v34 = vsel %vm1016_vm11, %v183_v17, %v13070_v10  ;;  %12429 = vmatmul.mubr.msk.bf16.vlgmr.msra.gmra.mrb[0].mxu0 %vm28_vm13, %v14750_v14  ;;  %v19772_v28 = vld [vmem:[#allocation72_spill] sm:$0xff] }
  0xec   :  { %v255_v20 = vsel %vm243_vm10, 0.0, %v215_v55  ;;  %v19768_v48 = vmov %v19764_v22  ;;  %12493 = vmatpush3.bf16.msra.mxu0 %v1776_v24  ;;  %v13085_v35 = vunpack.i.h.bf16 %v19769_v60  ;;  %v13084_v17 = vunpack.i.l.bf16 %v19769_v60  ;;  %12432 = vmatprep.mubr.msk.bf16.mxu0 %vm28_vm13, %v14762_v57 }
  0xed   :  { %v184_v59 = vsel %vm177_vm9, %v19766_v7, %v19764_v22  ;;  %v1027_v25 = vsel %vm1016_vm11, %v255_v20, %v13069_v0  ;;  %v19767_v5 = vmov %v19766_v7  ;;  %v13080_v47 = vunpack.i.h.bf16 %v14419_v61  ;;  %1183 = vst.msk [vmem:[#allocation2 + $0x28] sm:$0xff] %vm28_vm13, %v1150_v51  ;;  %v19770_v0 = vld [vmem:[#allocation69_spill] sm:$0xff]  ;;  %13012 = vmatprep.subr.msk.bf16.mxu0 %vm1381_vm14, %v14769_v38 }
  0xee   :  { %v216_v12 = vsel %vm177_vm9, %v19768_v48, %v19767_v5  ;;  %v13079_v55 = vunpack.i.l.bf16 %v14419_v61  ;;  %v13095_v29 = vunpack.i.h.bf16 %v14427_v45  ;;  %v13094_v10 = vunpack.i.l.bf16 %v14427_v45 }
  0xef   :  { %v257_v9 = vsel %vm243_vm10, 0.0, %v216_v12  ;;  %v19771_v24 = vrot.slane %v19770_v0, 7  ;;  %v19773_v53 = vrot.slane %v19772_v28, 7  ;;  %v1030_v63 = vsel %vm1016_vm11, %v184_v59, %v13085_v35  ;;  %v14827_v12 = vpop.permute.xlu1 %13197 }
  0xf0   :  { %v1029_v22 = vsel %vm1016_vm11, %v257_v9, %v13084_v17  ;;  %v1093_v61 = vsel %vm1081_vm12, %v1028_v34, %v13080_v47  ;;  %v1092_v51 = vsel %vm1081_vm12, %v1027_v25, %v13079_v55  ;;  %v1095_v48 = vsel %vm1081_vm12, %v1030_v63, %v13095_v29  ;;  %v14831_v17 = vpop.permute.xlu0 %13212  ;;  %v19776_v25 = vld [vmem:[#allocation74_spill] sm:$0xff] }
  0xf1   :  { %v185_v20 = vsel %vm177_vm9, %v19773_v53, %v19771_v24  ;;  %v19774_v4 = vmov %v19773_v53  ;;  %v19775_v45 = vmov %v19771_v24  ;;  %v1094_v5 = vsel %vm1081_vm12, %v1029_v22, %v13094_v10  ;;  %v14833_v47 = vld [vmem:[#allocation2 + $0x20] sm:$0xff] }
  0xf2   :  { %v217_v7 = vsel %vm177_vm9, %v19775_v45, %v19774_v4  ;;  %v1151_v9 = vpack.c.bf16 %v1093_v61, %v1092_v51  ;;  %v1152_v34 = vpack.c.bf16 %v1095_v48, %v1094_v5  ;;  %v13090_v60 = vunpack.i.h.bf16 %v14456_v40  ;;  %v19778_v10 = vld [vmem:[#allocation75_spill] sm:$0xff] }
  0xf3   :  { %v259_v59 = vsel %vm243_vm10, 0.0, %v217_v7  ;;  %v13089_v35 = vunpack.i.l.bf16 %v14456_v40  ;;  %v19777_v55 = vrot.slane %v19776_v25, 7  ;;  %v19779_v0 = vrot.slane %v19778_v10, 7  ;;  %12433 = vmatmul.mubr.msk.bf16.gmra.mrb[4].mxu0 %vm28_vm13, %v14833_v47 }
  0xf4   :  { %v13105_v40 = vunpack.i.h.bf16 %v14466_v49  ;;  %v13104_v63 = vunpack.i.l.bf16 %v14466_v49  ;;  %1184 = vst.msk [vmem:[#allocation2 + $0x30] sm:$0xff] %vm28_vm13, %v1151_v9  ;;  %1185 = vst.msk [vmem:[#allocation2 + $0x38] sm:$0xff] %vm28_vm13, %v1152_v34  ;;  %v1032_v22 = vsel %vm1016_vm11, %v185_v20, %v13090_v60  ;;  %v13100_v45 = vunpack.i.h.bf16 %v14508_v62  ;;  %v14863_v48 = vld [vmem:[#allocation2 + $0x28] sm:$0xff]  ;;  %v19784_v60 = vld [vmem:[#allocation82_spill] sm:$0xff] }
  0xf5   :  { %v186_v29 = vsel %vm177_vm9, %v19779_v0, %v19777_v55  ;;  %v19780_v24 = vmov %v19779_v0  ;;  %v19781_v28 = vmov %v19777_v55  ;;  %v1031_v61 = vsel %vm1016_vm11, %v259_v59, %v13089_v35  ;;  %v19782_v9 = vld [vmem:[#allocation76_spill] sm:$0xff]  ;;  %12436 = vmatprep.mubr.msk.bf16.mxu0 %vm28_vm13, %v14863_v48 }
  0xf6   :  { %v218_v53 = vsel %vm177_vm9, %v19781_v28, %v19780_v24  ;;  %v1034_v7 = vsel %vm1016_vm11, %v186_v29, %v13105_v40  ;;  %v13099_v51 = vunpack.i.l.bf16 %v14508_v62  ;;  %v13115_v5 = vunpack.i.h.bf16 %v14514_v8  ;;  %v14885_v28 = vpop.permute.xlu1 %13207 }
  0xf7   :  { %v261_v4 = vsel %vm243_vm10, 0.0, %v218_v53  ;;  %v1097_v20 = vsel %vm1081_vm12, %v1032_v22, %v13100_v45  ;;  %v13114_v59 = vunpack.i.l.bf16 %v14514_v8  ;;  %v19783_v34 = vrot.slane %v19782_v9, 7  ;;  %v19788_v22 = vld [vmem:[#allocation83_spill] sm:$0xff] }
  0xf8   :  { %v1033_v49 = vsel %vm1016_vm11, %v261_v4, %v13104_v63  ;;  %v19785_v35 = vrot.slane %v19784_v60, 7  ;;  %v1096_v0 = vsel %vm1081_vm12, %v1031_v61, %v13099_v51  ;;  %v1099_v8 = vsel %vm1081_vm12, %v1034_v7, %v13115_v5  ;;  %v14895_v7 = vpop.permute.xlu0 %13222 }
  0xf9   :  { %v19787_v10 = vmov %v19783_v34  ;;  %v13110_v24 = vunpack.i.h.bf16 %v14535_v30  ;;  %v1153_v53 = vpack.c.bf16 %v1097_v20, %v1096_v0  ;;  %v1098_v40 = vsel %vm1081_vm12, %v1033_v49, %v13114_v59 }
  0xfa   :  { %v187_v25 = vsel %vm177_vm9, %v19785_v35, %v19783_v34  ;;  %v19786_v55 = vmov %v19785_v35  ;;  %v13109_v63 = vunpack.i.l.bf16 %v14535_v30  ;;  %v19789_v4 = vrot.slane %v19788_v22, 7 }
  0xfb   :  { %v219_v62 = vsel %vm177_vm9, %v19787_v10, %v19786_v55  ;;  %v19790_v61 = vrot.slane %v14400_v32, 7  ;;  %v1154_v51 = vpack.c.bf16 %v1099_v8, %v1098_v40  ;;  %v1036_v5 = vsel %vm1016_vm11, %v187_v25, %v13110_v24  ;;  %1186 = vst.msk [vmem:[#allocation2 + $0x40] sm:$0xff] %vm28_vm13, %v1153_v53  ;;  %v14912_v32 = vld [vmem:[#allocation2 + $0x30] sm:$0xff]  ;;  %v14916_v10 = vld [vmem:[#allocation2 + $0x38] sm:$0xff] }
  0xfc   :  { %v263_v29 = vsel %vm243_vm10, 0.0, %v219_v62  ;;  %v19792_v20 = vmov %v19789_v4  ;;  %v13125_v30 = vunpack.i.h.bf16 %v14537_v54  ;;  %v13124_v60 = vunpack.i.l.bf16 %v14537_v54  ;;  %v19794_v24 = vld [vmem:[#allocation17_spill] sm:$0xff]  ;;  %12437 = vmatmul.mubr.msk.bf16.gmra.mrb[8].mxu0 %vm28_vm13, %v14912_v32 }
  0xfd   :  { %v188_v45 = vsel %vm177_vm9, %v19790_v61, %v19789_v4  ;;  %v19791_v9 = vmov %v19790_v61  ;;  %v1035_v59 = vsel %vm1016_vm11, %v263_v29, %v13109_v63  ;;  %v13120_v35 = vunpack.i.h.bf16 %v14539_v3  ;;  %1187 = vst.msk [vmem:[#allocation2 + $0x48] sm:$0xff] %vm28_vm13, %v1154_v51  ;;  %v14941_v51 = vpop.permute.xlu1 %13217  ;;  %12440 = vmatprep.mubr.msk.bf16.mxu0 %vm28_vm13, %v14916_v10 }
  0xfe   :  { %v220_v49 = vsel %vm177_vm9, %v19792_v20, %v19791_v9  ;;  %v1038_v25 = vsel %vm1016_vm11, %v188_v45, %v13125_v30  ;;  %v13119_v55 = vunpack.i.l.bf16 %v14539_v3  ;;  %v13135_v62 = vunpack.i.h.bf16 %v14541_v56  ;;  %v19798_v30 = vld [vmem:[#allocation19_spill] sm:$0xff] }
  0xff   :  { %v265_v34 = vsel %vm243_vm10, 0.0, %v220_v49  ;;  %v13134_v0 = vunpack.i.l.bf16 %v14541_v56  ;;  %v1101_v54 = vsel %vm1081_vm12, %v1036_v5, %v13120_v35  ;;  %v19793_v29 = vrot.slane %v13757_v16, 7  ;;  %v14947_v49 = vpop.permute.xlu0 %13232 }
 0x100   :  { %v1037_v8 = vsel %vm1016_vm11, %v265_v34, %v13124_v60  ;;  %v19795_v53 = vrot.slane %v19794_v24, 7  ;;  %v1100_v56 = vsel %vm1081_vm12, %v1035_v59, %v13119_v55  ;;  %v1103_v61 = vsel %vm1081_vm12, %v1038_v25, %v13135_v62  ;;  %v19800_v34 = vld [vmem:[#allocation18_spill] sm:$0xff] }
 0x101   :  { %v19797_v3 = vmov %v19793_v29  ;;  %v1102_v4 = vsel %vm1081_vm12, %v1037_v8, %v13134_v0  ;;  %v1155_v5 = vpack.c.bf16 %v1101_v54, %v1100_v56  ;;  %v13130_v9 = vunpack.i.h.bf16 %v14560_v41 }
 0x102   :  { %v189_v40 = vsel %vm177_vm9, %v19795_v53, %v19793_v29  ;;  %v19796_v63 = vmov %v19795_v53  ;;  %v1156_v16 = vpack.c.bf16 %v1103_v61, %v1102_v4  ;;  %v13129_v20 = vunpack.i.l.bf16 %v14560_v41  ;;  %v19804_v4 = vld [vmem:[#allocation23_spill] sm:$0xff] }
 0x103   :  { %v221_v22 = vsel %vm177_vm9, %v19797_v3, %v19796_v63  ;;  %v19799_v59 = vrot.slane %v19798_v30, 7  ;;  %v19801_v60 = vrot.slane %v19800_v34, 7  ;;  %v13145_v0 = vunpack.i.h.bf16 %v14568_v19  ;;  %1188 = vst.msk [vmem:[#allocation2 + $0x50] sm:$0xff] %vm28_vm13, %v1155_v5 }
 0x104   :  { %v267_v45 = vsel %vm243_vm10, 0.0, %v221_v22  ;;  %v13144_v41 = vunpack.i.l.bf16 %v14568_v19  ;;  %1189 = vst.msk [vmem:[#allocation2 + $0x58] sm:$0xff] %vm28_vm13, %v1156_v16  ;;  %v1040_v8 = vsel %vm1016_vm11, %v189_v40, %v13130_v9  ;;  %v13140_v24 = vunpack.i.h.bf16 %v14618_v43  ;;  %v14974_v22 = vld [vmem:[#allocation2 + $0x40] sm:$0xff] }
 0x105   :  { %v190_v35 = vsel %vm177_vm9, %v19801_v60, %v19799_v59  ;;  %v19802_v25 = vmov %v19801_v60  ;;  %v19803_v55 = vmov %v19799_v59  ;;  %v1039_v54 = vsel %vm1016_vm11, %v267_v45, %v13129_v20  ;;  %v19806_v45 = vld [vmem:[#allocation22_spill] sm:$0xff]  ;;  %v14991_v59 = vld [vmem:[#allocation2 + $0x48] sm:$0xff]  ;;  %12441 = vmatmul.mubr.msk.bf16.gmra.mrb[12].mxu0 %vm28_vm13, %v14974_v22 }
 0x106   :  { %v222_v62 = vsel %vm177_vm9, %v19803_v55, %v19802_v25  ;;  %v1042_v53 = vsel %vm1016_vm11, %v190_v35, %v13145_v0  ;;  %v13139_v3 = vunpack.i.l.bf16 %v14618_v43  ;;  %v13155_v19 = vunpack.i.h.bf16 %v14623_v37  ;;  %v14997_v35 = vpop.permute.xlu1 %13227  ;;  %v19810_v0 = vld [vmem:[#allocation25_spill] sm:$0xff]  ;;  %12444 = vmatprep.mubr.msk.bf16.mxu0 %vm28_vm13, %v14991_v59 }
 0x107   :  { %v269_v29 = vsel %vm243_vm10, 0.0, %v222_v62  ;;  %v1105_v56 = vsel %vm1081_vm12, %v1040_v8, %v13140_v24  ;;  %v13154_v40 = vunpack.i.l.bf16 %v14623_v37  ;;  %v19805_v61 = vrot.slane %v19804_v4, 7  ;;  %v19812_v8 = vld [vmem:[#allocation24_spill] sm:$0xff]  ;;  %v15007_v24 = vpop.permute.xlu0 %13242 }
 0x108   :  { %v1041_v63 = vsel %vm1016_vm11, %v269_v29, %v13144_v41  ;;  %v19807_v5 = vrot.slane %v19806_v45, 7  ;;  %v1104_v30 = vsel %vm1081_vm12, %v1039_v54, %v13139_v3  ;;  %v1107_v37 = vsel %vm1081_vm12, %v1042_v53, %v13155_v19 }
 0x109   :  { %v19809_v20 = vmov %v19805_v61  ;;  %v13150_v60 = vunpack.i.h.bf16 %v14656_v26  ;;  %v1157_v25 = vpack.c.bf16 %v1105_v56, %v1104_v30  ;;  %v1106_v55 = vsel %vm1081_vm12, %v1041_v63, %v13154_v40 }
 0x10a   :  { %v191_v16 = vsel %vm177_vm9, %v19807_v5, %v19805_v61  ;;  %v19808_v9 = vmov %v19807_v5  ;;  %v13149_v62 = vunpack.i.l.bf16 %v14656_v26  ;;  %v19811_v41 = vrot.slane %v19810_v0, 7 }
 0x10b   :  { %v223_v43 = vsel %vm177_vm9, %v19809_v20, %v19808_v9  ;;  %v19813_v54 = vrot.slane %v19812_v8, 7  ;;  %v1158_v53 = vpack.c.bf16 %v1107_v37, %v1106_v55  ;;  %v1044_v3 = vsel %vm1016_vm11, %v191_v16, %v13150_v60  ;;  %1190 = vst.msk [vmem:[#allocation2 + $0x60] sm:$0xff] %vm28_vm13, %v1157_v25  ;;  %v19816_v37 = vld [vmem:[#allocation27_spill] sm:$0xff]  ;;  %v19818_v60 = vld [vmem:[#allocation26_spill] sm:$0xff] }
 0x10c   :  { %v271_v34 = vsel %vm243_vm10, 0.0, %v223_v43  ;;  %v19815_v63 = vmov %v19811_v41  ;;  %v13165_v56 = vunpack.i.h.bf16 %v14662_v13  ;;  %v13164_v61 = vunpack.i.l.bf16 %v14662_v13 }
 0x10d   :  { %v192_v29 = vsel %vm177_vm9, %v19813_v54, %v19811_v41  ;;  %v19814_v19 = vmov %v19813_v54  ;;  %v1043_v40 = vsel %vm1016_vm11, %v271_v34, %v13149_v62  ;;  %v13160_v45 = vunpack.i.h.bf16 %v14667_v39  ;;  %1191 = vst.msk [vmem:[#allocation2 + $0x68] sm:$0xff] %vm28_vm13, %v1158_v53  ;;  %v15051_v54 = vpop.permute.xlu1 %13237 }
 0x10e   :  { %v224_v26 = vsel %vm177_vm9, %v19815_v63, %v19814_v19  ;;  %v1046_v5 = vsel %vm1016_vm11, %v192_v29, %v13165_v56  ;;  %v13159_v16 = vunpack.i.l.bf16 %v14667_v39  ;;  %v13175_v9 = vunpack.i.h.bf16 %v14669_v18  ;;  %v15053_v29 = vld [vmem:[#allocation2 + $0x50] sm:$0xff]  ;;  %v15059_v56 = vld [vmem:[#allocation2 + $0x58] sm:$0xff] }
 0x10f   :  { %v273_v4 = vsel %vm243_vm10, 0.0, %v224_v26  ;;  %v13174_v20 = vunpack.i.l.bf16 %v14669_v18  ;;  %v1109_v30 = vsel %vm1081_vm12, %v1044_v3, %v13160_v45  ;;  %v19817_v34 = vrot.slane %v19816_v37, 7  ;;  %v15057_v26 = vpop.permute.xlu0 %13252  ;;  %12445 = vmatmul.mubr.msk.bf16.gmra.mrb[16].mxu0 %vm28_vm13, %v15053_v29 }
 0x110   :  { %v1045_v43 = vsel %vm1016_vm11, %v273_v4, %v13164_v61  ;;  %v19819_v13 = vrot.slane %v19818_v60, 7  ;;  %v1108_v18 = vsel %vm1081_vm12, %v1043_v40, %v13159_v16  ;;  %v1111_v41 = vsel %vm1081_vm12, %v1046_v5, %v13175_v9  ;;  %v19822_v40 = vld [vmem:[#allocation29_spill] sm:$0xff]  ;;  %v19824_v61 = vld [vmem:[#allocation28_spill] sm:$0xff]  ;;  %12448 = vmatprep.mubr.msk.bf16.mxu0 %vm28_vm13, %v15059_v56 }
 0x111   :  { %v19821_v62 = vmov %v19817_v34  ;;  %v1110_v0 = vsel %vm1081_vm12, %v1045_v43, %v13174_v20  ;;  %v1159_v53 = vpack.c.bf16 %v1109_v30, %v1108_v18  ;;  %v13170_v19 = vunpack.i.h.bf16 %v14677_v42  ;;  %v19828_v18 = vld [vmem:[#allocation32_spill] sm:$0xff] }
 0x112   :  { %v193_v25 = vsel %vm177_vm9, %v19819_v13, %v19817_v34  ;;  %v19820_v55 = vmov %v19819_v13  ;;  %v1160_v3 = vpack.c.bf16 %v1111_v41, %v1110_v0  ;;  %v13169_v63 = vunpack.i.l.bf16 %v14677_v42  ;;  %v19830_v41 = vld [vmem:[#allocation31_spill] sm:$0xff] }
 0x113   :  { %v225_v39 = vsel %vm177_vm9, %v19821_v62, %v19820_v55  ;;  %v19823_v4 = vrot.slane %v19822_v40, 7  ;;  %v19825_v45 = vrot.slane %v19824_v61, 7  ;;  %v13185_v42 = vunpack.i.h.bf16 %v14681_v36  ;;  %1192 = vst.msk [vmem:[#allocation2 + $0x70] sm:$0xff] %vm28_vm13, %v1159_v53  ;;  %v15109_v61 = vpop.permute.xlu1 %13247 }
 0x114   :  { %v275_v8 = vsel %vm243_vm10, 0.0, %v225_v39  ;;  %v13184_v43 = vunpack.i.l.bf16 %v14681_v36  ;;  %1193 = vst.msk [vmem:[#allocation2 + $0x78] sm:$0xff] %vm28_vm13, %v1160_v3  ;;  %v1048_v30 = vsel %vm1016_vm11, %v193_v25, %v13170_v19  ;;  %v13180_v60 = vunpack.i.h.bf16 %v14715_v52 }
 0x115   :  { %v194_v5 = vsel %vm177_vm9, %v19825_v45, %v19823_v4  ;;  %v19826_v16 = vmov %v19825_v45  ;;  %v19827_v9 = vmov %v19823_v4  ;;  %v1047_v37 = vsel %vm1016_vm11, %v275_v8, %v13169_v63 }
 0x116   :  { %v226_v20 = vsel %vm177_vm9, %v19827_v9, %v19826_v16  ;;  %v1050_v13 = vsel %vm1016_vm11, %v194_v5, %v13185_v42  ;;  %v13179_v55 = vunpack.i.l.bf16 %v14715_v52  ;;  %v13195_v62 = vunpack.i.h.bf16 %v14722_v2  ;;  %v19834_v9 = vld [vmem:[#allocation36_spill] sm:$0xff]  ;;  %v19836_v42 = vld [vmem:[#allocation35_spill] sm:$0xff] }
 0x117   :  { %v277_v34 = vsel %vm243_vm10, 0.0, %v226_v20  ;;  %v1113_v25 = vsel %vm1081_vm12, %v1048_v30, %v13180_v60  ;;  %v13194_v39 = vunpack.i.l.bf16 %v14722_v2  ;;  %v19829_v0 = vrot.slane %v19828_v18, 7 }
 0x118   :  { %v1049_v36 = vsel %vm1016_vm11, %v277_v34, %v13184_v43  ;;  %v19831_v8 = vrot.slane %v19830_v41, 7  ;;  %v1112_v63 = vsel %vm1081_vm12, %v1047_v37, %v13179_v55  ;;  %v1115_v40 = vsel %vm1081_vm12, %v1050_v13, %v13195_v62  ;;  %v15119_v37 = vpop.permute.xlu0 %13262  ;;  %v15129_v62 = vld [vmem:[#allocation2 + $0x60] sm:$0xff]  ;;  %v15137_v41 = vld [vmem:[#allocation2 + $0x68] sm:$0xff] }
 0x119   :  { %v19833_v52 = vmov %v19829_v0  ;;  %v13190_v4 = vunpack.i.h.bf16 %v14764_v33  ;;  %v1161_v45 = vpack.c.bf16 %v1113_v25, %v1112_v63  ;;  %v1114_v5 = vsel %vm1081_vm12, %v1049_v36, %v13194_v39  ;;  %12449 = vmatmul.mubr.msk.bf16.gmra.mrb[20].mxu0 %vm28_vm13, %v15129_v62 }
 0x11a   :  { %v195_v53 = vsel %vm177_vm9, %v19831_v8, %v19829_v0  ;;  %v19832_v3 = vmov %v19831_v8  ;;  %v13189_v16 = vunpack.i.l.bf16 %v14764_v33  ;;  %v19835_v20 = vrot.slane %v19834_v9, 7  ;;  %12452 = vmatprep.mubr.msk.bf16.mxu0 %vm28_vm13, %v15137_v41 }
 0x11b   :  { %v227_v19 = vsel %vm177_vm9, %v19833_v52, %v19832_v3  ;;  %v19837_v43 = vrot.slane %v19836_v42, 7  ;;  %v1162_v34 = vpack.c.bf16 %v1115_v40, %v1114_v5  ;;  %v1052_v60 = vsel %vm1016_vm11, %v195_v53, %v13190_v4  ;;  %1194 = vst.msk [vmem:[#allocation2 + $0x80] sm:$0xff] %vm28_vm13, %v1161_v45  ;;  %v19840_v40 = vld [vmem:[#allocation39_spill] sm:$0xff] }
 0x11c   :  { %v279_v2 = vsel %vm243_vm10, 0.0, %v227_v19  ;;  %v19839_v55 = vmov %v19835_v20  ;;  %v13205_v33 = vunpack.i.h.bf16 %v14782_v50  ;;  %v13204_v18 = vunpack.i.l.bf16 %v14782_v50 }
 0x11d   :  { %v196_v30 = vsel %vm177_vm9, %v19837_v43, %v19835_v20  ;;  %v19838_v13 = vmov %v19837_v43  ;;  %v1051_v25 = vsel %vm1016_vm11, %v279_v2, %v13189_v16  ;;  %v13200_v0 = vunpack.i.h.bf16 %v14827_v12  ;;  %1195 = vst.msk [vmem:[#allocation2 + $0x98] sm:$0xff] %vm28_vm13, %v1162_v34  ;;  %v19842_v2 = vld [vmem:[#allocation38_spill] sm:$0xff]  ;;  %v15165_v43 = vpop.permute.xlu1 %13257 }
 0x11e   :  { %v228_v36 = vsel %vm177_vm9, %v19839_v55, %v19838_v13  ;;  %v1054_v8 = vsel %vm1016_vm11, %v196_v30, %v13205_v33  ;;  %v13199_v53 = vunpack.i.l.bf16 %v14827_v12  ;;  %v13215_v3 = vunpack.i.h.bf16 %v14831_v17  ;;  %v15171_v55 = vpop.permute.xlu0 %13272 }
 0x11f   :  { %v281_v39 = vsel %vm243_vm10, 0.0, %v228_v36  ;;  %v13214_v52 = vunpack.i.l.bf16 %v14831_v17  ;;  %v1117_v63 = vsel %vm1081_vm12, %v1052_v60, %v13200_v0  ;;  %v19841_v50 = vrot.slane %v19840_v40, 7  ;;  %v19846_v36 = vld [vmem:[#allocation41_spill] sm:$0xff] }
 0x120   :  { %v1053_v19 = vsel %vm1016_vm11, %v281_v39, %v13204_v18  ;;  %v19843_v4 = vrot.slane %v19842_v2, 7  ;;  %v1116_v17 = vsel %vm1081_vm12, %v1051_v25, %v13199_v53  ;;  %v1119_v20 = vsel %vm1081_vm12, %v1054_v8, %v13215_v3  ;;  %v19848_v25 = vld [vmem:[#allocation40_spill] sm:$0xff] }
 0x121   :  { %v19845_v16 = vmov %v19841_v50  ;;  %v1118_v9 = vsel %vm1081_vm12, %v1053_v19, %v13214_v52  ;;  %v1163_v30 = vpack.c.bf16 %v1117_v63, %v1116_v17  ;;  %v13210_v60 = vunpack.i.h.bf16 %v14885_v28 }
 0x122   :  { %v197_v45 = vsel %vm177_vm9, %v19843_v4, %v19841_v50  ;;  %v19844_v5 = vmov %v19843_v4  ;;  %v1164_v34 = vpack.c.bf16 %v1119_v20, %v1118_v9  ;;  %v13209_v13 = vunpack.i.l.bf16 %v14885_v28  ;;  %v19854_v9 = vld [vmem:[#allocation44_spill] sm:$0xff] }
 0x123   :  { %v229_v12 = vsel %vm177_vm9, %v19845_v16, %v19844_v5  ;;  %v19847_v33 = vrot.slane %v19846_v36, 7  ;;  %v19849_v39 = vrot.slane %v19848_v25, 7  ;;  %v13225_v3 = vunpack.i.h.bf16 %v14895_v7  ;;  %1196 = vst.msk [vmem:[#allocation2 + $0xa0] sm:$0xff] %vm28_vm13, %v1163_v30  ;;  %v15198_v5 = vld [vmem:[#allocation2 + $0x70] sm:$0xff]  ;;  %v15221_v25 = vpop.permute.xlu1 %13267 }
 0x124   :  { %v283_v42 = vsel %vm243_vm10, 0.0, %v229_v12  ;;  %v13224_v28 = vunpack.i.l.bf16 %v14895_v7  ;;  %1197 = vst.msk [vmem:[#allocation2 + $0xa8] sm:$0xff] %vm28_vm13, %v1164_v34  ;;  %v1056_v52 = vsel %vm1016_vm11, %v197_v45, %v13210_v60  ;;  %v13220_v40 = vunpack.i.h.bf16 %v14941_v51  ;;  %v19852_v12 = vld [vmem:[#allocation45_spill] sm:$0xff]  ;;  %v15214_v60 = vld [vmem:[#allocation2 + $0x78] sm:$0xff]  ;;  %12453 = vmatmul.mubr.msk.bf16.gmra.mrb[24].mxu0 %vm28_vm13, %v15198_v5 }
 0x125   :  { %v198_v18 = vsel %vm177_vm9, %v19849_v39, %v19847_v33  ;;  %v19850_v0 = vmov %v19849_v39  ;;  %v19851_v8 = vmov %v19847_v33  ;;  %v1055_v19 = vsel %vm1016_vm11, %v283_v42, %v13209_v13  ;;  %12456 = vmatprep.mubr.msk.bf16.mxu0 %vm28_vm13, %v15214_v60 }
 0x126   :  { %v230_v53 = vsel %vm177_vm9, %v19851_v8, %v19850_v0  ;;  %v1058_v50 = vsel %vm1016_vm11, %v198_v18, %v13225_v3  ;;  %v13219_v4 = vunpack.i.l.bf16 %v14941_v51  ;;  %v13235_v7 = vunpack.i.h.bf16 %v14947_v49  ;;  %v19858_v8 = vld [vmem:[#allocation47_spill] sm:$0xff]  ;;  %v19860_v3 = vld [vmem:[#allocation46_spill] sm:$0xff] }
 0x127   :  { %v285_v63 = vsel %vm243_vm10, 0.0, %v230_v53  ;;  %v1121_v16 = vsel %vm1081_vm12, %v1056_v52, %v13220_v40  ;;  %v13234_v45 = vunpack.i.l.bf16 %v14947_v49  ;;  %v19853_v17 = vrot.slane %v19852_v12, 7 }
 0x128   :  { %v1057_v2 = vsel %vm1016_vm11, %v285_v63, %v13224_v28  ;;  %v19855_v20 = vrot.slane %v19854_v9, 7  ;;  %v1120_v13 = vsel %vm1081_vm12, %v1055_v19, %v13219_v4  ;;  %v1123_v49 = vsel %vm1081_vm12, %v1058_v50, %v13235_v7  ;;  %v15231_v19 = vpop.permute.xlu0 %13282 }
 0x129   :  { %v19857_v34 = vmov %v19853_v17  ;;  %v13230_v33 = vunpack.i.h.bf16 %v14997_v35  ;;  %v1165_v39 = vpack.c.bf16 %v1121_v16, %v1120_v13  ;;  %v1122_v18 = vsel %vm1081_vm12, %v1057_v2, %v13234_v45 }
 0x12a   :  { %v199_v42 = vsel %vm177_vm9, %v19855_v20, %v19853_v17  ;;  %v19856_v30 = vmov %v19855_v20  ;;  %v13229_v0 = vunpack.i.l.bf16 %v14997_v35  ;;  %v19859_v53 = vrot.slane %v19858_v8, 7 }
 0x12b   :  { %v231_v51 = vsel %vm177_vm9, %v19857_v34, %v19856_v30  ;;  %v19861_v28 = vrot.slane %v19860_v3, 7  ;;  %v1166_v63 = vpack.c.bf16 %v1123_v49, %v1122_v18  ;;  %v1060_v40 = vsel %vm1016_vm11, %v199_v42, %v13230_v33  ;;  %1198 = vst.msk [vmem:[#allocation2 + $0xb0] sm:$0xff] %vm28_vm13, %v1165_v39  ;;  %v19866_v49 = vld [vmem:[#allocation48_spill] sm:$0xff]  ;;  %v15275_v3 = vld [vmem:[#allocation2 + $0x80] sm:$0xff] }
 0x12c   :  { %v287_v36 = vsel %vm243_vm10, 0.0, %v231_v51  ;;  %v19863_v2 = vmov %v19859_v53  ;;  %v13245_v4 = vunpack.i.h.bf16 %v15007_v24  ;;  %v13244_v45 = vunpack.i.l.bf16 %v15007_v24  ;;  %v19864_v51 = vld [vmem:[#allocation49_spill] sm:$0xff]  ;;  %12457 = vmatmul.mubr.msk.bf16.gmra.mrb[28].mxu0 %vm28_vm13, %v15275_v3 }
 0x12d   :  { %v200_v52 = vsel %vm177_vm9, %v19861_v28, %v19859_v53  ;;  %v19862_v50 = vmov %v19861_v28  ;;  %v1059_v7 = vsel %vm1016_vm11, %v287_v36, %v13229_v0  ;;  %v13240_v12 = vunpack.i.h.bf16 %v15051_v54  ;;  %1199 = vst.msk [vmem:[#allocation2 + $0xb8] sm:$0xff] %vm28_vm13, %v1166_v63  ;;  %v13278_v53 = vpop.permute.xlu1 %13277 }
 0x12e   :  { %v232_v35 = vsel %vm177_vm9, %v19863_v2, %v19862_v50  ;;  %v1062_v17 = vsel %vm1016_vm11, %v200_v52, %v13245_v4  ;;  %v13239_v9 = vunpack.i.l.bf16 %v15051_v54  ;;  %v13255_v20 = vunpack.i.h.bf16 %v15057_v26  ;;  %v13293_v50 = vpop.permute.xlu0 %13292  ;;  %v15279_v2 = vld [vmem:[#allocation2 + $0x98] sm:$0xff] }
 0x12f   :  { %v289_v16 = vsel %vm243_vm10, 0.0, %v232_v35  ;;  %v13254_v42 = vunpack.i.l.bf16 %v15057_v26  ;;  %v1125_v34 = vsel %vm1081_vm12, %v1060_v40, %v13240_v12  ;;  %v19865_v13 = vrot.slane %v19864_v51, 7  ;;  %v19870_v35 = vld [vmem:[#allocation51_spill] sm:$0xff]  ;;  %12460 = vmatprep.mubr.msk.bf16.mxu0 %vm28_vm13, %v15279_v2 }
 0x130   :  { %v1061_v30 = vsel %vm1016_vm11, %v289_v16, %v13244_v45  ;;  %v19867_v24 = vrot.slane %v19866_v49, 7  ;;  %v1124_v26 = vsel %vm1081_vm12, %v1059_v7, %v13239_v9  ;;  %v1127_v0 = vsel %vm1081_vm12, %v1062_v17, %v13255_v20  ;;  %v19872_v7 = vld [vmem:[#allocation50_spill] sm:$0xff] }
 0x131   :  { %v19869_v39 = vmov %v19865_v13  ;;  %v1126_v18 = vsel %vm1081_vm12, %v1061_v30, %v13254_v42  ;;  %v1167_v28 = vpack.c.bf16 %v1125_v34, %v1124_v26  ;;  %v13250_v63 = vunpack.i.h.bf16 %v15109_v61  ;;  %v19878_v26 = vld [vmem:[#allocation55_spill] sm:$0xff] }
 0x132   :  { %v201_v36 = vsel %vm177_vm9, %v19867_v24, %v19865_v13  ;;  %v19868_v33 = vmov %v19867_v24  ;;  %v1168_v52 = vpack.c.bf16 %v1127_v0, %v1126_v18  ;;  %v13249_v40 = vunpack.i.l.bf16 %v15109_v61 }
 0x133   :  { %v233_v54 = vsel %vm177_vm9, %v19869_v39, %v19868_v33  ;;  %v19871_v4 = vrot.slane %v19870_v35, 7  ;;  %v19873_v16 = vrot.slane %v19872_v7, 7  ;;  %v13265_v20 = vunpack.i.h.bf16 %v15119_v37  ;;  %1200 = vst.msk [vmem:[#allocation2 + $0xc0] sm:$0xff] %vm28_vm13, %v1167_v28  ;;  %v19876_v39 = vld [vmem:[#allocation56_spill] sm:$0xff]  ;;  %v13288_v35 = vpop.permute.xlu1 %13287 }
 0x134   :  { %v291_v8 = vsel %vm243_vm10, 0.0, %v233_v54  ;;  %v13264_v61 = vunpack.i.l.bf16 %v15119_v37  ;;  %1201 = vst.msk [vmem:[#allocation2 + $0xc8] sm:$0xff] %vm28_vm13, %v1168_v52  ;;  %v1064_v42 = vsel %vm1016_vm11, %v201_v36, %v13250_v63  ;;  %v13260_v51 = vunpack.i.h.bf16 %v15165_v43 }
 0x135   :  { %v202_v45 = vsel %vm177_vm9, %v19873_v16, %v19871_v4  ;;  %v19874_v12 = vmov %v19873_v16  ;;  %v19875_v17 = vmov %v19871_v4  ;;  %v1063_v30 = vsel %vm1016_vm11, %v291_v8, %v13249_v40 }
 0x136   :  { %v234_v9 = vsel %vm177_vm9, %v19875_v17, %v19874_v12  ;;  %v1066_v13 = vsel %vm1016_vm11, %v202_v45, %v13265_v20  ;;  %v13259_v49 = vunpack.i.l.bf16 %v15165_v43  ;;  %v13275_v24 = vunpack.i.h.bf16 %v15171_v55  ;;  %v19882_v45 = vld [vmem:[#allocation59_spill] sm:$0xff]  ;;  %v19884_v17 = vld [vmem:[#allocation58_spill] sm:$0xff] }
 0x137   :  { %v293_v34 = vsel %vm243_vm10, 0.0, %v234_v9  ;;  %v1129_v36 = vsel %vm1081_vm12, %v1064_v42, %v13260_v51  ;;  %v13274_v33 = vunpack.i.l.bf16 %v15171_v55  ;;  %v19877_v54 = vrot.slane %v19876_v39, 7  ;;  %v15352_v39 = vld [vmem:[#allocation2 + $0xa8] sm:$0xff] }
 0x138   :  { %v1065_v37 = vsel %vm1016_vm11, %v293_v34, %v13264_v61  ;;  %v19879_v18 = vrot.slane %v19878_v26, 7  ;;  %v1128_v52 = vsel %vm1081_vm12, %v1063_v30, %v13259_v49  ;;  %v1131_v63 = vsel %vm1081_vm12, %v1066_v13, %v13275_v24  ;;  %v13303_v61 = vpop.permute.xlu0 %13302 }
 0x139   :  { %v19881_v43 = vmov %v19877_v54  ;;  %v13270_v40 = vunpack.i.h.bf16 %v15221_v25  ;;  %v1169_v4 = vpack.c.bf16 %v1129_v36, %v1128_v52  ;;  %v1130_v7 = vsel %vm1081_vm12, %v1065_v37, %v13274_v33  ;;  %v15345_v37 = vld [vmem:[#allocation2 + $0xa0] sm:$0xff] }
 0x13a   :  { %v203_v0 = vsel %vm177_vm9, %v19879_v18, %v19877_v54  ;;  %v19880_v8 = vmov %v19879_v18  ;;  %v13269_v16 = vunpack.i.l.bf16 %v15221_v25  ;;  %v19883_v12 = vrot.slane %v19882_v45, 7  ;;  %12461 = vmatmul.mubr.msk.bf16.gmra.mrb[32].mxu0 %vm28_vm13, %v15345_v37 }
 0x13b   :  { %v235_v28 = vsel %vm177_vm9, %v19881_v43, %v19880_v8  ;;  %v19885_v9 = vrot.slane %v19884_v17, 7  ;;  %v1170_v42 = vpack.c.bf16 %v1131_v63, %v1130_v7  ;;  %v1068_v30 = vsel %vm1016_vm11, %v203_v0, %v13270_v40  ;;  %1202 = vst.msk [vmem:[#allocation2 + $0xd0] sm:$0xff] %vm28_vm13, %v1169_v4  ;;  %v19890_v63 = vld [vmem:[#allocation70_spill] sm:$0xff]  ;;  %12464 = vmatprep.mubr.msk.bf16.mxu0 %vm28_vm13, %v15352_v39 }
 0x13c   :  { %v295_v55 = vsel %vm243_vm10, 0.0, %v235_v28  ;;  %v19887_v51 = vmov %v19883_v12  ;;  %v13285_v25 = vunpack.i.h.bf16 %v15231_v19  ;;  %v13284_v36 = vunpack.i.l.bf16 %v15231_v19  ;;  %v19888_v28 = vld [vmem:[#allocation71_spill] sm:$0xff] }
 0x13d   :  { %v204_v20 = vsel %vm177_vm9, %v19885_v9, %v19883_v12  ;;  %v19886_v34 = vmov %v19885_v9  ;;  %v1067_v49 = vsel %vm1016_vm11, %v295_v55, %v13269_v16  ;;  %v13280_v33 = vunpack.i.h.bf16 %v13278_v53  ;;  %1203 = vst.msk [vmem:[#allocation2 + $0xd8] sm:$0xff] %vm28_vm13, %v1170_v42  ;;  %v13298_v12 = vpop.permute.xlu1 %13297 }
 0x13e   :  { %v236_v13 = vsel %vm177_vm9, %v19887_v51, %v19886_v34  ;;  %v1070_v54 = vsel %vm1016_vm11, %v204_v20, %v13285_v25  ;;  %v13279_v26 = vunpack.i.l.bf16 %v13278_v53  ;;  %v13295_v18 = vunpack.i.h.bf16 %v13293_v50  ;;  %v19894_v34 = vld [vmem:[#allocation78_spill] sm:$0xff] }
 0x13f   :  { %v297_v24 = vsel %vm243_vm10, 0.0, %v236_v13  ;;  %v13294_v0 = vunpack.i.l.bf16 %v13293_v50  ;;  %v1133_v43 = vsel %vm1081_vm12, %v1068_v30, %v13280_v33  ;;  %v19889_v52 = vrot.slane %v19888_v28, 7  ;;  %v13313_v30 = vpop.permute.xlu0 %13312  ;;  %v19896_v13 = vld [vmem:[#allocation77_spill] sm:$0xff] }
 0x140   :  { %v1069_v8 = vsel %vm1016_vm11, %v297_v24, %v13284_v36  ;;  %v19891_v55 = vrot.slane %v19890_v63, 7  ;;  %v1132_v50 = vsel %vm1081_vm12, %v1067_v49, %v13279_v26  ;;  %v1135_v16 = vsel %vm1081_vm12, %v1070_v54, %v13295_v18 }
 0x141   :  { %v19893_v4 = vmov %v19889_v52  ;;  %v1134_v7 = vsel %vm1081_vm12, %v1069_v8, %v13294_v0  ;;  %v1171_v17 = vpack.c.bf16 %v1133_v43, %v1132_v50  ;;  %v13290_v20 = vunpack.i.h.bf16 %v13288_v35 }
 0x142   :  { %v205_v19 = vsel %vm177_vm9, %v19891_v55, %v19889_v52  ;;  %v19892_v40 = vmov %v19891_v55  ;;  %v1172_v9 = vpack.c.bf16 %v1135_v16, %v1134_v7  ;;  %v13289_v42 = vunpack.i.l.bf16 %v13288_v35  ;;  %v15399_v55 = vld [vmem:[#allocation2 + $0xb0] sm:$0xff] }
 0x143   :  { %v237_v53 = vsel %vm177_vm9, %v19893_v4, %v19892_v40  ;;  %v19895_v51 = vrot.slane %v19894_v34, 7  ;;  %v19897_v25 = vrot.slane %v19896_v13, 7  ;;  %v13305_v54 = vunpack.i.h.bf16 %v13303_v61  ;;  %1204 = vst.msk [vmem:[#allocation2 + $0xe0] sm:$0xff] %vm28_vm13, %v1171_v17  ;;  %12465 = vmatmul.mubr.msk.bf16.gmra.mrb[36].mxu0 %vm28_vm13, %v15399_v55 }
 0x144   :  { %v299_v45 = vsel %vm243_vm10, 0.0, %v237_v53  ;;  %v13304_v26 = vunpack.i.l.bf16 %v13303_v61  ;;  %1205 = vst.msk [vmem:[#allocation2 + $0xe8] sm:$0xff] %vm28_vm13, %v1172_v9  ;;  %v1072_v35 = vsel %vm1016_vm11, %v205_v19, %v13290_v20  ;;  %v13300_v8 = vunpack.i.h.bf16 %v13298_v12 }
 0x145   :  { %v206_v49 = vsel %vm177_vm9, %v19897_v25, %v19895_v51  ;;  %v19898_v24 = vmov %v19897_v25  ;;  %v19899_v36 = vmov %v19895_v51  ;;  %v1071_v18 = vsel %vm1016_vm11, %v299_v45, %v13289_v42  ;;  %v15414_v45 = vld [vmem:[#allocation2 + $0xb8] sm:$0xff] }
 0x146   :  { %v238_v33 = vsel %vm177_vm9, %v19899_v36, %v19898_v24  ;;  %v1074_v43 = vsel %vm1016_vm11, %v206_v49, %v13305_v54  ;;  %v13299_v52 = vunpack.i.l.bf16 %v13298_v12  ;;  %v13315_v63 = vunpack.i.h.bf16 %v13313_v30  ;;  %12468 = vmatprep.mubr.msk.bf16.mxu0 %vm28_vm13, %v15414_v45  ;;  %v13308_v54 = vpop.permute.xlu1 %13307 }
 0x147   :  { %v301_v0 = vsel %vm243_vm10, 0.0, %v238_v33  ;;  %v1137_v61 = vsel %vm1081_vm12, %v1072_v35, %v13300_v8  ;;  %v13314_v40 = vunpack.i.l.bf16 %v13313_v30  ;;  %v19900_v4 = vrot.slane %v14481_v31, 7  ;;  %v15470_v8 = vld [vmem:[#allocation2 + $0xd0] sm:$0xff] }
 0x148   :  { %v1073_v28 = vsel %vm1016_vm11, %v301_v0, %v13304_v26  ;;  %v19901_v19 = vrot.slane %v14476_v27, 7  ;;  %v1136_v12 = vsel %vm1081_vm12, %v1071_v18, %v13299_v52  ;;  %v1139_v17 = vsel %vm1081_vm12, %v1074_v43, %v13315_v63  ;;  %v13323_v18 = vpop.permute.xlu0 %13322  ;;  %v15472_v63 = vld [vmem:[#allocation2 + $0xd8] sm:$0xff] }
 0x149   :  { %v19903_v7 = vmov %v19900_v4  ;;  %v1173_v9 = vpack.c.bf16 %v1137_v61, %v1136_v12  ;;  %v1138_v20 = vsel %vm1081_vm12, %v1073_v28, %v13314_v40  ;;  %v19904_v42 = vrot.slane %v14553_v23, 7 }
 0x14a   :  { %v207_v53 = vsel %vm177_vm9, %v19901_v19, %v19900_v4  ;;  %v19902_v50 = vmov %v19901_v19  ;;  %v19905_v30 = vrot.slane %v14548_v15, 7  ;;  %v1174_v31 = vpack.c.bf16 %v1139_v17, %v1138_v20  ;;  %v13318_v52 = vpop.permute.xlu1 %13317 }
 0x14b   :  { %v239_v16 = vsel %vm177_vm9, %v19903_v7, %v19902_v50  ;;  %v19907_v51 = vmov %v19904_v42  ;;  %v19908_v25 = vrot.slane %v14611_v58, 7  ;;  %v19909_v49 = vrot.slane %v14606_v21, 7  ;;  %1206 = vst.msk [vmem:[#allocation2 + $0xf0] sm:$0xff] %vm28_vm13, %v1173_v9  ;;  %v15460_v21 = vld [vmem:[#allocation2 + $0xc0] sm:$0xff]  ;;  %v15462_v58 = vld [vmem:[#allocation2 + $0xc8] sm:$0xff] }
 0x14c   :  { %v208_v27 = vsel %vm177_vm9, %v19905_v30, %v19904_v42  ;;  %v19906_v34 = vmov %v19905_v30  ;;  %1207 = vst.msk [vmem:[#allocation2 + $0xf8] sm:$0xff] %vm28_vm13, %v1174_v31  ;;  %v19520_v33 = vmov 0   ;;  %12469 = vmatmul.mubr.msk.bf16.gmra.mrb[40].mxu0 %vm28_vm13, %v15460_v21  ;;  %v13310_v26 = vunpack.i.h.bf16 %v13308_v54  ;;  %v13333_v20 = vpop.permute.xlu0 %13332 }
 0x14d   :  { %v240_v13 = vsel %vm177_vm9, %v19907_v51, %v19906_v34  ;;  %v15439_v24 = vsel %vm177_vm9, %v19909_v49, %v19908_v25  ;;  %v19910_v15 = vmov %v19909_v49  ;;  %v19911_v23 = vmov %v19908_v25  ;;  %29 = vst.msk [vmem:[#allocation2] sm:$0xff] %vm28_vm13, %v19520_v33  ;;  %30 = vst.msk [vmem:[#allocation2 + $0x90] sm:$0xff] %vm28_vm13, %v19520_v33  ;;  %3705 = vmatprep.subr.bf16.mxu1 %v19520_v33  ;;  %v15489_v34 = vld [vmem:[#allocation2 + $0xe0] sm:$0xff] }
 0x14e   :  { %v241_v36 = vsel %vm177_vm9, %v19911_v23, %v19910_v15  ;;  %32 = vst.msk [vmem:[#allocation2 + $0x88] sm:$0xff] %vm28_vm13, %v19520_v33  ;;  %33 = vst.msk [vmem:[#allocation2 + $0x118] sm:$0xff] %vm28_vm13, %v19520_v33  ;;  %12472 = vmatprep.mubr.msk.bf16.mxu0 %vm28_vm13, %v15462_v58  ;;  %v13309_v35 = vunpack.i.l.bf16 %v13308_v54  ;;  %v303_v0 = vsel %vm243_vm10, 0.0, %v239_v16  ;;  %v13325_v43 = vunpack.i.h.bf16 %v13323_v18  ;;  %v13328_v49 = vpop.permute.xlu1 %13327 }
 0x14f   :  { %v13324_v28 = vunpack.i.l.bf16 %v13323_v18  ;;  %v305_v61 = vsel %vm243_vm10, 0.0, %v240_v13  ;;  %v13320_v40 = vunpack.i.h.bf16 %v13318_v52  ;;  %v13319_v4 = vunpack.i.l.bf16 %v13318_v52  ;;  %v15491_v13 = vld [vmem:[#allocation2 + $0xe8] sm:$0xff] }
 0x150   :  { %v1076_v19 = vsel %vm1016_vm11, %v207_v53, %v13310_v26  ;;  %v1075_v50 = vsel %vm1016_vm11, %v303_v0, %v13309_v35  ;;  %v1078_v12 = vsel %vm1016_vm11, %v208_v27, %v13325_v43  ;;  %v13335_v42 = vunpack.i.h.bf16 %v13333_v20 }
 0x151   :  { %v1140_v7 = vsel %vm1081_vm12, %v1075_v50, %v13319_v4  ;;  %v1141_v16 = vsel %vm1081_vm12, %v1076_v19, %v13320_v40  ;;  %v1077_v17 = vsel %vm1016_vm11, %v305_v61, %v13324_v28  ;;  %v13334_v53 = vunpack.i.l.bf16 %v13333_v20  ;;  %v13438_v50 = vld [vmem:[#allocation2 + $0x8] sm:$0xff]  ;;  %v13347_v20 = vld [vmem:[%s19391_s3 + $0x10] sm:$0xff]  }
 0x152   :  { %v1175_v9 = vpack.c.bf16 %v1141_v16, %v1140_v7  ;;  %v1143_v31 = vsel %vm1081_vm12, %v1078_v12, %v13335_v42  ;;  %v15498_v27 = vld [vmem:[#allocation2 + $0xf0] sm:$0xff]  ;;  %v13330_v15 = vunpack.i.h.bf16 %v13328_v49  ;;  %v13329_v23 = vunpack.i.l.bf16 %v13328_v49  ;;  %v13344_v7 = vld [vmem:[%s19391_s3] sm:$0xff]   ;;  %v2069_v12 = vld [vmem:[#allocation2 + $0x18] sm:$0xff] }
 0x153   :  { %v1142_v30 = vsel %vm1081_vm12, %v1077_v17, %v13334_v53  ;;  %v15500_v25 = vld [vmem:[#allocation2 + $0xf8] sm:$0xff]  ;;  %v307_v54 = vsel %vm243_vm10, 0.0, %v241_v36  ;;  %v13350_v16 = vld [vmem:[%s19391_s3 + $0xd0] sm:$0xff]   ;;  %v13345_v17 = vld [vmem:[%s19391_s3 + $0x8] sm:$0xff]   ;;  %vm13471_vm10 = vmmov 1  }
 0x154   :  { %12473 = vmatmul.mubr.msk.bf16.gmra.mrb[44].mxu0 %vm28_vm13, %v15470_v8  ;;  %1208 = vst.msk [vmem:[#allocation2 + $0x100] sm:$0xff] %vm28_vm13, %v1175_v9  ;;  %v1176_v51 = vpack.c.bf16 %v1143_v31, %v1142_v30  ;;  %v1080_v28 = vsel %vm1016_vm11, %v15439_v24, %v13330_v15  ;;  %v1079_v52 = vsel %vm1016_vm11, %v307_v54, %v13329_v23  ;;  %v1211_v4 = vld [vmem:[#allocation2] sm:$0xff]  ;;  %v2205_v24 = vsel %vm1381_vm14, %v14769_v38, 0  ;;  %v13352_v9 = vld [vmem:[%s19391_s3 + $0xd8] sm:$0xff]   ;;  %v13356_v53 = vld [vmem:[%s19391_s3 + $0xe8] sm:$0xff]  }
 0x155   :  { %12476 = vmatprep.mubr.msk.bf16.mxu0 %vm28_vm13, %v15472_v63  ;;  %v13346_v38 = vld [vmem:[%s19391_s3 + $0xc0] sm:$0xff]   ;;  %v13349_v42 = vld [vmem:[%s19391_s3 + $0x18] sm:$0xff]   ;;  %v13353_v30 = vld [vmem:[%s19391_s3 + $0x28] sm:$0xff]  }
 0x156   :  { %1209 = vst.msk [vmem:[#allocation2 + $0x108] sm:$0xff] %vm28_vm13, %v1176_v51  ;;  %3706 = vmatpush1.bf16.msra.mxu1 %v13346_v38  ;;  %v13360_v31 = vld [vmem:[%s19391_s3 + $0xf8] sm:$0xff]   ;;  %v13364_v49 = vld [vmem:[%s19391_s3 + $0x108] sm:$0xff]  }
 0x157   :  { %3707 = vmatprep.subr.bf16.mxu1 %v19520_v33  ;;  %v13357_v51 = vld [vmem:[%s19391_s3 + $0x38] sm:$0xff]   ;;  %v13361_v15 = vld [vmem:[%s19391_s3 + $0x48] sm:$0xff]  }
 0x158   :  { %v13368_v23 = vld [vmem:[%s19391_s3 + $0x118] sm:$0xff]  }
 0x159   :  { %v13338_v35 = vpop.permute.xlu1 %13337  ;;  %v13365_v54 = vld [vmem:[%s19391_s3 + $0x58] sm:$0xff]  }
 0x15a   :  { %v13340_v0 = vunpack.i.h.bf16 %v13338_v35  ;;  %v13339_v43 = vunpack.i.l.bf16 %v13338_v35  ;;  %v13367_v35 = vld [vmem:[%s19391_s3 + $0x60] sm:$0xff]  }
 0x15b   :  { %v15508_v26 = vld [vmem:[#allocation2 + $0x100] sm:$0xff] }
 0x15c   :  { %12477 = vmatmul.mubr.msk.bf16.gmra.mrb[48].mxu0 %vm28_vm13, %v15489_v34  ;;  %v1144_v61 = vsel %vm1081_vm12, %v1079_v52, %v13339_v43  ;;  %v1145_v40 = vsel %vm1081_vm12, %v1080_v28, %v13340_v0  ;;  %v13371_v0 = vld [vmem:[%s19391_s3 + $0x70] sm:$0xff]   ;;  %vm15816_vm12 = vmpackc.low %vm13471_vm10, %vm15795_vm15 }
 0x15d   :  { %12480 = vmatprep.mubr.msk.bf16.mxu0 %vm28_vm13, %v15491_v13  ;;  %v15510_v18 = vld [vmem:[#allocation2 + $0x108] sm:$0xff]  ;;  %v1177_v36 = vpack.c.bf16 %v1145_v40, %v1144_v61 }
 0x15f   :  { %1210 = vst.msk [vmem:[#allocation2 + $0x110] sm:$0xff] %vm28_vm13, %v1177_v36 }
 0x164   :  { %12481 = vmatmul.mubr.msk.bf16.gmra.mrb[52].mxu0 %vm28_vm13, %v15498_v27 }
 0x165   :  { %12484 = vmatprep.mubr.msk.bf16.mxu0 %vm28_vm13, %v15500_v25 }
 0x166   :  { %v15522_v19 = vld [vmem:[#allocation2 + $0x110] sm:$0xff] }
 0x16c   :  { %12485 = vmatmul.mubr.msk.bf16.gmra.mrb[56].mxu0 %vm28_vm13, %v15508_v26 }
 0x16d   :  { %12488 = vmatprep.mubr.msk.bf16.mxu0 %vm28_vm13, %v15510_v18 }
 0x174   :  { %12489 = vmatmul.mubr.msk.bf16.gmra.mrb[60].mxu0 %vm28_vm13, %v15522_v19 }
 0x175   :  { %12494 = vmatprep.mubr.msk.bf16.mxu0 %vm28_vm13, %v1211_v4 }
 0x17c   :  { %12495 = vmatmul.mubr.msk.bf16.vlgmr.msra.gmra.mrb[0].mxu0 %vm28_vm13, %v13438_v50 }
 0x17d   :  { %12559 = vmatpush3.bf16.msra.mxu0 %v2205_v24  ;;  %12498 = vmatprep.mubr.msk.bf16.mxu0 %vm28_vm13, %v14750_v14  ;;  %v1227_v14 = vld [vmem:[#allocation2 + $0x90] sm:$0xff] }
 0x17e   :  { %4427 = vmatprep.subr.bf16.mxu0 %v19520_v33 }
 0x184   :  { %12499 = vmatmul.mubr.msk.bf16.gmra.mrb[4].mxu0 %vm28_vm13, %v14762_v57  ;;  %v2068_v57 = vld [vmem:[#allocation2 + $0x10] sm:$0xff] }
 0x185   :  { %12502 = vmatprep.mubr.msk.bf16.mxu0 %vm28_vm13, %v14833_v47 }
 0x18c   :  { %12503 = vmatmul.mubr.msk.bf16.gmra.mrb[8].mxu0 %vm28_vm13, %v14863_v48 }
 0x18d   :  { %12506 = vmatprep.mubr.msk.bf16.mxu0 %vm28_vm13, %v14912_v32 }
 0x194   :  { %12507 = vmatmul.mubr.msk.bf16.gmra.mrb[12].mxu0 %vm28_vm13, %v14916_v10 }
 0x195   :  { %12510 = vmatprep.mubr.msk.bf16.mxu0 %vm28_vm13, %v14974_v22 }
 0x19c   :  { %12511 = vmatmul.mubr.msk.bf16.gmra.mrb[16].mxu0 %vm28_vm13, %v14991_v59 }
 0x19d   :  { %12514 = vmatprep.mubr.msk.bf16.mxu0 %vm28_vm13, %v15053_v29 }
 0x1a4   :  { %12515 = vmatmul.mubr.msk.bf16.gmra.mrb[20].mxu0 %vm28_vm13, %v15059_v56 }
 0x1a5   :  { %12518 = vmatprep.mubr.msk.bf16.mxu0 %vm28_vm13, %v15129_v62 }
 0x1ac   :  { %12519 = vmatmul.mubr.msk.bf16.gmra.mrb[24].mxu0 %vm28_vm13, %v15137_v41 }
 0x1ad   :  { %12522 = vmatprep.mubr.msk.bf16.mxu0 %vm28_vm13, %v15198_v5 }
 0x1b4   :  { %12523 = vmatmul.mubr.msk.bf16.gmra.mrb[28].mxu0 %vm28_vm13, %v15214_v60 }
 0x1b5   :  { %12526 = vmatprep.mubr.msk.bf16.mxu0 %vm28_vm13, %v1227_v14 }
 0x1bc   :  { %12527 = vmatmul.mubr.msk.bf16.gmra.mrb[32].mxu0 %vm28_vm13, %v15279_v2  ;;  %v13348_v2 = vld [vmem:[%s19391_s3 + $0xc8] sm:$0xff]  }
 0x1bd   :  { %12530 = vmatprep.mubr.msk.bf16.mxu0 %vm28_vm13, %v15345_v37  ;;  %3708 = vmatpush1.bf16.msra.mxu1 %v13348_v2 }
 0x1be   :  { %3709 = vmatprep.subr.bf16.mxu1 %v19520_v33 }
 0x1c1   :  { %3710 = vmatpush1.bf16.msra.mxu1 %v13350_v16 }
 0x1c2   :  { %3711 = vmatprep.subr.bf16.mxu1 %v19520_v33 }
 0x1c4   :  { %12531 = vmatmul.mubr.msk.bf16.gmra.mrb[36].mxu0 %vm28_vm13, %v15352_v39 }
 0x1c5   :  { %12534 = vmatprep.mubr.msk.bf16.mxu0 %vm28_vm13, %v15399_v55  ;;  %3712 = vmatpush1.bf16.msra.mxu1 %v13352_v9 }
 0x1c6   :  { %3713 = vmatprep.subr.bf16.mxu1 %v19520_v33 }
 0x1cc   :  { %12535 = vmatmul.mubr.msk.bf16.gmra.mrb[40].mxu0 %vm28_vm13, %v15414_v45 }
 0x1cd   :  { %12538 = vmatprep.mubr.msk.bf16.mxu0 %vm28_vm13, %v15460_v21 }
 0x1d4   :  { %12539 = vmatmul.mubr.msk.bf16.gmra.mrb[44].mxu0 %vm28_vm13, %v15462_v58 }
 0x1d5   :  { %12542 = vmatprep.mubr.msk.bf16.mxu0 %vm28_vm13, %v15470_v8 }
 0x1dc   :  { %12543 = vmatmul.mubr.msk.bf16.gmra.mrb[48].mxu0 %vm28_vm13, %v15472_v63 }
 0x1dd   :  { %12546 = vmatprep.mubr.msk.bf16.mxu0 %vm28_vm13, %v15489_v34 }
 0x1e4   :  { %12547 = vmatmul.mubr.msk.bf16.gmra.mrb[52].mxu0 %vm28_vm13, %v15491_v13 }
 0x1e5   :  { %12550 = vmatprep.mubr.msk.bf16.mxu0 %vm28_vm13, %v15498_v27 }
 0x1ec   :  { %12551 = vmatmul.mubr.msk.bf16.gmra.mrb[56].mxu0 %vm28_vm13, %v15500_v25 }
 0x1ed   :  { %12554 = vmatprep.mubr.msk.bf16.mxu0 %vm28_vm13, %v15508_v26 }
 0x1f4   :  { %12555 = vmatmul.mubr.msk.bf16.gmra.mrb[60].mxu0 %vm28_vm13, %v15510_v18 }
 0x1f5   :  { %12560 = vmatprep.mubr.msk.bf16.mxu0 %vm28_vm13, %v2068_v57 }
 0x1fc   :  { %12561 = vmatmul.mubr.msk.bf16.vlgmr.msra.gmra.mrb[0].mxu0 %vm28_vm13, %v2069_v12 }
 0x1fd   :  { %12564 = vmatprep.mubr.msk.bf16.mxu0 %vm28_vm13, %v14833_v47  ;;  %4428 = vmatpush1.bf16.msra.mxu0 %v13344_v7  ;;  %v13354_v47 = vld [vmem:[%s19391_s3 + $0xe0] sm:$0xff]  }
 0x1fe   :  { %4429 = vmatprep.subr.bf16.mxu0 %v19520_v33  ;;  %3714 = vmatpush1.bf16.msra.mxu1 %v13354_v47 }
 0x1ff   :  { %3715 = vmatprep.subr.bf16.mxu1 %v19520_v33 }
 0x201   :  { %4430 = vmatpush1.bf16.msra.mxu0 %v13345_v17 }
 0x202   :  { %4431 = vmatprep.subr.bf16.mxu0 %v19520_v33  ;;  %3716 = vmatpush1.bf16.msra.mxu1 %v13356_v53 }
 0x203   :  { %3717 = vmatprep.subr.bf16.mxu1 %v19520_v33 }
 0x204   :  { %12565 = vmatmul.mubr.msk.bf16.gmra.mrb[4].mxu0 %vm28_vm13, %v14863_v48  ;;  %v13351_v48 = vld [vmem:[%s19391_s3 + $0x20] sm:$0xff]  }
 0x205   :  { %12568 = vmatprep.mubr.msk.bf16.mxu0 %vm28_vm13, %v14912_v32  ;;  %4432 = vmatpush1.bf16.msra.mxu0 %v13347_v20  ;;  %v13358_v32 = vld [vmem:[%s19391_s3 + $0xf0] sm:$0xff]  }
 0x206   :  { %4433 = vmatprep.subr.bf16.mxu0 %v19520_v33  ;;  %3718 = vmatpush1.bf16.msra.mxu1 %v13358_v32  ;;  %v19915_v32 = vmov 0 }
 0x207   :  { %3719 = vmatprep.subr.bf16.mxu1 %v19520_v33  ;;  %v19916_v32 = vsel %vm15816_vm12, 4294967295, %v19915_v32 }
 0x208   :  { %19917 = vst [vmem:[#allocation63_spill] sm:$0xff] %v19916_v32 }
 0x209   :  { %4434 = vmatpush1.bf16.msra.mxu0 %v13349_v42 }
 0x20a   :  { %4435 = vmatprep.subr.bf16.mxu0 %v19520_v33  ;;  %3720 = vmatpush1.bf16.msra.mxu1 %v13360_v31 }
 0x20b   :  { %3721 = vmatprep.subr.bf16.mxu1 %v19520_v33 }
 0x20c   :  { %12569 = vmatmul.mubr.msk.bf16.gmra.mrb[8].mxu0 %vm28_vm13, %v14916_v10  ;;  %v13355_v10 = vld [vmem:[%s19391_s3 + $0x30] sm:$0xff]  }
 0x20d   :  { %12572 = vmatprep.mubr.msk.bf16.mxu0 %vm28_vm13, %v14974_v22  ;;  %4436 = vmatpush1.bf16.msra.mxu0 %v13351_v48  ;;  %v13362_v22 = vld [vmem:[%s19391_s3 + $0x100] sm:$0xff]  }
 0x20e   :  { %4437 = vmatprep.subr.bf16.mxu0 %v19520_v33  ;;  %3722 = vmatpush1.bf16.msra.mxu1 %v13362_v22 }
 0x20f   :  { %3723 = vmatprep.subr.bf16.mxu1 %v19520_v33 }
 0x211   :  { %4438 = vmatpush1.bf16.msra.mxu0 %v13353_v30 }
 0x212   :  { %4439 = vmatprep.subr.bf16.mxu0 %v19520_v33  ;;  %3724 = vmatpush1.bf16.msra.mxu1 %v13364_v49  ;;  %v13377_v49 = vld [vmem:[%s19391_s3 + $0x148] sm:$0xff]  }
 0x213   :  { %3725 = vmatprep.subr.bf16.mxu1 %v19520_v33 }
 0x214   :  { %12573 = vmatmul.mubr.msk.bf16.gmra.mrb[12].mxu0 %vm28_vm13, %v14991_v59  ;;  %v13359_v59 = vld [vmem:[%s19391_s3 + $0x40] sm:$0xff]  }
 0x215   :  { %12576 = vmatprep.mubr.msk.bf16.mxu0 %vm28_vm13, %v15053_v29  ;;  %4440 = vmatpush1.bf16.msra.mxu0 %v13355_v10  ;;  %v13366_v29 = vld [vmem:[%s19391_s3 + $0x110] sm:$0xff]  }
 0x216   :  { %4441 = vmatprep.subr.bf16.mxu0 %v19520_v33  ;;  %3726 = vmatpush1.bf16.msra.mxu1 %v13366_v29 }
 0x217   :  { %3727 = vmatprep.subr.bf16.mxu1 %v19520_v33 }
 0x219   :  { %4442 = vmatpush1.bf16.msra.mxu0 %v13357_v51 }
 0x21a   :  { %4443 = vmatprep.subr.bf16.mxu0 %v19520_v33  ;;  %3728 = vmatpush1.bf16.msra.mxu1 %v13368_v23 }
 0x21b   :  { %3729 = vmatprep.subr.bf16.mxu1 %v19520_v33 }
 0x21c   :  { %12577 = vmatmul.mubr.msk.bf16.gmra.mrb[16].mxu0 %vm28_vm13, %v15059_v56  ;;  %v13363_v56 = vld [vmem:[%s19391_s3 + $0x50] sm:$0xff]  }
 0x21d   :  { %12580 = vmatprep.mubr.msk.bf16.mxu0 %vm28_vm13, %v15129_v62  ;;  %4444 = vmatpush1.bf16.msra.mxu0 %v13359_v59  ;;  %v13370_v62 = vld [vmem:[%s19391_s3 + $0x120] sm:$0xff]  }
 0x21e   :  { %4445 = vmatprep.subr.bf16.mxu0 %v19520_v33  ;;  %3730 = vmatpush1.bf16.msra.mxu1 %v13370_v62 }
 0x21f   :  { %3731 = vmatprep.subr.bf16.mxu1 %v19520_v33 }
 0x221   :  { %4446 = vmatpush1.bf16.msra.mxu0 %v13361_v15 }
 0x222   :  { %4447 = vmatprep.subr.bf16.mxu0 %v19520_v33 }
 0x224   :  { %12581 = vmatmul.mubr.msk.bf16.gmra.mrb[20].mxu0 %vm28_vm13, %v15137_v41  ;;  %v13369_v41 = vld [vmem:[%s19391_s3 + $0x68] sm:$0xff]  }
 0x225   :  { %12584 = vmatprep.mubr.msk.bf16.mxu0 %vm28_vm13, %v15198_v5  ;;  %4448 = vmatpush1.bf16.msra.mxu0 %v13363_v56  ;;  %v2083_v5 = vld [vmem:[#allocation2 + $0x88] sm:$0xff] }
 0x226   :  { %4449 = vmatprep.subr.bf16.mxu0 %v19520_v33 }
 0x229   :  { %4450 = vmatpush1.bf16.msra.mxu0 %v13365_v54 }
 0x22a   :  { %4451 = vmatprep.subr.bf16.mxu0 %v19520_v33 }
 0x22c   :  { %12585 = vmatmul.mubr.msk.bf16.gmra.mrb[24].mxu0 %vm28_vm13, %v15214_v60  ;;  %v13372_v60 = vld [vmem:[%s19391_s3 + $0x128] sm:$0xff]  }
 0x22d   :  { %12588 = vmatprep.mubr.msk.bf16.mxu0 %vm28_vm13, %v15275_v3  ;;  %4452 = vmatpush1.bf16.msra.mxu0 %v13367_v35  ;;  %v13373_v3 = vld [vmem:[%s19391_s3 + $0x78] sm:$0xff]  }
 0x22e   :  { %4453 = vmatprep.subr.bf16.mxu0 %v19520_v33  ;;  %3732 = vmatpush1.bf16.msra.mxu1 %v13372_v60 }
 0x22f   :  { %3733 = vmatprep.subr.bf16.mxu1 %v19520_v33 }
 0x231   :  { %4454 = vmatpush1.bf16.msra.mxu0 %v13369_v41 }
 0x232   :  { %4455 = vmatprep.subr.bf16.mxu0 %v19520_v33 }
 0x234   :  { %12589 = vmatmul.mubr.msk.bf16.gmra.mrb[28].mxu0 %vm28_vm13, %v2083_v5 }
 0x235   :  { %12592 = vmatprep.mubr.msk.bf16.mxu0 %vm28_vm13, %v15345_v37  ;;  %4456 = vmatpush1.bf16.msra.mxu0 %v13371_v0  ;;  %v13374_v37 = vld [vmem:[%s19391_s3 + $0x130] sm:$0xff]  }
 0x236   :  { %4457 = vmatprep.subr.bf16.mxu0 %v19520_v33  ;;  %3734 = vmatpush1.bf16.msra.mxu1 %v13374_v37 }
 0x237   :  { %3735 = vmatprep.subr.bf16.mxu1 %v19520_v33 }
 0x239   :  { %4458 = vmatpush1.bf16.msra.mxu0 %v13373_v3 }
 0x23c   :  { %12593 = vmatmul.mubr.msk.bf16.gmra.mrb[32].mxu0 %vm28_vm13, %v15352_v39  ;;  %v13375_v39 = vld [vmem:[%s19391_s3 + $0x138] sm:$0xff]  }
 0x23d   :  { %12596 = vmatprep.mubr.msk.bf16.mxu0 %vm28_vm13, %v15399_v55  ;;  %3736 = vmatpush1.bf16.msra.mxu1 %v13375_v39  ;;  %v15770_v55 = vld [vmem:[%s19391_s3 + $0x140] sm:$0xff]   ;;  %v13378_v39 = vld [vmem:[%s19391_s3 + $0x150] sm:$0xff]  }
 0x23e   :  { %12624 = vmatprep.subr.bf16.mxu1 %v15770_v55 }
 0x244   :  { %12597 = vmatmul.mubr.msk.bf16.gmra.mrb[36].mxu0 %vm28_vm13, %v15414_v45  ;;  %v2099_v45 = vld [vmem:[#allocation2 + $0x118] sm:$0xff] }
 0x245   :  { %12600 = vmatprep.mubr.msk.bf16.mxu0 %vm28_vm13, %v15460_v21  ;;  %v15787_v21 = vld [vmem:[%s19390_s2] ss:$0 sm:$0xff] }
 0x24c   :  { %12601 = vmatmul.mubr.msk.bf16.gmra.mrb[40].mxu0 %vm28_vm13, %v15462_v58 }
 0x24d   :  { %12604 = vmatprep.mubr.msk.bf16.mxu0 %vm28_vm13, %v15470_v8 }
 0x254   :  { %12605 = vmatmul.mubr.msk.bf16.gmra.mrb[44].mxu0 %vm28_vm13, %v15472_v63 }
 0x255   :  { %12608 = vmatprep.mubr.msk.bf16.mxu0 %vm28_vm13, %v15489_v34 }
 0x25c   :  { %12609 = vmatmul.mubr.msk.bf16.gmra.mrb[48].mxu0 %vm28_vm13, %v15491_v13 }
 0x25d   :  { %12612 = vmatprep.mubr.msk.bf16.mxu0 %vm28_vm13, %v15498_v27 }
 0x264   :  { %12613 = vmatmul.mubr.msk.bf16.gmra.mrb[52].mxu0 %vm28_vm13, %v15500_v25 }
 0x265   :  { %12616 = vmatprep.mubr.msk.bf16.mxu0 %vm28_vm13, %v15508_v26 }
 0x26c   :  { %12617 = vmatmul.mubr.msk.bf16.gmra.mrb[56].mxu0 %vm28_vm13, %v15510_v18 }
 0x26d   :  { %12620 = vmatprep.mubr.msk.bf16.mxu0 %vm28_vm13, %v15522_v19 }
 0x274   :  { %12621 = vmatmul.mubr.msk.bf16.gmra.mrb[60].mxu0 %vm28_vm13, %v2099_v45 }
 0x275   :  { %4459 = vmatprep.mubr.bf16.mxu0 %v19520_v33 }
 0x27c   :  { %4460 = vmatmul.mubr.bf16.vlgmr.msra.gmra.mrb[64].mxu0 %v19520_v33 }
 0x2cf   :  { %v12562_v58 = vpop.f32.mrb[0].mxu0 }
 0x2d0   :  { %v2569_v8 = vadd.f32 %v12562_v58, %v15787_v21  ;;  %v2241_v63 = vpop.f32.mrb[1].mxu0 }
 0x2d1   :  { %v2567_v34 = vadd.f32 %v15787_v21, %v2241_v63  ;;  %v12563_v13 = vpop.f32.mrb[2].mxu0 }
 0x2d2   :  { %v2633_v27 = vmax.f32 %v2569_v8, 0.0  ;;  %v2570_v25 = vadd.f32 %v12563_v13, %v15787_v21  ;;  %v2244_v26 = vpop.f32.mrb[3].mxu0 }
 0x2d3   :  { %v2631_v18 = vmax.f32 %v2567_v34, 0.0  ;;  %v2568_v43 = vadd.f32 %v15787_v21, %v2244_v26 }
 0x2d4   :  { %v2634_v28 = vmax.f32 %v2570_v25, 0.0  ;;  %v2696_v52 = vrot.slane %v2633_v27, 7  ;;  %v2888_v40 = vrot.slane %v2633_v27, 1 }
 0x2d5   :  { %v2632_v61 = vmax.f32 %v2568_v43, 0.0  ;;  %v2695_v50 = vrot.slane %v2631_v18, 7  ;;  %v2887_v20 = vrot.slane %v2631_v18, 1 }
 0x2d6   :  { %v2728_v36 = vrot.slane %v2634_v28, 7  ;;  %v2920_v4 = vrot.slane %v2634_v28, 1  ;;  %v15799_v24 = vpack.c.bf16 %v2634_v28, %v2633_v27 }
 0x2d7   :  { %v2727_v14 = vrot.slane %v2632_v61, 7  ;;  %v2919_v57 = vrot.slane %v2632_v61, 1  ;;  %v12566_v38 = vpop.f32.mrb[4].mxu0  ;;  %v3080_v2 = vpack.c.bf16 %v2632_v61, %v2631_v18 }
 0x2d8   :  { %19914 = vst [vmem:[#allocation61_spill] sm:$0xff] %v15799_v24  ;;  %v2573_v7 = vadd.f32 %v12566_v38, %v15787_v21  ;;  %v2257_v16 = vpop.f32.mrb[5].mxu0  ;;  %v2760_v12 = vsel %vm177_vm9, %v2696_v52, %v2728_v36  ;;  %v2792_v17 = vsel %vm177_vm9, %v2728_v36, %v2696_v52  ;;  %v2952_v9 = vsel %vm373_vm0, %v2888_v40, %v2920_v4 }
 0x2d9   :  { %v2571_v47 = vadd.f32 %v15787_v21, %v2257_v16  ;;  %v12567_v42 = vpop.f32.mrb[6].mxu0  ;;  %3737 = vmatprep.mubr.bf16.mxu1 %v3080_v2  ;;  %4467 = vmatprep.mubr.bf16.mxu0 %v3080_v2  ;;  %v2759_v53 = vsel %vm177_vm9, %v2695_v50, %v2727_v14  ;;  %v2791_v48 = vsel %vm177_vm9, %v2727_v14, %v2695_v50  ;;  %v13379_v16 = vld [vmem:[%s19391_s3 + $0x158] sm:$0xff]  }
 0x2da   :  { %v2637_v30 = vmax.f32 %v2573_v7, 0.0  ;;  %v2574_v31 = vadd.f32 %v12567_v42, %v15787_v21  ;;  %v2260_v10 = vpop.f32.mrb[7].mxu0  ;;  %v11464_v22 = vpack.c.bf16 %v2759_v53, %v2791_v48  ;;  %v15821_v51 = vpack.c.bf16 %v2760_v12, %v2792_v17 }
 0x2db   :  { %v2635_v59 = vmax.f32 %v2571_v47, 0.0  ;;  %v2572_v29 = vadd.f32 %v15787_v21, %v2260_v10  ;;  %v2984_v15 = vsel %vm373_vm0, %v2920_v4, %v2888_v40  ;;  %v2951_v23 = vsel %vm373_vm0, %v2887_v20, %v2919_v57 }
 0x2dc   :  { %19918 = vst [vmem:[#allocation64_spill] sm:$0xff] %v15821_v51  ;;  %v2698_v56 = vrot.slane %v2637_v30, 7  ;;  %v2638_v62 = vmax.f32 %v2574_v31, 0.0  ;;  %11465 = vmatmul.mubr.msk.bf16.vlgmr.msra.gmra.mrb[0].mxu1 %vm15816_vm12, %v11464_v22  ;;  %11721 = vmatmul.mubr.msk.bf16.gmra.mrb[68].mxu0 %vm15816_vm12, %v11464_v22  ;;  %v15835_v54 = vpack.c.bf16 %v2984_v15, %v2952_v9  ;;  %v2890_v35 = vrot.slane %v2637_v30, 1  ;;  %v13380_v15 = vld [vmem:[%s19391_s3 + $0x160] sm:$0xff]  }
 0x2dd   :  { %v2697_v41 = vrot.slane %v2635_v59, 7  ;;  %v2636_v5 = vmax.f32 %v2572_v29, 0.0  ;;  %12625 = vmatpush3.bf16.msra.mxu1 %v15770_v55  ;;  %3745 = vmatprep.mubr.bf16.mxu1 %v15799_v24  ;;  %v2983_v0 = vsel %vm373_vm0, %v2919_v57, %v2887_v20  ;;  %v2889_v58 = vrot.slane %v2635_v59, 1 }
 0x2de   :  { %v2730_v60 = vrot.slane %v2638_v62, 7  ;;  %v2922_v3 = vrot.slane %v2638_v62, 1  ;;  %4475 = vmatprep.mubr.bf16.mxu0 %v15799_v24  ;;  %v15842_v37 = vpack.c.bf16 %v2638_v62, %v2637_v30  ;;  %12626 = vmatprep.subr.bf16.mxu1 %v13377_v49  ;;  %v15847_v45 = vpack.c.bf16 %v2983_v0, %v2951_v23 }
 0x2df   :  { %v2729_v55 = vrot.slane %v2636_v5, 7  ;;  %v2921_v8 = vrot.slane %v2636_v5, 1  ;;  %v12570_v63 = vpop.f32.mrb[8].mxu0  ;;  %v15849_v34 = vpack.c.bf16 %v2636_v5, %v2635_v59 }
 0x2e0   :  { %19919 = vst [vmem:[#allocation65_spill] sm:$0xff] %v15842_v37  ;;  %v2577_v13 = vadd.f32 %v12570_v63, %v15787_v21  ;;  %v2273_v27 = vpop.f32.mrb[9].mxu0  ;;  %v2762_v25 = vsel %vm177_vm9, %v2698_v56, %v2730_v60  ;;  %v2794_v26 = vsel %vm177_vm9, %v2730_v60, %v2698_v56  ;;  %v2954_v18 = vsel %vm373_vm0, %v2890_v35, %v2922_v3 }
 0x2e1   :  { %19920 = vst [vmem:[#allocation66_spill] sm:$0xff] %v15849_v34  ;;  %v2953_v43 = vsel %vm373_vm0, %v2889_v58, %v2921_v8  ;;  %v2985_v28 = vsel %vm373_vm0, %v2921_v8, %v2889_v58  ;;  %v2575_v52 = vadd.f32 %v15787_v21, %v2273_v27  ;;  %v12571_v61 = vpop.f32.mrb[10].mxu0  ;;  %v2761_v40 = vsel %vm177_vm9, %v2697_v41, %v2729_v55 }
 0x2e2   :  { %12627 = vmatpush3.bf16.msra.mxu1 %v13377_v49  ;;  %v15865_v36 = vpack.c.bf16 %v2985_v28, %v2953_v43  ;;  %v2641_v4 = vmax.f32 %v2577_v13, 0.0  ;;  %v2578_v19 = vadd.f32 %v12571_v61, %v15787_v21  ;;  %v2276_v50 = vpop.f32.mrb[11].mxu0  ;;  %v2793_v14 = vsel %vm177_vm9, %v2729_v55, %v2697_v41 }
 0x2e3   :  { %12628 = vmatprep.subr.bf16.mxu1 %v13378_v39  ;;  %v2639_v57 = vmax.f32 %v2575_v52, 0.0  ;;  %v2576_v38 = vadd.f32 %v15787_v21, %v2276_v50  ;;  %v15871_v2 = vpack.c.bf16 %v2761_v40, %v2793_v14  ;;  %v15873_v7 = vpack.c.bf16 %v2762_v25, %v2794_v26 }
 0x2e4   :  { %v2642_v12 = vmax.f32 %v2578_v19, 0.0  ;;  %11469 = vmatmul.mubr.msk.bf16.gmra.mrb[4].mxu1 %vm15816_vm12, %v15821_v51  ;;  %11725 = vmatmul.mubr.msk.bf16.gmra.mrb[72].mxu0 %vm15816_vm12, %v15821_v51  ;;  %v2986_v17 = vsel %vm373_vm0, %v2922_v3, %v2890_v35  ;;  %v2700_v9 = vrot.slane %v2641_v4, 7  ;;  %v2892_v20 = vrot.slane %v2641_v4, 1 }
 0x2e5   :  { %19921 = vst [vmem:[#allocation73_spill] sm:$0xff] %v15871_v2  ;;  %19922 = vst [vmem:[#allocation67_spill] sm:$0xff] %v15873_v7  ;;  %v2640_v47 = vmax.f32 %v2576_v38, 0.0  ;;  %3753 = vmatprep.mubr.bf16.mxu1 %v15849_v34  ;;  %4483 = vmatprep.mubr.bf16.mxu0 %v15849_v34  ;;  %v15888_v42 = vpack.c.bf16 %v2986_v17, %v2954_v18  ;;  %v2699_v53 = vrot.slane %v2639_v57, 7  ;;  %v2891_v10 = vrot.slane %v2639_v57, 1 }
 0x2e6   :  { %v2732_v48 = vrot.slane %v2642_v12, 7  ;;  %v2924_v30 = vrot.slane %v2642_v12, 1  ;;  %v15890_v31 = vpack.c.bf16 %v2642_v12, %v2641_v4  ;;  %12629 = vmatpush3.bf16.msra.mxu1 %v13378_v39 }
 0x2e7   :  { %v2731_v22 = vrot.slane %v2640_v47, 7  ;;  %v2923_v49 = vrot.slane %v2640_v47, 1  ;;  %v12574_v59 = vpop.f32.mrb[12].mxu0  ;;  %v15892_v29 = vpack.c.bf16 %v2640_v47, %v2639_v57  ;;  %12630 = vmatprep.subr.bf16.mxu1 %v13379_v16 }
 0x2e8   :  { %19923 = vst [vmem:[#allocation68_spill] sm:$0xff] %v15890_v31  ;;  %v2581_v23 = vadd.f32 %v12574_v59, %v15787_v21  ;;  %v2289_v56 = vpop.f32.mrb[13].mxu0  ;;  %v2764_v62 = vsel %vm177_vm9, %v2700_v9, %v2732_v48  ;;  %v2796_v35 = vsel %vm177_vm9, %v2732_v48, %v2700_v9  ;;  %v2956_v41 = vsel %vm373_vm0, %v2892_v20, %v2924_v30 }
 0x2e9   :  { %19924 = vst [vmem:[#allocation79_spill] sm:$0xff] %v15892_v29  ;;  %v2579_v5 = vadd.f32 %v15787_v21, %v2289_v56  ;;  %v12575_v0 = vpop.f32.mrb[14].mxu0  ;;  %v2763_v60 = vsel %vm177_vm9, %v2699_v53, %v2731_v22  ;;  %v2795_v3 = vsel %vm177_vm9, %v2731_v22, %v2699_v53  ;;  %v15909_v39 = vpack.c.bf16 %v2764_v62, %v2796_v35 }
 0x2ea   :  { %v2645_v58 = vmax.f32 %v2581_v23, 0.0  ;;  %v2582_v55 = vadd.f32 %v12575_v0, %v15787_v21  ;;  %v2292_v8 = vpop.f32.mrb[15].mxu0  ;;  %v15912_v63 = vpack.c.bf16 %v2763_v60, %v2795_v3  ;;  %12631 = vmatpush3.bf16.msra.mxu1 %v13379_v16  ;;  %v2955_v13 = vsel %vm373_vm0, %v2891_v10, %v2923_v49 }
 0x2eb   :  { %19925 = vst [vmem:[#allocation69_spill] sm:$0xff] %v15909_v39  ;;  %v2643_v27 = vmax.f32 %v2579_v5, 0.0  ;;  %v2580_v25 = vadd.f32 %v15787_v21, %v2292_v8  ;;  %12632 = vmatprep.subr.bf16.mxu1 %v13380_v15  ;;  %v2987_v26 = vsel %vm373_vm0, %v2923_v49, %v2891_v10  ;;  %v2988_v18 = vsel %vm373_vm0, %v2924_v30, %v2892_v20 }
 0x2ec   :  { %19926 = vst [vmem:[#allocation72_spill] sm:$0xff] %v15912_v63  ;;  %v2646_v43 = vmax.f32 %v2582_v55, 0.0  ;;  %11473 = vmatmul.mubr.msk.bf16.gmra.mrb[8].mxu1 %vm15816_vm12, %v15871_v2  ;;  %11729 = vmatmul.mubr.msk.bf16.gmra.mrb[76].mxu0 %vm15816_vm12, %v15871_v2  ;;  %v15927_v28 = vpack.c.bf16 %v2987_v26, %v2955_v13  ;;  %v2702_v52 = vrot.slane %v2645_v58, 7  ;;  %v2894_v61 = vrot.slane %v2645_v58, 1 }
 0x2ed   :  { %v2644_v40 = vmax.f32 %v2580_v25, 0.0  ;;  %3761 = vmatprep.mubr.bf16.mxu1 %v15842_v37  ;;  %4491 = vmatprep.mubr.bf16.mxu0 %v15842_v37  ;;  %v15931_v4 = vpack.c.bf16 %v2988_v18, %v2956_v41  ;;  %v2701_v19 = vrot.slane %v2643_v27, 7  ;;  %v2893_v38 = vrot.slane %v2643_v27, 1  ;;  %v13381_v25 = vld [vmem:[%s19391_s3 + $0x168] sm:$0xff]  }
 0x2ee   :  { %v2734_v50 = vrot.slane %v2646_v43, 7  ;;  %v2926_v14 = vrot.slane %v2646_v43, 1  ;;  %v15933_v57 = vpack.c.bf16 %v2646_v43, %v2645_v58  ;;  %12633 = vmatpush3.bf16.msra.mxu1 %v13380_v15 }
 0x2ef   :  { %v2733_v16 = vrot.slane %v2644_v40, 7  ;;  %v2925_v12 = vrot.slane %v2644_v40, 1  ;;  %v12578_v17 = vpop.f32.mrb[16].mxu0  ;;  %v15935_v9 = vpack.c.bf16 %v2644_v40, %v2643_v27  ;;  %12634 = vmatprep.subr.bf16.mxu1 %v13381_v25 }
 0x2f0   :  { %19927 = vst [vmem:[#allocation74_spill] sm:$0xff] %v15933_v57  ;;  %v2585_v20 = vadd.f32 %v12578_v17, %v15787_v21  ;;  %v2305_v47 = vpop.f32.mrb[17].mxu0  ;;  %v2766_v53 = vsel %vm177_vm9, %v2702_v52, %v2734_v50  ;;  %v2798_v48 = vsel %vm177_vm9, %v2734_v50, %v2702_v52  ;;  %v2958_v30 = vsel %vm373_vm0, %v2894_v61, %v2926_v14 }
 0x2f1   :  { %19928 = vst [vmem:[#allocation75_spill] sm:$0xff] %v15935_v9  ;;  %v2583_v10 = vadd.f32 %v15787_v21, %v2305_v47  ;;  %v12579_v22 = vpop.f32.mrb[18].mxu0  ;;  %v2765_v49 = vsel %vm177_vm9, %v2701_v19, %v2733_v16  ;;  %v2797_v59 = vsel %vm177_vm9, %v2733_v16, %v2701_v19  ;;  %v15949_v15 = vpack.c.bf16 %v2766_v53, %v2798_v48 }
 0x2f2   :  { %v2649_v23 = vmax.f32 %v2585_v20, 0.0  ;;  %v2586_v56 = vadd.f32 %v12579_v22, %v15787_v21  ;;  %v2308_v62 = vpop.f32.mrb[19].mxu0  ;;  %v15952_v35 = vpack.c.bf16 %v2765_v49, %v2797_v59  ;;  %v2957_v41 = vsel %vm373_vm0, %v2893_v38, %v2925_v12  ;;  %12635 = vmatpush3.bf16.msra.mxu1 %v13381_v25 }
 0x2f3   :  { %19929 = vst [vmem:[#allocation76_spill] sm:$0xff] %v15949_v15  ;;  %v2647_v5 = vmax.f32 %v2583_v10, 0.0  ;;  %v2584_v0 = vadd.f32 %v15787_v21, %v2308_v62  ;;  %v2989_v60 = vsel %vm373_vm0, %v2925_v12, %v2893_v38  ;;  %v2990_v3 = vsel %vm373_vm0, %v2926_v14, %v2894_v61 }
 0x2f4   :  { %19930 = vst [vmem:[#allocation82_spill] sm:$0xff] %v15952_v35  ;;  %v2650_v58 = vmax.f32 %v2586_v56, 0.0  ;;  %11477 = vmatmul.mubr.msk.bf16.gmra.mrb[12].mxu1 %vm15816_vm12, %v15873_v7  ;;  %11733 = vmatmul.mubr.msk.bf16.gmra.mrb[80].mxu0 %vm15816_vm12, %v15873_v7  ;;  %v15967_v55 = vpack.c.bf16 %v2989_v60, %v2957_v41  ;;  %v2704_v8 = vrot.slane %v2649_v23, 7  ;;  %v2896_v13 = vrot.slane %v2649_v23, 1 }
 0x2f5   :  { %v2648_v27 = vmax.f32 %v2584_v0, 0.0  ;;  %3769 = vmatprep.mubr.bf16.mxu1 %v15892_v29  ;;  %4499 = vmatprep.mubr.bf16.mxu0 %v15892_v29  ;;  %v15974_v26 = vpack.c.bf16 %v2990_v3, %v2958_v30  ;;  %v2703_v18 = vrot.slane %v2647_v5, 7  ;;  %v2895_v40 = vrot.slane %v2647_v5, 1 }
 0x2f6   :  { %v2736_v43 = vrot.slane %v2650_v58, 7  ;;  %v2928_v52 = vrot.slane %v2650_v58, 1  ;;  %v15976_v61 = vpack.c.bf16 %v2650_v58, %v2649_v23 }
 0x2f7   :  { %19931 = vst [vmem:[#allocation83_spill] sm:$0xff] %v15974_v26  ;;  %v2735_v19 = vrot.slane %v2648_v27, 7  ;;  %v2927_v50 = vrot.slane %v2648_v27, 1  ;;  %v12582_v14 = vpop.f32.mrb[20].mxu0  ;;  %v15978_v38 = vpack.c.bf16 %v2648_v27, %v2647_v5 }
 0x2f8   :  { %19932 = vst [vmem:[#allocation17_spill] sm:$0xff] %v15976_v61  ;;  %v2589_v16 = vadd.f32 %v12582_v14, %v15787_v21  ;;  %v2321_v12 = vpop.f32.mrb[21].mxu0  ;;  %v2768_v17 = vsel %vm177_vm9, %v2704_v8, %v2736_v43  ;;  %v2800_v20 = vsel %vm177_vm9, %v2736_v43, %v2704_v8  ;;  %v2960_v47 = vsel %vm373_vm0, %v2896_v13, %v2928_v52 }
 0x2f9   :  { %19933 = vst [vmem:[#allocation19_spill] sm:$0xff] %v15978_v38  ;;  %v2587_v53 = vadd.f32 %v15787_v21, %v2321_v12  ;;  %v12583_v48 = vpop.f32.mrb[22].mxu0  ;;  %v2767_v30 = vsel %vm177_vm9, %v2703_v18, %v2735_v19  ;;  %v2799_v10 = vsel %vm177_vm9, %v2735_v19, %v2703_v18  ;;  %v15992_v22 = vpack.c.bf16 %v2768_v17, %v2800_v20 }
 0x2fa   :  { %v2653_v49 = vmax.f32 %v2589_v16, 0.0  ;;  %v2590_v59 = vadd.f32 %v12583_v48, %v15787_v21  ;;  %v2324_v23 = vpop.f32.mrb[23].mxu0  ;;  %v15995_v56 = vpack.c.bf16 %v2767_v30, %v2799_v10  ;;  %v2959_v62 = vsel %vm373_vm0, %v2895_v40, %v2927_v50 }
 0x2fb   :  { %19934 = vst [vmem:[#allocation18_spill] sm:$0xff] %v15992_v22  ;;  %v2651_v41 = vmax.f32 %v2587_v53, 0.0  ;;  %v2588_v5 = vadd.f32 %v15787_v21, %v2324_v23  ;;  %v2991_v0 = vsel %vm373_vm0, %v2927_v50, %v2895_v40  ;;  %v2992_v60 = vsel %vm373_vm0, %v2928_v52, %v2896_v13 }
 0x2fc   :  { %19935 = vst [vmem:[#allocation23_spill] sm:$0xff] %v15995_v56  ;;  %v2654_v3 = vmax.f32 %v2590_v59, 0.0  ;;  %11481 = vmatmul.mubr.msk.bf16.gmra.mrb[16].mxu1 %vm15816_vm12, %v15912_v63  ;;  %11737 = vmatmul.mubr.msk.bf16.gmra.mrb[84].mxu0 %vm15816_vm12, %v15912_v63  ;;  %v16010_v58 = vpack.c.bf16 %v2991_v0, %v2959_v62  ;;  %v2706_v8 = vrot.slane %v2653_v49, 7  ;;  %v2898_v27 = vrot.slane %v2653_v49, 1 }
 0x2fd   :  { %v2652_v25 = vmax.f32 %v2588_v5, 0.0  ;;  %3777 = vmatprep.mubr.bf16.mxu1 %v15890_v31  ;;  %4507 = vmatprep.mubr.bf16.mxu0 %v15890_v31  ;;  %v16014_v18 = vpack.c.bf16 %v2992_v60, %v2960_v47  ;;  %v2705_v13 = vrot.slane %v2651_v41, 7  ;;  %v2897_v19 = vrot.slane %v2651_v41, 1 }
 0x2fe   :  { %19936 = vst [vmem:[#allocation22_spill] sm:$0xff] %v16010_v58  ;;  %v2738_v43 = vrot.slane %v2654_v3, 7  ;;  %v2930_v52 = vrot.slane %v2654_v3, 1  ;;  %v16016_v40 = vpack.c.bf16 %v2654_v3, %v2653_v49 }
 0x2ff   :  { %19937 = vst [vmem:[#allocation25_spill] sm:$0xff] %v16014_v18  ;;  %v2737_v50 = vrot.slane %v2652_v25, 7  ;;  %v2929_v14 = vrot.slane %v2652_v25, 1  ;;  %v12586_v16 = vpop.f32.mrb[24].mxu0  ;;  %v16018_v12 = vpack.c.bf16 %v2652_v25, %v2651_v41 }
 0x300   :  { %19938 = vst [vmem:[#allocation24_spill] sm:$0xff] %v16016_v40  ;;  %v2593_v17 = vadd.f32 %v12586_v16, %v15787_v21  ;;  %v2337_v20 = vpop.f32.mrb[25].mxu0  ;;  %v2770_v53 = vsel %vm177_vm9, %v2706_v8, %v2738_v43  ;;  %v2802_v47 = vsel %vm177_vm9, %v2738_v43, %v2706_v8  ;;  %v2962_v48 = vsel %vm373_vm0, %v2898_v27, %v2930_v52 }
 0x301   :  { %19939 = vst [vmem:[#allocation27_spill] sm:$0xff] %v16018_v12  ;;  %v2591_v30 = vadd.f32 %v15787_v21, %v2337_v20  ;;  %v12587_v10 = vpop.f32.mrb[26].mxu0  ;;  %v2769_v49 = vsel %vm177_vm9, %v2705_v13, %v2737_v50  ;;  %v2801_v59 = vsel %vm177_vm9, %v2737_v50, %v2705_v13  ;;  %v16032_v23 = vpack.c.bf16 %v2770_v53, %v2802_v47 }
 0x302   :  { %v2657_v62 = vmax.f32 %v2593_v17, 0.0  ;;  %v2594_v41 = vadd.f32 %v12587_v10, %v15787_v21  ;;  %v2340_v5 = vpop.f32.mrb[27].mxu0  ;;  %v16035_v0 = vpack.c.bf16 %v2769_v49, %v2801_v59  ;;  %v2961_v60 = vsel %vm373_vm0, %v2897_v19, %v2929_v14 }
 0x303   :  { %19940 = vst [vmem:[#allocation26_spill] sm:$0xff] %v16032_v23  ;;  %v2655_v3 = vmax.f32 %v2591_v30, 0.0  ;;  %v2592_v8 = vadd.f32 %v15787_v21, %v2340_v5  ;;  %v2993_v25 = vsel %vm373_vm0, %v2929_v14, %v2897_v19  ;;  %v2994_v13 = vsel %vm373_vm0, %v2930_v52, %v2898_v27 }
 0x304   :  { %19941 = vst [vmem:[#allocation29_spill] sm:$0xff] %v16035_v0  ;;  %v2658_v43 = vmax.f32 %v2594_v41, 0.0  ;;  %11485 = vmatmul.mubr.msk.bf16.gmra.mrb[20].mxu1 %vm15816_vm12, %v15909_v39  ;;  %11741 = vmatmul.mubr.msk.bf16.gmra.mrb[88].mxu0 %vm15816_vm12, %v15909_v39  ;;  %v16050_v50 = vpack.c.bf16 %v2993_v25, %v2961_v60  ;;  %v2708_v16 = vrot.slane %v2657_v62, 7  ;;  %v2900_v17 = vrot.slane %v2657_v62, 1 }
 0x305   :  { %v2656_v20 = vmax.f32 %v2592_v8, 0.0  ;;  %3785 = vmatprep.mubr.bf16.mxu1 %v15935_v9  ;;  %4515 = vmatprep.mubr.bf16.mxu0 %v15935_v9  ;;  %v16054_v19 = vpack.c.bf16 %v2994_v13, %v2962_v48  ;;  %v2707_v27 = vrot.slane %v2655_v3, 7  ;;  %v2899_v47 = vrot.slane %v2655_v3, 1 }
 0x306   :  { %19942 = vst [vmem:[#allocation28_spill] sm:$0xff] %v16050_v50  ;;  %v2740_v52 = vrot.slane %v2658_v43, 7  ;;  %v2932_v14 = vrot.slane %v2658_v43, 1  ;;  %v16056_v53 = vpack.c.bf16 %v2658_v43, %v2657_v62 }
 0x307   :  { %19943 = vst [vmem:[#allocation32_spill] sm:$0xff] %v16054_v19  ;;  %v2739_v30 = vrot.slane %v2656_v20, 7  ;;  %v2931_v10 = vrot.slane %v2656_v20, 1  ;;  %v12590_v49 = vpop.f32.mrb[28].mxu0  ;;  %v16058_v59 = vpack.c.bf16 %v2656_v20, %v2655_v3 }
 0x308   :  { %19944 = vst [vmem:[#allocation31_spill] sm:$0xff] %v16056_v53  ;;  %v2597_v41 = vadd.f32 %v12590_v49, %v15787_v21  ;;  %v2353_v5 = vpop.f32.mrb[29].mxu0  ;;  %v2772_v60 = vsel %vm177_vm9, %v2708_v16, %v2740_v52  ;;  %v2804_v48 = vsel %vm177_vm9, %v2740_v52, %v2708_v16  ;;  %v2964_v8 = vsel %vm373_vm0, %v2900_v17, %v2932_v14 }
 0x309   :  { %19945 = vst [vmem:[#allocation36_spill] sm:$0xff] %v16058_v59  ;;  %v2595_v62 = vadd.f32 %v15787_v21, %v2353_v5  ;;  %v12591_v25 = vpop.f32.mrb[30].mxu0  ;;  %v2771_v13 = vsel %vm177_vm9, %v2707_v27, %v2739_v30  ;;  %v2803_v3 = vsel %vm177_vm9, %v2739_v30, %v2707_v27  ;;  %v16072_v43 = vpack.c.bf16 %v2772_v60, %v2804_v48 }
 0x30a   :  { %v2661_v20 = vmax.f32 %v2597_v41, 0.0  ;;  %v2598_v49 = vadd.f32 %v12591_v25, %v15787_v21  ;;  %v2356_v1 = vpop.f32.mrb[31].mxu0  ;;  %v16075_v33 = vpack.c.bf16 %v2771_v13, %v2803_v3  ;;  %v2963_v16 = vsel %vm373_vm0, %v2899_v47, %v2931_v10 }
 0x30b   :  { %19946 = vst [vmem:[#allocation35_spill] sm:$0xff] %v16072_v43  ;;  %v2659_v52 = vmax.f32 %v2595_v62, 0.0  ;;  %v2596_v5 = vadd.f32 %v15787_v21, %v2356_v1  ;;  %v2995_v44 = vsel %vm373_vm0, %v2931_v10, %v2899_v47  ;;  %v2996_v27 = vsel %vm373_vm0, %v2932_v14, %v2900_v17 }
 0x30c   :  { %19947 = vst [vmem:[#allocation39_spill] sm:$0xff] %v16075_v33  ;;  %v2662_v30 = vmax.f32 %v2598_v49, 0.0  ;;  %11489 = vmatmul.mubr.msk.bf16.gmra.mrb[24].mxu1 %vm15816_vm12, %v15952_v35  ;;  %11745 = vmatmul.mubr.msk.bf16.gmra.mrb[92].mxu0 %vm15816_vm12, %v15952_v35  ;;  %v16090_v41 = vpack.c.bf16 %v2995_v44, %v2963_v16  ;;  %v2710_v60 = vrot.slane %v2661_v20, 7  ;;  %v2902_v48 = vrot.slane %v2661_v20, 1 }
 0x30d   :  { %v2660_v1 = vmax.f32 %v2596_v5, 0.0  ;;  %3793 = vmatprep.mubr.bf16.mxu1 %v15933_v57  ;;  %4523 = vmatprep.mubr.bf16.mxu0 %v15933_v57  ;;  %v16094_v47 = vpack.c.bf16 %v2996_v27, %v2964_v8  ;;  %v2709_v17 = vrot.slane %v2659_v52, 7  ;;  %v2901_v25 = vrot.slane %v2659_v52, 1 }
 0x30e   :  { %19948 = vst [vmem:[#allocation38_spill] sm:$0xff] %v16090_v41  ;;  %v2742_v14 = vrot.slane %v2662_v30, 7  ;;  %v2934_v10 = vrot.slane %v2662_v30, 1  ;;  %v16096_v62 = vpack.c.bf16 %v2662_v30, %v2661_v20 }
 0x30f   :  { %19949 = vst [vmem:[#allocation41_spill] sm:$0xff] %v16094_v47  ;;  %v2741_v13 = vrot.slane %v2660_v1, 7  ;;  %v2933_v3 = vrot.slane %v2660_v1, 1  ;;  %v12594_v49 = vpop.f32.mrb[32].mxu0  ;;  %v16098_v44 = vpack.c.bf16 %v2660_v1, %v2659_v52 }
 0x310   :  { %19950 = vst [vmem:[#allocation40_spill] sm:$0xff] %v16096_v62  ;;  %v2601_v16 = vadd.f32 %v12594_v49, %v15787_v21  ;;  %v2369_v5 = vpop.f32.mrb[33].mxu0  ;;  %v2774_v46 = vsel %vm177_vm9, %v2710_v60, %v2742_v14  ;;  %v2806_v8 = vsel %vm177_vm9, %v2742_v14, %v2710_v60  ;;  %v2966_v27 = vsel %vm373_vm0, %v2902_v48, %v2934_v10 }
 0x311   :  { %19951 = vst [vmem:[#allocation45_spill] sm:$0xff] %v16098_v44  ;;  %v2599_v20 = vadd.f32 %v15787_v21, %v2369_v5  ;;  %v12595_v30 = vpop.f32.mrb[34].mxu0  ;;  %v2773_v57 = vsel %vm177_vm9, %v2709_v17, %v2741_v13  ;;  %v2805_v52 = vsel %vm177_vm9, %v2741_v13, %v2709_v17  ;;  %v16112_v1 = vpack.c.bf16 %v2774_v46, %v2806_v8 }
 0x312   :  { %v2665_v49 = vmax.f32 %v2601_v16, 0.0  ;;  %v2602_v35 = vadd.f32 %v12595_v30, %v15787_v21  ;;  %v2372_v9 = vpop.f32.mrb[35].mxu0  ;;  %v16115_v39 = vpack.c.bf16 %v2773_v57, %v2805_v52  ;;  %v2965_v60 = vsel %vm373_vm0, %v2901_v25, %v2933_v3 }
 0x313   :  { %19952 = vst [vmem:[#allocation44_spill] sm:$0xff] %v16112_v1  ;;  %v2663_v14 = vmax.f32 %v2599_v20, 0.0  ;;  %v2600_v5 = vadd.f32 %v15787_v21, %v2372_v9  ;;  %v2997_v31 = vsel %vm373_vm0, %v2933_v3, %v2901_v25  ;;  %v2998_v17 = vsel %vm373_vm0, %v2934_v10, %v2902_v48 }
 0x314   :  { %19953 = vst [vmem:[#allocation47_spill] sm:$0xff] %v16115_v39  ;;  %v2666_v46 = vmax.f32 %v2602_v35, 0.0  ;;  %11493 = vmatmul.mubr.msk.bf16.gmra.mrb[28].mxu1 %vm15816_vm12, %v15949_v15  ;;  %11749 = vmatmul.mubr.msk.bf16.gmra.mrb[96].mxu0 %vm15816_vm12, %v15949_v15  ;;  %v16130_v57 = vpack.c.bf16 %v2997_v31, %v2965_v60  ;;  %v2712_v13 = vrot.slane %v2665_v49, 7  ;;  %v2904_v16 = vrot.slane %v2665_v49, 1  ;;  %v13382_v35 = vld [vmem:[%s19391_s3 + $0x170] sm:$0xff]  }
 0x315   :  { %v2664_v9 = vmax.f32 %v2600_v5, 0.0  ;;  %3801 = vmatprep.mubr.bf16.mxu1 %v15978_v38  ;;  %4531 = vmatprep.mubr.bf16.mxu0 %v15978_v38  ;;  %v16137_v48 = vpack.c.bf16 %v2998_v17, %v2966_v27  ;;  %v2711_v10 = vrot.slane %v2663_v14, 7  ;;  %v2903_v31 = vrot.slane %v2663_v14, 1 }
 0x316   :  { %19954 = vst [vmem:[#allocation46_spill] sm:$0xff] %v16130_v57  ;;  %v2744_v25 = vrot.slane %v2666_v46, 7  ;;  %v2936_v3 = vrot.slane %v2666_v46, 1  ;;  %v16139_v8 = vpack.c.bf16 %v2666_v46, %v2665_v49  ;;  %12636 = vmatprep.subr.bf16.mxu1 %v13382_v35 }
 0x317   :  { %19955 = vst [vmem:[#allocation49_spill] sm:$0xff] %v16137_v48  ;;  %v2743_v20 = vrot.slane %v2664_v9, 7  ;;  %v2935_v30 = vrot.slane %v2664_v9, 1  ;;  %v12598_v52 = vpop.f32.mrb[36].mxu0  ;;  %v16141_v60 = vpack.c.bf16 %v2664_v9, %v2663_v14  ;;  %12637 = vmatpush3.bf16.msra.mxu1 %v13382_v35 }
 0x318   :  { %19956 = vst [vmem:[#allocation48_spill] sm:$0xff] %v16139_v8  ;;  %v2605_v5 = vadd.f32 %v12598_v52, %v15787_v21  ;;  %v2385_v38 = vpop.f32.mrb[37].mxu0  ;;  %v2776_v15 = vsel %vm177_vm9, %v2712_v13, %v2744_v25  ;;  %v2808_v27 = vsel %vm177_vm9, %v2744_v25, %v2712_v13  ;;  %v2968_v49 = vsel %vm373_vm0, %v2904_v16, %v2936_v3 }
 0x319   :  { %v2603_v17 = vadd.f32 %v15787_v21, %v2385_v38  ;;  %v12599_v46 = vpop.f32.mrb[38].mxu0  ;;  %v2775_v14 = vsel %vm177_vm9, %v2711_v10, %v2743_v20  ;;  %v2807_v9 = vsel %vm177_vm9, %v2743_v20, %v2711_v10  ;;  %v16155_v52 = vpack.c.bf16 %v2776_v15, %v2808_v27 }
 0x31a   :  { %v2669_v63 = vmax.f32 %v2605_v5, 0.0  ;;  %v2606_v29 = vadd.f32 %v12599_v46, %v15787_v21  ;;  %v2388_v7 = vpop.f32.mrb[39].mxu0  ;;  %v16158_v13 = vpack.c.bf16 %v2775_v14, %v2807_v9  ;;  %v3000_v35 = vsel %vm373_vm0, %v2936_v3, %v2904_v16 }
 0x31b   :  { %19957 = vst [vmem:[#allocation51_spill] sm:$0xff] %v16155_v52  ;;  %v2667_v25 = vmax.f32 %v2603_v17, 0.0  ;;  %v2604_v38 = vadd.f32 %v15787_v21, %v2388_v7  ;;  %v16163_v37 = vpack.c.bf16 %v3000_v35, %v2968_v49  ;;  %v2967_v2 = vsel %vm373_vm0, %v2903_v31, %v2935_v30 }
 0x31c   :  { %v2670_v10 = vmax.f32 %v2606_v29, 0.0  ;;  %11497 = vmatmul.mubr.msk.bf16.gmra.mrb[32].mxu1 %vm15816_vm12, %v15995_v56  ;;  %11753 = vmatmul.mubr.msk.bf16.gmra.mrb[100].mxu0 %vm15816_vm12, %v15995_v56  ;;  %v2999_v15 = vsel %vm373_vm0, %v2935_v30, %v2903_v31  ;;  %v2714_v16 = vrot.slane %v2669_v63, 7  ;;  %v2906_v3 = vrot.slane %v2669_v63, 1 }
 0x31d   :  { %19958 = vst [vmem:[#allocation50_spill] sm:$0xff] %v16163_v37  ;;  %v2668_v7 = vmax.f32 %v2604_v38, 0.0  ;;  %3809 = vmatprep.mubr.bf16.mxu1 %v15976_v61  ;;  %4539 = vmatprep.mubr.bf16.mxu0 %v15976_v61  ;;  %v16177_v20 = vpack.c.bf16 %v2999_v15, %v2967_v2  ;;  %v2713_v29 = vrot.slane %v2667_v25, 7  ;;  %v2905_v17 = vrot.slane %v2667_v25, 1 }
 0x31e   :  { %v2746_v5 = vrot.slane %v2670_v10, 7  ;;  %v2938_v27 = vrot.slane %v2670_v10, 1  ;;  %v16179_v49 = vpack.c.bf16 %v2670_v10, %v2669_v63 }
 0x31f   :  { %19959 = vst [vmem:[#allocation56_spill] sm:$0xff] %v16177_v20  ;;  %v2745_v46 = vrot.slane %v2668_v7, 7  ;;  %v2937_v14 = vrot.slane %v2668_v7, 1  ;;  %v12602_v9 = vpop.f32.mrb[40].mxu0  ;;  %v16181_v35 = vpack.c.bf16 %v2668_v7, %v2667_v25 }
 0x320   :  { %19960 = vst [vmem:[#allocation55_spill] sm:$0xff] %v16179_v49  ;;  %v2609_v31 = vadd.f32 %v12602_v9, %v15787_v21  ;;  %v2401_v30 = vpop.f32.mrb[41].mxu0  ;;  %v2778_v38 = vsel %vm177_vm9, %v2714_v16, %v2746_v5  ;;  %v2810_v2 = vsel %vm177_vm9, %v2746_v5, %v2714_v16  ;;  %v2970_v15 = vsel %vm373_vm0, %v2906_v3, %v2938_v27 }
 0x321   :  { %19961 = vst [vmem:[#allocation59_spill] sm:$0xff] %v16181_v35  ;;  %v2607_v63 = vadd.f32 %v15787_v21, %v2401_v30  ;;  %v12603_v10 = vpop.f32.mrb[42].mxu0  ;;  %v2777_v61 = vsel %vm177_vm9, %v2713_v29, %v2745_v46  ;;  %v2809_v25 = vsel %vm177_vm9, %v2745_v46, %v2713_v29  ;;  %v16195_v7 = vpack.c.bf16 %v2778_v38, %v2810_v2 }
 0x322   :  { %v2673_v9 = vmax.f32 %v2609_v31, 0.0  ;;  %v2610_v56 = vadd.f32 %v12603_v10, %v15787_v21  ;;  %v2404_v34 = vpop.f32.mrb[43].mxu0  ;;  %v16198_v51 = vpack.c.bf16 %v2777_v61, %v2809_v25  ;;  %v2969_v16 = vsel %vm373_vm0, %v2905_v17, %v2937_v14 }
 0x323   :  { %19962 = vst [vmem:[#allocation58_spill] sm:$0xff] %v16195_v7  ;;  %v2671_v5 = vmax.f32 %v2607_v63, 0.0  ;;  %v2608_v30 = vadd.f32 %v15787_v21, %v2404_v34  ;;  %v3001_v24 = vsel %vm373_vm0, %v2937_v14, %v2905_v17  ;;  %v3002_v29 = vsel %vm373_vm0, %v2938_v27, %v2906_v3 }
 0x324   :  { %19963 = vst [vmem:[#allocation71_spill] sm:$0xff] %v16198_v51  ;;  %v2674_v46 = vmax.f32 %v2610_v56, 0.0  ;;  %11501 = vmatmul.mubr.msk.bf16.gmra.mrb[36].mxu1 %vm15816_vm12, %v15992_v22  ;;  %11757 = vmatmul.mubr.msk.bf16.gmra.mrb[104].mxu0 %vm15816_vm12, %v15992_v22  ;;  %v16213_v61 = vpack.c.bf16 %v3001_v24, %v2969_v16  ;;  %v2716_v31 = vrot.slane %v2673_v9, 7  ;;  %v2908_v38 = vrot.slane %v2673_v9, 1 }
 0x325   :  { %v2672_v34 = vmax.f32 %v2608_v30, 0.0  ;;  %3817 = vmatprep.mubr.bf16.mxu1 %v16018_v12  ;;  %4547 = vmatprep.mubr.bf16.mxu0 %v16018_v12  ;;  %v16217_v17 = vpack.c.bf16 %v3002_v29, %v2970_v15  ;;  %v2715_v56 = vrot.slane %v2671_v5, 7  ;;  %v2907_v2 = vrot.slane %v2671_v5, 1 }
 0x326   :  { %19964 = vst [vmem:[#allocation70_spill] sm:$0xff] %v16213_v61  ;;  %v2748_v3 = vrot.slane %v2674_v46, 7  ;;  %v2940_v27 = vrot.slane %v2674_v46, 1  ;;  %v16219_v14 = vpack.c.bf16 %v2674_v46, %v2673_v9 }
 0x327   :  { %19965 = vst [vmem:[#allocation78_spill] sm:$0xff] %v16217_v17  ;;  %v2747_v63 = vrot.slane %v2672_v34, 7  ;;  %v2939_v10 = vrot.slane %v2672_v34, 1  ;;  %v12606_v25 = vpop.f32.mrb[44].mxu0  ;;  %v16221_v24 = vpack.c.bf16 %v2672_v34, %v2671_v5 }
 0x328   :  { %19966 = vst [vmem:[#allocation77_spill] sm:$0xff] %v16219_v14  ;;  %v2613_v16 = vadd.f32 %v12606_v25, %v15787_v21  ;;  %v2417_v30 = vpop.f32.mrb[45].mxu0  ;;  %v2780_v22 = vsel %vm177_vm9, %v2716_v31, %v2748_v3  ;;  %v2812_v15 = vsel %vm177_vm9, %v2748_v3, %v2716_v31  ;;  %v2972_v29 = vsel %vm373_vm0, %v2908_v38, %v2940_v27 }
 0x329   :  { %19967 = vst [vmem:[#allocation84_spill] sm:$0xff] %v16221_v24  ;;  %v2611_v9 = vadd.f32 %v15787_v21, %v2417_v30  ;;  %v12607_v46 = vpop.f32.mrb[46].mxu0  ;;  %v2779_v12 = vsel %vm177_vm9, %v2715_v56, %v2747_v63  ;;  %v2811_v5 = vsel %vm177_vm9, %v2747_v63, %v2715_v56  ;;  %v16235_v34 = vpack.c.bf16 %v2780_v22, %v2812_v15 }
 0x32a   :  { %v2677_v25 = vmax.f32 %v2613_v16, 0.0  ;;  %v2614_v17 = vadd.f32 %v12607_v46, %v15787_v21  ;;  %v2420_v20 = vpop.f32.mrb[47].mxu0  ;;  %v16238_v61 = vpack.c.bf16 %v2779_v12, %v2811_v5  ;;  %v2971_v31 = vsel %vm373_vm0, %v2907_v2, %v2939_v10 }
 0x32b   :  { %19968 = vst [vmem:[#allocation85_spill] sm:$0xff] %v16235_v34  ;;  %v2675_v3 = vmax.f32 %v2611_v9, 0.0  ;;  %v2612_v30 = vadd.f32 %v15787_v21, %v2420_v20  ;;  %v3003_v37 = vsel %vm373_vm0, %v2939_v10, %v2907_v2  ;;  %v3004_v56 = vsel %vm373_vm0, %v2940_v27, %v2908_v38 }
 0x32c   :  { %19969 = vst [vmem:[#allocation86_spill] sm:$0xff] %v16238_v61  ;;  %v2678_v22 = vmax.f32 %v2614_v17, 0.0  ;;  %11505 = vmatmul.mubr.msk.bf16.gmra.mrb[40].mxu1 %vm15816_vm12, %v16035_v0  ;;  %11761 = vmatmul.mubr.msk.bf16.gmra.mrb[108].mxu0 %vm15816_vm12, %v16035_v0  ;;  %v16253_v12 = vpack.c.bf16 %v3003_v37, %v2971_v31  ;;  %v2718_v63 = vrot.slane %v2677_v25, 7  ;;  %v2910_v16 = vrot.slane %v2677_v25, 1 }
 0x32d   :  { %v2676_v20 = vmax.f32 %v2612_v30, 0.0  ;;  %3825 = vmatprep.mubr.bf16.mxu1 %v16016_v40  ;;  %4555 = vmatprep.mubr.bf16.mxu0 %v16016_v40  ;;  %v16257_v2 = vpack.c.bf16 %v3004_v56, %v2972_v29  ;;  %v2717_v38 = vrot.slane %v2675_v3, 7  ;;  %v2909_v15 = vrot.slane %v2675_v3, 1 }
 0x32e   :  { %19970 = vst [vmem:[#allocation87_spill] sm:$0xff] %v16253_v12  ;;  %v2750_v17 = vrot.slane %v2678_v22, 7  ;;  %v2942_v27 = vrot.slane %v2678_v22, 1  ;;  %v16259_v10 = vpack.c.bf16 %v2678_v22, %v2677_v25 }
 0x32f   :  { %19971 = vst [vmem:[#allocation88_spill] sm:$0xff] %v16257_v2  ;;  %v2749_v9 = vrot.slane %v2676_v20, 7  ;;  %v2941_v46 = vrot.slane %v2676_v20, 1  ;;  %v12610_v5 = vpop.f32.mrb[48].mxu0  ;;  %v16261_v37 = vpack.c.bf16 %v2676_v20, %v2675_v3 }
 0x330   :  { %19972 = vst [vmem:[#allocation89_spill] sm:$0xff] %v16259_v10  ;;  %v2617_v31 = vadd.f32 %v12610_v5, %v15787_v21  ;;  %v2433_v30 = vpop.f32.mrb[49].mxu0  ;;  %v2782_v0 = vsel %vm177_vm9, %v2718_v63, %v2750_v17  ;;  %v2814_v29 = vsel %vm177_vm9, %v2750_v17, %v2718_v63  ;;  %v2974_v56 = vsel %vm373_vm0, %v2910_v16, %v2942_v27 }
 0x331   :  { %19973 = vst [vmem:[#allocation90_spill] sm:$0xff] %v16261_v37  ;;  %v2615_v25 = vadd.f32 %v15787_v21, %v2433_v30  ;;  %v12611_v22 = vpop.f32.mrb[50].mxu0  ;;  %v2781_v40 = vsel %vm177_vm9, %v2717_v38, %v2749_v9  ;;  %v2813_v3 = vsel %vm177_vm9, %v2749_v9, %v2717_v38  ;;  %v16275_v20 = vpack.c.bf16 %v2782_v0, %v2814_v29 }
 0x332   :  { %v2681_v5 = vmax.f32 %v2617_v31, 0.0  ;;  %v2618_v2 = vadd.f32 %v12611_v22, %v15787_v21  ;;  %v2436_v12 = vpop.f32.mrb[51].mxu0  ;;  %v16278_v48 = vpack.c.bf16 %v2781_v40, %v2813_v3  ;;  %v2973_v63 = vsel %vm373_vm0, %v2909_v15, %v2941_v46  ;;  %v13383_v40 = vld [vmem:[%s19391_s3 + $0x200] sm:$0xff]  }
 0x333   :  { %19974 = vst [vmem:[#allocation91_spill] sm:$0xff] %v16275_v20  ;;  %v2679_v17 = vmax.f32 %v2615_v25, 0.0  ;;  %v2616_v30 = vadd.f32 %v15787_v21, %v2436_v12  ;;  %v3005_v57 = vsel %vm373_vm0, %v2941_v46, %v2909_v15  ;;  %v3006_v38 = vsel %vm373_vm0, %v2942_v27, %v2910_v16  ;;  %12784 = vmatprep.subr.bf16.mxu0 %v13383_v40 }
 0x334   :  { %19975 = vst [vmem:[#allocation92_spill] sm:$0xff] %v16278_v48  ;;  %v2682_v0 = vmax.f32 %v2618_v2, 0.0  ;;  %11509 = vmatmul.mubr.msk.bf16.gmra.mrb[44].mxu1 %vm15816_vm12, %v16032_v23  ;;  %11765 = vmatmul.mubr.msk.bf16.gmra.mrb[112].mxu0 %vm15816_vm12, %v16032_v23  ;;  %v16296_v12 = vpack.c.bf16 %v3005_v57, %v2973_v63  ;;  %v2720_v9 = vrot.slane %v2681_v5, 7  ;;  %v2912_v15 = vrot.slane %v2681_v5, 1 }
 0x335   :  { %v2680_v46 = vmax.f32 %v2616_v30, 0.0  ;;  %3833 = vmatprep.mubr.bf16.mxu1 %v16058_v59  ;;  %4563 = vmatprep.mubr.bf16.mxu0 %v16058_v59  ;;  %v16300_v16 = vpack.c.bf16 %v3006_v38, %v2974_v56  ;;  %v2719_v2 = vrot.slane %v2679_v17, 7  ;;  %v2911_v25 = vrot.slane %v2679_v17, 1 }
 0x336   :  { %19976 = vst [vmem:[#allocation93_spill] sm:$0xff] %v16296_v12  ;;  %v2752_v27 = vrot.slane %v2682_v0, 7  ;;  %v2944_v31 = vrot.slane %v2682_v0, 1  ;;  %v16302_v29 = vpack.c.bf16 %v2682_v0, %v2681_v5  ;;  %12785 = vmatpush3.bf16.msra.mxu0 %v13383_v40  ;;  %v13384_v5 = vld [vmem:[%s19391_s3 + $0x208] sm:$0xff]  }
 0x337   :  { %19977 = vst [vmem:[#allocation94_spill] sm:$0xff] %v16300_v16  ;;  %v2751_v22 = vrot.slane %v2680_v46, 7  ;;  %v2943_v3 = vrot.slane %v2680_v46, 1  ;;  %v12614_v57 = vpop.f32.mrb[52].mxu0  ;;  %v16304_v63 = vpack.c.bf16 %v2680_v46, %v2679_v17  ;;  %v16319_v17 = vld [vmem:[%s19390_s2] ss:$0 sm:$0xff]  ;;  %12786 = vmatprep.subr.bf16.mxu0 %v13384_v5 }
 0x338   :  { %19978 = vst [vmem:[#allocation95_spill] sm:$0xff] %v16302_v29  ;;  %v2621_v30 = vadd.f32 %v12614_v57, %v15787_v21  ;;  %v2449_v23 = vpop.f32.mrb[53].mxu0  ;;  %v2784_v56 = vsel %vm177_vm9, %v2720_v9, %v2752_v27  ;;  %v2816_v38 = vsel %vm177_vm9, %v2752_v27, %v2720_v9  ;;  %v2976_v0 = vsel %vm373_vm0, %v2912_v15, %v2944_v31 }
 0x339   :  { %19979 = vst [vmem:[#allocation96_spill] sm:$0xff] %v16304_v63  ;;  %v2619_v21 = vadd.f32 %v16319_v17, %v2449_v23  ;;  %v12615_v40 = vpop.f32.mrb[54].mxu0  ;;  %v2783_v46 = vsel %vm177_vm9, %v2719_v2, %v2751_v22  ;;  %v2815_v9 = vsel %vm177_vm9, %v2751_v22, %v2719_v2  ;;  %v16326_v27 = vpack.c.bf16 %v2784_v56, %v2816_v38  ;;  %v13385_v23 = vld [vmem:[%s19391_s3 + $0x178] sm:$0xff]  }
 0x33a   :  { %v2685_v57 = vmax.f32 %v2621_v30, 0.0  ;;  %v2622_v59 = vadd.f32 %v16319_v17, %v12615_v40  ;;  %v2452_v16 = vpop.f32.mrb[55].mxu0  ;;  %v16329_v12 = vpack.c.bf16 %v2783_v46, %v2815_v9  ;;  %v2975_v47 = vsel %vm373_vm0, %v2911_v25, %v2943_v3  ;;  %12787 = vmatpush3.bf16.msra.mxu0 %v13384_v5  ;;  %12638 = vmatprep.subr.bf16.mxu1 %v13385_v23 }
 0x33b   :  { %19980 = vst [vmem:[#allocation97_spill] sm:$0xff] %v16326_v27  ;;  %v2683_v41 = vmax.f32 %v2619_v21, 0.0  ;;  %v2620_v19 = vadd.f32 %v16319_v17, %v2452_v16  ;;  %v3007_v2 = vsel %vm373_vm0, %v2943_v3, %v2911_v25  ;;  %v3008_v22 = vsel %vm373_vm0, %v2944_v31, %v2912_v15  ;;  %v13386_v16 = vld [vmem:[%s19391_s3 + $0x210] sm:$0xff]   ;;  %12639 = vmatpush3.bf16.msra.mxu1 %v13385_v23 }
 0x33c   :  { %19981 = vst [vmem:[#allocation98_spill] sm:$0xff] %v16329_v12  ;;  %v2686_v30 = vmax.f32 %v2622_v59, 0.0  ;;  %11513 = vmatmul.mubr.msk.bf16.gmra.mrb[48].mxu1 %vm15816_vm12, %v16075_v33  ;;  %11769 = vmatmul.mubr.msk.bf16.gmra.mrb[116].mxu0 %vm15816_vm12, %v16075_v33  ;;  %v16350_v56 = vpack.c.bf16 %v3007_v2, %v2975_v47  ;;  %v2722_v38 = vrot.slane %v2685_v57, 7  ;;  %v2914_v25 = vrot.slane %v2685_v57, 1 }
 0x33d   :  { %v2684_v3 = vmax.f32 %v2620_v19, 0.0  ;;  %3841 = vmatprep.mubr.bf16.mxu1 %v16056_v53  ;;  %4571 = vmatprep.mubr.bf16.mxu0 %v16056_v53  ;;  %v16354_v59 = vpack.c.bf16 %v3008_v22, %v2976_v0  ;;  %v2721_v15 = vrot.slane %v2683_v41, 7  ;;  %v2913_v40 = vrot.slane %v2683_v41, 1  ;;  %v13387_v22 = vld [vmem:[%s19391_s3 + $0x218] sm:$0xff]  }
 0x33e   :  { %19982 = vst [vmem:[#allocation99_spill] sm:$0xff] %v16350_v56  ;;  %v2754_v31 = vrot.slane %v2686_v30, 7  ;;  %v2946_v5 = vrot.slane %v2686_v30, 1  ;;  %v16356_v21 = vpack.c.bf16 %v2686_v30, %v2685_v57  ;;  %12788 = vmatprep.subr.bf16.mxu0 %v13386_v16 }
 0x33f   :  { %19983 = vst [vmem:[#allocation100_spill] sm:$0xff] %v16354_v59  ;;  %v2753_v46 = vrot.slane %v2684_v3, 7  ;;  %v2945_v47 = vrot.slane %v2684_v3, 1  ;;  %v12618_v9 = vpop.f32.mrb[56].mxu0  ;;  %v16358_v2 = vpack.c.bf16 %v2684_v3, %v2683_v41  ;;  %12789 = vmatpush3.bf16.msra.mxu0 %v13386_v16 }
 0x340   :  { %19984 = vst [vmem:[#allocation101_spill] sm:$0xff] %v16356_v21  ;;  %v2625_v19 = vadd.f32 %v16319_v17, %v12618_v9  ;;  %v2465_v53 = vpop.f32.mrb[57].mxu0  ;;  %v2786_v0 = vsel %vm177_vm9, %v2722_v38, %v2754_v31  ;;  %v2818_v57 = vsel %vm177_vm9, %v2754_v31, %v2722_v38  ;;  %v2978_v30 = vsel %vm373_vm0, %v2914_v25, %v2946_v5 }
 0x341   :  { %19985 = vst [vmem:[#allocation102_spill] sm:$0xff] %v16358_v2  ;;  %v2623_v41 = vadd.f32 %v16319_v17, %v2465_v53  ;;  %v12619_v23 = vpop.f32.mrb[58].mxu0  ;;  %v2785_v16 = vsel %vm177_vm9, %v2721_v15, %v2753_v46  ;;  %v2817_v3 = vsel %vm177_vm9, %v2753_v46, %v2721_v15  ;;  %v16375_v9 = vpack.c.bf16 %v2786_v0, %v2818_v57 }
 0x342   :  { %v2689_v33 = vmax.f32 %v2625_v19, 0.0  ;;  %v2626_v38 = vadd.f32 %v16319_v17, %v12619_v23  ;;  %v2468_v31 = vpop.f32.mrb[59].mxu0  ;;  %v16378_v59 = vpack.c.bf16 %v2785_v16, %v2817_v3  ;;  %12790 = vmatprep.subr.bf16.mxu0 %v13387_v22  ;;  %v2977_v56 = vsel %vm373_vm0, %v2913_v40, %v2945_v47  ;;  %v13388_v19 = vld [vmem:[%s19391_s3 + $0x220] sm:$0xff]  }
 0x343   :  { %19986 = vst [vmem:[#allocation103_spill] sm:$0xff] %v16375_v9  ;;  %v2687_v53 = vmax.f32 %v2623_v41, 0.0  ;;  %v2624_v50 = vadd.f32 %v16319_v17, %v2468_v31  ;;  %12791 = vmatpush3.bf16.msra.mxu0 %v13387_v22  ;;  %v3009_v18 = vsel %vm373_vm0, %v2945_v47, %v2913_v40  ;;  %v3010_v15 = vsel %vm373_vm0, %v2946_v5, %v2914_v25 }
 0x344   :  { %19987 = vst [vmem:[#allocation104_spill] sm:$0xff] %v16378_v59  ;;  %v2690_v46 = vmax.f32 %v2626_v38, 0.0  ;;  %11517 = vmatmul.mubr.msk.bf16.gmra.mrb[52].mxu1 %vm15816_vm12, %v16072_v43  ;;  %11773 = vmatmul.mubr.msk.bf16.gmra.mrb[120].mxu0 %vm15816_vm12, %v16072_v43  ;;  %v16396_v0 = vpack.c.bf16 %v3009_v18, %v2977_v56  ;;  %v2724_v57 = vrot.slane %v2689_v33, 7  ;;  %v2916_v40 = vrot.slane %v2689_v33, 1 }
 0x345   :  { %v2688_v47 = vmax.f32 %v2624_v50, 0.0  ;;  %3849 = vmatprep.mubr.bf16.mxu1 %v16098_v44  ;;  %4579 = vmatprep.mubr.bf16.mxu0 %v16098_v44  ;;  %v16400_v25 = vpack.c.bf16 %v3010_v15, %v2978_v30  ;;  %v2723_v5 = vrot.slane %v2687_v53, 7  ;;  %v2915_v16 = vrot.slane %v2687_v53, 1 }
 0x346   :  { %19988 = vst [vmem:[#allocation105_spill] sm:$0xff] %v16396_v0  ;;  %v2756_v22 = vrot.slane %v2690_v46, 7  ;;  %v2948_v41 = vrot.slane %v2690_v46, 1  ;;  %v16402_v23 = vpack.c.bf16 %v2690_v46, %v2689_v33  ;;  %12792 = vmatprep.subr.bf16.mxu0 %v13388_v19  ;;  %v13389_v33 = vld [vmem:[%s19391_s3 + $0x228] sm:$0xff]  }
 0x347   :  { %19989 = vst [vmem:[#allocation106_spill] sm:$0xff] %v16400_v25  ;;  %v2755_v3 = vrot.slane %v2688_v47, 7  ;;  %v2947_v38 = vrot.slane %v2688_v47, 1  ;;  %v12622_v18 = vpop.f32.mrb[60].mxu0  ;;  %v16404_v56 = vpack.c.bf16 %v2688_v47, %v2687_v53  ;;  %12793 = vmatpush3.bf16.msra.mxu0 %v13388_v19 }
 0x348   :  { %19990 = vst [vmem:[#allocation107_spill] sm:$0xff] %v16402_v23  ;;  %v2629_v50 = vadd.f32 %v16319_v17, %v12622_v18  ;;  %v2481_v31 = vpop.f32.mrb[61].mxu0  ;;  %v2788_v30 = vsel %vm177_vm9, %v2724_v57, %v2756_v22  ;;  %v2820_v15 = vsel %vm177_vm9, %v2756_v22, %v2724_v57  ;;  %v2980_v46 = vsel %vm373_vm0, %v2916_v40, %v2948_v41 }
 0x349   :  { %19991 = vst [vmem:[#allocation108_spill] sm:$0xff] %v16404_v56  ;;  %v2627_v53 = vadd.f32 %v16319_v17, %v2481_v31  ;;  %v12623_v47 = vpop.f32.mrb[62].mxu0  ;;  %v2787_v19 = vsel %vm177_vm9, %v2723_v5, %v2755_v3  ;;  %v2819_v18 = vsel %vm177_vm9, %v2755_v3, %v2723_v5  ;;  %v16421_v44 = vpack.c.bf16 %v2788_v30, %v2820_v15 }
 0x34a   :  { %v2693_v43 = vmax.f32 %v2629_v50, 0.0  ;;  %v2630_v57 = vadd.f32 %v16319_v17, %v12623_v47  ;;  %v2484_v22 = vpop.f32.mrb[63].mxu0  ;;  %v16424_v25 = vpack.c.bf16 %v2787_v19, %v2819_v18  ;;  %12794 = vmatprep.subr.bf16.mxu0 %v13389_v33  ;;  %v2979_v0 = vsel %vm373_vm0, %v2915_v16, %v2947_v38 }
 0x34b   :  { %19992 = vst [vmem:[#allocation109_spill] sm:$0xff] %v16421_v44  ;;  %v2691_v31 = vmax.f32 %v2627_v53, 0.0  ;;  %v2628_v58 = vadd.f32 %v16319_v17, %v2484_v22  ;;  %12795 = vmatpush3.bf16.msra.mxu0 %v13389_v33  ;;  %v3011_v26 = vsel %vm373_vm0, %v2947_v38, %v2915_v16  ;;  %v3012_v5 = vsel %vm373_vm0, %v2948_v41, %v2916_v40  ;;  %v13390_v17 = vld [vmem:[%s19391_s3 + $0x230] sm:$0xff]  }
 0x34c   :  { %19993 = vst [vmem:[#allocation110_spill] sm:$0xff] %v16424_v25  ;;  %v2694_v3 = vmax.f32 %v2630_v57, 0.0  ;;  %11521 = vmatmul.mubr.msk.bf16.gmra.mrb[56].mxu1 %vm15816_vm12, %v16115_v39  ;;  %11777 = vmatmul.mubr.msk.bf16.gmra.mrb[124].mxu0 %vm15816_vm12, %v16115_v39  ;;  %v16442_v50 = vpack.c.bf16 %v3011_v26, %v2979_v0  ;;  %v2726_v30 = vrot.slane %v2693_v43, 7  ;;  %v2918_v16 = vrot.slane %v2693_v43, 1 }
 0x34d   :  { %v2692_v38 = vmax.f32 %v2628_v58, 0.0  ;;  %3857 = vmatprep.mubr.bf16.mxu1 %v16096_v62  ;;  %v19995_v40 = vmov 0   ;;  %v16446_v41 = vpack.c.bf16 %v3012_v5, %v2980_v46  ;;  %v2725_v15 = vrot.slane %v2691_v31, 7  ;;  %12796 = vmatprep.subr.bf16.mxu0 %v13390_v17  ;;  %v13391_v46 = vld [vmem:[%s19391_s3 + $0x238] sm:$0xff]  }
 0x34e   :  { %19994 = vst [vmem:[#allocation111_spill] sm:$0xff] %v16442_v50  ;;  %4587 = vmatprep.mubr.bf16.mxu0 %v19995_v40  ;;  %v2758_v33 = vrot.slane %v2694_v3, 7  ;;  %v2950_v53 = vrot.slane %v2694_v3, 1  ;;  %v16448_v47 = vpack.c.bf16 %v2694_v3, %v2693_v43  ;;  %v2917_v19 = vrot.slane %v2691_v31, 1 }
 0x34f   :  { %19996 = vst [vmem:[#allocation112_spill] sm:$0xff] %v16446_v41  ;;  %v2757_v18 = vrot.slane %v2692_v38, 7  ;;  %v2949_v57 = vrot.slane %v2692_v38, 1  ;;  %v16450_v26 = vpop.f32.mrb[64].mxu0  ;;  %v16452_v0 = vpack.c.bf16 %v2692_v38, %v2691_v31  ;;  %12797 = vmatpush3.bf16.msra.mxu0 %v13390_v17 }
 0x350   :  { %19997 = vst [vmem:[#allocation113_spill] sm:$0xff] %v16448_v47  ;;  %v4463_v58 = vpop.f32.mrb[65].mxu0  ;;  %v2790_v22 = vsel %vm177_vm9, %v2726_v30, %v2758_v33  ;;  %v2822_v43 = vsel %vm177_vm9, %v2758_v33, %v2726_v30  ;;  %v2982_v5 = vsel %vm373_vm0, %v2918_v16, %v2950_v53  ;;  %v3014_v3 = vsel %vm373_vm0, %v2950_v53, %v2918_v16 }
 0x351   :  { %19998 = vst [vmem:[#allocation114_spill] sm:$0xff] %v16452_v0  ;;  %v16465_v31 = vpop.f32.mrb[66].mxu0  ;;  %v2789_v17 = vsel %vm177_vm9, %v2725_v15, %v2757_v18  ;;  %v2821_v38 = vsel %vm177_vm9, %v2757_v18, %v2725_v15  ;;  %v16471_v58 = vpack.c.bf16 %v2790_v22, %v2822_v43  ;;  %v2981_v62 = vsel %vm373_vm0, %v2917_v19, %v2949_v57  ;;  %v16492_v15 = vld [vmem:[%s19391_s3 + $0x80] sm:$0xff]  }
 0x352   :  { %19999 = vst [vmem:[#allocation115_spill] sm:$0xff] %v16465_v31  ;;  %v4466_v30 = vpop.f32.mrb[67].mxu0  ;;  %v16475_v33 = vpack.c.bf16 %v2789_v17, %v2821_v38  ;;  %12798 = vmatprep.subr.bf16.mxu0 %v13391_v46  ;;  %v3013_v16 = vsel %vm373_vm0, %v2949_v57, %v2917_v19  ;;  %v16479_v53 = vpack.c.bf16 %v3014_v3, %v2982_v5  ;;  %vm11590_vm0 = vmneg %vm439_vm1  ;;  %vm9415_vm1 = vcmask 1041408  }
 0x353   :  { %20000 = vst [vmem:[#allocation116_spill] sm:$0xff] %v16471_v58  ;;  %12799 = vmatpush3.bf16.msra.mxu0 %v13391_v46  ;;  %v16481_v39 = vpack.c.bf16 %v3013_v16, %v2981_v62  ;;  %12704 = vmatprep.subr.bf16.mxu1 %v16492_v15  ;;  %vm16642_vm9 = vmpackc.low %vm11590_vm0, %vm13471_vm10 }
 0x354   :  { %20001 = vst [vmem:[#allocation117_spill] sm:$0xff] %v16475_v33  ;;  %11525 = vmatmul.mubr.msk.bf16.gmra.mrb[60].mxu1 %vm15816_vm12, %v16112_v1  ;;  %4588 = vmatmul.mubr.bf16.gmra.mrb[128].mxu0 %v19995_v40 }
 0x355   :  { %20002 = vst [vmem:[#allocation118_spill] sm:$0xff] %v16481_v39  ;;  %3865 = vmatprep.mubr.bf16.mxu1 %v16141_v60  ;;  %4595 = vmatprep.mubr.bf16.mxu0 %v16141_v60 }
 0x35c   :  { %11529 = vmatmul.mubr.msk.bf16.gmra.mrb[64].mxu1 %vm15816_vm12, %v16158_v13  ;;  %11781 = vmatmul.mubr.msk.bf16.gmra.mrb[132].mxu0 %vm15816_vm12, %v16158_v13 }
 0x35d   :  { %3873 = vmatprep.mubr.bf16.mxu1 %v16139_v8  ;;  %4603 = vmatprep.mubr.bf16.mxu0 %v16139_v8  ;;  %v20039_v8 = vld [vmem:[#allocation28_spill] sm:$0xff] }
 0x364   :  { %11533 = vmatmul.mubr.msk.bf16.gmra.mrb[68].mxu1 %vm15816_vm12, %v16155_v52  ;;  %11785 = vmatmul.mubr.msk.bf16.gmra.mrb[136].mxu0 %vm15816_vm12, %v16155_v52 }
 0x365   :  { %3881 = vmatprep.mubr.bf16.mxu1 %v16181_v35  ;;  %4611 = vmatprep.mubr.bf16.mxu0 %v16181_v35 }
 0x36c   :  { %11537 = vmatmul.mubr.msk.bf16.gmra.mrb[72].mxu1 %vm15816_vm12, %v16198_v51  ;;  %11789 = vmatmul.mubr.msk.bf16.gmra.mrb[140].mxu0 %vm15816_vm12, %v16198_v51 }
 0x36d   :  { %3889 = vmatprep.mubr.bf16.mxu1 %v16179_v49  ;;  %4619 = vmatprep.mubr.bf16.mxu0 %v16179_v49 }
 0x374   :  { %11541 = vmatmul.mubr.msk.bf16.gmra.mrb[76].mxu1 %vm15816_vm12, %v16195_v7  ;;  %11793 = vmatmul.mubr.msk.bf16.gmra.mrb[144].mxu0 %vm15816_vm12, %v16195_v7 }
 0x375   :  { %3897 = vmatprep.mubr.bf16.mxu1 %v16221_v24  ;;  %4627 = vmatprep.mubr.bf16.mxu0 %v16221_v24  ;;  %v20033_v24 = vld [vmem:[#allocation22_spill] sm:$0xff] }
 0x37c   :  { %11545 = vmatmul.mubr.msk.bf16.gmra.mrb[80].mxu1 %vm15816_vm12, %v16238_v61  ;;  %11797 = vmatmul.mubr.msk.bf16.gmra.mrb[148].mxu0 %vm15816_vm12, %v16238_v61 }
 0x37d   :  { %3905 = vmatprep.mubr.bf16.mxu1 %v16219_v14  ;;  %4635 = vmatprep.mubr.bf16.mxu0 %v16219_v14 }
 0x384   :  { %11549 = vmatmul.mubr.msk.bf16.gmra.mrb[84].mxu1 %vm15816_vm12, %v16235_v34  ;;  %11801 = vmatmul.mubr.msk.bf16.gmra.mrb[152].mxu0 %vm15816_vm12, %v16235_v34 }
 0x385   :  { %3913 = vmatprep.mubr.bf16.mxu1 %v16261_v37  ;;  %4643 = vmatprep.mubr.bf16.mxu0 %v16261_v37 }
 0x38c   :  { %11553 = vmatmul.mubr.msk.bf16.gmra.mrb[88].mxu1 %vm15816_vm12, %v16278_v48  ;;  %11805 = vmatmul.mubr.msk.bf16.gmra.mrb[156].mxu0 %vm15816_vm12, %v16278_v48 }
 0x38d   :  { %3921 = vmatprep.mubr.bf16.mxu1 %v16259_v10  ;;  %4651 = vmatprep.mubr.bf16.mxu0 %v16259_v10  ;;  %v13395_v10 = vld [vmem:[%s19391_s3 + $0x98] sm:$0xff]  }
 0x394   :  { %11557 = vmatmul.mubr.msk.bf16.gmra.mrb[92].mxu1 %vm15816_vm12, %v16275_v20  ;;  %11809 = vmatmul.mubr.msk.bf16.gmra.mrb[160].mxu0 %vm15816_vm12, %v16275_v20 }
 0x395   :  { %3929 = vmatprep.mubr.bf16.mxu1 %v16304_v63  ;;  %4659 = vmatprep.mubr.bf16.mxu0 %v16304_v63 }
 0x39c   :  { %11561 = vmatmul.mubr.msk.bf16.gmra.mrb[96].mxu1 %vm15816_vm12, %v16329_v12  ;;  %11813 = vmatmul.mubr.msk.bf16.gmra.mrb[164].mxu0 %vm15816_vm12, %v16329_v12 }
 0x39d   :  { %3937 = vmatprep.mubr.bf16.mxu1 %v16302_v29  ;;  %4667 = vmatprep.mubr.bf16.mxu0 %v16302_v29 }
 0x3a4   :  { %11565 = vmatmul.mubr.msk.bf16.gmra.mrb[100].mxu1 %vm15816_vm12, %v16326_v27  ;;  %11817 = vmatmul.mubr.msk.bf16.gmra.mrb[168].mxu0 %vm15816_vm12, %v16326_v27  ;;  %v13393_v27 = vld [vmem:[%s19391_s3 + $0x88] sm:$0xff]  }
 0x3a5   :  { %3945 = vmatprep.mubr.bf16.mxu1 %v16358_v2  ;;  %4675 = vmatprep.mubr.bf16.mxu0 %v16358_v2 }
 0x3ac   :  { %11569 = vmatmul.mubr.msk.bf16.gmra.mrb[104].mxu1 %vm15816_vm12, %v16378_v59  ;;  %11821 = vmatmul.mubr.msk.bf16.gmra.mrb[172].mxu0 %vm15816_vm12, %v16378_v59 }
 0x3ad   :  { %3953 = vmatprep.mubr.bf16.mxu1 %v16356_v21  ;;  %4683 = vmatprep.mubr.bf16.mxu0 %v16356_v21 }
 0x3af   :  { %v16583_v62 = vpop.f32.mrb[0].mxu1  ;;  %v16585_v60 = vpop.f32.mrb[68].mxu0 }
 0x3b0   :  { %v3741_v13 = vpop.f32.mrb[1].mxu1  ;;  %v4471_v19 = vpop.f32.mrb[69].mxu0 }
 0x3b1   :  { %v16587_v18 = vpop.f32.mrb[2].mxu1  ;;  %v16589_v57 = vpop.f32.mrb[70].mxu0 }
 0x3b2   :  { %20003 = vst [vmem:[#allocation119_spill] sm:$0xff] %v16589_v57  ;;  %v3744_v46 = vpop.f32.mrb[3].mxu1  ;;  %v4474_v22 = vpop.f32.mrb[71].mxu0 }
 0x3b4   :  { %11573 = vmatmul.mubr.msk.bf16.gmra.mrb[108].mxu1 %vm15816_vm12, %v16375_v9  ;;  %11825 = vmatmul.mubr.msk.bf16.gmra.mrb[176].mxu0 %vm15816_vm12, %v16375_v9 }
 0x3b5   :  { %3961 = vmatprep.mubr.bf16.mxu1 %v16404_v56  ;;  %4691 = vmatprep.mubr.bf16.mxu0 %v16404_v56 }
 0x3b7   :  { %v16599_v43 = vpop.f32.mrb[4].mxu1  ;;  %v16601_v5 = vpop.f32.mrb[72].mxu0 }
 0x3b8   :  { %20004 = vst [vmem:[#allocation120_spill] sm:$0xff] %v16601_v5  ;;  %v3749_v3 = vpop.f32.mrb[5].mxu1  ;;  %v4479_v17 = vpop.f32.mrb[73].mxu0 }
 0x3b9   :  { %v16603_v38 = vpop.f32.mrb[6].mxu1  ;;  %v16605_v30 = vpop.f32.mrb[74].mxu0 }
 0x3ba   :  { %20005 = vst [vmem:[#allocation121_spill] sm:$0xff] %v16605_v30  ;;  %v3752_v16 = vpop.f32.mrb[7].mxu1  ;;  %v4482_v13 = vpop.f32.mrb[75].mxu0 }
 0x3bc   :  { %11577 = vmatmul.mubr.msk.bf16.gmra.mrb[112].mxu1 %vm15816_vm12, %v16424_v25  ;;  %11829 = vmatmul.mubr.msk.bf16.gmra.mrb[180].mxu0 %vm15816_vm12, %v16424_v25 }
 0x3bd   :  { %3969 = vmatprep.mubr.bf16.mxu1 %v16402_v23  ;;  %4699 = vmatprep.mubr.bf16.mxu0 %v16402_v23 }
 0x3bf   :  { %v16615_v19 = vpop.f32.mrb[8].mxu1  ;;  %v16617_v46 = vpop.f32.mrb[76].mxu0 }
 0x3c0   :  { %20006 = vst [vmem:[#allocation122_spill] sm:$0xff] %v16615_v19  ;;  %20007 = vst [vmem:[#allocation123_spill] sm:$0xff] %v16617_v46  ;;  %v3757_v22 = vpop.f32.mrb[9].mxu1  ;;  %v4487_v3 = vpop.f32.mrb[77].mxu0 }
 0x3c1   :  { %v16619_v17 = vpop.f32.mrb[10].mxu1  ;;  %v16621_v16 = vpop.f32.mrb[78].mxu0 }
 0x3c2   :  { %20008 = vst [vmem:[#allocation124_spill] sm:$0xff] %v16619_v17  ;;  %20009 = vst [vmem:[#allocation125_spill] sm:$0xff] %v16621_v16  ;;  %v3760_v13 = vpop.f32.mrb[11].mxu1  ;;  %v4490_v6 = vpop.f32.mrb[79].mxu0 }
 0x3c4   :  { %11581 = vmatmul.mubr.msk.bf16.gmra.mrb[116].mxu1 %vm15816_vm12, %v16421_v44  ;;  %11833 = vmatmul.mubr.msk.bf16.gmra.mrb[184].mxu0 %vm15816_vm12, %v16421_v44 }
 0x3c5   :  { %3977 = vmatprep.mubr.bf16.mxu1 %v16452_v0  ;;  %4707 = vmatprep.mubr.bf16.mxu0 %v16452_v0 }
 0x3c7   :  { %v16631_v22 = vpop.f32.mrb[12].mxu1  ;;  %v16633_v3 = vpop.f32.mrb[80].mxu0 }
 0x3c8   :  { %20010 = vst [vmem:[#allocation126_spill] sm:$0xff] %v16631_v22  ;;  %20011 = vst [vmem:[#allocation127_spill] sm:$0xff] %v16633_v3  ;;  %v3765_v6 = vpop.f32.mrb[13].mxu1  ;;  %v4495_v13 = vpop.f32.mrb[81].mxu0 }
 0x3c9   :  { %v16637_v23 = vpop.f32.mrb[14].mxu1  ;;  %v16639_v25 = vpop.f32.mrb[82].mxu0 }
 0x3ca   :  { %20012 = vst [vmem:[#allocation128_spill] sm:$0xff] %v16637_v23  ;;  %20013 = vst [vmem:[#allocation129_spill] sm:$0xff] %v16639_v25  ;;  %v3768_v56 = vpop.f32.mrb[15].mxu1  ;;  %v4498_v9 = vpop.f32.mrb[83].mxu0 }
 0x3cc   :  { %11585 = vmatmul.mubr.msk.bf16.gmra.mrb[120].mxu1 %vm15816_vm12, %v16475_v33  ;;  %11837 = vmatmul.mubr.msk.bf16.gmra.mrb[188].mxu0 %vm15816_vm12, %v16475_v33 }
 0x3cd   :  { %3985 = vmatprep.mubr.bf16.mxu1 %v16448_v47  ;;  %12800 = vmatprep.mubr.msk.bf16.mxu0 %vm16642_vm9, %v15835_v54 }
 0x3cf   :  { %v16656_v11 = vpop.f32.mrb[16].mxu1  ;;  %v16658_v9 = vpop.f32.mrb[84].mxu0 }
 0x3d0   :  { %20016 = vst [vmem:[#allocation130_spill] sm:$0xff] %v16656_v11  ;;  %20017 = vst [vmem:[#allocation131_spill] sm:$0xff] %v16658_v9  ;;  %v3773_v56 = vpop.f32.mrb[17].mxu1  ;;  %v4503_v6 = vpop.f32.mrb[85].mxu0 }
 0x3d1   :  { %v16660_v13 = vpop.f32.mrb[18].mxu1  ;;  %v16662_v0 = vpop.f32.mrb[86].mxu0 }
 0x3d2   :  { %20018 = vst [vmem:[#allocation132_spill] sm:$0xff] %v16660_v13  ;;  %20019 = vst [vmem:[#allocation133_spill] sm:$0xff] %v16662_v0  ;;  %v3776_v21 = vpop.f32.mrb[19].mxu1  ;;  %v4506_v59 = vpop.f32.mrb[87].mxu0  ;;  %v20097_v0 = vld [vmem:[#allocation9_spill] sm:$0xff] }
 0x3d3   :  { %v7448_v3 = vcombine.high %v20097_v0, %v20097_v0 }
 0x3d4   :  { %11589 = vmatmul.mubr.msk.bf16.gmra.mrb[124].mxu1 %vm15816_vm12, %v16471_v58  ;;  %12801 = vmatmul.mubr.msk.bf16.vlgmr.msra.gmra.mrb[192].mxu0 %vm16642_vm9, %v15865_v36 }
 0x3d5   :  { %12640 = vmatprep.mubr.msk.bf16.mxu1 %vm16642_vm9, %v15847_v45  ;;  %12804 = vmatprep.mubr.msk.bf16.mxu0 %vm16642_vm9, %v15888_v42 }
 0x3d7   :  { %v16676_v56 = vpop.f32.mrb[20].mxu1  ;;  %v16678_v21 = vpop.f32.mrb[88].mxu0 }
 0x3d8   :  { %20020 = vst [vmem:[#allocation134_spill] sm:$0xff] %v16676_v56  ;;  %20021 = vst [vmem:[#allocation135_spill] sm:$0xff] %v16678_v21  ;;  %v3781_v59 = vpop.f32.mrb[21].mxu1  ;;  %v4511_v6 = vpop.f32.mrb[89].mxu0 }
 0x3d9   :  { %v16680_v47 = vpop.f32.mrb[22].mxu1  ;;  %v16682_v58 = vpop.f32.mrb[90].mxu0 }
 0x3da   :  { %20022 = vst [vmem:[#allocation136_spill] sm:$0xff] %v16680_v47  ;;  %20023 = vst [vmem:[#allocation137_spill] sm:$0xff] %v16682_v58  ;;  %v3784_v33 = vpop.f32.mrb[23].mxu1  ;;  %v4514_v2 = vpop.f32.mrb[91].mxu0  ;;  %v20063_v58 = vld [vmem:[#allocation56_spill] sm:$0xff] }
 0x3db   :  { %v13394_v2 = vld [vmem:[%s19391_s3 + $0x90] sm:$0xff]  }
 0x3dc   :  { %12641 = vmatmul.mubr.msk.bf16.vlgmr.msra.gmra.mrb[128].mxu1 %vm16642_vm9, %v15835_v54  ;;  %12805 = vmatmul.mubr.msk.bf16.gmra.mrb[196].mxu0 %vm16642_vm9, %v15927_v28 }
 0x3dd   :  { %12705 = vmatpush3.bf16.msra.mxu1 %v16492_v15  ;;  %12644 = vmatprep.mubr.msk.bf16.mxu1 %vm16642_vm9, %v15865_v36 }
 0x3de   :  { %12808 = vmatprep.mubr.msk.bf16.mxu0 %vm16642_vm9, %v15931_v4  ;;  %12706 = vmatprep.subr.bf16.mxu1 %v13393_v27 }
 0x3df   :  { %v16703_v33 = vpop.f32.mrb[24].mxu1  ;;  %v16705_v59 = vpop.f32.mrb[92].mxu0 }
 0x3e0   :  { %20024 = vst [vmem:[#allocation138_spill] sm:$0xff] %v16703_v33  ;;  %20025 = vst [vmem:[#allocation139_spill] sm:$0xff] %v16705_v59  ;;  %v3789_v6 = vpop.f32.mrb[25].mxu1  ;;  %v4519_v29 = vpop.f32.mrb[93].mxu0 }
 0x3e1   :  { %v16707_v15 = vpop.f32.mrb[26].mxu1  ;;  %v16709_v12 = vpop.f32.mrb[94].mxu0  ;;  %12707 = vmatpush3.bf16.msra.mxu1 %v13393_v27  ;;  %v20028_v29 = vld [vmem:[#allocation83_spill] sm:$0xff] }
 0x3e2   :  { %20026 = vst [vmem:[#allocation140_spill] sm:$0xff] %v16707_v15  ;;  %20027 = vst [vmem:[#allocation141_spill] sm:$0xff] %v16709_v12  ;;  %v3792_v63 = vpop.f32.mrb[27].mxu1  ;;  %v4522_v20 = vpop.f32.mrb[95].mxu0  ;;  %12708 = vmatprep.subr.bf16.mxu1 %v13394_v2  ;;  %v13396_v27 = vld [vmem:[%s19391_s3 + $0xa0] sm:$0xff]   ;;  %v20075_v15 = vld [vmem:[#allocation93_spill] sm:$0xff] }
 0x3e3   :  { %v20069_v12 = vld [vmem:[#allocation87_spill] sm:$0xff] }
 0x3e4   :  { %12645 = vmatmul.mubr.msk.bf16.gmra.mrb[132].mxu1 %vm16642_vm9, %v15888_v42  ;;  %12809 = vmatmul.mubr.msk.bf16.gmra.mrb[200].mxu0 %vm16642_vm9, %v15967_v55 }
 0x3e5   :  { %12648 = vmatprep.mubr.msk.bf16.mxu1 %vm16642_vm9, %v15927_v28  ;;  %12812 = vmatprep.mubr.msk.bf16.mxu0 %vm16642_vm9, %v20028_v29 }
 0x3e6   :  { %12709 = vmatpush3.bf16.msra.mxu1 %v13394_v2  ;;  %v13397_v2 = vld [vmem:[%s19391_s3 + $0xa8] sm:$0xff]  }
 0x3e7   :  { %v16726_v20 = vpop.f32.mrb[28].mxu1  ;;  %v16728_v63 = vpop.f32.mrb[96].mxu0  ;;  %12710 = vmatprep.subr.bf16.mxu1 %v13395_v10 }
 0x3e8   :  { %20029 = vst [vmem:[#allocation83_spill] sm:$0xff] %v16726_v20  ;;  %20030 = vst [vmem:[#allocation142_spill] sm:$0xff] %v16728_v63  ;;  %v3797_v6 = vpop.f32.mrb[29].mxu1  ;;  %v4527_v48 = vpop.f32.mrb[97].mxu0  ;;  %v20087_v20 = vld [vmem:[#allocation105_spill] sm:$0xff] }
 0x3e9   :  { %v16733_v37 = vpop.f32.mrb[30].mxu1  ;;  %v16735_v34 = vpop.f32.mrb[98].mxu0  ;;  %v20034_v48 = vld [vmem:[#allocation25_spill] sm:$0xff] }
 0x3ea   :  { %20031 = vst [vmem:[#allocation143_spill] sm:$0xff] %v16733_v37  ;;  %20032 = vst [vmem:[#allocation144_spill] sm:$0xff] %v16735_v34  ;;  %v3800_v14 = vpop.f32.mrb[31].mxu1  ;;  %v4530_v61 = vpop.f32.mrb[99].mxu0  ;;  %12711 = vmatpush3.bf16.msra.mxu1 %v13395_v10  ;;  %v13398_v10 = vld [vmem:[%s19391_s3 + $0xb0] sm:$0xff]   ;;  %v20081_v37 = vld [vmem:[#allocation99_spill] sm:$0xff] }
 0x3eb   :  { %12712 = vmatprep.subr.bf16.mxu1 %v13396_v27 }
 0x3ec   :  { %12649 = vmatmul.mubr.msk.bf16.gmra.mrb[136].mxu1 %vm16642_vm9, %v15931_v4  ;;  %12813 = vmatmul.mubr.msk.bf16.gmra.mrb[204].mxu0 %vm16642_vm9, %v20033_v24 }
 0x3ed   :  { %12652 = vmatprep.mubr.msk.bf16.mxu1 %vm16642_vm9, %v15967_v55  ;;  %12816 = vmatprep.mubr.msk.bf16.mxu0 %vm16642_vm9, %v20034_v48 }
 0x3ee   :  { %12713 = vmatpush3.bf16.msra.mxu1 %v13396_v27  ;;  %v13399_v27 = vld [vmem:[%s19391_s3 + $0xb8] sm:$0xff]  }
 0x3ef   :  { %v16752_v61 = vpop.f32.mrb[32].mxu1  ;;  %v16754_v14 = vpop.f32.mrb[100].mxu0  ;;  %12714 = vmatprep.subr.bf16.mxu1 %v13397_v2 }
 0x3f0   :  { %20035 = vst [vmem:[#allocation22_spill] sm:$0xff] %v16752_v61  ;;  %20036 = vst [vmem:[#allocation25_spill] sm:$0xff] %v16754_v14  ;;  %v3805_v6 = vpop.f32.mrb[33].mxu1  ;;  %v4535_v7 = vpop.f32.mrb[101].mxu0  ;;  %v20051_v14 = vld [vmem:[#allocation46_spill] sm:$0xff] }
 0x3f1   :  { %v16759_v49 = vpop.f32.mrb[34].mxu1  ;;  %v16761_v51 = vpop.f32.mrb[102].mxu0 }
 0x3f2   :  { %20037 = vst [vmem:[#allocation145_spill] sm:$0xff] %v16759_v49  ;;  %20038 = vst [vmem:[#allocation146_spill] sm:$0xff] %v16761_v51  ;;  %v3808_v35 = vpop.f32.mrb[35].mxu1  ;;  %v4538_v52 = vpop.f32.mrb[103].mxu0  ;;  %12715 = vmatpush3.bf16.msra.mxu1 %v13397_v2 }
 0x3f3   :  { %12716 = vmatprep.subr.bf16.mxu1 %v13398_v10  ;;  %v20040_v35 = vld [vmem:[#allocation32_spill] sm:$0xff] }
 0x3f4   :  { %12653 = vmatmul.mubr.msk.bf16.gmra.mrb[140].mxu1 %vm16642_vm9, %v20028_v29  ;;  %12817 = vmatmul.mubr.msk.bf16.gmra.mrb[208].mxu0 %vm16642_vm9, %v20039_v8 }
 0x3f5   :  { %12656 = vmatprep.mubr.msk.bf16.mxu1 %vm16642_vm9, %v20033_v24  ;;  %12820 = vmatprep.mubr.msk.bf16.mxu0 %vm16642_vm9, %v20040_v35 }
 0x3f6   :  { %12717 = vmatpush3.bf16.msra.mxu1 %v13398_v10  ;;  %v20045_v10 = vld [vmem:[#allocation38_spill] sm:$0xff] }
 0x3f7   :  { %v16778_v52 = vpop.f32.mrb[36].mxu1  ;;  %v16780_v7 = vpop.f32.mrb[104].mxu0  ;;  %12718 = vmatprep.subr.bf16.mxu1 %v13399_v27 }
 0x3f8   :  { %20041 = vst [vmem:[#allocation28_spill] sm:$0xff] %v16778_v52  ;;  %20042 = vst [vmem:[#allocation32_spill] sm:$0xff] %v16780_v7  ;;  %v3813_v2 = vpop.f32.mrb[37].mxu1  ;;  %v4543_v6 = vpop.f32.mrb[105].mxu0  ;;  %v20062_v52 = vld [vmem:[#allocation70_spill] sm:$0xff] }
 0x3f9   :  { %v16782_v1 = vpop.f32.mrb[38].mxu1  ;;  %v16784_v32 = vpop.f32.mrb[106].mxu0  ;;  %v20046_v2 = vld [vmem:[#allocation41_spill] sm:$0xff] }
 0x3fa   :  { %20043 = vst [vmem:[#allocation147_spill] sm:$0xff] %v16782_v1  ;;  %20044 = vst [vmem:[#allocation148_spill] sm:$0xff] %v16784_v32  ;;  %v3816_v34 = vpop.f32.mrb[39].mxu1  ;;  %v4546_v51 = vpop.f32.mrb[107].mxu0  ;;  %12719 = vmatpush3.bf16.msra.mxu1 %v13399_v27 }
 0x3fb   :  { %5295 = vmatprep.subr.bf16.mxu1 %v19995_v40 }
 0x3fc   :  { %12657 = vmatmul.mubr.msk.bf16.gmra.mrb[144].mxu1 %vm16642_vm9, %v20034_v48  ;;  %12821 = vmatmul.mubr.msk.bf16.gmra.mrb[212].mxu0 %vm16642_vm9, %v20045_v10 }
 0x3fd   :  { %12660 = vmatprep.mubr.msk.bf16.mxu1 %vm16642_vm9, %v20039_v8  ;;  %12824 = vmatprep.mubr.msk.bf16.mxu0 %vm16642_vm9, %v20046_v2 }
 0x3ff   :  { %v16799_v51 = vpop.f32.mrb[40].mxu1  ;;  %v16801_v34 = vpop.f32.mrb[108].mxu0 }
 0x400   :  { %20047 = vst [vmem:[#allocation38_spill] sm:$0xff] %v16799_v51  ;;  %20048 = vst [vmem:[#allocation41_spill] sm:$0xff] %v16801_v34  ;;  %v3821_v27 = vpop.f32.mrb[41].mxu1  ;;  %v4551_v6 = vpop.f32.mrb[109].mxu0 }
 0x401   :  { %v16803_v32 = vpop.f32.mrb[42].mxu1  ;;  %v16805_v7 = vpop.f32.mrb[110].mxu0  ;;  %v20052_v27 = vld [vmem:[#allocation49_spill] sm:$0xff] }
 0x402   :  { %20049 = vst [vmem:[#allocation149_spill] sm:$0xff] %v16803_v32  ;;  %20050 = vst [vmem:[#allocation150_spill] sm:$0xff] %v16805_v7  ;;  %v3824_v63 = vpop.f32.mrb[43].mxu1  ;;  %v4554_v49 = vpop.f32.mrb[111].mxu0 }
 0x404   :  { %12661 = vmatmul.mubr.msk.bf16.gmra.mrb[148].mxu1 %vm16642_vm9, %v20040_v35  ;;  %12825 = vmatmul.mubr.msk.bf16.gmra.mrb[216].mxu0 %vm16642_vm9, %v20051_v14 }
 0x405   :  { %12664 = vmatprep.mubr.msk.bf16.mxu1 %vm16642_vm9, %v20045_v10  ;;  %12828 = vmatprep.mubr.msk.bf16.mxu0 %vm16642_vm9, %v20052_v27 }
 0x407   :  { %v16819_v6 = vpop.f32.mrb[44].mxu1  ;;  %v16821_v63 = vpop.f32.mrb[112].mxu0 }
 0x408   :  { %20053 = vst [vmem:[#allocation46_spill] sm:$0xff] %v16819_v6  ;;  %20054 = vst [vmem:[#allocation49_spill] sm:$0xff] %v16821_v63  ;;  %v3829_v49 = vpop.f32.mrb[45].mxu1  ;;  %v4559_v7 = vpop.f32.mrb[113].mxu0  ;;  %v20057_v6 = vld [vmem:[#allocation50_spill] sm:$0xff] }
 0x409   :  { %v16823_v32 = vpop.f32.mrb[46].mxu1  ;;  %v16825_v34 = vpop.f32.mrb[114].mxu0 }
 0x40a   :  { %20055 = vst [vmem:[#allocation151_spill] sm:$0xff] %v16823_v32  ;;  %20056 = vst [vmem:[#allocation152_spill] sm:$0xff] %v16825_v34  ;;  %v3832_v51 = vpop.f32.mrb[47].mxu1  ;;  %v4562_v1 = vpop.f32.mrb[115].mxu0 }
 0x40c   :  { %12665 = vmatmul.mubr.msk.bf16.gmra.mrb[152].mxu1 %vm16642_vm9, %v20046_v2  ;;  %12829 = vmatmul.mubr.bf16.gmra.mrb[220].mxu0 %v19995_v40 }
 0x40d   :  { %12668 = vmatprep.mubr.msk.bf16.mxu1 %vm16642_vm9, %v20051_v14  ;;  %12832 = vmatprep.mubr.msk.bf16.mxu0 %vm16642_vm9, %v20057_v6 }
 0x40f   :  { %v16837_v7 = vpop.f32.mrb[48].mxu1  ;;  %v16839_v49 = vpop.f32.mrb[116].mxu0 }
 0x410   :  { %20058 = vst [vmem:[#allocation50_spill] sm:$0xff] %v16837_v7  ;;  %20059 = vst [vmem:[#allocation153_spill] sm:$0xff] %v16839_v49  ;;  %v3837_v51 = vpop.f32.mrb[49].mxu1  ;;  %v4567_v1 = vpop.f32.mrb[117].mxu0 }
 0x411   :  { %v16841_v34 = vpop.f32.mrb[50].mxu1  ;;  %v16843_v63 = vpop.f32.mrb[118].mxu0  ;;  %v20064_v51 = vld [vmem:[#allocation78_spill] sm:$0xff] }
 0x412   :  { %20060 = vst [vmem:[#allocation154_spill] sm:$0xff] %v16841_v34  ;;  %20061 = vst [vmem:[#allocation155_spill] sm:$0xff] %v16843_v63  ;;  %v3840_v32 = vpop.f32.mrb[51].mxu1  ;;  %v4570_v61 = vpop.f32.mrb[119].mxu0 }
 0x414   :  { %12669 = vmatmul.mubr.msk.bf16.gmra.mrb[156].mxu1 %vm16642_vm9, %v20052_v27  ;;  %12833 = vmatmul.mubr.msk.bf16.gmra.mrb[224].mxu0 %vm16642_vm9, %v20062_v52 }
 0x415   :  { %12672 = vmatprep.mubr.msk.bf16.mxu1 %vm16642_vm9, %v20063_v58  ;;  %12836 = vmatprep.mubr.msk.bf16.mxu0 %vm16642_vm9, %v20064_v51 }
 0x417   :  { %v16857_v1 = vpop.f32.mrb[52].mxu1  ;;  %v16859_v32 = vpop.f32.mrb[120].mxu0 }
 0x418   :  { %20065 = vst [vmem:[#allocation70_spill] sm:$0xff] %v16857_v1  ;;  %20066 = vst [vmem:[#allocation56_spill] sm:$0xff] %v16859_v32  ;;  %v3845_v61 = vpop.f32.mrb[53].mxu1  ;;  %v4575_v63 = vpop.f32.mrb[121].mxu0 }
 0x419   :  { %v16861_v34 = vpop.f32.mrb[54].mxu1  ;;  %v16863_v27 = vpop.f32.mrb[122].mxu0  ;;  %v20070_v61 = vld [vmem:[#allocation88_spill] sm:$0xff] }
 0x41a   :  { %20067 = vst [vmem:[#allocation78_spill] sm:$0xff] %v16861_v34  ;;  %20068 = vst [vmem:[#allocation156_spill] sm:$0xff] %v16863_v27  ;;  %v3848_v49 = vpop.f32.mrb[55].mxu1  ;;  %v4578_v7 = vpop.f32.mrb[123].mxu0 }
 0x41c   :  { %12673 = vmatmul.mubr.msk.bf16.gmra.mrb[160].mxu1 %vm16642_vm9, %v20057_v6  ;;  %12837 = vmatmul.mubr.msk.bf16.gmra.mrb[228].mxu0 %vm16642_vm9, %v20069_v12 }
 0x41d   :  { %12676 = vmatprep.mubr.msk.bf16.mxu1 %vm16642_vm9, %v20062_v52  ;;  %12840 = vmatprep.mubr.msk.bf16.mxu0 %vm16642_vm9, %v20070_v61 }
 0x41f   :  { %v16877_v63 = vpop.f32.mrb[56].mxu1  ;;  %v16879_v49 = vpop.f32.mrb[124].mxu0 }
 0x420   :  { %20071 = vst [vmem:[#allocation87_spill] sm:$0xff] %v16877_v63  ;;  %20072 = vst [vmem:[#allocation88_spill] sm:$0xff] %v16879_v49  ;;  %v3853_v7 = vpop.f32.mrb[57].mxu1  ;;  %v4583_v27 = vpop.f32.mrb[125].mxu0 }
 0x421   :  { %v16881_v32 = vpop.f32.mrb[58].mxu1  ;;  %v16883_v34 = vpop.f32.mrb[126].mxu0  ;;  %v20076_v7 = vld [vmem:[#allocation94_spill] sm:$0xff] }
 0x422   :  { %20073 = vst [vmem:[#allocation157_spill] sm:$0xff] %v16881_v32  ;;  %20074 = vst [vmem:[#allocation158_spill] sm:$0xff] %v16883_v34  ;;  %v3856_v1 = vpop.f32.mrb[59].mxu1  ;;  %v4586_v21 = vpop.f32.mrb[127].mxu0 }
 0x424   :  { %12677 = vmatmul.mubr.msk.bf16.gmra.mrb[164].mxu1 %vm16642_vm9, %v20064_v51  ;;  %12841 = vmatmul.mubr.msk.bf16.gmra.mrb[232].mxu0 %vm16642_vm9, %v20075_v15 }
 0x425   :  { %12680 = vmatprep.mubr.msk.bf16.mxu1 %vm16642_vm9, %v20069_v12  ;;  %12844 = vmatprep.mubr.msk.bf16.mxu0 %vm16642_vm9, %v20076_v7 }
 0x427   :  { %v16897_v27 = vpop.f32.mrb[60].mxu1  ;;  %v16899_v1 = vpop.f32.mrb[128].mxu0 }
 0x428   :  { %20077 = vst [vmem:[#allocation93_spill] sm:$0xff] %v16897_v27  ;;  %20078 = vst [vmem:[#allocation159_spill] sm:$0xff] %v16899_v1  ;;  %v3861_v21 = vpop.f32.mrb[61].mxu1  ;;  %v4591_v34 = vpop.f32.mrb[129].mxu0 }
 0x429   :  { %v16901_v32 = vpop.f32.mrb[62].mxu1  ;;  %v16903_v49 = vpop.f32.mrb[130].mxu0  ;;  %v20082_v21 = vld [vmem:[#allocation100_spill] sm:$0xff] }
 0x42a   :  { %20079 = vst [vmem:[#allocation160_spill] sm:$0xff] %v16901_v32  ;;  %20080 = vst [vmem:[#allocation161_spill] sm:$0xff] %v16903_v49  ;;  %v3864_v63 = vpop.f32.mrb[63].mxu1  ;;  %v4594_v59 = vpop.f32.mrb[131].mxu0 }
 0x42c   :  { %12681 = vmatmul.mubr.msk.bf16.gmra.mrb[168].mxu1 %vm16642_vm9, %v20070_v61  ;;  %12845 = vmatmul.mubr.msk.bf16.gmra.mrb[236].mxu0 %vm16642_vm9, %v20081_v37 }
 0x42d   :  { %12684 = vmatprep.mubr.msk.bf16.mxu1 %vm16642_vm9, %v20075_v15  ;;  %12848 = vmatprep.mubr.msk.bf16.mxu0 %vm16642_vm9, %v20082_v21 }
 0x42f   :  { %v16917_v34 = vpop.f32.mrb[64].mxu1  ;;  %v16919_v63 = vpop.f32.mrb[132].mxu0 }
 0x430   :  { %20083 = vst [vmem:[#allocation162_spill] sm:$0xff] %v16917_v34  ;;  %20084 = vst [vmem:[#allocation163_spill] sm:$0xff] %v16919_v63  ;;  %v3869_v59 = vpop.f32.mrb[65].mxu1  ;;  %v4599_v49 = vpop.f32.mrb[133].mxu0 }
 0x431   :  { %v16921_v1 = vpop.f32.mrb[66].mxu1  ;;  %v16923_v32 = vpop.f32.mrb[134].mxu0  ;;  %v20088_v59 = vld [vmem:[#allocation106_spill] sm:$0xff] }
 0x432   :  { %20085 = vst [vmem:[#allocation164_spill] sm:$0xff] %v16921_v1  ;;  %20086 = vst [vmem:[#allocation165_spill] sm:$0xff] %v16923_v32  ;;  %v3872_v27 = vpop.f32.mrb[67].mxu1  ;;  %v4602_v33 = vpop.f32.mrb[135].mxu0 }
 0x434   :  { %12685 = vmatmul.mubr.msk.bf16.gmra.mrb[172].mxu1 %vm16642_vm9, %v20076_v7  ;;  %12849 = vmatmul.mubr.msk.bf16.gmra.mrb[240].mxu0 %vm16642_vm9, %v20087_v20 }
 0x435   :  { %12688 = vmatprep.mubr.msk.bf16.mxu1 %vm16642_vm9, %v20081_v37  ;;  %12852 = vmatprep.mubr.msk.bf16.mxu0 %vm16642_vm9, %v20088_v59 }
 0x437   :  { %v16937_v49 = vpop.f32.mrb[68].mxu1  ;;  %v16939_v27 = vpop.f32.mrb[136].mxu0 }
 0x438   :  { %20089 = vst [vmem:[#allocation166_spill] sm:$0xff] %v16937_v49  ;;  %20090 = vst [vmem:[#allocation167_spill] sm:$0xff] %v16939_v27  ;;  %v3877_v33 = vpop.f32.mrb[69].mxu1  ;;  %v4607_v32 = vpop.f32.mrb[137].mxu0 }
 0x439   :  { %v16941_v63 = vpop.f32.mrb[70].mxu1  ;;  %v16943_v1 = vpop.f32.mrb[138].mxu0 }
 0x43a   :  { %20091 = vst [vmem:[#allocation168_spill] sm:$0xff] %v16941_v63  ;;  %20092 = vst [vmem:[#allocation169_spill] sm:$0xff] %v16943_v1  ;;  %v3880_v34 = vpop.f32.mrb[71].mxu1  ;;  %v4610_v25 = vpop.f32.mrb[139].mxu0 }
 0x43c   :  { %12689 = vmatmul.mubr.msk.bf16.gmra.mrb[176].mxu1 %vm16642_vm9, %v20082_v21  ;;  %12853 = vmatmul.mubr.msk.bf16.gmra.mrb[244].mxu0 %vm16642_vm9, %v16442_v50 }
 0x43d   :  { %12692 = vmatprep.mubr.msk.bf16.mxu1 %vm16642_vm9, %v20087_v20  ;;  %12856 = vmatprep.mubr.msk.bf16.mxu0 %vm16642_vm9, %v16446_v41 }
 0x43f   :  { %v16957_v32 = vpop.f32.mrb[72].mxu1  ;;  %v16959_v34 = vpop.f32.mrb[140].mxu0 }
 0x440   :  { %20093 = vst [vmem:[#allocation170_spill] sm:$0xff] %v16957_v32  ;;  %20094 = vst [vmem:[#allocation171_spill] sm:$0xff] %v16959_v34  ;;  %v3885_v25 = vpop.f32.mrb[73].mxu1  ;;  %v4615_v33 = vpop.f32.mrb[141].mxu0  ;;  %v20098_v34 = vld [vmem:[#allocation12_spill] sm:$0xff] }
 0x441   :  { %v16961_v1 = vpop.f32.mrb[74].mxu1  ;;  %v16963_v27 = vpop.f32.mrb[142].mxu0  ;;  %v7455_v25 = vrot.slane %v20097_v0, %v20098_v34  ;;  %v7462_v33 = vrot.slane %v7448_v3, %v20098_v34 }
 0x442   :  { %20095 = vst [vmem:[#allocation172_spill] sm:$0xff] %v16961_v1  ;;  %20096 = vst [vmem:[#allocation173_spill] sm:$0xff] %v16963_v27  ;;  %v3888_v63 = vpop.f32.mrb[75].mxu1  ;;  %v4618_v49 = vpop.f32.mrb[143].mxu0  ;;  %v20101_v27 = vld [vmem:[#allocation10_spill] sm:$0xff] }
 0x443   :  { %v7482_v1 = vcombine.high %v20101_v27, %v20101_v27  ;;  %v7489_v0 = vrot.slane %v20101_v27, %v20098_v34  ;;  %v7463_v20 = vcombine.high %v7455_v25, %v7455_v25  ;;  %v11327_v11 = vrot.slane %v7462_v33, 9 }
 0x444   :  { %12693 = vmatmul.mubr.msk.bf16.gmra.mrb[180].mxu1 %vm16642_vm9, %v20088_v59  ;;  %12857 = vmatmul.mubr.msk.bf16.gmra.mrb[248].mxu0 %vm16642_vm9, %v16481_v39  ;;  %v7464_v31 = vcombine.high %v7462_v33, %v7462_v33 }
 0x445   :  { %12696 = vmatprep.mubr.msk.bf16.mxu1 %vm16642_vm9, %v16442_v50  ;;  %12860 = vmatprep.mubr.msk.bf16.mxu0 %vm16642_vm9, %v16479_v53  ;;  %v7496_v3 = vrot.slane %v7482_v1, %v20098_v34  ;;  %v7497_v56 = vcombine.high %v7489_v0, %v7489_v0  ;;  %v11325_v1 = vrot.slane %v7455_v25, 9 }
 0x447   :  { %v16981_v63 = vpop.f32.mrb[76].mxu1  ;;  %v16983_v49 = vpop.f32.mrb[144].mxu0  ;;  %v11334_v30 = vrot.slane %v7497_v56, 9  ;;  %v11335_v21 = vrot.slane %v7496_v3, 9 }
 0x448   :  { %20099 = vst [vmem:[#allocation9_spill] sm:$0xff] %v16981_v63  ;;  %20100 = vst [vmem:[#allocation174_spill] sm:$0xff] %v16983_v49  ;;  %v3893_v32 = vpop.f32.mrb[77].mxu1  ;;  %v4623_v59 = vpop.f32.mrb[145].mxu0  ;;  %v20104_v63 = vld [vmem:[#allocation8_spill] sm:$0xff] }
 0x449   :  { %v16990_v50 = vpop.f32.mrb[78].mxu1  ;;  %v16992_v13 = vpop.f32.mrb[146].mxu0  ;;  %v7472_v49 = vrot.slane %v20104_v63, %v20098_v34  ;;  %v11326_v59 = vrot.slane %v7463_v20, 9  ;;  %v8514_v57 = vadd.f32 %v11335_v21, %v7496_v3 }
 0x44a   :  { %20102 = vst [vmem:[#allocation10_spill] sm:$0xff] %v16990_v50  ;;  %20103 = vst [vmem:[#allocation175_spill] sm:$0xff] %v16992_v13  ;;  %v3896_v9 = vpop.f32.mrb[79].mxu1  ;;  %v4626_v47 = vpop.f32.mrb[147].mxu0  ;;  %v8506_v50 = vadd.f32 %v11327_v11, %v7462_v33 }
 0x44b   :  { %v20105_v47 = vld [vmem:[#allocation11_spill] sm:$0xff]  ;;  %v11329_v27 = vrot.slane %v7472_v49, 9  ;;  %v8505_v37 = vadd.f32 %v11326_v59, %v7463_v20 }
 0x44c   :  { %12697 = vmatmul.mubr.msk.bf16.gmra.mrb[184].mxu1 %vm16642_vm9, %v16446_v41  ;;  %12861 = vmatmul.mubr.bf16.gmra.mrb[252].mxu0 %v19995_v40  ;;  %v7506_v9 = vrot.slane %v20105_v47, %v20098_v34  ;;  %v8634_v7 = vmul.f32 0.25, %v8506_v50 }
 0x44d   :  { %12700 = vmatprep.mubr.msk.bf16.mxu1 %vm16642_vm9, %v16481_v39  ;;  %v11333_v39 = vrot.slane %v7489_v0, 9  ;;  %v8508_v22 = vadd.f32 %v11329_v27, %v7472_v49 }
 0x44e   :  { %v11337_v46 = vrot.slane %v7506_v9, 9  ;;  %v8762_v50 = vpack.c.bf16 %v8634_v7, %v8634_v7  ;;  %v13400_v7 = vld [vmem:[%s19391_s3 + $0x180] sm:$0xff]  }
 0x44f   :  { %v17006_v32 = vpop.f32.mrb[80].mxu1  ;;  %v17008_v13 = vpop.f32.mrb[148].mxu0  ;;  %v8512_v11 = vadd.f32 %v11333_v39, %v7489_v0  ;;  %v8636_v59 = vmul.f32 0.25, %v8508_v22  ;;  %v7499_v39 = vcombine.high %v20105_v47, %v20105_v47 }
 0x450   :  { %20106 = vst [vmem:[#allocation8_spill] sm:$0xff] %v17006_v32  ;;  %20107 = vst [vmem:[#allocation11_spill] sm:$0xff] %v17008_v13  ;;  %v3901_v41 = vpop.f32.mrb[81].mxu1  ;;  %v4631_v16 = vpop.f32.mrb[149].mxu0  ;;  %v8504_v32 = vadd.f32 %v11325_v1, %v7455_v25  ;;  %v8513_v13 = vadd.f32 %v11334_v30, %v7497_v56  ;;  %v8516_v20 = vadd.f32 %v11337_v46, %v7506_v9  ;;  %v8642_v56 = vmul.f32 0.25, %v8514_v57 }
 0x451   :  { %v17010_v5 = vpop.f32.mrb[82].mxu1  ;;  %v17012_v17 = vpop.f32.mrb[150].mxu0  ;;  %v8633_v41 = vmul.f32 0.25, %v8505_v37  ;;  %v7498_v16 = vcombine.high %v7496_v3, %v7496_v3  ;;  %v7465_v37 = vcombine.high %v20104_v63, %v20104_v63  ;;  %v8764_v1 = vpack.c.bf16 %v8636_v59, %v8636_v59 }
 0x452   :  { %20108 = vst [vmem:[#allocation176_spill] sm:$0xff] %v17010_v5  ;;  %20109 = vst [vmem:[#allocation177_spill] sm:$0xff] %v17012_v17  ;;  %v3904_v23 = vpop.f32.mrb[83].mxu1  ;;  %v4634_v19 = vpop.f32.mrb[151].mxu0  ;;  %v11328_v17 = vrot.slane %v7464_v31, 9  ;;  %v8632_v25 = vmul.f32 0.25, %v8504_v32  ;;  %v7480_v32 = vcombine.high %v7472_v49, %v7472_v49 }
 0x453   :  { %v8641_v30 = vmul.f32 0.25, %v8513_v13  ;;  %v11336_v46 = vrot.slane %v7498_v16, 9  ;;  %v8640_v13 = vmul.f32 0.25, %v8512_v11  ;;  %v8644_v57 = vmul.f32 0.25, %v8516_v20 }
 0x454   :  { %12701 = vmatmul.mubr.msk.bf16.gmra.mrb[188].mxu1 %vm16642_vm9, %v16479_v53  ;;  %v8761_v53 = vpack.c.bf16 %v8633_v41, %v8633_v41  ;;  %v8507_v63 = vadd.f32 %v11328_v17, %v7464_v31  ;;  %v7514_v41 = vcombine.high %v7506_v9, %v7506_v9  ;;  %v7513_v11 = vrot.slane %v7499_v39, %v20098_v34  ;;  %v13401_v31 = vld [vmem:[%s19391_s3 + $0x188] sm:$0xff]  }
 0x455   :  { %12720 = vmatprep.mubr.bf16.mxu1 %v19995_v40  ;;  %v8769_v47 = vpack.c.bf16 %v8641_v30, %v8641_v30  ;;  %v8515_v20 = vadd.f32 %v11336_v46, %v7498_v16  ;;  %v8768_v17 = vpack.c.bf16 %v8640_v13, %v8640_v13  ;;  %v8772_v49 = vpack.c.bf16 %v8644_v57, %v8644_v57 }
 0x456   :  { %v17039_v5 = vunpack.c.l.b16 %v8761_v53  ;;  %v17049_v9 = vunpack.c.l.b16 %v8764_v1  ;;  %v8635_v59 = vmul.f32 0.25, %v8507_v63  ;;  %v7515_v1 = vcombine.high %v7513_v11, %v7513_v11 }
 0x457   :  { %v17018_v23 = vpop.f32.mrb[84].mxu1  ;;  %v17020_v19 = vpop.f32.mrb[152].mxu0  ;;  %v17070_v63 = vunpack.c.l.b16 %v8768_v17 }
 0x458   :  { %20110 = vst [vmem:[#allocation178_spill] sm:$0xff] %v17020_v19  ;;  %v3909_v21 = vpop.f32.mrb[85].mxu1  ;;  %v4639_v33 = vpop.f32.mrb[153].mxu0  ;;  %v8770_v19 = vpack.c.bf16 %v8642_v56, %v8642_v56  ;;  %v17058_v56 = vunpack.c.l.b16 %v8769_v47  ;;  %v9152_v46 = vrot.slane %v17039_v5, 7 }
 0x459   :  { %v17026_v22 = vpop.f32.mrb[86].mxu1  ;;  %v17028_v0 = vpop.f32.mrb[154].mxu0  ;;  %v8760_v21 = vpack.c.bf16 %v8632_v25, %v8632_v25  ;;  %v17033_v33 = vunpack.c.l.b16 %v8762_v50  ;;  %v11338_v25 = vrot.slane %v7514_v41, 9 }
 0x45a   :  { %20111 = vst [vmem:[#allocation179_spill] sm:$0xff] %v17028_v0  ;;  %v3912_v3 = vpop.f32.mrb[87].mxu1  ;;  %v4642_v27 = vpop.f32.mrb[155].mxu0  ;;  %v7479_v0 = vrot.slane %v7465_v37, %v20098_v34  ;;  %v17060_v37 = vunpack.c.l.b16 %v8770_v19  ;;  %v17072_v19 = vunpack.c.l.b16 %v8772_v49 }
 0x45b   :  { %v17055_v30 = vunpack.c.l.b16 %v8760_v21  ;;  %v13402_v3 = vld [vmem:[%s19391_s3 + $0x190] sm:$0xff]  }
 0x45c   :  { %12721 = vmatmul.mubr.msk.bf16.vlgmr.msra.gmra.mrb[192].mxu1 %vm16642_vm9, %v15847_v45  ;;  %v11330_v45 = vrot.slane %v7480_v32, 9  ;;  %v7481_v27 = vcombine.high %v7479_v0, %v7479_v0  ;;  %v11331_v5 = vrot.slane %v7479_v0, 9 }
 0x45d   :  { %5296 = vmatpush1.bf16.msra.mxu1 %v13400_v7  ;;  %12724 = vmatprep.mubr.msk.bf16.mxu1 %vm16642_vm9, %v15835_v54  ;;  %v8643_v7 = vmul.f32 0.25, %v8515_v20  ;;  %v11339_v20 = vrot.slane %v7513_v11, 9 }
 0x45e   :  { %5297 = vmatprep.subr.bf16.mxu1 %v19995_v40  ;;  %v8509_v54 = vadd.f32 %v11330_v45, %v7480_v32  ;;  %v8510_v17 = vadd.f32 %v11331_v5, %v7479_v0  ;;  %v13403_v32 = vld [vmem:[%s19391_s3 + $0x198] sm:$0xff]  }
 0x45f   :  { %v17051_v50 = vpop.f32.mrb[88].mxu1  ;;  %v17053_v16 = vpop.f32.mrb[156].mxu0  ;;  %v8518_v49 = vadd.f32 %v11339_v20, %v7513_v11  ;;  %v8771_v0 = vpack.c.bf16 %v8643_v7, %v8643_v7 }
 0x460   :  { %20112 = vst [vmem:[#allocation180_spill] sm:$0xff] %v17051_v50  ;;  %20113 = vst [vmem:[#allocation181_spill] sm:$0xff] %v17053_v16  ;;  %v3917_v53 = vpop.f32.mrb[89].mxu1  ;;  %v4647_v39 = vpop.f32.mrb[157].mxu0 }
 0x461   :  { %v17063_v13 = vpop.f32.mrb[90].mxu1  ;;  %v17065_v57 = vpop.f32.mrb[158].mxu0  ;;  %5298 = vmatpush1.bf16.msra.mxu1 %v13401_v31  ;;  %v11332_v53 = vrot.slane %v7481_v27, 9  ;;  %v11340_v39 = vrot.slane %v7515_v1, 9  ;;  %v8517_v31 = vadd.f32 %v11338_v25, %v7514_v41  ;;  %v8637_v25 = vmul.f32 0.25, %v8509_v54 }
 0x462   :  { %20114 = vst [vmem:[#allocation182_spill] sm:$0xff] %v17063_v13  ;;  %20115 = vst [vmem:[#allocation183_spill] sm:$0xff] %v17065_v57  ;;  %v3920_v21 = vpop.f32.mrb[91].mxu1  ;;  %v4650_v47 = vpop.f32.mrb[159].mxu0  ;;  %5299 = vmatprep.subr.bf16.mxu1 %v19995_v40  ;;  %v9173_v57 = vrot.slane %v17058_v56, 7 }
 0x463   :  { %v8511_v41 = vadd.f32 %v11332_v53, %v7481_v27  ;;  %v8519_v45 = vadd.f32 %v11340_v39, %v7515_v1  ;;  %v8645_v56 = vmul.f32 0.25, %v8517_v31  ;;  %v8638_v21 = vmul.f32 0.25, %v8510_v17 }
 0x464   :  { %12725 = vmatmul.mubr.msk.bf16.gmra.mrb[196].mxu1 %vm16642_vm9, %v15865_v36  ;;  %v8646_v47 = vmul.f32 0.25, %v8518_v49  ;;  %v8763_v36 = vpack.c.bf16 %v8635_v59, %v8635_v59  ;;  %v8765_v20 = vpack.c.bf16 %v8637_v25, %v8637_v25  ;;  %v9035_v53 = vunpack.c.l.b16 %v8771_v0  ;;  %v13404_v59 = vld [vmem:[%s19391_s3 + $0x1a0] sm:$0xff]  }
 0x465   :  { %12728 = vmatprep.mubr.msk.bf16.mxu1 %vm16642_vm9, %v15888_v42  ;;  %5300 = vmatpush1.bf16.msra.mxu1 %v13402_v3  ;;  %v8639_v42 = vmul.f32 0.25, %v8511_v41  ;;  %v8647_v3 = vmul.f32 0.25, %v8519_v45  ;;  %v8773_v13 = vpack.c.bf16 %v8645_v56, %v8645_v56  ;;  %v8766_v27 = vpack.c.bf16 %v8638_v21, %v8638_v21 }
 0x466   :  { %5301 = vmatprep.subr.bf16.mxu1 %v19995_v40  ;;  %v8774_v1 = vpack.c.bf16 %v8646_v47, %v8646_v47  ;;  %v9027_v54 = vunpack.c.l.b16 %v8763_v36  ;;  %v9029_v49 = vunpack.c.l.b16 %v8765_v20  ;;  %v9154_v56 = vsel %vm9153_vm2, %v9152_v46, %v17055_v30 }
 0x467   :  { %v17087_v11 = vpop.f32.mrb[92].mxu1  ;;  %v17089_v5 = vpop.f32.mrb[160].mxu0  ;;  %v8767_v7 = vpack.c.bf16 %v8639_v42, %v8639_v42  ;;  %v8775_v17 = vpack.c.bf16 %v8647_v3, %v8647_v3  ;;  %v9037_v41 = vunpack.c.l.b16 %v8773_v13  ;;  %v20116_v0 = vrot.slane %v17033_v33, 6  ;;  %v13405_v33 = vld [vmem:[%s19391_s3 + $0x1a8] sm:$0xff]  }
 0x468   :  { %v3925_v16 = vpop.f32.mrb[93].mxu1  ;;  %v4655_v50 = vpop.f32.mrb[161].mxu0  ;;  %v9038_v25 = vunpack.c.l.b16 %v8774_v1  ;;  %v9158_v21 = vrot.slane %v9027_v54, 5  ;;  %v9161_v46 = vrot.slane %v17049_v9, 4  ;;  %v9164_v3 = vrot.slane %v9029_v49, 3 }
 0x469   :  { %v17091_v39 = vpop.f32.mrb[94].mxu1  ;;  %v17093_v31 = vpop.f32.mrb[162].mxu0  ;;  %5302 = vmatpush1.bf16.msra.mxu1 %v13403_v32  ;;  %v9030_v50 = vunpack.c.l.b16 %v8766_v27  ;;  %v8888_v32 = vld [vmem:[%s19393_s5] sm:$0x3]  ;;  %v9031_v47 = vunpack.c.l.b16 %v8767_v7  ;;  %v9039_v36 = vunpack.c.l.b16 %v8775_v17  ;;  %v9157_v13 = vsel %vm9156_vm3, %v20116_v0, %v9154_v56 }
 0x46a   :  { %v3928_v45 = vpop.f32.mrb[95].mxu1  ;;  %v4658_v16 = vpop.f32.mrb[163].mxu0  ;;  %5303 = vmatprep.subr.bf16.mxu1 %v19995_v40  ;;  %13013 = vmatprep.subr.msk.bf16.mxu0 %vm9415_vm1, %v8888_v32  ;;  %v9417_v42 = vsel %vm9415_vm1, %v8888_v32, 0  ;;  %v9160_v30 = vsel %vm9159_vm4, %v9158_v21, %v9157_v13  ;;  %v9177_v1 = vrot.slane %v9035_v53, 5  ;;  %v20117_v54 = vrot.slane %v17060_v37, 6 }
 0x46b   :  { %v9167_v20 = vrot.slane %v9030_v50, 2  ;;  %v9170_v27 = vrot.slane %v9031_v47, 1  ;;  %12865 = vmatpush3.bf16.msra.mxu0 %v9417_v42  ;;  %v9163_v9 = vsel %vm9162_vm5, %v9161_v46, %v9160_v30  ;;  %v9181_v7 = vrot.slane %v9037_v41, 3  ;;  %v13406_v41 = vld [vmem:[%s19391_s3 + $0x1b0] sm:$0xff]   ;;  %v13407_v30 = vld [vmem:[%s19391_s3 + $0x1b8] sm:$0xff]  }
 0x46c   :  { %12729 = vmatmul.mubr.msk.bf16.gmra.mrb[200].mxu1 %vm16642_vm9, %v15927_v28  ;;  %v9174_v28 = vsel %vm9153_vm2, %v9173_v57, %v17070_v63  ;;  %v9166_v45 = vsel %vm9165_vm6, %v9164_v3, %v9163_v9  ;;  %v9183_v63 = vrot.slane %v9038_v25, 2  ;;  %v9185_v53 = vrot.slane %v9039_v36, 1  ;;  %v13408_v9 = vld [vmem:[%s19391_s3 + $0x1c0] sm:$0xff]  }
 0x46d   :  { %12732 = vmatprep.mubr.msk.bf16.mxu1 %vm16642_vm9, %v15931_v4  ;;  %5304 = vmatpush1.bf16.msra.mxu1 %v13404_v59  ;;  %v9176_v4 = vsel %vm9156_vm3, %v20117_v54, %v9174_v28  ;;  %v9179_v59 = vrot.slane %v17072_v19, 4  ;;  %v9169_v56 = vsel %vm9168_vm7, %v9167_v20, %v9166_v45 }
 0x46e   :  { %5305 = vmatprep.subr.bf16.mxu1 %v19995_v40  ;;  %v9178_v57 = vsel %vm9159_vm4, %v9177_v1, %v9176_v4  ;;  %v9172_v32 = vsel %vm9171_vm8, %v9170_v27, %v9169_v56  ;;  %v20123_v56 = vld [vmem:[#allocation14_spill] sm:$0xff] }
 0x46f   :  { %v17126_v17 = vpop.f32.mrb[96].mxu1  ;;  %v17128_v49 = vpop.f32.mrb[164].mxu0  ;;  %v9180_v37 = vsel %vm9162_vm5, %v9179_v59, %v9178_v57  ;;  %v13409_v59 = vld [vmem:[%s19391_s3 + $0x1c8] sm:$0xff]  }
 0x470   :  { %v3933_v16 = vpop.f32.mrb[97].mxu1  ;;  %v4663_v50 = vpop.f32.mrb[165].mxu0  ;;  %v9182_v25 = vsel %vm9165_vm6, %v9181_v7, %v9180_v37  ;;  %v7591_v37 = vrot.slane %v20123_v56, %v20098_v34 }
 0x471   :  { %v17134_v21 = vpop.f32.mrb[98].mxu1  ;;  %v17136_v19 = vpop.f32.mrb[166].mxu0  ;;  %5306 = vmatpush1.bf16.msra.mxu1 %v13405_v33  ;;  %v9184_v0 = vsel %vm9168_vm7, %v9183_v63, %v9182_v25  ;;  %v20118_v33 = vld [vmem:[#allocation16_spill] sm:$0xff] }
 0x472   :  { %v3936_v47 = vpop.f32.mrb[99].mxu1  ;;  %v4666_v36 = vpop.f32.mrb[167].mxu0  ;;  %5307 = vmatprep.subr.bf16.mxu1 %v19995_v40  ;;  %v9186_v13 = vsel %vm9171_vm8, %v9185_v53, %v9184_v0 }
 0x473   :  { %v9383_v42 = vpack.c.b16 %v9186_v13, %v9172_v32  ;;  %v13411_v32 = vld [vmem:[%s19391_s3 + $0x1d8] sm:$0xff]   ;;  %v7599_v36 = vcombine.high %v7591_v37, %v7591_v37 }
 0x474   :  { %12733 = vmatmul.mubr.msk.bf16.gmra.mrb[204].mxu1 %vm16642_vm9, %v15967_v55  ;;  %v20119_v55 = vld [vmem:[#allocation13_spill] sm:$0xff] }
 0x475   :  { %12736 = vmatprep.mubr.msk.bf16.mxu1 %vm16642_vm9, %v20028_v29  ;;  %5308 = vmatpush1.bf16.msra.mxu1 %v13406_v41  ;;  %v20120_v20 = vpack.c.b16 %v20118_v33, %v20119_v55  ;;  %v7584_v41 = vcombine.high %v20123_v56, %v20123_v56  ;;  %v11357_v56 = vrot.slane %v7591_v37, 9 }
 0x476   :  { %5309 = vmatprep.subr.bf16.mxu1 %v19995_v40  ;;  %12866 = vmatprep.mubr.msk.bf16.mxu0 %vm1016_vm11, %v9383_v42 }
 0x477   :  { %v17157_v46 = vpop.f32.mrb[100].mxu1  ;;  %v17159_v3 = vpop.f32.mrb[168].mxu0  ;;  %12867 = vmatmul.mubr.msk.bf16.vlgmr.msra.gmra.mrb[0].mxu0 %vm1016_vm11, %v20120_v20  ;;  %v13412_v20 = vld [vmem:[%s19391_s3 + $0x1e0] sm:$0xff]  }
 0x478   :  { %v3941_v27 = vpop.f32.mrb[101].mxu1  ;;  %v4671_v29 = vpop.f32.mrb[169].mxu0 }
 0x479   :  { %v17165_v28 = vpop.f32.mrb[102].mxu1  ;;  %v17167_v1 = vpop.f32.mrb[170].mxu0  ;;  %5310 = vmatpush1.bf16.msra.mxu1 %v13407_v30  ;;  %v7598_v30 = vrot.slane %v7584_v41, %v20098_v34 }
 0x47a   :  { %20121 = vst [vmem:[#allocation16_spill] sm:$0xff] %v17167_v1  ;;  %v3944_v54 = vpop.f32.mrb[103].mxu1  ;;  %v4674_v4 = vpop.f32.mrb[171].mxu0  ;;  %5311 = vmatprep.subr.bf16.mxu1 %v19995_v40 }
 0x47b   :  { %v11358_v4 = vrot.slane %v7599_v36, 9 }
 0x47c   :  { %12737 = vmatmul.mubr.msk.bf16.gmra.mrb[208].mxu1 %vm16642_vm9, %v20033_v24 }
 0x47d   :  { %12740 = vmatprep.mubr.msk.bf16.mxu1 %vm16642_vm9, %v20034_v48  ;;  %5312 = vmatpush1.bf16.msra.mxu1 %v13408_v9  ;;  %v13410_v48 = vld [vmem:[%s19391_s3 + $0x1d0] sm:$0xff]   ;;  %v20127_v9 = vld [vmem:[#allocation15_spill] sm:$0xff] }
 0x47e   :  { %5313 = vmatprep.subr.bf16.mxu1 %v19995_v40  ;;  %v17228_v54 = vrot.slane %v20127_v9, %v20098_v34 }
 0x47f   :  { %v17183_v7 = vpop.f32.mrb[104].mxu1  ;;  %v17185_v45 = vpop.f32.mrb[172].mxu0 }
 0x480   :  { %v3949_v57 = vpop.f32.mrb[105].mxu1  ;;  %v4679_v63 = vpop.f32.mrb[173].mxu0 }
 0x481   :  { %v17187_v53 = vpop.f32.mrb[106].mxu1  ;;  %v17189_v24 = vpop.f32.mrb[174].mxu0  ;;  %5314 = vmatpush1.bf16.msra.mxu1 %v13409_v59  ;;  %v11359_v63 = vrot.slane %v7598_v30, 9 }
 0x482   :  { %20122 = vst [vmem:[#allocation13_spill] sm:$0xff] %v17189_v24  ;;  %v3952_v16 = vpop.f32.mrb[107].mxu1  ;;  %v4682_v50 = vpop.f32.mrb[175].mxu0  ;;  %5315 = vmatprep.subr.bf16.mxu1 %v19995_v40 }
 0x483   :  { %v20128_v16 = vld [vmem:[#allocation21_spill] sm:$0xff] }
 0x484   :  { %12741 = vmatmul.mubr.msk.bf16.gmra.mrb[212].mxu1 %vm16642_vm9, %v20039_v8  ;;  %v20125_v8 = vld [vmem:[#allocation20_spill] sm:$0xff]  ;;  %v7642_v50 = vrot.slane %v20128_v16, %v20098_v34 }
 0x485   :  { %12744 = vmatprep.mubr.msk.bf16.mxu1 %vm16642_vm9, %v20040_v35  ;;  %5316 = vmatpush1.bf16.msra.mxu1 %v13410_v48  ;;  %v7618_v0 = vcombine.high %v20125_v8, %v20125_v8  ;;  %v7625_v13 = vrot.slane %v20125_v8, %v20098_v34  ;;  %v13413_v48 = vld [vmem:[%s19391_s3 + $0x1e8] sm:$0xff]   ;;  %v8537_v8 = vadd.f32 %v11358_v4, %v7599_v36 }
 0x486   :  { %5317 = vmatprep.subr.bf16.mxu1 %v19995_v40  ;;  %v7600_v36 = vcombine.high %v7598_v30, %v7598_v30  ;;  %v8536_v4 = vadd.f32 %v11357_v56, %v7591_v37 }
 0x487   :  { %v17209_v25 = vpop.f32.mrb[108].mxu1  ;;  %v17211_v47 = vpop.f32.mrb[176].mxu0  ;;  %v7632_v59 = vrot.slane %v7618_v0, %v20098_v34  ;;  %v7633_v57 = vcombine.high %v7625_v13, %v7625_v13 }
 0x488   :  { %20124 = vst [vmem:[#allocation14_spill] sm:$0xff] %v17211_v47  ;;  %v3957_v42 = vpop.f32.mrb[109].mxu1  ;;  %v4687_v35 = vpop.f32.mrb[177].mxu0  ;;  %v11365_v47 = vrot.slane %v7625_v13, 9  ;;  %v11360_v56 = vrot.slane %v7600_v36, 9 }
 0x489   :  { %v17218_v33 = vpop.f32.mrb[110].mxu1  ;;  %v17220_v55 = vpop.f32.mrb[178].mxu0  ;;  %5318 = vmatpush1.bf16.msra.mxu1 %v13411_v32  ;;  %v11366_v0 = vrot.slane %v7633_v57, 9 }
 0x48a   :  { %20126 = vst [vmem:[#allocation20_spill] sm:$0xff] %v17220_v55  ;;  %v3960_v27 = vpop.f32.mrb[111].mxu1  ;;  %v4690_v29 = vpop.f32.mrb[179].mxu0  ;;  %5319 = vmatprep.subr.bf16.mxu1 %v19995_v40  ;;  %v13414_v55 = vld [vmem:[%s19391_s3 + $0x1f0] sm:$0xff]  }
 0x48c   :  { %12745 = vmatmul.mubr.msk.bf16.gmra.mrb[216].mxu1 %vm16642_vm9, %v20045_v10  ;;  %v11361_v10 = vrot.slane %v17228_v54, 9 }
 0x48d   :  { %12748 = vmatprep.mubr.msk.bf16.mxu1 %vm16642_vm9, %v20046_v2  ;;  %5320 = vmatpush1.bf16.msra.mxu1 %v13412_v20  ;;  %v11367_v2 = vrot.slane %v7632_v59, 9  ;;  %v8538_v20 = vadd.f32 %v11359_v63, %v7598_v30  ;;  %v8665_v63 = vmul.f32 0.25, %v8537_v8  ;;  %v8544_v30 = vadd.f32 %v11365_v47, %v7625_v13 }
 0x48e   :  { %5321 = vmatprep.subr.bf16.mxu1 %v19995_v40  ;;  %v7635_v47 = vcombine.high %v20128_v16, %v20128_v16 }
 0x48f   :  { %v17243_v41 = vpop.f32.mrb[112].mxu1  ;;  %v17245_v32 = vpop.f32.mrb[180].mxu0  ;;  %v8793_v8 = vpack.c.bf16 %v8665_v63, %v8665_v63 }
 0x490   :  { %20129 = vst [vmem:[#allocation15_spill] sm:$0xff] %v17243_v41  ;;  %20130 = vst [vmem:[#allocation21_spill] sm:$0xff] %v17245_v32  ;;  %v3965_v42 = vpop.f32.mrb[113].mxu1  ;;  %v4695_v35 = vpop.f32.mrb[181].mxu0  ;;  %v11369_v41 = vrot.slane %v7642_v50, 9 }
 0x491   :  { %v17248_v27 = vpop.f32.mrb[114].mxu1  ;;  %v17250_v29 = vpop.f32.mrb[182].mxu0  ;;  %5322 = vmatpush1.bf16.msra.mxu1 %v13413_v48  ;;  %v8540_v42 = vadd.f32 %v11361_v10, %v17228_v54  ;;  %v8545_v35 = vadd.f32 %v11366_v0, %v7633_v57  ;;  %v8666_v48 = vmul.f32 0.25, %v8538_v20  ;;  %v8664_v57 = vmul.f32 0.25, %v8536_v4 }
 0x492   :  { %20131 = vst [vmem:[#allocation184_spill] sm:$0xff] %v17248_v27  ;;  %20132 = vst [vmem:[#allocation185_spill] sm:$0xff] %v17250_v29  ;;  %v3968_v32 = vpop.f32.mrb[115].mxu1  ;;  %v4698_v1 = vpop.f32.mrb[183].mxu0  ;;  %5323 = vmatprep.subr.bf16.mxu1 %v19995_v40  ;;  %v8546_v27 = vadd.f32 %v11367_v2, %v7632_v59  ;;  %v7634_v29 = vcombine.high %v7632_v59, %v7632_v59  ;;  %v8548_v37 = vadd.f32 %v11369_v41, %v7642_v50 }
 0x493   :  { %v13415_v1 = vld [vmem:[%s19391_s3 + $0x1f8] sm:$0xff]   ;;  %v8673_v59 = vmul.f32 0.25, %v8545_v35  ;;  %v7601_v20 = vcombine.high %v20127_v9, %v20127_v9  ;;  %v8794_v24 = vpack.c.bf16 %v8666_v48, %v8666_v48  ;;  %v7650_v9 = vcombine.high %v7642_v50, %v7642_v50 }
 0x494   :  { %12749 = vmatmul.mubr.msk.bf16.gmra.mrb[220].mxu1 %vm16642_vm9, %v20051_v14  ;;  %v8668_v14 = vmul.f32 0.25, %v8540_v42  ;;  %v8674_v0 = vmul.f32 0.25, %v8546_v27  ;;  %v11368_v13 = vrot.slane %v7634_v29, 9  ;;  %v8676_v42 = vmul.f32 0.25, %v8548_v37 }
 0x495   :  { %12752 = vmatprep.mubr.bf16.mxu1 %v19995_v40  ;;  %5324 = vmatpush1.bf16.msra.mxu1 %v13414_v55  ;;  %v7616_v27 = vcombine.high %v17228_v54, %v17228_v54  ;;  %v8801_v16 = vpack.c.bf16 %v8673_v59, %v8673_v59  ;;  %v7649_v37 = vrot.slane %v7635_v47, %v20098_v34 }
 0x496   :  { %5325 = vmatprep.subr.bf16.mxu1 %v19995_v40  ;;  %v8672_v40 = vmul.f32 0.25, %v8544_v30  ;;  %v8796_v48 = vpack.c.bf16 %v8668_v14, %v8668_v14  ;;  %v17285_v30 = vunpack.c.l.b16 %v8794_v24  ;;  %v8804_v50 = vpack.c.bf16 %v8676_v42, %v8676_v42 }
 0x497   :  { %v17265_v32 = vpop.f32.mrb[116].mxu1  ;;  %v17267_v10 = vpop.f32.mrb[184].mxu0  ;;  %v11370_v14 = vrot.slane %v7650_v9, 9 }
 0x498   :  { %20133 = vst [vmem:[#allocation186_spill] sm:$0xff] %v17265_v32  ;;  %20134 = vst [vmem:[#allocation187_spill] sm:$0xff] %v17267_v10  ;;  %v3973_v2 = vpop.f32.mrb[117].mxu1  ;;  %v4703_v55 = vpop.f32.mrb[185].mxu0  ;;  %v17279_v10 = vunpack.c.l.b16 %v8793_v8  ;;  %v8802_v32 = vpack.c.bf16 %v8674_v0, %v8674_v0  ;;  %v8800_v54 = vpack.c.bf16 %v8672_v40, %v8672_v40  ;;  %v17297_v24 = vunpack.c.l.b16 %v8796_v48 }
 0x499   :  { %v17273_v41 = vpop.f32.mrb[118].mxu1  ;;  %v17275_v4 = vpop.f32.mrb[186].mxu0  ;;  %5326 = vmatpush1.bf16.msra.mxu1 %v13415_v1  ;;  %v8539_v2 = vadd.f32 %v11360_v56, %v7600_v36  ;;  %v8792_v55 = vpack.c.bf16 %v8664_v57, %v8664_v57  ;;  %v7615_v1 = vrot.slane %v7601_v20, %v20098_v34  ;;  %v11362_v36 = vrot.slane %v7616_v27, 9 }
 0x49a   :  { %20135 = vst [vmem:[#allocation188_spill] sm:$0xff] %v17273_v41  ;;  %20136 = vst [vmem:[#allocation189_spill] sm:$0xff] %v17275_v4  ;;  %v3976_v63 = vpop.f32.mrb[119].mxu1  ;;  %v4706_v35 = vpop.f32.mrb[187].mxu0  ;;  %v9215_v59 = vrot.slane %v17279_v10, 7  ;;  %v17302_v0 = vunpack.c.l.b16 %v8802_v32  ;;  %v9217_v20 = vrot.slane %v17285_v30, 6  ;;  %v17309_v48 = vunpack.c.l.b16 %v8804_v50 }
 0x49b   :  { %v8547_v63 = vadd.f32 %v11368_v13, %v7634_v29  ;;  %v8667_v56 = vmul.f32 0.25, %v8539_v2  ;;  %v17291_v57 = vunpack.c.l.b16 %v8792_v55  ;;  %v17300_v29 = vunpack.c.l.b16 %v8801_v16 }
 0x49c   :  { %12753 = vmatmul.mubr.msk.bf16.gmra.mrb[224].mxu1 %vm16642_vm9, %v20063_v58  ;;  %v7617_v35 = vcombine.high %v7615_v1, %v7615_v1  ;;  %v7651_v2 = vcombine.high %v7649_v37, %v7649_v37  ;;  %v9064_v55 = vunpack.c.l.b16 %v8800_v54  ;;  %v11363_v16 = vrot.slane %v7615_v1, 9 }
 0x49d   :  { %12756 = vmatprep.mubr.msk.bf16.mxu1 %vm16642_vm9, %v20057_v6  ;;  %v8675_v47 = vmul.f32 0.25, %v8547_v63  ;;  %v9229_v30 = vrot.slane %v17300_v29, 7  ;;  %v9231_v63 = vrot.slane %v17302_v0, 6 }
 0x49e   :  { %v11364_v32 = vrot.slane %v7617_v35, 9 }
 0x49f   :  { %v17293_v8 = vpop.f32.mrb[120].mxu1  ;;  %v17295_v58 = vpop.f32.mrb[188].mxu0 }
 0x4a0   :  { %20137 = vst [vmem:[#allocation190_spill] sm:$0xff] %v17293_v8  ;;  %20138 = vst [vmem:[#allocation191_spill] sm:$0xff] %v17295_v58  ;;  %v3981_v6 = vpop.f32.mrb[121].mxu1  ;;  %v4711_v40 = vpop.f32.mrb[189].mxu0  ;;  %v11371_v58 = vrot.slane %v7649_v37, 9  ;;  %v11372_v8 = vrot.slane %v7651_v2, 9 }
 0x4a1   :  { %v17305_v13 = vpop.f32.mrb[122].mxu1  ;;  %v17307_v42 = vpop.f32.mrb[190].mxu0  ;;  %v8541_v6 = vadd.f32 %v11362_v36, %v7616_v27  ;;  %v8549_v40 = vadd.f32 %v11370_v14, %v7650_v9  ;;  %v8795_v36 = vpack.c.bf16 %v8667_v56, %v8667_v56  ;;  %v8803_v14 = vpack.c.bf16 %v8675_v47, %v8675_v47 }
 0x4a2   :  { %20139 = vst [vmem:[#allocation192_spill] sm:$0xff] %v17305_v13  ;;  %20140 = vst [vmem:[#allocation193_spill] sm:$0xff] %v17307_v42  ;;  %v3984_v4 = vpop.f32.mrb[123].mxu1  ;;  %v4714_v10 = vpop.f32.mrb[191].mxu0  ;;  %v8542_v42 = vadd.f32 %v11363_v16, %v7615_v1  ;;  %v8550_v54 = vadd.f32 %v11371_v58, %v7649_v37  ;;  %v8551_v50 = vadd.f32 %v11372_v8, %v7651_v2 }
 0x4a3   :  { %v8543_v4 = vadd.f32 %v11364_v32, %v7617_v35  ;;  %v8669_v10 = vmul.f32 0.25, %v8541_v6  ;;  %v8677_v13 = vmul.f32 0.25, %v8549_v40  ;;  %v9059_v8 = vunpack.c.l.b16 %v8795_v36 }
 0x4a4   :  { %12757 = vmatmul.mubr.msk.bf16.gmra.mrb[228].mxu1 %vm16642_vm9, %v20062_v52  ;;  %v8670_v27 = vmul.f32 0.25, %v8542_v42  ;;  %v8678_v9 = vmul.f32 0.25, %v8550_v54  ;;  %v8679_v52 = vmul.f32 0.25, %v8551_v50  ;;  %v9067_v2 = vunpack.c.l.b16 %v8803_v14 }
 0x4a5   :  { %12760 = vmatprep.mubr.msk.bf16.mxu1 %vm16642_vm9, %v20064_v51  ;;  %v8671_v41 = vmul.f32 0.25, %v8543_v4  ;;  %v8797_v1 = vpack.c.bf16 %v8669_v10, %v8669_v10  ;;  %v8805_v37 = vpack.c.bf16 %v8677_v13, %v8677_v13  ;;  %v9216_v10 = vsel %vm9153_vm2, %v9215_v59, %v17291_v57 }
 0x4a6   :  { %v8798_v51 = vpack.c.bf16 %v8670_v27, %v8670_v27  ;;  %v8806_v35 = vpack.c.bf16 %v8678_v9, %v8678_v9  ;;  %v8807_v47 = vpack.c.bf16 %v8679_v52, %v8679_v52  ;;  %v9219_v27 = vrot.slane %v9059_v8, 5 }
 0x4a7   :  { %v17319_v29 = vpop.f32.mrb[124].mxu1  ;;  %v17321_v0 = vpop.f32.mrb[192].mxu0  ;;  %v8799_v56 = vpack.c.bf16 %v8671_v41, %v8671_v41  ;;  %v9061_v6 = vunpack.c.l.b16 %v8797_v1  ;;  %v9069_v40 = vunpack.c.l.b16 %v8805_v37  ;;  %v9218_v14 = vsel %vm9156_vm3, %v9217_v20, %v9216_v10 }
 0x4a8   :  { %20141 = vst [vmem:[#allocation194_spill] sm:$0xff] %v17321_v0  ;;  %v3989_v58 = vpop.f32.mrb[125].mxu1  ;;  %v17323_v16 = vpop.f32.mrb[193].mxu0  ;;  %v9062_v50 = vunpack.c.l.b16 %v8798_v51  ;;  %v9070_v13 = vunpack.c.l.b16 %v8806_v35  ;;  %v9071_v36 = vunpack.c.l.b16 %v8807_v47  ;;  %v9220_v41 = vsel %vm9159_vm4, %v9219_v27, %v9218_v14  ;;  %v20208_v0 = vld [vmem:[#allocation111_spill] sm:$0xff] }
 0x4a9   :  { %20142 = vst [vmem:[#allocation195_spill] sm:$0xff] %v17323_v16  ;;  %v17325_v32 = vpop.f32.mrb[126].mxu1  ;;  %v17327_v42 = vpop.f32.mrb[194].mxu0  ;;  %v9063_v9 = vunpack.c.l.b16 %v8799_v56  ;;  %v9221_v58 = vrot.slane %v17297_v24, 4  ;;  %v9223_v52 = vrot.slane %v9061_v6, 3  ;;  %v9230_v37 = vsel %vm9153_vm2, %v9229_v30, %v9064_v55 }
 0x4aa   :  { %20143 = vst [vmem:[#allocation196_spill] sm:$0xff] %v17327_v42  ;;  %v3992_v54 = vpop.f32.mrb[127].mxu1  ;;  %v17329_v4 = vpop.f32.mrb[195].mxu0  ;;  %v9225_v1 = vrot.slane %v9062_v50, 2  ;;  %v9232_v20 = vsel %vm9156_vm3, %v9231_v63, %v9230_v37  ;;  %v9233_v24 = vrot.slane %v9067_v2, 5  ;;  %v9237_v35 = vrot.slane %v9069_v40, 3 }
 0x4ab   :  { %20144 = vst [vmem:[#allocation197_spill] sm:$0xff] %v17329_v4  ;;  %v9222_v57 = vsel %vm9162_vm5, %v9221_v58, %v9220_v41  ;;  %v9227_v59 = vrot.slane %v9063_v9, 1  ;;  %v9239_v8 = vrot.slane %v9070_v13, 2  ;;  %v20150_v37 = vld [vmem:[#allocation94_spill] sm:$0xff]  ;;  %v20205_v42 = vld [vmem:[#allocation135_spill] sm:$0xff]  ;;  %v20211_v4 = vld [vmem:[#allocation112_spill] sm:$0xff] }
 0x4ac   :  { %12761 = vmatmul.mubr.msk.bf16.gmra.mrb[232].mxu1 %vm16642_vm9, %v20069_v12  ;;  %v9224_v51 = vsel %vm9165_vm6, %v9223_v52, %v9222_v57  ;;  %v9235_v12 = vrot.slane %v17309_v48, 4  ;;  %v9234_v30 = vsel %vm9159_vm4, %v9233_v24, %v9232_v20  ;;  %v20149_v52 = vld [vmem:[#allocation119_spill] sm:$0xff]  ;;  %v20155_v20 = vld [vmem:[#allocation30_spill] sm:$0xff] }
 0x4ad   :  { %12764 = vmatprep.mubr.msk.bf16.mxu1 %vm16642_vm9, %v20070_v61  ;;  %v9226_v55 = vsel %vm9168_vm7, %v9225_v1, %v9224_v51  ;;  %v9241_v61 = vrot.slane %v9071_v36, 1 }
 0x4ae   :  { %v9228_v63 = vsel %vm9171_vm8, %v9227_v59, %v9226_v55  ;;  %v9236_v2 = vsel %vm9162_vm5, %v9235_v12, %v9234_v30  ;;  %v20154_v59 = vld [vmem:[#allocation37_spill] sm:$0xff] }
 0x4af   :  { %v12642_v56 = vpop.f32.mrb[128].mxu1  ;;  %v17347_v47 = vpop.f32.mrb[196].mxu0  ;;  %v9238_v10 = vsel %vm9165_vm6, %v9237_v35, %v9236_v2  ;;  %v20156_v24 = vpack.c.b16 %v20154_v59, %v20155_v20  ;;  %v20163_v2 = vld [vmem:[#allocation123_spill] sm:$0xff]  ;;  %v20175_v59 = vld [vmem:[#allocation134_spill] sm:$0xff] }
 0x4b0   :  { %20145 = vst [vmem:[#allocation198_spill] sm:$0xff] %v17347_v47  ;;  %v4037_v6 = vadd.f32 %v12642_v56, %v16599_v43  ;;  %v4028_v54 = vpop.f32.mrb[129].mxu1  ;;  %v17352_v50 = vpop.f32.mrb[197].mxu0  ;;  %v9240_v43 = vsel %vm9168_vm7, %v9239_v8, %v9238_v10  ;;  %v20159_v8 = vld [vmem:[#allocation122_spill] sm:$0xff] }
 0x4b1   :  { %20146 = vst [vmem:[#allocation199_spill] sm:$0xff] %v17352_v50  ;;  %v4029_v48 = vadd.f32 %v4028_v54, %v16583_v62  ;;  %v12643_v40 = vpop.f32.mrb[130].mxu1  ;;  %v17357_v13 = vpop.f32.mrb[198].mxu0  ;;  %v9242_v41 = vsel %vm9171_vm8, %v9241_v61, %v9240_v43  ;;  %v20161_v61 = vld [vmem:[#allocation128_spill] sm:$0xff]  ;;  %v20168_v43 = vld [vmem:[#allocation99_spill] sm:$0xff] }
 0x4b2   :  { %20147 = vst [vmem:[#allocation200_spill] sm:$0xff] %v17357_v13  ;;  %v4040_v27 = vadd.f32 %v12643_v40, %v16603_v38  ;;  %v4031_v9 = vpop.f32.mrb[131].mxu1  ;;  %v17361_v36 = vpop.f32.mrb[199].mxu0  ;;  %v17365_v14 = vadd.f32 %v16585_v60, %v4037_v6  ;;  %v9385_v38 = vpack.c.b16 %v9242_v41, %v9228_v63  ;;  %v20151_v60 = vld [vmem:[#allocation115_spill] sm:$0xff]  ;;  %v20165_v40 = vld [vmem:[#allocation124_spill] sm:$0xff] }
 0x4b3   :  { %20148 = vst [vmem:[#allocation201_spill] sm:$0xff] %v17361_v36  ;;  %v4032_v58 = vadd.f32 %v4031_v9, %v16587_v18  ;;  %v17370_v62 = vadd.f32 %v16450_v26, %v4029_v48  ;;  %v20204_v36 = vld [vmem:[#allocation140_spill] sm:$0xff] }
 0x4b4   :  { %12765 = vmatmul.mubr.msk.bf16.gmra.mrb[236].mxu1 %vm16642_vm9, %v20075_v15  ;;  %v17376_v1 = vadd.f32 %v20149_v52, %v4040_v27  ;;  %12870 = vmatprep.mubr.msk.bf16.mxu0 %vm1016_vm11, %v9385_v38  ;;  %v20157_v15 = vld [vmem:[#allocation126_spill] sm:$0xff]  ;;  %v20166_v27 = vld [vmem:[#allocation120_spill] sm:$0xff]  ;;  %v20172_v52 = vld [vmem:[#allocation121_spill] sm:$0xff] }
 0x4b5   :  { %12768 = vmatprep.mubr.msk.bf16.mxu1 %vm16642_vm9, %v20150_v37  ;;  %v17382_v57 = vadd.f32 %v20151_v60, %v4032_v58  ;;  %12871 = vmatmul.mubr.msk.bf16.gmra.mrb[4].mxu0 %vm1016_vm11, %v20156_v24  ;;  %v20169_v58 = vld [vmem:[#allocation125_spill] sm:$0xff]  ;;  %v20171_v38 = vld [vmem:[#allocation100_spill] sm:$0xff] }
 0x4b7   :  { %20152 = vst [vmem:[#allocation119_spill] sm:$0xff] %v17382_v57  ;;  %v12646_v18 = vpop.f32.mrb[132].mxu1  ;;  %v17385_v26 = vpop.f32.mrb[200].mxu0 }
 0x4b8   :  { %20153 = vst [vmem:[#allocation94_spill] sm:$0xff] %v17385_v26  ;;  %v4053_v51 = vadd.f32 %v12646_v18, %v20157_v15  ;;  %v4044_v12 = vpop.f32.mrb[133].mxu1  ;;  %v17392_v35 = vpop.f32.mrb[201].mxu0 }
 0x4b9   :  { %20158 = vst [vmem:[#allocation115_spill] sm:$0xff] %v17392_v35  ;;  %v4045_v56 = vadd.f32 %v4044_v12, %v20159_v8  ;;  %v12647_v55 = vpop.f32.mrb[134].mxu1  ;;  %v17395_v30 = vpop.f32.mrb[202].mxu0 }
 0x4ba   :  { %20160 = vst [vmem:[#allocation37_spill] sm:$0xff] %v17395_v30  ;;  %v4056_v6 = vadd.f32 %v12647_v55, %v20161_v61  ;;  %v4047_v54 = vpop.f32.mrb[135].mxu1  ;;  %v17398_v63 = vpop.f32.mrb[203].mxu0  ;;  %v17401_v48 = vadd.f32 %v20163_v2, %v4053_v51  ;;  %v20177_v51 = vld [vmem:[#allocation130_spill] sm:$0xff]  ;;  %v20179_v55 = vld [vmem:[#allocation33_spill] sm:$0xff] }
 0x4bb   :  { %20162 = vst [vmem:[#allocation30_spill] sm:$0xff] %v17398_v63  ;;  %v4048_v10 = vadd.f32 %v4047_v54, %v20165_v40  ;;  %v17405_v9 = vadd.f32 %v20166_v27, %v4045_v56  ;;  %v7720_v61 = vcombine.high %v20179_v55, %v20179_v55  ;;  %v20180_v54 = vld [vmem:[#allocation136_spill] sm:$0xff]  ;;  %v20182_v27 = vld [vmem:[#allocation131_spill] sm:$0xff] }
 0x4bc   :  { %20164 = vst [vmem:[#allocation126_spill] sm:$0xff] %v17401_v48  ;;  %12769 = vmatmul.mubr.msk.bf16.gmra.mrb[240].mxu1 %vm16642_vm9, %v20168_v43  ;;  %v17411_v41 = vadd.f32 %v20169_v58, %v4056_v6  ;;  %v7727_v6 = vrot.slane %v20179_v55, %v20098_v34  ;;  %v20184_v58 = vld [vmem:[#allocation132_spill] sm:$0xff]  ;;  %v20200_v63 = vld [vmem:[#allocation143_spill] sm:$0xff] }
 0x4bd   :  { %20167 = vst [vmem:[#allocation122_spill] sm:$0xff] %v17405_v9  ;;  %12772 = vmatprep.mubr.msk.bf16.mxu1 %vm16642_vm9, %v20171_v38  ;;  %v17417_v37 = vadd.f32 %v20172_v52, %v4048_v10  ;;  %v20185_v52 = vld [vmem:[#allocation127_spill] sm:$0xff]  ;;  %v20266_v9 = vld [vmem:[#allocation152_spill] sm:$0xff] }
 0x4be   :  { %20170 = vst [vmem:[#allocation128_spill] sm:$0xff] %v17411_v41 }
 0x4bf   :  { %20173 = vst [vmem:[#allocation123_spill] sm:$0xff] %v17417_v37  ;;  %v12650_v60 = vpop.f32.mrb[136].mxu1  ;;  %v17419_v18 = vpop.f32.mrb[204].mxu0 }
 0x4c0   :  { %20174 = vst [vmem:[#allocation124_spill] sm:$0xff] %v17419_v18  ;;  %v4069_v20 = vadd.f32 %v12650_v60, %v20175_v59  ;;  %v4060_v24 = vpop.f32.mrb[137].mxu1  ;;  %v17422_v15 = vpop.f32.mrb[205].mxu0  ;;  %v20187_v59 = vld [vmem:[#allocation42_spill] sm:$0xff] }
 0x4c1   :  { %20176 = vst [vmem:[#allocation120_spill] sm:$0xff] %v17422_v15  ;;  %v4061_v12 = vadd.f32 %v4060_v24, %v20177_v51  ;;  %v12651_v8 = vpop.f32.mrb[138].mxu1  ;;  %v17425_v56 = vpop.f32.mrb[206].mxu0  ;;  %v17443_v24 = vrot.slane %v20187_v59, %v20098_v34  ;;  %v20188_v51 = vld [vmem:[#allocation105_spill] sm:$0xff] }
 0x4c2   :  { %20178 = vst [vmem:[#allocation99_spill] sm:$0xff] %v17425_v56  ;;  %v4072_v2 = vadd.f32 %v12651_v8, %v20180_v54  ;;  %v4063_v40 = vpop.f32.mrb[139].mxu1  ;;  %v17432_v10 = vpop.f32.mrb[207].mxu0  ;;  %v17435_v43 = vadd.f32 %v20182_v27, %v4069_v20  ;;  %v20189_v8 = vld [vmem:[#allocation133_spill] sm:$0xff]  ;;  %v7754_v20 = vcombine.high %v20187_v59, %v20187_v59  ;;  %v20191_v54 = vld [vmem:[#allocation106_spill] sm:$0xff]  ;;  %v7734_v27 = vrot.slane %v7720_v61, %v20098_v34 }
 0x4c3   :  { %20181 = vst [vmem:[#allocation125_spill] sm:$0xff] %v17432_v10  ;;  %v4064_v38 = vadd.f32 %v4063_v40, %v20184_v58  ;;  %v17439_v60 = vadd.f32 %v20185_v52, %v4061_v12  ;;  %v20192_v12 = vld [vmem:[#allocation129_spill] sm:$0xff]  ;;  %v7735_v58 = vcombine.high %v7727_v6, %v7727_v6  ;;  %v20197_v10 = vld [vmem:[#allocation34_spill] sm:$0xff] }
 0x4c4   :  { %20183 = vst [vmem:[#allocation100_spill] sm:$0xff] %v17435_v43  ;;  %12773 = vmatmul.mubr.msk.bf16.gmra.mrb[244].mxu1 %vm16642_vm9, %v20188_v51  ;;  %v17449_v55 = vadd.f32 %v20189_v8, %v4072_v2  ;;  %v7769_v2 = vcombine.high %v17443_v24, %v17443_v24  ;;  %v20195_v51 = vld [vmem:[#allocation83_spill] sm:$0xff] }
 0x4c5   :  { %20186 = vst [vmem:[#allocation121_spill] sm:$0xff] %v17439_v60  ;;  %12776 = vmatprep.mubr.msk.bf16.mxu1 %vm16642_vm9, %v20191_v54  ;;  %v17457_v40 = vadd.f32 %v20192_v12, %v4064_v38  ;;  %v7744_v54 = vrot.slane %v20197_v10, %v20098_v34  ;;  %v7768_v38 = vrot.slane %v7754_v20, %v20098_v34  ;;  %v20198_v12 = vld [vmem:[#allocation138_spill] sm:$0xff]  ;;  %v11390_v26 = vrot.slane %v7735_v58, 9 }
 0x4c6   :  { %20190 = vst [vmem:[#allocation134_spill] sm:$0xff] %v17449_v55 }
 0x4c7   :  { %20193 = vst [vmem:[#allocation130_spill] sm:$0xff] %v17457_v40  ;;  %v12654_v52 = vpop.f32.mrb[140].mxu1  ;;  %v17460_v56 = vpop.f32.mrb[208].mxu0 }
 0x4c8   :  { %20194 = vst [vmem:[#allocation33_spill] sm:$0xff] %v17460_v56  ;;  %v4085_v8 = vadd.f32 %v12654_v52, %v20195_v51  ;;  %v4076_v18 = vpop.f32.mrb[141].mxu1  ;;  %v17465_v59 = vpop.f32.mrb[209].mxu0  ;;  %v11391_v56 = vrot.slane %v7734_v27, 9  ;;  %v20202_v52 = vld [vmem:[#allocation139_spill] sm:$0xff] }
 0x4c9   :  { %20196 = vst [vmem:[#allocation136_spill] sm:$0xff] %v17465_v59  ;;  %v4077_v15 = vadd.f32 %v4076_v18, %v20198_v12  ;;  %v12655_v61 = vpop.f32.mrb[142].mxu1  ;;  %v17471_v30 = vpop.f32.mrb[210].mxu0  ;;  %v11389_v59 = vrot.slane %v7727_v6, 9  ;;  %v20207_v18 = vld [vmem:[#allocation43_spill] sm:$0xff] }
 0x4ca   :  { %20199 = vst [vmem:[#allocation131_spill] sm:$0xff] %v17471_v30  ;;  %v4088_v35 = vadd.f32 %v12655_v61, %v20200_v63  ;;  %v4079_v13 = vpop.f32.mrb[143].mxu1  ;;  %v17474_v47 = vpop.f32.mrb[211].mxu0  ;;  %v17477_v51 = vadd.f32 %v20202_v52, %v4085_v8  ;;  %v17485_v12 = vrot.slane %v20207_v18, %v20098_v34  ;;  %v11398_v30 = vrot.slane %v7769_v2, 9  ;;  %v20209_v63 = vld [vmem:[#allocation141_spill] sm:$0xff] }
 0x4cb   :  { %20201 = vst [vmem:[#allocation132_spill] sm:$0xff] %v17474_v47  ;;  %v4080_v50 = vadd.f32 %v4079_v13, %v20204_v36  ;;  %v17481_v20 = vadd.f32 %v20205_v42, %v4077_v15  ;;  %v7736_v8 = vcombine.high %v7734_v27, %v7734_v27  ;;  %v11393_v52 = vrot.slane %v7744_v54, 9  ;;  %v20212_v42 = vld [vmem:[#allocation137_spill] sm:$0xff] }
 0x4cc   :  { %20203 = vst [vmem:[#allocation127_spill] sm:$0xff] %v17477_v51  ;;  %12777 = vmatmul.mubr.msk.bf16.gmra.mrb[248].mxu1 %vm16642_vm9, %v20208_v0  ;;  %v17491_v61 = vadd.f32 %v20209_v63, %v4088_v35  ;;  %v11399_v47 = vrot.slane %v7768_v38, 9  ;;  %v8569_v36 = vadd.f32 %v11390_v26, %v7735_v58  ;;  %v8570_v15 = vadd.f32 %v11391_v56, %v7734_v27 }
 0x4cd   :  { %20206 = vst [vmem:[#allocation42_spill] sm:$0xff] %v17481_v20  ;;  %12780 = vmatprep.mubr.msk.bf16.mxu1 %vm16642_vm9, %v20211_v4  ;;  %v17497_v13 = vadd.f32 %v20212_v42, %v4080_v50  ;;  %v8568_v16 = vadd.f32 %v11389_v59, %v7727_v6  ;;  %v11397_v0 = vrot.slane %v17443_v24, 9  ;;  %v11401_v35 = vrot.slane %v17485_v12, 9  ;;  %v20217_v42 = vld [vmem:[#allocation22_spill] sm:$0xff]  ;;  %v20219_v59 = vld [vmem:[#allocation147_spill] sm:$0xff] }
 0x4ce   :  { %20210 = vst [vmem:[#allocation105_spill] sm:$0xff] %v17491_v61  ;;  %v8577_v63 = vadd.f32 %v11398_v30, %v7769_v2  ;;  %v20215_v61 = vld [vmem:[#allocation28_spill] sm:$0xff]  ;;  %v11392_v4 = vrot.slane %v7736_v8, 9  ;;  %v8572_v43 = vadd.f32 %v11393_v52, %v7744_v54  ;;  %v8578_v50 = vadd.f32 %v11399_v47, %v7768_v38  ;;  %v20221_v30 = vld [vmem:[#allocation25_spill] sm:$0xff]  ;;  %v20224_v47 = vld [vmem:[#allocation142_spill] sm:$0xff] }
 0x4cf   :  { %20213 = vst [vmem:[#allocation133_spill] sm:$0xff] %v17497_v13  ;;  %v12658_v20 = vpop.f32.mrb[144].mxu1  ;;  %v17499_v51 = vpop.f32.mrb[212].mxu0  ;;  %v8697_v27 = vmul.f32 0.25, %v8569_v36  ;;  %v8698_v58 = vmul.f32 0.25, %v8570_v15  ;;  %v8580_v36 = vadd.f32 %v11401_v35, %v17485_v12 }
 0x4d0   :  { %20214 = vst [vmem:[#allocation106_spill] sm:$0xff] %v17499_v51  ;;  %v4101_v40 = vadd.f32 %v12658_v20, %v20215_v61  ;;  %v4092_v55 = vpop.f32.mrb[145].mxu1  ;;  %v17504_v60 = vpop.f32.mrb[213].mxu0  ;;  %v8696_v20 = vmul.f32 0.25, %v8568_v16  ;;  %v7770_v61 = vcombine.high %v7768_v38, %v7768_v38  ;;  %v8705_v15 = vmul.f32 0.25, %v8577_v63  ;;  %v20229_v38 = vld [vmem:[#allocation61_spill] sm:$0xff] }
 0x4d1   :  { %20216 = vst [vmem:[#allocation129_spill] sm:$0xff] %v17504_v60  ;;  %v4093_v26 = vadd.f32 %v4092_v55, %v20217_v42  ;;  %v12659_v56 = vpop.f32.mrb[146].mxu1  ;;  %v17507_v6 = vpop.f32.mrb[214].mxu0  ;;  %v20223_v60 = vld [vmem:[#allocation145_spill] sm:$0xff]  ;;  %v8576_v55 = vadd.f32 %v11397_v0, %v17443_v24  ;;  %v20226_v42 = vld [vmem:[#allocation118_spill] sm:$0xff]  ;;  %v8706_v16 = vmul.f32 0.25, %v8578_v50  ;;  %v7737_v24 = vcombine.high %v20197_v10, %v20197_v10 }
 0x4d2   :  { %20218 = vst [vmem:[#allocation83_spill] sm:$0xff] %v17507_v6  ;;  %v4104_v51 = vadd.f32 %v12659_v56, %v20219_v59  ;;  %v4095_v13 = vpop.f32.mrb[147].mxu1  ;;  %v17510_v37 = vpop.f32.mrb[215].mxu0  ;;  %v17513_v2 = vadd.f32 %v20221_v30, %v4101_v40  ;;  %v20227_v56 = vld [vmem:[#allocation146_spill] sm:$0xff]  ;;  %v8700_v40 = vmul.f32 0.25, %v8572_v43  ;;  %v8825_v0 = vpack.c.bf16 %v8697_v27, %v8697_v27 }
 0x4d3   :  { %20220 = vst [vmem:[#allocation34_spill] sm:$0xff] %v17510_v37  ;;  %v4096_v52 = vadd.f32 %v4095_v13, %v20223_v60  ;;  %v17517_v41 = vadd.f32 %v20224_v47, %v4093_v26  ;;  %v20230_v60 = vld [vmem:[#allocation144_spill] sm:$0xff]  ;;  %v8826_v35 = vpack.c.bf16 %v8698_v58, %v8698_v58  ;;  %v17533_v63 = vcombine.high %v7744_v54, %v7744_v54  ;;  %v20235_v27 = vld [vmem:[#allocation38_spill] sm:$0xff] }
 0x4d4   :  { %20222 = vst [vmem:[#allocation138_spill] sm:$0xff] %v17513_v2  ;;  %12781 = vmatmul.mubr.msk.bf16.gmra.mrb[252].mxu1 %vm16642_vm9, %v20226_v42  ;;  %v17525_v59 = vadd.f32 %v20227_v56, %v4104_v51  ;;  %v8571_v26 = vadd.f32 %v11392_v4, %v7736_v8  ;;  %v8824_v44 = vpack.c.bf16 %v8696_v20, %v8696_v20  ;;  %v11400_v30 = vrot.slane %v7770_v61, 9  ;;  %v20233_v56 = vld [vmem:[#allocation46_spill] sm:$0xff] }
 0x4d5   :  { %20225 = vst [vmem:[#allocation143_spill] sm:$0xff] %v17517_v41  ;;  %5327 = vmatprep.mubr.bf16.mxu1 %v20229_v38  ;;  %v17529_v13 = vadd.f32 %v20230_v60, %v4096_v52  ;;  %v8704_v43 = vmul.f32 0.25, %v8576_v55  ;;  %v8708_v50 = vmul.f32 0.25, %v8580_v36  ;;  %v8833_v42 = vpack.c.bf16 %v8705_v15, %v8705_v15  ;;  %v20237_v36 = vld [vmem:[#allocation151_spill] sm:$0xff] }
 0x4d6   :  { %20228 = vst [vmem:[#allocation139_spill] sm:$0xff] %v17525_v59  ;;  %v8828_v6 = vpack.c.bf16 %v8700_v40, %v8700_v40  ;;  %v7771_v10 = vcombine.high %v20207_v18, %v20207_v18  ;;  %v8834_v54 = vpack.c.bf16 %v8706_v16, %v8706_v16  ;;  %v17545_v20 = vunpack.c.l.b16 %v8825_v0 }
 0x4d7   :  { %20231 = vst [vmem:[#allocation140_spill] sm:$0xff] %v17529_v13  ;;  %v12662_v47 = vpop.f32.mrb[148].mxu1  ;;  %v17535_v51 = vpop.f32.mrb[216].mxu0  ;;  %v17547_v55 = vunpack.c.l.b16 %v8826_v35  ;;  %v7786_v18 = vcombine.high %v17485_v12, %v17485_v12  ;;  %v8579_v16 = vadd.f32 %v11400_v30, %v7770_v61  ;;  %v8832_v0 = vpack.c.bf16 %v8704_v43, %v8704_v43  ;;  %v20248_v30 = vld [vmem:[#allocation66_spill] sm:$0xff] }
 0x4d8   :  { %20232 = vst [vmem:[#allocation135_spill] sm:$0xff] %v17535_v51  ;;  %v4117_v38 = vadd.f32 %v12662_v47, %v20233_v56  ;;  %v4108_v52 = vpop.f32.mrb[149].mxu1  ;;  %v17538_v60 = vpop.f32.mrb[217].mxu0  ;;  %v20239_v51 = vld [vmem:[#allocation41_spill] sm:$0xff]  ;;  %v8836_v35 = vpack.c.bf16 %v8708_v50, %v8708_v50  ;;  %v17561_v37 = vunpack.c.l.b16 %v8833_v42  ;;  %v7785_v12 = vrot.slane %v7771_v10, %v20098_v34 }
 0x4d9   :  { %20234 = vst [vmem:[#allocation43_spill] sm:$0xff] %v17538_v60  ;;  %v4109_v8 = vadd.f32 %v4108_v52, %v20235_v27  ;;  %v12663_v4 = vpop.f32.mrb[150].mxu1  ;;  %v17543_v58 = vpop.f32.mrb[218].mxu0  ;;  %v20241_v52 = vld [vmem:[#allocation149_spill] sm:$0xff]  ;;  %v20242_v60 = vld [vmem:[#allocation32_spill] sm:$0xff]  ;;  %v17571_v61 = vunpack.c.l.b16 %v8834_v54  ;;  %v11394_v50 = vrot.slane %v17533_v63, 9 }
 0x4da   :  { %20236 = vst [vmem:[#allocation111_spill] sm:$0xff] %v17543_v58  ;;  %v4120_v15 = vadd.f32 %v12663_v4, %v20237_v36  ;;  %v4111_v47 = vpop.f32.mrb[151].mxu1  ;;  %v17550_v56 = vpop.f32.mrb[219].mxu0  ;;  %v17553_v40 = vadd.f32 %v20239_v51, %v4117_v38  ;;  %v20244_v4 = vld [vmem:[#allocation64_spill] sm:$0xff]  ;;  %v7751_v38 = vrot.slane %v7737_v24, %v20098_v34  ;;  %v17578_v42 = vmul.f32 0.25, %v8571_v26  ;;  %v20254_v24 = vld [vmem:[#allocation50_spill] sm:$0xff] }
 0x4db   :  { %20238 = vst [vmem:[#allocation141_spill] sm:$0xff] %v17550_v56  ;;  %v4112_v27 = vadd.f32 %v4111_v47, %v20241_v52  ;;  %v17559_v58 = vadd.f32 %v20242_v60, %v4109_v8  ;;  %v20246_v56 = vld [vmem:[#allocation150_spill] sm:$0xff]  ;;  %v20249_v60 = vld [vmem:[#allocation148_spill] sm:$0xff]  ;;  %v17580_v8 = vunpack.c.l.b16 %v8824_v44  ;;  %v17582_v47 = vunpack.c.l.b16 %v8828_v6  ;;  %v20258_v26 = vld [vmem:[#allocation153_spill] sm:$0xff] }
 0x4dc   :  { %20240 = vst [vmem:[#allocation112_spill] sm:$0xff] %v17553_v40  ;;  %11961 = vmatmul.mubr.msk.bf16.vlgmr.msra.gmra.mrb[0].mxu1 %vm15816_vm12, %v20244_v4  ;;  %v17567_v51 = vadd.f32 %v20246_v56, %v4120_v15  ;;  %v11402_v10 = vrot.slane %v7786_v18, 9  ;;  %v17586_v54 = vmul.f32 0.25, %v8579_v16  ;;  %v17592_v4 = vunpack.c.l.b16 %v8836_v35  ;;  %v20252_v44 = vld [vmem:[#allocation70_spill] sm:$0xff]  ;;  %v20261_v15 = vld [vmem:[#allocation49_spill] sm:$0xff] }
 0x4dd   :  { %20243 = vst [vmem:[#allocation137_spill] sm:$0xff] %v17559_v58  ;;  %5335 = vmatprep.mubr.bf16.mxu1 %v20248_v30  ;;  %v17575_v43 = vadd.f32 %v20249_v60, %v4112_v27  ;;  %v17590_v27 = vunpack.c.l.b16 %v8832_v0  ;;  %v7753_v58 = vcombine.high %v7751_v38, %v7751_v38  ;;  %v20256_v0 = vld [vmem:[#allocation78_spill] sm:$0xff] }
 0x4de   :  { %20247 = vst [vmem:[#allocation28_spill] sm:$0xff] %v17567_v51 }
 0x4df   :  { %20250 = vst [vmem:[#allocation22_spill] sm:$0xff] %v17575_v43  ;;  %v12666_v56 = vpop.f32.mrb[152].mxu1  ;;  %v17588_v52 = vpop.f32.mrb[220].mxu0 }
 0x4e0   :  { %20251 = vst [vmem:[#allocation147_spill] sm:$0xff] %v17588_v52  ;;  %v4133_v30 = vadd.f32 %v12666_v56, %v20252_v44  ;;  %v4124_v6 = vpop.f32.mrb[153].mxu1  ;;  %v17596_v60 = vpop.f32.mrb[221].mxu0  ;;  %v7787_v52 = vcombine.high %v7785_v12, %v7785_v12  ;;  %v11395_v56 = vrot.slane %v7751_v38, 9  ;;  %v11403_v44 = vrot.slane %v7785_v12, 9 }
 0x4e1   :  { %20253 = vst [vmem:[#allocation25_spill] sm:$0xff] %v17596_v60  ;;  %v4125_v43 = vadd.f32 %v4124_v6, %v20254_v24  ;;  %v12667_v16 = vpop.f32.mrb[154].mxu1  ;;  %v17600_v51 = vpop.f32.mrb[222].mxu0  ;;  %v20260_v60 = vld [vmem:[#allocation154_spill] sm:$0xff]  ;;  %v11396_v24 = vrot.slane %v7753_v58, 9 }
 0x4e2   :  { %20255 = vst [vmem:[#allocation145_spill] sm:$0xff] %v17600_v51  ;;  %v4136_v40 = vadd.f32 %v12667_v16, %v20256_v0  ;;  %v4127_v35 = vpop.f32.mrb[155].mxu1  ;;  %v17603_v13 = vpop.f32.mrb[223].mxu0  ;;  %v17606_v59 = vadd.f32 %v20258_v26, %v4133_v30  ;;  %v11404_v6 = vrot.slane %v7787_v52, 9  ;;  %v20263_v51 = vld [vmem:[#allocation73_spill] sm:$0xff]  ;;  %v20264_v16 = vld [vmem:[#allocation155_spill] sm:$0xff]  ;;  %v8574_v26 = vadd.f32 %v11395_v56, %v7751_v38 }
 0x4e3   :  { %20257 = vst [vmem:[#allocation142_spill] sm:$0xff] %v17603_v13  ;;  %v4128_v41 = vadd.f32 %v4127_v35, %v20260_v60  ;;  %v17610_v2 = vadd.f32 %v20261_v15, %v4125_v43  ;;  %v8573_v13 = vadd.f32 %v11394_v50, %v17533_v63  ;;  %v8581_v30 = vadd.f32 %v11402_v10, %v7786_v18 }
 0x4e4   :  { %20259 = vst [vmem:[#allocation118_spill] sm:$0xff] %v17606_v59  ;;  %11965 = vmatmul.mubr.msk.bf16.gmra.mrb[4].mxu1 %vm15816_vm12, %v20263_v51  ;;  %v17616_v0 = vadd.f32 %v20264_v16, %v4136_v40  ;;  %v20265_v59 = vld [vmem:[#allocation65_spill] sm:$0xff]  ;;  %v8575_v43 = vadd.f32 %v11396_v24, %v7753_v58  ;;  %v8582_v15 = vadd.f32 %v11403_v44, %v7785_v12  ;;  %v8702_v48 = vmul.f32 0.25, %v8574_v26 }
 0x4e5   :  { %20262 = vst [vmem:[#allocation146_spill] sm:$0xff] %v17610_v2  ;;  %5343 = vmatprep.mubr.bf16.mxu1 %v20265_v59  ;;  %v17621_v60 = vadd.f32 %v20266_v9, %v4128_v41  ;;  %v8583_v35 = vadd.f32 %v11404_v6, %v7787_v52  ;;  %v8701_v2 = vmul.f32 0.25, %v8573_v13  ;;  %v8709_v57 = vmul.f32 0.25, %v8581_v30  ;;  %v20268_v9 = vld [vmem:[#allocation93_spill] sm:$0xff]  ;;  %v20270_v52 = vld [vmem:[#allocation87_spill] sm:$0xff]  ;;  %v20272_v30 = vld [vmem:[#allocation160_spill] sm:$0xff] }
 0x4e6   :  { %v8827_v51 = vpack.c.bf16 %v17578_v42, %v17578_v42  ;;  %v8703_v63 = vmul.f32 0.25, %v8575_v43  ;;  %v8710_v38 = vmul.f32 0.25, %v8582_v15  ;;  %v8835_v59 = vpack.c.bf16 %v17586_v54, %v17586_v54 }
 0x4e7   :  { %v12670_v40 = vpop.f32.mrb[156].mxu1  ;;  %v17625_v16 = vpop.f32.mrb[224].mxu0  ;;  %v8711_v18 = vmul.f32 0.25, %v8583_v35  ;;  %v8829_v13 = vpack.c.bf16 %v8701_v2, %v8701_v2  ;;  %v8830_v50 = vpack.c.bf16 %v8702_v48, %v8702_v48  ;;  %v8837_v10 = vpack.c.bf16 %v8709_v57, %v8709_v57  ;;  %v20274_v35 = vld [vmem:[#allocation88_spill] sm:$0xff]  ;;  %v20275_v48 = vld [vmem:[#allocation157_spill] sm:$0xff] }
 0x4e8   :  { %20267 = vst [vmem:[#allocation61_spill] sm:$0xff] %v17625_v16  ;;  %v4149_v41 = vadd.f32 %v12670_v40, %v20268_v9  ;;  %v4140_v58 = vpop.f32.mrb[157].mxu1  ;;  %v17630_v12 = vpop.f32.mrb[225].mxu0  ;;  %v8831_v24 = vpack.c.bf16 %v8703_v63, %v8703_v63  ;;  %v8838_v6 = vpack.c.bf16 %v8710_v38, %v8710_v38  ;;  %v9091_v9 = vunpack.c.l.b16 %v8827_v51  ;;  %v20276_v16 = vld [vmem:[#allocation56_spill] sm:$0xff]  ;;  %v20277_v63 = vld [vmem:[#allocation67_spill] sm:$0xff]  ;;  %v20278_v38 = vld [vmem:[#allocation158_spill] sm:$0xff] }
 0x4e9   :  { %20269 = vst [vmem:[#allocation144_spill] sm:$0xff] %v17630_v12  ;;  %v4141_v56 = vadd.f32 %v4140_v58, %v20270_v52  ;;  %v12671_v42 = vpop.f32.mrb[158].mxu1  ;;  %v17633_v44 = vpop.f32.mrb[226].mxu0  ;;  %v8839_v26 = vpack.c.bf16 %v8711_v18, %v8711_v18  ;;  %v9093_v2 = vunpack.c.l.b16 %v8829_v13  ;;  %v9094_v52 = vunpack.c.l.b16 %v8830_v50  ;;  %v20280_v51 = vld [vmem:[#allocation156_spill] sm:$0xff]  ;;  %v20346_v12 = vld [vmem:[#allocation182_spill] sm:$0xff] }
 0x4ea   :  { %20271 = vst [vmem:[#allocation46_spill] sm:$0xff] %v17633_v44  ;;  %v4152_v43 = vadd.f32 %v12671_v42, %v20272_v30  ;;  %v4143_v15 = vpop.f32.mrb[159].mxu1  ;;  %v17636_v54 = vpop.f32.mrb[227].mxu0  ;;  %v17639_v40 = vadd.f32 %v20274_v35, %v4149_v41  ;;  %v9095_v44 = vunpack.c.l.b16 %v8831_v24  ;;  %v9099_v42 = vunpack.c.l.b16 %v8835_v59  ;;  %v20279_v35 = vld [vmem:[#allocation79_spill] sm:$0xff] }
 0x4eb   :  { %20273 = vst [vmem:[#allocation38_spill] sm:$0xff] %v17636_v54  ;;  %v4144_v57 = vadd.f32 %v4143_v15, %v20275_v48  ;;  %v17643_v58 = vadd.f32 %v20276_v16, %v4141_v56  ;;  %v9101_v30 = vunpack.c.l.b16 %v8837_v10  ;;  %v9102_v41 = vunpack.c.l.b16 %v8838_v6 }
 0x4ec   :  { %11969 = vmatmul.mubr.msk.bf16.gmra.mrb[8].mxu1 %vm15816_vm12, %v20277_v63  ;;  %v17649_v18 = vadd.f32 %v20278_v38, %v4152_v43  ;;  %v9103_v15 = vunpack.c.l.b16 %v8839_v26  ;;  %v20281_v16 = vrot.slane %v17545_v20, 7  ;;  %v9275_v56 = vrot.slane %v9091_v9, 5  ;;  %v20285_v38 = vld [vmem:[#allocation166_spill] sm:$0xff] }
 0x4ed   :  { %5351 = vmatprep.mubr.bf16.mxu1 %v20279_v35  ;;  %v17653_v13 = vadd.f32 %v20280_v51, %v4144_v57  ;;  %v20282_v24 = vrot.slane %v17547_v55, 6  ;;  %v9277_v59 = vrot.slane %v17582_v47, 4  ;;  %v9279_v10 = vrot.slane %v9093_v2, 3 }
 0x4ee   :  { %v9272_v50 = vsel %vm9153_vm2, %v20281_v16, %v17580_v8  ;;  %v9281_v6 = vrot.slane %v9094_v52, 2  ;;  %v9283_v26 = vrot.slane %v9095_v44, 1  ;;  %v20284_v20 = vrot.slane %v17561_v37, 7  ;;  %v20288_v44 = vld [vmem:[#allocation162_spill] sm:$0xff] }
 0x4ef   :  { %v9274_v43 = vsel %vm9156_vm3, %v20282_v24, %v9272_v50  ;;  %v12674_v48 = vpop.f32.mrb[160].mxu1  ;;  %v17663_v63 = vpop.f32.mrb[228].mxu0  ;;  %v9289_v9 = vrot.slane %v9099_v42, 5  ;;  %v20287_v2 = vrot.slane %v17571_v61, 6  ;;  %v9291_v16 = vrot.slane %v17592_v4, 4 }
 0x4f0   :  { %20283 = vst [vmem:[#allocation151_spill] sm:$0xff] %v17663_v63  ;;  %v9276_v57 = vsel %vm9159_vm4, %v9275_v56, %v9274_v43  ;;  %v9286_v8 = vsel %vm9153_vm2, %v20284_v20, %v17590_v27  ;;  %v4165_v55 = vadd.f32 %v12674_v48, %v20285_v38  ;;  %v4156_v35 = vpop.f32.mrb[161].mxu1  ;;  %v17671_v51 = vpop.f32.mrb[229].mxu0  ;;  %v9293_v24 = vrot.slane %v9101_v30, 3  ;;  %v20290_v43 = vld [vmem:[#allocation168_spill] sm:$0xff] }
 0x4f1   :  { %20286 = vst [vmem:[#allocation41_spill] sm:$0xff] %v17671_v51  ;;  %v9278_v47 = vsel %vm9162_vm5, %v9277_v59, %v9276_v57  ;;  %v9288_v52 = vsel %vm9156_vm3, %v20287_v2, %v9286_v8  ;;  %v4157_v50 = vadd.f32 %v4156_v35, %v20288_v44  ;;  %v12675_v56 = vpop.f32.mrb[162].mxu1  ;;  %v17679_v37 = vpop.f32.mrb[230].mxu0  ;;  %v9295_v4 = vrot.slane %v9102_v41, 2  ;;  %v20292_v8 = vld [vmem:[#allocation164_spill] sm:$0xff]  ;;  %v20296_v41 = vld [vmem:[#allocation165_spill] sm:$0xff] }
 0x4f2   :  { %20289 = vst [vmem:[#allocation149_spill] sm:$0xff] %v17679_v37  ;;  %v9280_v27 = vsel %vm9165_vm6, %v9279_v10, %v9278_v47  ;;  %v9290_v42 = vsel %vm9159_vm4, %v9289_v9, %v9288_v52  ;;  %v4168_v48 = vadd.f32 %v12675_v56, %v20290_v43  ;;  %v4159_v20 = vpop.f32.mrb[163].mxu1  ;;  %v17684_v59 = vpop.f32.mrb[231].mxu0  ;;  %v9297_v10 = vrot.slane %v9103_v15, 1  ;;  %v20293_v47 = vld [vmem:[#allocation72_spill] sm:$0xff]  ;;  %v20294_v9 = vld [vmem:[#allocation163_spill] sm:$0xff] }
 0x4f3   :  { %20291 = vst [vmem:[#allocation32_spill] sm:$0xff] %v17684_v59  ;;  %v9282_v61 = vsel %vm9168_vm7, %v9281_v6, %v9280_v27  ;;  %v9292_v57 = vsel %vm9162_vm5, %v9291_v16, %v9290_v42  ;;  %v4160_v38 = vadd.f32 %v4159_v20, %v20292_v8  ;;  %v17696_v52 = vadd.f32 %v20294_v9, %v4165_v55  ;;  %v20295_v6 = vld [vmem:[#allocation159_spill] sm:$0xff]  ;;  %v20297_v56 = vld [vmem:[#allocation68_spill] sm:$0xff]  ;;  %v20298_v15 = vld [vmem:[#allocation161_spill] sm:$0xff] }
 0x4f4   :  { %v9284_v35 = vsel %vm9171_vm8, %v9283_v26, %v9282_v61  ;;  %v9294_v2 = vsel %vm9165_vm6, %v9293_v24, %v9292_v57  ;;  %11973 = vmatmul.mubr.msk.bf16.gmra.mrb[12].mxu1 %vm15816_vm12, %v20293_v47  ;;  %v17699_v44 = vadd.f32 %v20295_v6, %v4157_v50  ;;  %v17702_v16 = vadd.f32 %v20296_v41, %v4168_v48  ;;  %v20300_v20 = vld [vmem:[#allocation9_spill] sm:$0xff]  ;;  %v20302_v50 = vld [vmem:[#allocation170_spill] sm:$0xff]  ;;  %v20309_v6 = vld [vmem:[#allocation171_spill] sm:$0xff] }
 0x4f5   :  { %v9296_v30 = vsel %vm9168_vm7, %v9295_v4, %v9294_v2  ;;  %5359 = vmatprep.mubr.bf16.mxu1 %v20297_v56  ;;  %v17707_v27 = vadd.f32 %v20298_v15, %v4160_v38  ;;  %v20304_v2 = vld [vmem:[#allocation62_spill] sm:$0xff]  ;;  %v20311_v56 = vld [vmem:[#allocation172_spill] sm:$0xff]  ;;  %v20312_v15 = vld [vmem:[#allocation167_spill] sm:$0xff] }
 0x4f6   :  { %v9298_v26 = vsel %vm9171_vm8, %v9297_v10, %v9296_v30  ;;  %v20305_v10 = vld [vmem:[#allocation53_spill] sm:$0xff] }
 0x4f7   :  { %v9387_v42 = vpack.c.b16 %v9298_v26, %v9284_v35  ;;  %v12678_v24 = vpop.f32.mrb[164].mxu1  ;;  %v17709_v43 = vpop.f32.mrb[232].mxu0  ;;  %v20306_v38 = vpack.c.b16 %v20304_v2, %v20305_v10  ;;  %v20307_v35 = vld [vmem:[#allocation10_spill] sm:$0xff] }
 0x4f8   :  { %20299 = vst [vmem:[#allocation64_spill] sm:$0xff] %v17709_v43  ;;  %v4181_v55 = vadd.f32 %v12678_v24, %v20300_v20  ;;  %v4172_v61 = vpop.f32.mrb[165].mxu1  ;;  %v17712_v57 = vpop.f32.mrb[233].mxu0  ;;  %v20314_v24 = vld [vmem:[#allocation69_spill] sm:$0xff]  ;;  %v20332_v43 = vld [vmem:[#allocation82_spill] sm:$0xff] }
 0x4f9   :  { %20301 = vst [vmem:[#allocation63_spill] sm:$0xff] %v17712_v57  ;;  %12874 = vmatprep.mubr.msk.bf16.mxu0 %vm1016_vm11, %v9387_v42  ;;  %v4173_v48 = vadd.f32 %v4172_v61, %v20302_v50  ;;  %v12679_v4 = vpop.f32.mrb[166].mxu1  ;;  %v17716_v8 = vpop.f32.mrb[234].mxu0  ;;  %v20315_v20 = vld [vmem:[#allocation173_spill] sm:$0xff]  ;;  %v20317_v50 = vld [vmem:[#allocation75_spill] sm:$0xff] }
 0x4fa   :  { %20303 = vst [vmem:[#allocation150_spill] sm:$0xff] %v17716_v8  ;;  %12875 = vmatmul.mubr.msk.bf16.gmra.mrb[8].mxu0 %vm1016_vm11, %v20306_v38  ;;  %v4184_v47 = vadd.f32 %v12679_v4, %v20307_v35  ;;  %v4175_v30 = vpop.f32.mrb[167].mxu1  ;;  %v17723_v9 = vpop.f32.mrb[235].mxu0  ;;  %v17726_v41 = vadd.f32 %v20309_v6, %v4181_v55  ;;  %v20318_v4 = vld [vmem:[#allocation169_spill] sm:$0xff] }
 0x4fb   :  { %20308 = vst [vmem:[#allocation66_spill] sm:$0xff] %v17723_v9  ;;  %v4176_v26 = vadd.f32 %v4175_v30, %v20311_v56  ;;  %v17730_v42 = vadd.f32 %v20312_v15, %v4173_v48  ;;  %v20322_v30 = vld [vmem:[#allocation8_spill] sm:$0xff] }
 0x4fc   :  { %20310 = vst [vmem:[#allocation148_spill] sm:$0xff] %v17726_v41  ;;  %11977 = vmatmul.mubr.msk.bf16.gmra.mrb[16].mxu1 %vm15816_vm12, %v20314_v24  ;;  %v17736_v61 = vadd.f32 %v20315_v20, %v4184_v47  ;;  %v20324_v47 = vld [vmem:[#allocation57_spill] sm:$0xff] }
 0x4fd   :  { %20313 = vst [vmem:[#allocation70_spill] sm:$0xff] %v17730_v42  ;;  %5367 = vmatprep.mubr.bf16.mxu1 %v20317_v50  ;;  %v17740_v2 = vadd.f32 %v20318_v4, %v4176_v26  ;;  %v7856_v24 = vcombine.high %v20324_v47, %v20324_v47  ;;  %v7863_v26 = vrot.slane %v20324_v47, %v20098_v34  ;;  %v20335_v47 = vld [vmem:[#allocation74_spill] sm:$0xff] }
 0x4fe   :  { %20316 = vst [vmem:[#allocation50_spill] sm:$0xff] %v17736_v61 }
 0x4ff   :  { %20319 = vst [vmem:[#allocation78_spill] sm:$0xff] %v17740_v2  ;;  %v12682_v10 = vpop.f32.mrb[168].mxu1  ;;  %v17742_v55 = vpop.f32.mrb[236].mxu0 }
 0x500   :  { %20320 = vst [vmem:[#allocation153_spill] sm:$0xff] %v17742_v55  ;;  %v4197_v38 = vadd.f32 %v12682_v10, %v17018_v23  ;;  %v4188_v35 = vpop.f32.mrb[169].mxu1  ;;  %v17745_v48 = vpop.f32.mrb[237].mxu0  ;;  %v20326_v23 = vld [vmem:[#allocation11_spill] sm:$0xff]  ;;  %v20328_v55 = vld [vmem:[#allocation176_spill] sm:$0xff] }
 0x501   :  { %20321 = vst [vmem:[#allocation154_spill] sm:$0xff] %v17745_v48  ;;  %v4189_v6 = vadd.f32 %v4188_v35, %v20322_v30  ;;  %v12683_v56 = vpop.f32.mrb[170].mxu1  ;;  %v17748_v15 = vpop.f32.mrb[238].mxu0  ;;  %v20329_v35 = vld [vmem:[#allocation174_spill] sm:$0xff] }
 0x502   :  { %20323 = vst [vmem:[#allocation49_spill] sm:$0xff] %v17748_v15  ;;  %v4200_v20 = vadd.f32 %v12683_v56, %v17026_v22  ;;  %v4191_v50 = vpop.f32.mrb[171].mxu1  ;;  %v17755_v4 = vpop.f32.mrb[239].mxu0  ;;  %v17758_v10 = vadd.f32 %v20326_v23, %v4197_v38  ;;  %v20331_v15 = vld [vmem:[#allocation80_spill] sm:$0xff]  ;;  %v20333_v22 = vld [vmem:[#allocation177_spill] sm:$0xff]  ;;  %v7871_v23 = vcombine.high %v7863_v26, %v7863_v26 }
 0x503   :  { %20325 = vst [vmem:[#allocation73_spill] sm:$0xff] %v17755_v4  ;;  %v4192_v48 = vadd.f32 %v4191_v50, %v20328_v55  ;;  %v17762_v30 = vadd.f32 %v20329_v35, %v4189_v6  ;;  %v17766_v8 = vrot.slane %v20331_v15, %v20098_v34  ;;  %v7890_v38 = vcombine.high %v20331_v15, %v20331_v15  ;;  %v20336_v55 = vld [vmem:[#allocation175_spill] sm:$0xff]  ;;  %v20340_v15 = vld [vmem:[#allocation60_spill] sm:$0xff] }
 0x504   :  { %20327 = vst [vmem:[#allocation155_spill] sm:$0xff] %v17758_v10  ;;  %11981 = vmatmul.mubr.msk.bf16.gmra.mrb[20].mxu1 %vm15816_vm12, %v20332_v43  ;;  %v17772_v56 = vadd.f32 %v20333_v22, %v4200_v20  ;;  %v7870_v6 = vrot.slane %v7856_v24, %v20098_v34  ;;  %v11422_v63 = vrot.slane %v7871_v23, 9 }
 0x505   :  { %20330 = vst [vmem:[#allocation65_spill] sm:$0xff] %v17762_v30  ;;  %5375 = vmatprep.mubr.bf16.mxu1 %v20335_v47  ;;  %v17778_v50 = vadd.f32 %v20336_v55, %v4192_v48  ;;  %v7905_v43 = vcombine.high %v17766_v8, %v17766_v8  ;;  %v7880_v47 = vrot.slane %v20340_v15, %v20098_v34  ;;  %v20341_v55 = vld [vmem:[#allocation180_spill] sm:$0xff]  ;;  %v11429_v61 = vrot.slane %v17766_v8, 9 }
 0x506   :  { %20334 = vst [vmem:[#allocation152_spill] sm:$0xff] %v17772_v56  ;;  %v7904_v48 = vrot.slane %v7890_v38, %v20098_v34  ;;  %v20347_v56 = vld [vmem:[#allocation178_spill] sm:$0xff]  ;;  %v20350_v30 = vld [vmem:[#allocation76_spill] sm:$0xff] }
 0x507   :  { %20337 = vst [vmem:[#allocation93_spill] sm:$0xff] %v17778_v50  ;;  %v12686_v35 = vpop.f32.mrb[172].mxu1  ;;  %v17781_v4 = vpop.f32.mrb[240].mxu0 }
 0x508   :  { %20338 = vst [vmem:[#allocation87_spill] sm:$0xff] %v17781_v4  ;;  %v4213_v20 = vadd.f32 %v12686_v35, %v17087_v11  ;;  %v4204_v22 = vpop.f32.mrb[173].mxu1  ;;  %v17786_v9 = vpop.f32.mrb[241].mxu0  ;;  %v11423_v4 = vrot.slane %v7870_v6, 9  ;;  %v20344_v11 = vld [vmem:[#allocation181_spill] sm:$0xff] }
 0x509   :  { %20339 = vst [vmem:[#allocation160_spill] sm:$0xff] %v17786_v9  ;;  %v4205_v57 = vadd.f32 %v4204_v22, %v20341_v55  ;;  %v12687_v24 = vpop.f32.mrb[174].mxu1  ;;  %v17792_v37 = vpop.f32.mrb[242].mxu0  ;;  %v11421_v9 = vrot.slane %v7863_v26, 9  ;;  %v20349_v22 = vld [vmem:[#allocation81_spill] sm:$0xff] }
 0x50a   :  { %20342 = vst [vmem:[#allocation88_spill] sm:$0xff] %v17792_v37  ;;  %v4216_v59 = vadd.f32 %v12687_v24, %v17091_v39  ;;  %v4207_v51 = vpop.f32.mrb[175].mxu1  ;;  %v17795_v54 = vpop.f32.mrb[243].mxu0  ;;  %v17798_v35 = vadd.f32 %v20344_v11, %v4213_v20  ;;  %v17806_v55 = vrot.slane %v20349_v22, %v20098_v34  ;;  %v11430_v37 = vrot.slane %v7905_v43, 9  ;;  %v20351_v39 = vld [vmem:[#allocation183_spill] sm:$0xff] }
 0x50b   :  { %20343 = vst [vmem:[#allocation157_spill] sm:$0xff] %v17795_v54  ;;  %v4208_v50 = vadd.f32 %v4207_v51, %v20346_v12  ;;  %v17802_v38 = vadd.f32 %v20347_v56, %v4205_v57  ;;  %v7872_v20 = vcombine.high %v7870_v6, %v7870_v6  ;;  %v11425_v11 = vrot.slane %v7880_v47, 9  ;;  %v20354_v12 = vld [vmem:[#allocation179_spill] sm:$0xff] }
 0x50c   :  { %20345 = vst [vmem:[#allocation56_spill] sm:$0xff] %v17798_v35  ;;  %11985 = vmatmul.mubr.msk.bf16.gmra.mrb[24].mxu1 %vm15816_vm12, %v20350_v30  ;;  %v17812_v24 = vadd.f32 %v20351_v39, %v4216_v59  ;;  %v11431_v54 = vrot.slane %v7904_v48, 9  ;;  %v20353_v35 = vld [vmem:[#allocation19_spill] sm:$0xff]  ;;  %v8601_v57 = vadd.f32 %v11422_v63, %v7871_v23  ;;  %v8602_v56 = vadd.f32 %v11423_v4, %v7870_v6 }
 0x50d   :  { %20348 = vst [vmem:[#allocation67_spill] sm:$0xff] %v17802_v38  ;;  %5383 = vmatprep.mubr.bf16.mxu1 %v20353_v35  ;;  %v17816_v51 = vadd.f32 %v20354_v12, %v4208_v50  ;;  %v8600_v38 = vadd.f32 %v11421_v9, %v7863_v26  ;;  %v11433_v30 = vrot.slane %v17806_v55, 9  ;;  %v8609_v59 = vadd.f32 %v11430_v37, %v7905_v43 }
 0x50e   :  { %20352 = vst [vmem:[#allocation158_spill] sm:$0xff] %v17812_v24  ;;  %v11424_v35 = vrot.slane %v7872_v20, 9  ;;  %v8604_v41 = vadd.f32 %v11425_v11, %v7880_v47  ;;  %v8610_v50 = vadd.f32 %v11431_v54, %v7904_v48  ;;  %v8729_v26 = vmul.f32 0.25, %v8601_v57  ;;  %v20359_v57 = vld [vmem:[#allocation23_spill] sm:$0xff] }
 0x50f   :  { %v12690_v10 = vpop.f32.mrb[176].mxu1  ;;  %v17818_v2 = vpop.f32.mrb[244].mxu0  ;;  %v8730_v6 = vmul.f32 0.25, %v8602_v56  ;;  %v8728_v37 = vmul.f32 0.25, %v8600_v38  ;;  %v8737_v11 = vmul.f32 0.25, %v8609_v59  ;;  %v17852_v56 = vcombine.high %v7880_v47, %v7880_v47 }
 0x510   :  { %20355 = vst [vmem:[#allocation79_spill] sm:$0xff] %v17818_v2  ;;  %v4229_v39 = vadd.f32 %v12690_v10, %v17157_v46  ;;  %v4220_v24 = vpop.f32.mrb[177].mxu1  ;;  %v17823_v42 = vpop.f32.mrb[245].mxu0  ;;  %v7906_v10 = vcombine.high %v7904_v48, %v7904_v48  ;;  %v8738_v38 = vmul.f32 0.25, %v8610_v50  ;;  %v20360_v48 = vld [vmem:[#allocation17_spill] sm:$0xff] }
 0x511   :  { %20356 = vst [vmem:[#allocation156_spill] sm:$0xff] %v17823_v42  ;;  %v4221_v63 = vadd.f32 %v4220_v24, %v17126_v17  ;;  %v12691_v4 = vpop.f32.mrb[178].mxu1  ;;  %v17826_v9 = vpop.f32.mrb[246].mxu0  ;;  %v8608_v17 = vadd.f32 %v11429_v61, %v17766_v8  ;;  %v8612_v24 = vadd.f32 %v11433_v30, %v17806_v55  ;;  %v8857_v8 = vpack.c.bf16 %v8729_v26, %v8729_v26  ;;  %v20383_v42 = vld [vmem:[#allocation20_spill] sm:$0xff] }
 0x512   :  { %20357 = vst [vmem:[#allocation166_spill] sm:$0xff] %v17826_v9  ;;  %v4232_v23 = vadd.f32 %v12691_v4, %v17165_v28  ;;  %v4223_v12 = vpop.f32.mrb[179].mxu1  ;;  %v17829_v2 = vpop.f32.mrb[247].mxu0  ;;  %v17832_v46 = vadd.f32 %v17128_v49, %v4229_v39  ;;  %v8732_v49 = vmul.f32 0.25, %v8604_v41  ;;  %v8858_v61 = vpack.c.bf16 %v8730_v6, %v8730_v6  ;;  %v20377_v9 = vld [vmem:[#allocation14_spill] sm:$0xff] }
 0x513   :  { %20358 = vst [vmem:[#allocation162_spill] sm:$0xff] %v17829_v2  ;;  %v4224_v43 = vadd.f32 %v4223_v12, %v17134_v21  ;;  %v17836_v54 = vadd.f32 %v17089_v5, %v4221_v63  ;;  %v7873_v5 = vcombine.high %v20340_v15, %v20340_v15  ;;  %v8603_v30 = vadd.f32 %v11424_v35, %v7872_v20  ;;  %v20379_v2 = vld [vmem:[#allocation29_spill] sm:$0xff] }
 0x514   :  { %11989 = vmatmul.mubr.msk.bf16.gmra.mrb[28].mxu1 %vm15816_vm12, %v20359_v57  ;;  %v17844_v28 = vadd.f32 %v17136_v19, %v4232_v23  ;;  %v8856_v59 = vpack.c.bf16 %v8728_v37, %v8728_v37  ;;  %v11432_v39 = vrot.slane %v7906_v10, 9  ;;  %v8736_v41 = vmul.f32 0.25, %v8608_v17 }
 0x515   :  { %5391 = vmatprep.mubr.bf16.mxu1 %v20360_v48  ;;  %v17848_v21 = vadd.f32 %v17093_v31, %v4224_v43  ;;  %v8740_v50 = vmul.f32 0.25, %v8612_v24  ;;  %v8865_v4 = vpack.c.bf16 %v8737_v11, %v8737_v11  ;;  %v8860_v43 = vpack.c.bf16 %v8732_v49, %v8732_v49 }
 0x516   :  { %v7907_v15 = vcombine.high %v20349_v22, %v20349_v22  ;;  %v8866_v47 = vpack.c.bf16 %v8738_v38, %v8738_v38  ;;  %v17864_v6 = vunpack.c.l.b16 %v8857_v8  ;;  %v17866_v37 = vunpack.c.l.b16 %v8858_v61  ;;  %v20366_v61 = vld [vmem:[#allocation13_spill] sm:$0xff] }
 0x517   :  { %v12694_v63 = vpop.f32.mrb[180].mxu1  ;;  %v17854_v19 = vpop.f32.mrb[248].mxu0  ;;  %v7922_v22 = vcombine.high %v17806_v55, %v17806_v55  ;;  %v8611_v57 = vadd.f32 %v11432_v39, %v7906_v10  ;;  %v8864_v38 = vpack.c.bf16 %v8736_v41, %v8736_v41  ;;  %v8868_v48 = vpack.c.bf16 %v8740_v50, %v8740_v50 }
 0x518   :  { %20361 = vst [vmem:[#allocation168_spill] sm:$0xff] %v17854_v19  ;;  %v4245_v23 = vadd.f32 %v12694_v63, %v17209_v25  ;;  %v4236_v31 = vpop.f32.mrb[181].mxu1  ;;  %v17857_v12 = vpop.f32.mrb[249].mxu0  ;;  %v17880_v8 = vunpack.c.l.b16 %v8865_v4  ;;  %v7887_v63 = vrot.slane %v7873_v5, %v20098_v34  ;;  %v7921_v55 = vrot.slane %v7907_v15, %v20098_v34  ;;  %v20373_v5 = vld [vmem:[#allocation188_spill] sm:$0xff]  ;;  %v20374_v19 = vld [vmem:[#allocation21_spill] sm:$0xff] }
 0x519   :  { %20362 = vst [vmem:[#allocation164_spill] sm:$0xff] %v17857_v12  ;;  %v4237_v20 = vadd.f32 %v4236_v31, %v17183_v7  ;;  %v12695_v35 = vpop.f32.mrb[182].mxu1  ;;  %v17862_v26 = vpop.f32.mrb[250].mxu0  ;;  %v17890_v10 = vunpack.c.l.b16 %v8866_v47  ;;  %v11426_v41 = vrot.slane %v17852_v56, 9  ;;  %v8731_v50 = vmul.f32 0.25, %v8603_v30  ;;  %v20376_v12 = vld [vmem:[#allocation184_spill] sm:$0xff] }
 0x51a   :  { %20363 = vst [vmem:[#allocation72_spill] sm:$0xff] %v17862_v26  ;;  %v4248_v17 = vadd.f32 %v12695_v35, %v17218_v33  ;;  %v4239_v25 = vpop.f32.mrb[183].mxu1  ;;  %v17869_v24 = vpop.f32.mrb[251].mxu0  ;;  %v17872_v11 = vadd.f32 %v17185_v45, %v4245_v23  ;;  %v20365_v33 = vld [vmem:[#allocation18_spill] sm:$0xff]  ;;  %v17897_v4 = vunpack.c.l.b16 %v8856_v59  ;;  %v17899_v23 = vunpack.c.l.b16 %v8860_v43  ;;  %v20372_v43 = vld [vmem:[#allocation15_spill] sm:$0xff] }
 0x51b   :  { %20364 = vst [vmem:[#allocation163_spill] sm:$0xff] %v17869_v24  ;;  %v4240_v7 = vadd.f32 %v4239_v25, %v17187_v53  ;;  %v17878_v49 = vadd.f32 %v17159_v3, %v4237_v20  ;;  %v20368_v53 = vld [vmem:[#allocation27_spill] sm:$0xff]  ;;  %v20369_v3 = vld [vmem:[#allocation16_spill] sm:$0xff]  ;;  %v11434_v20 = vrot.slane %v7922_v22, 9  ;;  %v8739_v15 = vmul.f32 0.25, %v8611_v57 }
 0x51c   :  { %11993 = vmatmul.mubr.msk.bf16.gmra.mrb[32].mxu1 %vm15816_vm12, %v20365_v33  ;;  %v17886_v45 = vadd.f32 %v20366_v61, %v4248_v17  ;;  %v17903_v35 = vunpack.c.l.b16 %v8864_v38  ;;  %v17905_v17 = vunpack.c.l.b16 %v8868_v48  ;;  %v7923_v31 = vcombine.high %v7921_v55, %v7921_v55 }
 0x51d   :  { %5399 = vmatprep.mubr.bf16.mxu1 %v20368_v53  ;;  %v17894_v39 = vadd.f32 %v20369_v3, %v4240_v7  ;;  %v20371_v7 = vld [vmem:[#allocation186_spill] sm:$0xff]  ;;  %v7889_v3 = vcombine.high %v7887_v63, %v7887_v63  ;;  %v11427_v48 = vrot.slane %v7887_v63, 9  ;;  %v11435_v24 = vrot.slane %v7921_v55, 9 }
 0x51e   :  { %20367 = vst [vmem:[#allocation159_spill] sm:$0xff] %v17886_v45  ;;  %v11436_v59 = vrot.slane %v7923_v31, 9 }
 0x51f   :  { %20370 = vst [vmem:[#allocation165_spill] sm:$0xff] %v17894_v39  ;;  %v12698_v47 = vpop.f32.mrb[184].mxu1  ;;  %v8859_v39 = vpack.c.bf16 %v8731_v50, %v8731_v50 }
 0x520   :  { %v4261_v33 = vadd.f32 %v12698_v47, %v20371_v7  ;;  %v4252_v30 = vpop.f32.mrb[185].mxu1  ;;  %v11428_v7 = vrot.slane %v7889_v3, 9 }
 0x521   :  { %v4253_v61 = vadd.f32 %v4252_v30, %v20372_v43  ;;  %v12699_v53 = vpop.f32.mrb[186].mxu1  ;;  %v20380_v30 = vld [vmem:[#allocation185_spill] sm:$0xff] }
 0x522   :  { %v4264_v26 = vadd.f32 %v12699_v53, %v20373_v5  ;;  %v4255_v57 = vpop.f32.mrb[187].mxu1  ;;  %v17913_v38 = vadd.f32 %v20374_v19, %v4261_v33  ;;  %v8605_v5 = vadd.f32 %v11426_v41, %v17852_v56  ;;  %v8606_v19 = vadd.f32 %v11427_v48, %v7887_v63  ;;  %v20382_v53 = vld [vmem:[#allocation24_spill] sm:$0xff]  ;;  %v20385_v48 = vld [vmem:[#allocation191_spill] sm:$0xff] }
 0x523   :  { %v4256_v25 = vadd.f32 %v4255_v57, %v20376_v12  ;;  %v17917_v47 = vadd.f32 %v20377_v9, %v4253_v61  ;;  %v8613_v33 = vadd.f32 %v11434_v20, %v7922_v22  ;;  %v8607_v9 = vadd.f32 %v11428_v7, %v7889_v3 }
 0x524   :  { %20375 = vst [vmem:[#allocation68_spill] sm:$0xff] %v17913_v38  ;;  %11997 = vmatmul.mubr.msk.bf16.gmra.mrb[36].mxu1 %vm15816_vm12, %v20379_v2  ;;  %v17923_v43 = vadd.f32 %v20380_v30, %v4264_v26  ;;  %v8614_v61 = vadd.f32 %v11435_v24, %v7921_v55  ;;  %v8615_v57 = vadd.f32 %v11436_v59, %v7923_v31  ;;  %v8733_v34 = vmul.f32 0.25, %v8605_v5 }
 0x525   :  { %20378 = vst [vmem:[#allocation161_spill] sm:$0xff] %v17917_v47  ;;  %5407 = vmatprep.mubr.bf16.mxu1 %v20382_v53  ;;  %v17928_v12 = vadd.f32 %v20383_v42, %v4256_v25  ;;  %v8734_v47 = vmul.f32 0.25, %v8606_v19  ;;  %v8741_v38 = vmul.f32 0.25, %v8613_v33  ;;  %v8735_v45 = vmul.f32 0.25, %v8607_v9  ;;  %v20384_v42 = vld [vmem:[#allocation190_spill] sm:$0xff]  ;;  %v20386_v19 = vld [vmem:[#allocation192_spill] sm:$0xff] }
 0x526   :  { %20381 = vst [vmem:[#allocation9_spill] sm:$0xff] %v17923_v43  ;;  %v8742_v26 = vmul.f32 0.25, %v8614_v61  ;;  %v8743_v30 = vmul.f32 0.25, %v8615_v57  ;;  %v8867_v43 = vpack.c.bf16 %v8739_v15, %v8739_v15  ;;  %v8861_v63 = vpack.c.bf16 %v8733_v34, %v8733_v34  ;;  %v20387_v33 = vld [vmem:[#allocation187_spill] sm:$0xff]  ;;  %v20388_v53 = vld [vmem:[#allocation26_spill] sm:$0xff] }
 0x527   :  { %v12702_v2 = vpop.f32.mrb[188].mxu1  ;;  %v8862_v41 = vpack.c.bf16 %v8734_v47, %v8734_v47  ;;  %v8869_v20 = vpack.c.bf16 %v8741_v38, %v8741_v38  ;;  %v8863_v24 = vpack.c.bf16 %v8735_v45, %v8735_v45  ;;  %v9123_v5 = vunpack.c.l.b16 %v8859_v39  ;;  %v20389_v45 = vld [vmem:[#allocation193_spill] sm:$0xff] }
 0x528   :  { %v4277_v56 = vadd.f32 %v12702_v2, %v17319_v29  ;;  %v4268_v22 = vpop.f32.mrb[189].mxu1  ;;  %v8870_v55 = vpack.c.bf16 %v8742_v26, %v8742_v26  ;;  %v8871_v31 = vpack.c.bf16 %v8743_v30, %v8743_v30  ;;  %v9125_v15 = vunpack.c.l.b16 %v8861_v63  ;;  %v20390_v2 = vld [vmem:[#allocation36_spill] sm:$0xff]  ;;  %v20391_v39 = vld [vmem:[#allocation189_spill] sm:$0xff] }
 0x529   :  { %v4269_v25 = vadd.f32 %v4268_v22, %v20384_v42  ;;  %v12703_v3 = vpop.f32.mrb[190].mxu1  ;;  %v9126_v38 = vunpack.c.l.b16 %v8862_v41  ;;  %v9127_v47 = vunpack.c.l.b16 %v8863_v24  ;;  %v9133_v61 = vunpack.c.l.b16 %v8869_v20 }
 0x52a   :  { %v4280_v59 = vadd.f32 %v12703_v3, %v17325_v32  ;;  %v4271_v50 = vpop.f32.mrb[191].mxu1  ;;  %v17934_v7 = vadd.f32 %v20385_v48, %v4277_v56  ;;  %v9131_v32 = vunpack.c.l.b16 %v8867_v43  ;;  %v9134_v57 = vunpack.c.l.b16 %v8870_v55 }
 0x52b   :  { %v4272_v29 = vadd.f32 %v4271_v50, %v20386_v19  ;;  %v17938_v34 = vadd.f32 %v20387_v33, %v4269_v25  ;;  %v9135_v30 = vunpack.c.l.b16 %v8871_v31  ;;  %v20392_v56 = vrot.slane %v17864_v6, 7 }
 0x52c   :  { %12001 = vmatmul.mubr.msk.bf16.gmra.mrb[40].mxu1 %vm15816_vm12, %v20388_v53  ;;  %v17944_v9 = vadd.f32 %v20389_v45, %v4280_v59  ;;  %v9331_v63 = vrot.slane %v9123_v5, 5  ;;  %v20393_v41 = vrot.slane %v17866_v37, 6  ;;  %v9333_v43 = vrot.slane %v17899_v23, 4  ;;  %v20396_v53 = vld [vmem:[#allocation119_spill] sm:$0xff] }
 0x52d   :  { %5415 = vmatprep.mubr.bf16.mxu1 %v20390_v2  ;;  %v17948_v26 = vadd.f32 %v20391_v39, %v4272_v29  ;;  %v9328_v22 = vsel %vm9153_vm2, %v20392_v56, %v17897_v4  ;;  %v9335_v20 = vrot.slane %v9125_v15, 3  ;;  %v9337_v25 = vrot.slane %v9126_v38, 2  ;;  %v20397_v2 = vld [vmem:[#allocation39_spill] sm:$0xff] }
 0x52e   :  { %v9330_v42 = vsel %vm9156_vm3, %v20393_v41, %v9328_v22  ;;  %v9339_v55 = vrot.slane %v9127_v47, 1  ;;  %v20394_v31 = vrot.slane %v17880_v8, 7  ;;  %v9345_v59 = vrot.slane %v9131_v32, 5  ;;  %v20399_v22 = vld [vmem:[#allocation126_spill] sm:$0xff] }
 0x52f   :  { %v12722_v3 = vpop.f32.mrb[192].mxu1  ;;  %v9332_v24 = vsel %vm9159_vm4, %v9331_v63, %v9330_v42  ;;  %v20395_v23 = vrot.slane %v17890_v10, 6  ;;  %v9347_v5 = vrot.slane %v17905_v17, 4  ;;  %v9349_v29 = vrot.slane %v9133_v61, 3  ;;  %v20398_v61 = vld [vmem:[#allocation31_spill] sm:$0xff]  ;;  %v20400_v42 = vld [vmem:[#allocation122_spill] sm:$0xff] }
 0x530   :  { %v9342_v6 = vsel %vm9153_vm2, %v20394_v31, %v17903_v35  ;;  %v17964_v4 = vadd.f32 %v12722_v3, %v17365_v14  ;;  %v4750_v37 = vpop.f32.mrb[193].mxu1  ;;  %v9334_v50 = vsel %vm9162_vm5, %v9333_v43, %v9332_v24  ;;  %v9351_v47 = vrot.slane %v9134_v57, 2  ;;  %v20404_v24 = vld [vmem:[#allocation128_spill] sm:$0xff] }
 0x531   :  { %v9344_v48 = vsel %vm9156_vm3, %v20395_v23, %v9342_v6  ;;  %v17972_v15 = vadd.f32 %v4750_v37, %v17370_v62  ;;  %v12723_v19 = vpop.f32.mrb[194].mxu1  ;;  %v9336_v8 = vsel %vm9165_vm6, %v9335_v20, %v9334_v50  ;;  %v9353_v32 = vrot.slane %v9135_v30, 1  ;;  %v20401_v20 = vld [vmem:[#allocation54_spill] sm:$0xff]  ;;  %v20405_v6 = vld [vmem:[#allocation123_spill] sm:$0xff]  ;;  %v20407_v50 = vld [vmem:[#allocation45_spill] sm:$0xff] }
 0x532   :  { %v9346_v35 = vsel %vm9159_vm4, %v9345_v59, %v9344_v48  ;;  %v17977_v14 = vadd.f32 %v12723_v19, %v17376_v1  ;;  %v4753_v33 = vpop.f32.mrb[195].mxu1  ;;  %v9338_v38 = vsel %vm9168_vm7, %v9337_v25, %v9336_v8  ;;  %v20402_v25 = vld [vmem:[#allocation52_spill] sm:$0xff]  ;;  %v20406_v37 = vld [vmem:[#allocation35_spill] sm:$0xff]  ;;  %v20409_v8 = vld [vmem:[#allocation121_spill] sm:$0xff] }
 0x533   :  { %v9348_v10 = vsel %vm9162_vm5, %v9347_v5, %v9346_v35  ;;  %v17982_v17 = vadd.f32 %v4753_v33, %v20396_v53  ;;  %v9340_v62 = vsel %vm9171_vm8, %v9339_v55, %v9338_v38  ;;  %v20403_v3 = vpack.c.b16 %v20401_v20, %v20402_v25  ;;  %v20408_v48 = vld [vmem:[#allocation100_spill] sm:$0xff]  ;;  %v20410_v33 = vld [vmem:[#allocation134_spill] sm:$0xff]  ;;  %v20420_v20 = vld [vmem:[#allocation105_spill] sm:$0xff] }
 0x534   :  { %v9350_v45 = vsel %vm9165_vm6, %v9349_v29, %v9348_v10  ;;  %12005 = vmatmul.mubr.msk.bf16.gmra.mrb[44].mxu1 %vm15816_vm12, %v20397_v2  ;;  %v20412_v53 = vld [vmem:[#allocation130_spill] sm:$0xff] }
 0x535   :  { %v9352_v1 = vsel %vm9168_vm7, %v9351_v47, %v9350_v45  ;;  %5423 = vmatprep.mubr.bf16.mxu1 %v20398_v61  ;;  %v18022_v47 = vpop.f32.mrb[252].mxu0 }
 0x536   :  { %v9354_v39 = vsel %vm9171_vm8, %v9353_v32, %v9352_v1  ;;  %20411 = vst [vmem:[#allocation170_spill] sm:$0xff] %v18022_v47  ;;  %v18027_v45 = vpop.f32.mrb[253].mxu0  ;;  %v20414_v32 = vld [vmem:[#allocation47_spill] sm:$0xff]  ;;  %v20416_v1 = vld [vmem:[#allocation40_spill] sm:$0xff] }
 0x537   :  { %v9389_v56 = vpack.c.b16 %v9354_v39, %v9340_v62  ;;  %v12726_v57 = vpop.f32.mrb[196].mxu1  ;;  %20413 = vst [vmem:[#allocation62_spill] sm:$0xff] %v18027_v45  ;;  %v18032_v2 = vpop.f32.mrb[254].mxu0 }
 0x538   :  { %v17993_v63 = vadd.f32 %v12726_v57, %v20399_v22  ;;  %v4766_v41 = vpop.f32.mrb[197].mxu1  ;;  %20415 = vst [vmem:[#allocation53_spill] sm:$0xff] %v18032_v2  ;;  %v18035_v61 = vpop.f32.mrb[255].mxu0 }
 0x539   :  { %12878 = vmatprep.mubr.msk.bf16.mxu0 %vm1016_vm11, %v9389_v56  ;;  %v17997_v30 = vadd.f32 %v4766_v41, %v20400_v42  ;;  %v12727_v43 = vpop.f32.mrb[198].mxu1  ;;  %20417 = vst [vmem:[#allocation10_spill] sm:$0xff] %v18035_v61  ;;  %v20418_v56 = vld [vmem:[#allocation127_spill] sm:$0xff]  ;;  %v20419_v41 = vld [vmem:[#allocation42_spill] sm:$0xff] }
 0x53a   :  { %12879 = vmatmul.mubr.msk.bf16.gmra.mrb[12].mxu0 %vm1016_vm11, %v20403_v3  ;;  %v18004_v55 = vadd.f32 %v12727_v43, %v20404_v24  ;;  %v4769_v31 = vpop.f32.mrb[199].mxu1  ;;  %v20446_v61 = vld [vmem:[#allocation146_spill] sm:$0xff] }
 0x53b   :  { %v18007_v59 = vadd.f32 %v4769_v31, %v20405_v6  ;;  %v20422_v31 = vld [vmem:[#allocation133_spill] sm:$0xff] }
 0x53c   :  { %12009 = vmatmul.mubr.msk.bf16.gmra.mrb[48].mxu1 %vm15816_vm12, %v20406_v37 }
 0x53d   :  { %5431 = vmatprep.mubr.bf16.mxu1 %v20407_v50  ;;  %v20423_v50 = vld [vmem:[#allocation44_spill] sm:$0xff] }
 0x53f   :  { %v12730_v23 = vpop.f32.mrb[200].mxu1 }
 0x540   :  { %v18014_v5 = vadd.f32 %v12730_v23, %v20408_v48  ;;  %v4782_v19 = vpop.f32.mrb[201].mxu1  ;;  %v20424_v23 = vmov 0  }
 0x541   :  { %v18017_v35 = vadd.f32 %v4782_v19, %v20409_v8  ;;  %v12731_v29 = vpop.f32.mrb[202].mxu1  ;;  %v20425_v19 = vld [vmem:[#allocation138_spill] sm:$0xff] }
 0x542   :  { %v18020_v38 = vadd.f32 %v12731_v29, %v20410_v33  ;;  %v4785_v10 = vpop.f32.mrb[203].mxu1  ;;  %v20427_v33 = vld [vmem:[#allocation143_spill] sm:$0xff] }
 0x543   :  { %v18025_v62 = vadd.f32 %v4785_v10, %v20412_v53 }
 0x544   :  { %12013 = vmatmul.mubr.msk.bf16.gmra.mrb[52].mxu1 %vm15816_vm12, %v20414_v32  ;;  %v20429_v32 = vld [vmem:[#allocation139_spill] sm:$0xff] }
 0x545   :  { %5439 = vmatprep.mubr.bf16.mxu1 %v20416_v1 }
 0x547   :  { %v12734_v39 = vpop.f32.mrb[204].mxu1 }
 0x548   :  { %v18038_v57 = vadd.f32 %v12734_v39, %v20418_v56  ;;  %v4798_v22 = vpop.f32.mrb[205].mxu1  ;;  %v20431_v56 = vld [vmem:[#allocation140_spill] sm:$0xff] }
 0x549   :  { %v18041_v42 = vadd.f32 %v4798_v22, %v20419_v41  ;;  %v12735_v43 = vpop.f32.mrb[206].mxu1  ;;  %v20433_v41 = vld [vmem:[#allocation48_spill] sm:$0xff] }
 0x54a   :  { %v18044_v25 = vadd.f32 %v12735_v43, %v20420_v20  ;;  %v4801_v3 = vpop.f32.mrb[207].mxu1  ;;  %v18046_v24 = vpop.f32.mrb[0].mxu0  ;;  %v20434_v20 = vld [vmem:[#allocation112_spill] sm:$0xff] }
 0x54b   :  { %v18049_v6 = vadd.f32 %v4801_v3, %v20422_v31  ;;  %v18051_v37 = vpop.f32.mrb[1].mxu0 }
 0x54c   :  { %20421 = vst [vmem:[#allocation171_spill] sm:$0xff] %v18044_v25  ;;  %12017 = vmatmul.mubr.msk.bf16.gmra.mrb[56].mxu1 %vm15816_vm12, %v20423_v50  ;;  %v20436_v50 = vld [vmem:[#allocation137_spill] sm:$0xff] }
 0x54d   :  { %5447 = vmatprep.mubr.bf16.mxu1 %v20424_v23 }
 0x54f   :  { %v12738_v48 = vpop.f32.mrb[208].mxu1 }
 0x550   :  { %v18058_v8 = vadd.f32 %v12738_v48, %v20425_v19  ;;  %v4814_v29 = vpop.f32.mrb[209].mxu1 }
 0x551   :  { %v18061_v10 = vadd.f32 %v4814_v29, %v20427_v33  ;;  %v12739_v53 = vpop.f32.mrb[210].mxu1  ;;  %v18077_v29 = vpop.f32.mrb[2].mxu0  ;;  %v20438_v33 = vld [vmem:[#allocation28_spill] sm:$0xff] }
 0x552   :  { %20426 = vst [vmem:[#allocation172_spill] sm:$0xff] %v18058_v8  ;;  %v18064_v1 = vadd.f32 %v12739_v53, %v20429_v32  ;;  %v4817_v39 = vpop.f32.mrb[211].mxu1  ;;  %v18085_v2 = vpop.f32.mrb[3].mxu0 }
 0x553   :  { %20428 = vst [vmem:[#allocation167_spill] sm:$0xff] %v18061_v10  ;;  %v18067_v22 = vadd.f32 %v4817_v39, %v20431_v56  ;;  %v20440_v39 = vld [vmem:[#allocation22_spill] sm:$0xff] }
 0x554   :  { %20430 = vst [vmem:[#allocation69_spill] sm:$0xff] %v18064_v1  ;;  %5448 = vmatmul.mubr.bf16.gmra.mrb[60].mxu1 %v20424_v23 }
 0x555   :  { %20432 = vst [vmem:[#allocation173_spill] sm:$0xff] %v18067_v22  ;;  %5455 = vmatprep.mubr.bf16.mxu1 %v20433_v41  ;;  %v20442_v41 = vld [vmem:[#allocation51_spill] sm:$0xff] }
 0x557   :  { %v12742_v43 = vpop.f32.mrb[212].mxu1 }
 0x558   :  { %v18072_v3 = vadd.f32 %v12742_v43, %v20434_v20  ;;  %v4830_v31 = vpop.f32.mrb[213].mxu1  ;;  %v20443_v43 = vld [vmem:[#allocation59_spill] sm:$0xff] }
 0x559   :  { %v18075_v48 = vadd.f32 %v4830_v31, %v20436_v50  ;;  %v12743_v19 = vpop.f32.mrb[214].mxu1  ;;  %v20444_v31 = vld [vmem:[#allocation118_spill] sm:$0xff] }
 0x55a   :  { %20435 = vst [vmem:[#allocation75_spill] sm:$0xff] %v18072_v3  ;;  %v18080_v53 = vadd.f32 %v12743_v19, %v20438_v33  ;;  %v4833_v32 = vpop.f32.mrb[215].mxu1 }
 0x55b   :  { %20437 = vst [vmem:[#allocation169_spill] sm:$0xff] %v18075_v48  ;;  %v18083_v56 = vadd.f32 %v4833_v32, %v20440_v39 }
 0x55c   :  { %20439 = vst [vmem:[#allocation8_spill] sm:$0xff] %v18080_v53  ;;  %12021 = vmatmul.mubr.msk.bf16.gmra.mrb[64].mxu1 %vm15816_vm12, %v20442_v41  ;;  %v20450_v53 = vld [vmem:[#allocation71_spill] sm:$0xff] }
 0x55d   :  { %20441 = vst [vmem:[#allocation57_spill] sm:$0xff] %v18083_v56  ;;  %5463 = vmatprep.mubr.bf16.mxu1 %v20443_v43  ;;  %v20451_v41 = vld [vmem:[#allocation55_spill] sm:$0xff] }
 0x55f   :  { %v12746_v20 = vpop.f32.mrb[216].mxu1 }
 0x560   :  { %v18092_v50 = vadd.f32 %v12746_v20, %v20444_v31  ;;  %v4846_v47 = vpop.f32.mrb[217].mxu1 }
 0x561   :  { %v18095_v19 = vadd.f32 %v4846_v47, %v20446_v61  ;;  %v12747_v33 = vpop.f32.mrb[218].mxu1 }
 0x562   :  { %20445 = vst [vmem:[#allocation11_spill] sm:$0xff] %v18092_v50  ;;  %v18098_v32 = vadd.f32 %v12747_v33, %v17616_v0  ;;  %v4849_v39 = vpop.f32.mrb[219].mxu1 }
 0x563   :  { %20447 = vst [vmem:[#allocation176_spill] sm:$0xff] %v18095_v19  ;;  %v18101_v45 = vadd.f32 %v4849_v39, %v17621_v60  ;;  %v20456_v39 = vld [vmem:[#allocation58_spill] sm:$0xff] }
 0x564   :  { %20448 = vst [vmem:[#allocation174_spill] sm:$0xff] %v18098_v32  ;;  %12025 = vmatmul.mubr.msk.bf16.gmra.mrb[68].mxu1 %vm15816_vm12, %v20450_v53  ;;  %v20457_v53 = vld [vmem:[#allocation84_spill] sm:$0xff] }
 0x565   :  { %20449 = vst [vmem:[#allocation80_spill] sm:$0xff] %v18101_v45  ;;  %5471 = vmatprep.mubr.bf16.mxu1 %v20451_v41 }
 0x567   :  { %v12750_v43 = vpop.f32.mrb[220].mxu1 }
 0x568   :  { %v18108_v20 = vadd.f32 %v12750_v43, %v17639_v40  ;;  %v4862_v47 = vpop.f32.mrb[221].mxu1 }
 0x569   :  { %v18111_v61 = vadd.f32 %v4862_v47, %v17643_v58  ;;  %v12751_v0 = vpop.f32.mrb[222].mxu1 }
 0x56a   :  { %20452 = vst [vmem:[#allocation82_spill] sm:$0xff] %v18108_v20  ;;  %v18114_v31 = vadd.f32 %v12751_v0, %v17649_v18  ;;  %v4865_v60 = vpop.f32.mrb[223].mxu1 }
 0x56b   :  { %20453 = vst [vmem:[#allocation177_spill] sm:$0xff] %v18111_v61  ;;  %v18117_v33 = vadd.f32 %v4865_v60, %v17653_v13  ;;  %v20462_v60 = vld [vmem:[#allocation86_spill] sm:$0xff]  ;;  %v18362_v61 = vld [vmem:[%s19392_s4] ss:$0 sm:$0xff] }
 0x56c   :  { %20454 = vst [vmem:[#allocation74_spill] sm:$0xff] %v18114_v31  ;;  %12029 = vmatmul.mubr.msk.bf16.gmra.mrb[72].mxu1 %vm15816_vm12, %v20456_v39  ;;  %v20463_v39 = vld [vmem:[#allocation77_spill] sm:$0xff] }
 0x56d   :  { %20455 = vst [vmem:[#allocation175_spill] sm:$0xff] %v18117_v33  ;;  %5479 = vmatprep.mubr.bf16.mxu1 %v20457_v53  ;;  %v20464_v53 = vld [vmem:[#allocation148_spill] sm:$0xff] }
 0x56f   :  { %v12754_v40 = vpop.f32.mrb[224].mxu1 }
 0x570   :  { %v18124_v41 = vadd.f32 %v12754_v40, %v17696_v52  ;;  %v4878_v58 = vpop.f32.mrb[225].mxu1 }
 0x571   :  { %v18127_v43 = vadd.f32 %v4878_v58, %v17699_v44  ;;  %v12755_v18 = vpop.f32.mrb[226].mxu1  ;;  %v20466_v58 = vld [vmem:[#allocation70_spill] sm:$0xff] }
 0x572   :  { %20458 = vst [vmem:[#allocation60_spill] sm:$0xff] %v18124_v41  ;;  %v18130_v47 = vadd.f32 %v12755_v18, %v17702_v16  ;;  %v4881_v13 = vpop.f32.mrb[227].mxu1  ;;  %v20468_v18 = vld [vmem:[#allocation50_spill] sm:$0xff] }
 0x573   :  { %20459 = vst [vmem:[#allocation180_spill] sm:$0xff] %v18127_v43  ;;  %v18133_v0 = vadd.f32 %v4881_v13, %v17707_v27  ;;  %v20470_v13 = vld [vmem:[#allocation78_spill] sm:$0xff]  ;;  %v20472_v43 = vld [vmem:[#allocation85_spill] sm:$0xff] }
 0x574   :  { %20460 = vst [vmem:[#allocation181_spill] sm:$0xff] %v18130_v47  ;;  %12033 = vmatmul.mubr.msk.bf16.gmra.mrb[76].mxu1 %vm15816_vm12, %v20462_v60  ;;  %v20473_v60 = vld [vmem:[#allocation90_spill] sm:$0xff] }
 0x575   :  { %20461 = vst [vmem:[#allocation182_spill] sm:$0xff] %v18133_v0  ;;  %5487 = vmatprep.mubr.bf16.mxu1 %v20463_v39 }
 0x577   :  { %v12758_v52 = vpop.f32.mrb[228].mxu1 }
 0x578   :  { %v18140_v40 = vadd.f32 %v12758_v52, %v20464_v53  ;;  %v4894_v44 = vpop.f32.mrb[229].mxu1  ;;  %v20474_v52 = vld [vmem:[#allocation155_spill] sm:$0xff] }
 0x579   :  { %v18143_v41 = vadd.f32 %v4894_v44, %v20466_v58  ;;  %v12759_v16 = vpop.f32.mrb[230].mxu1  ;;  %v20476_v58 = vld [vmem:[#allocation65_spill] sm:$0xff] }
 0x57a   :  { %20465 = vst [vmem:[#allocation178_spill] sm:$0xff] %v18140_v40  ;;  %v18146_v47 = vadd.f32 %v12759_v16, %v20468_v18  ;;  %v4897_v27 = vpop.f32.mrb[231].mxu1  ;;  %v20478_v18 = vld [vmem:[#allocation152_spill] sm:$0xff] }
 0x57b   :  { %20467 = vst [vmem:[#allocation81_spill] sm:$0xff] %v18143_v41  ;;  %v18149_v0 = vadd.f32 %v4897_v27, %v20470_v13  ;;  %v20480_v13 = vld [vmem:[#allocation93_spill] sm:$0xff]  ;;  %v20482_v41 = vld [vmem:[#allocation92_spill] sm:$0xff] }
 0x57c   :  { %20469 = vst [vmem:[#allocation76_spill] sm:$0xff] %v18146_v47  ;;  %12037 = vmatmul.mubr.msk.bf16.gmra.mrb[80].mxu1 %vm15816_vm12, %v20472_v43  ;;  %v20483_v43 = vld [vmem:[#allocation89_spill] sm:$0xff] }
 0x57d   :  { %20471 = vst [vmem:[#allocation183_spill] sm:$0xff] %v18149_v0  ;;  %5495 = vmatprep.mubr.bf16.mxu1 %v20473_v60 }
 0x57f   :  { %v12762_v39 = vpop.f32.mrb[232].mxu1 }
 0x580   :  { %v18156_v53 = vadd.f32 %v12762_v39, %v20474_v52  ;;  %v4910_v44 = vpop.f32.mrb[233].mxu1  ;;  %v20484_v39 = vld [vmem:[#allocation56_spill] sm:$0xff] }
 0x581   :  { %v18159_v40 = vadd.f32 %v4910_v44, %v20476_v58  ;;  %v12763_v16 = vpop.f32.mrb[234].mxu1  ;;  %v20486_v58 = vld [vmem:[#allocation67_spill] sm:$0xff] }
 0x582   :  { %20475 = vst [vmem:[#allocation19_spill] sm:$0xff] %v18156_v53  ;;  %v18162_v47 = vadd.f32 %v12763_v16, %v20478_v18  ;;  %v4913_v27 = vpop.f32.mrb[235].mxu1  ;;  %v20488_v18 = vld [vmem:[#allocation158_spill] sm:$0xff] }
 0x583   :  { %20477 = vst [vmem:[#allocation179_spill] sm:$0xff] %v18159_v40  ;;  %v18165_v0 = vadd.f32 %v4913_v27, %v20480_v13 }
 0x584   :  { %20479 = vst [vmem:[#allocation23_spill] sm:$0xff] %v18162_v47  ;;  %12041 = vmatmul.mubr.msk.bf16.gmra.mrb[84].mxu1 %vm15816_vm12, %v20482_v41  ;;  %v20492_v41 = vld [vmem:[#allocation96_spill] sm:$0xff] }
 0x585   :  { %20481 = vst [vmem:[#allocation17_spill] sm:$0xff] %v18165_v0  ;;  %5503 = vmatprep.mubr.bf16.mxu1 %v20483_v43  ;;  %v20491_v0 = vld [vmem:[#allocation91_spill] sm:$0xff] }
 0x587   :  { %v12766_v60 = vpop.f32.mrb[236].mxu1 }
 0x588   :  { %v18172_v52 = vadd.f32 %v12766_v60, %v20484_v39  ;;  %v4926_v44 = vpop.f32.mrb[237].mxu1 }
 0x589   :  { %v18175_v53 = vadd.f32 %v4926_v44, %v20486_v58  ;;  %v12767_v16 = vpop.f32.mrb[238].mxu1  ;;  %v18190_v44 = vpop.f32.mrb[4].mxu0 }
 0x58a   :  { %20485 = vst [vmem:[#allocation18_spill] sm:$0xff] %v18172_v52  ;;  %v18178_v47 = vadd.f32 %v12767_v16, %v20488_v18  ;;  %v4929_v27 = vpop.f32.mrb[239].mxu1  ;;  %v9469_v18 = vpop.f32.mrb[5].mxu0 }
 0x58b   :  { %20487 = vst [vmem:[#allocation13_spill] sm:$0xff] %v18175_v53  ;;  %v18181_v13 = vadd.f32 %v4929_v27, %v17816_v51 }
 0x58c   :  { %20489 = vst [vmem:[#allocation27_spill] sm:$0xff] %v18178_v47  ;;  %12045 = vmatmul.mubr.msk.bf16.gmra.mrb[88].mxu1 %vm15816_vm12, %v20491_v0 }
 0x58d   :  { %20490 = vst [vmem:[#allocation16_spill] sm:$0xff] %v18181_v13  ;;  %5511 = vmatprep.mubr.bf16.mxu1 %v20492_v41  ;;  %v20497_v41 = vld [vmem:[#allocation98_spill] sm:$0xff] }
 0x58f   :  { %v12770_v43 = vpop.f32.mrb[240].mxu1 }
 0x590   :  { %v18188_v60 = vadd.f32 %v12770_v43, %v17832_v46  ;;  %v4942_v39 = vpop.f32.mrb[241].mxu1  ;;  %v20498_v46 = vld [vmem:[#allocation95_spill] sm:$0xff] }
 0x591   :  { %v18193_v58 = vadd.f32 %v4942_v39, %v17836_v54  ;;  %v12771_v16 = vpop.f32.mrb[242].mxu1 }
 0x592   :  { %20493 = vst [vmem:[#allocation186_spill] sm:$0xff] %v18188_v60  ;;  %v18196_v51 = vadd.f32 %v12771_v16, %v17844_v28  ;;  %v4945_v27 = vpop.f32.mrb[243].mxu1  ;;  %v20501_v16 = vld [vmem:[#allocation159_spill] sm:$0xff] }
 0x593   :  { %20494 = vst [vmem:[#allocation15_spill] sm:$0xff] %v18193_v58  ;;  %v18199_v0 = vadd.f32 %v4945_v27, %v17848_v21  ;;  %v20503_v27 = vld [vmem:[#allocation165_spill] sm:$0xff] }
 0x594   :  { %20495 = vst [vmem:[#allocation188_spill] sm:$0xff] %v18196_v51  ;;  %12049 = vmatmul.mubr.msk.bf16.gmra.mrb[92].mxu1 %vm15816_vm12, %v20497_v41  ;;  %v20505_v58 = vld [vmem:[#allocation97_spill] sm:$0xff]  ;;  %v20506_v41 = vld [vmem:[#allocation102_spill] sm:$0xff] }
 0x595   :  { %20496 = vst [vmem:[#allocation21_spill] sm:$0xff] %v18199_v0  ;;  %5519 = vmatprep.mubr.bf16.mxu1 %v20498_v46  ;;  %v20507_v46 = vld [vmem:[#allocation68_spill] sm:$0xff] }
 0x597   :  { %v12774_v43 = vpop.f32.mrb[244].mxu1 }
 0x598   :  { %v18206_v60 = vadd.f32 %v12774_v43, %v17872_v11  ;;  %v4958_v54 = vpop.f32.mrb[245].mxu1 }
 0x599   :  { %v18209_v39 = vadd.f32 %v4958_v54, %v17878_v49  ;;  %v12775_v28 = vpop.f32.mrb[246].mxu1  ;;  %v20509_v54 = vld [vmem:[#allocation161_spill] sm:$0xff] }
 0x59a   :  { %20499 = vst [vmem:[#allocation184_spill] sm:$0xff] %v18206_v60  ;;  %v18212_v51 = vadd.f32 %v12775_v28, %v20501_v16  ;;  %v4961_v21 = vpop.f32.mrb[247].mxu1  ;;  %v20511_v16 = vld [vmem:[#allocation9_spill] sm:$0xff] }
 0x59b   :  { %20500 = vst [vmem:[#allocation14_spill] sm:$0xff] %v18209_v39  ;;  %v18215_v0 = vadd.f32 %v4961_v21, %v20503_v27 }
 0x59c   :  { %20502 = vst [vmem:[#allocation29_spill] sm:$0xff] %v18212_v51  ;;  %12053 = vmatmul.mubr.msk.bf16.gmra.mrb[96].mxu1 %vm15816_vm12, %v20505_v58  ;;  %v18236_v58 = vld [vmem:[%s19394_s6] ss:$0 sm:$0xff] }
 0x59d   :  { %20504 = vst [vmem:[#allocation185_spill] sm:$0xff] %v18215_v0  ;;  %5527 = vmatprep.mubr.bf16.mxu1 %v20506_v41  ;;  %v18238_v41 = vpop.f32.mrb[6].mxu0 }
 0x59e   :  { %v18414_v3 = vadd.f32 %v18238_v41, %v18236_v58 }
 0x59f   :  { %v12778_v11 = vpop.f32.mrb[248].mxu1 }
 0x5a0   :  { %v18222_v43 = vadd.f32 %v12778_v11, %v20507_v46  ;;  %v4974_v49 = vpop.f32.mrb[249].mxu1  ;;  %v20514_v11 = vld [vmem:[#allocation104_spill] sm:$0xff]  ;;  %v18243_v46 = vpop.f32.mrb[7].mxu0 }
 0x5a1   :  { %v18225_v60 = vadd.f32 %v4974_v49, %v20509_v54  ;;  %v12779_v28 = vpop.f32.mrb[250].mxu1  ;;  %v20515_v49 = vld [vmem:[#allocation101_spill] sm:$0xff]  ;;  %v9462_v54 = vadd.f32 %v18046_v24, %v18236_v58 }
 0x5a2   :  { %20508 = vst [vmem:[#allocation24_spill] sm:$0xff] %v18222_v43  ;;  %v18228_v51 = vadd.f32 %v12779_v28, %v20511_v16  ;;  %v4977_v21 = vpop.f32.mrb[251].mxu1 }
 0x5a3   :  { %20510 = vst [vmem:[#allocation20_spill] sm:$0xff] %v18225_v60  ;;  %v18231_v27 = vadd.f32 %v4977_v21, %v17928_v12  ;;  %v9454_v12 = vadd.f32 %v18236_v58, %v18051_v37  ;;  %v9465_v37 = vadd.f32 %v18077_v29, %v18236_v58 }
 0x5a4   :  { %20512 = vst [vmem:[#allocation190_spill] sm:$0xff] %v18228_v51  ;;  %12057 = vmatmul.mubr.msk.bf16.gmra.mrb[100].mxu1 %vm15816_vm12, %v20514_v11 }
 0x5a5   :  { %20513 = vst [vmem:[#allocation191_spill] sm:$0xff] %v18231_v27  ;;  %5535 = vmatprep.mubr.bf16.mxu1 %v20515_v49  ;;  %v9566_v49 = vcombine.high %v9462_v54, %v9462_v54  ;;  %v9532_v60 = vcombine.high %v9454_v12, %v9454_v12 }
 0x5a7   :  { %v12782_v28 = vpop.f32.mrb[252].mxu1 }
 0x5a8   :  { %v18251_v16 = vadd.f32 %v12782_v28, %v17934_v7  ;;  %v4990_v21 = vpop.f32.mrb[253].mxu1  ;;  %v9457_v7 = vadd.f32 %v18236_v58, %v18085_v2  ;;  %v20520_v28 = vld [vmem:[#allocation103_spill] sm:$0xff]  ;;  %v9583_v2 = vcombine.high %v9465_v37, %v9465_v37 }
 0x5a9   :  { %v18254_v51 = vadd.f32 %v4990_v21, %v17938_v34  ;;  %v12783_v43 = vpop.f32.mrb[254].mxu1  ;;  %v20521_v34 = vld [vmem:[#allocation12_spill] sm:$0xff] }
 0x5aa   :  { %20516 = vst [vmem:[#allocation192_spill] sm:$0xff] %v18251_v16  ;;  %v18257_v11 = vadd.f32 %v12783_v43, %v17944_v9  ;;  %v4993_v27 = vpop.f32.mrb[255].mxu1  ;;  %v18270_v21 = vrot.slane %v9462_v54, %v20521_v34  ;;  %v20522_v9 = vld [vmem:[#allocation108_spill] sm:$0xff]  ;;  %v18274_v43 = vrot.slane %v9454_v12, %v20521_v34  ;;  %v18280_v29 = vrot.slane %v9532_v60, %v20521_v34  ;;  %v20524_v16 = vld [vmem:[#allocation7_spill] sm:$0xff] }
 0x5ab   :  { %20517 = vst [vmem:[#allocation187_spill] sm:$0xff] %v18254_v51  ;;  %v18260_v24 = vadd.f32 %v4993_v27, %v17948_v26  ;;  %v18277_v26 = vrot.slane %v9566_v49, %v20521_v34  ;;  %v18291_v12 = vrot.slane %v9457_v7, %v20521_v34  ;;  %v18298_v0 = vrot.slane %v9465_v37, %v20521_v34  ;;  %v20532_v37 = vld [vmem:[#allocation107_spill] sm:$0xff] }
 0x5ac   :  { %20518 = vst [vmem:[#allocation26_spill] sm:$0xff] %v18257_v11  ;;  %12061 = vmatmul.mubr.msk.bf16.gmra.mrb[104].mxu1 %vm15816_vm12, %v20520_v28  ;;  %v9549_v11 = vcombine.high %v9457_v7, %v9457_v7  ;;  %v20525_v28 = vld [vmem:[#allocation195_spill] sm:$0xff]  ;;  %v18295_v60 = vcombine.high %v18274_v43, %v18274_v43  ;;  %v18311_v52 = vcombine.high %v18280_v29, %v18280_v29 }
 0x5ad   :  { %20519 = vst [vmem:[#allocation193_spill] sm:$0xff] %v18260_v24  ;;  %5543 = vmatprep.mubr.bf16.mxu1 %v20522_v9  ;;  %20523 = vst [vmem:[#allocation36_spill] sm:$0xff] %v18277_v26  ;;  %v18283_v24 = vsub.s32 0, %v20524_v16  ;;  %v18288_v9 = vcombine.high %v18270_v21, %v18270_v21  ;;  %v9478_v16 = vadd.f32 %v18190_v44, %v18236_v58 }
 0x5ae   :  { %20527 = vst [vmem:[#allocation119_spill] sm:$0xff] %v18298_v0  ;;  %v18307_v7 = vcombine.high %v18277_v26, %v18277_v26  ;;  %v18316_v44 = vrot.slane %v9583_v2, %v20521_v34 }
 0x5af   :  { %v5329_v27 = vpop.f32.mrb[0].mxu1  ;;  %20526 = vst [vmem:[#allocation189_spill] sm:$0xff] %v18288_v9 }
 0x5b0   :  { %v5619_v54 = vadd.f32 %v20525_v28, %v5329_v27  ;;  %v5331_v51 = vpop.f32.mrb[1].mxu1  ;;  %v20528_v28 = vld [vmem:[#allocation197_spill] sm:$0xff]  ;;  %20529 = vst [vmem:[#allocation39_spill] sm:$0xff] %v18307_v7  ;;  %20530 = vst [vmem:[#allocation31_spill] sm:$0xff] %v18316_v44 }
 0x5b1   :  { %v5332_v49 = vpop.f32.mrb[2].mxu1  ;;  %v9470_v51 = vadd.f32 %v18236_v58, %v9469_v18  ;;  %v20531_v18 = vld [vmem:[#allocation110_spill] sm:$0xff] }
 0x5b2   :  { %v5873_v27 = vadd.f32 %v5619_v54, %v17972_v15  ;;  %v5622_v39 = vadd.f32 %v20528_v28, %v5332_v49  ;;  %v5334_v47 = vpop.f32.mrb[3].mxu1  ;;  %v18319_v15 = vrot.slane %v9549_v11, %v20521_v34  ;;  %v18329_v28 = vcombine.high %v18291_v12, %v18291_v12  ;;  %v20537_v54 = vld [vmem:[#allocation194_spill] sm:$0xff] }
 0x5b3   :  { %v18335_v11 = vcombine.high %v18298_v0, %v18298_v0  ;;  %v18341_v13 = vrot.slane %v9470_v51, %v20521_v34 }
 0x5b4   :  { %v5874_v47 = vadd.f32 %v5622_v39, %v17982_v17  ;;  %12065 = vmatmul.mubr.msk.bf16.gmra.mrb[108].mxu1 %vm15816_vm12, %v20531_v18  ;;  %v9634_v17 = vcombine.high %v9478_v16, %v9478_v16  ;;  %v9600_v39 = vcombine.high %v9470_v51, %v9470_v51  ;;  %v18349_v2 = vcombine.high %v18319_v15, %v18319_v15  ;;  %v20540_v51 = vld [vmem:[#allocation196_spill] sm:$0xff] }
 0x5b5   :  { %5551 = vmatprep.mubr.bf16.mxu1 %v20532_v37  ;;  %20533 = vst [vmem:[#allocation126_spill] sm:$0xff] %v18335_v11  ;;  %20534 = vst [vmem:[#allocation122_spill] sm:$0xff] %v18341_v13  ;;  %v18345_v37 = vcombine.high %v18316_v44, %v18316_v44  ;;  %v18353_v18 = vrot.slane %v9478_v16, %v20521_v34  ;;  %v18378_v45 = vcombine.high %v18341_v13, %v18341_v13 }
 0x5b6   :  { %v18366_v16 = vrot.slane %v9634_v17, %v20521_v34  ;;  %v20544_v17 = vld [vmem:[#allocation114_spill] sm:$0xff] }
 0x5b7   :  { %v5337_v53 = vpop.f32.mrb[4].mxu1  ;;  %20535 = vst [vmem:[#allocation54_spill] sm:$0xff] %v18345_v37  ;;  %20536 = vst [vmem:[#allocation52_spill] sm:$0xff] %v18353_v18 }
 0x5b8   :  { %v5627_v31 = vadd.f32 %v20537_v54, %v5337_v53  ;;  %v5339_v49 = vpop.f32.mrb[5].mxu1  ;;  %20538 = vst [vmem:[#allocation128_spill] sm:$0xff] %v18366_v16  ;;  %v18369_v53 = vrot.slane %v9600_v39, %v20521_v34  ;;  %v9473_v54 = vadd.f32 %v18236_v58, %v18243_v46  ;;  %20541 = vst [vmem:[#allocation35_spill] sm:$0xff] %v18378_v45 }
 0x5b9   :  { %v5340_v32 = vpop.f32.mrb[6].mxu1  ;;  %v18384_v39 = vcombine.high %v18353_v18, %v18353_v18  ;;  %v18397_v50 = vcombine.high %v18366_v16, %v18366_v16 }
 0x5ba   :  { %20539 = vst [vmem:[#allocation123_spill] sm:$0xff] %v18369_v53  ;;  %v5875_v49 = vadd.f32 %v5627_v31, %v17964_v4  ;;  %v5630_v20 = vadd.f32 %v20540_v51, %v5340_v32  ;;  %v5342_v33 = vpop.f32.mrb[7].mxu1  ;;  %v5944_v4 = vadd.f32 %v18362_v61, %v5873_v27  ;;  %v18401_v46 = vcombine.high %v18369_v53, %v18369_v53  ;;  %v20549_v53 = vld [vmem:[#allocation117_spill] sm:$0xff] }
 0x5bb   :  { %20542 = vst [vmem:[#allocation45_spill] sm:$0xff] %v18384_v39  ;;  %v20543_v33 = vld [vmem:[#allocation109_spill] sm:$0xff]  ;;  %20545 = vst [vmem:[#allocation100_spill] sm:$0xff] %v18397_v50  ;;  %v9617_v27 = vcombine.high %v9473_v54, %v9473_v54 }
 0x5bc   :  { %v5946_v32 = vadd.f32 %v18362_v61, %v5875_v49  ;;  %v5876_v31 = vadd.f32 %v5630_v20, %v17977_v14  ;;  %12069 = vmatmul.mubr.msk.bf16.gmra.mrb[112].mxu1 %vm15816_vm12, %v20543_v33  ;;  %20546 = vst [vmem:[#allocation121_spill] sm:$0xff] %v18401_v46  ;;  %v18404_v49 = vrot.slane %v9473_v54, %v20521_v34 }
 0x5bd   :  { %5559 = vmatprep.mubr.bf16.mxu1 %v20544_v17  ;;  %v5945_v14 = vadd.f32 %v18362_v61, %v5874_v47  ;;  %v18421_v18 = vrot.slane %v9617_v27, %v20521_v34  ;;  %v9651_v27 = vcombine.high %v18414_v3, %v18414_v3 }
 0x5be   :  { %v6008_v20 = vadd.f32 %v5946_v32, %v5944_v4  ;;  %v5947_v33 = vadd.f32 %v18362_v61, %v5876_v31  ;;  %v20547_v4 = vld [vmem:[#allocation199_spill] sm:$0xff]  ;;  %v18425_v19 = vcombine.high %v18404_v49, %v18404_v49 }
 0x5bf   :  { %v5345_v17 = vpop.f32.mrb[8].mxu1 }
 0x5c0   :  { %v6072_v54 = vcombine.high %v6008_v20, %v6008_v20  ;;  %v6079_v13 = vrot.slane %v6008_v20, %v20521_v34  ;;  %v6009_v47 = vadd.f32 %v5947_v33, %v5945_v14  ;;  %v5635_v32 = vadd.f32 %v20547_v4, %v5345_v17  ;;  %v5347_v31 = vpop.f32.mrb[9].mxu1  ;;  %v20548_v4 = vld [vmem:[#allocation201_spill] sm:$0xff] }
 0x5c1   :  { %v5348_v56 = vpop.f32.mrb[10].mxu1 }
 0x5c2   :  { %v6086_v41 = vrot.slane %v6072_v54, %v20521_v34  ;;  %v6087_v16 = vcombine.high %v6079_v13, %v6079_v13  ;;  %v6089_v20 = vcombine.high %v6009_v47, %v6009_v47  ;;  %v6096_v14 = vrot.slane %v6009_v47, %v20521_v34  ;;  %v5350_v33 = vpop.f32.mrb[11].mxu1 }
 0x5c3   :  { %v5877_v17 = vadd.f32 %v5635_v32, %v17997_v30  ;;  %v5638_v31 = vadd.f32 %v20548_v4, %v5348_v56  ;;  %v11197_v51 = vrot.slane %v6079_v13, 9  ;;  %v20550_v30 = vld [vmem:[#allocation113_spill] sm:$0xff]  ;;  %v18441_v56 = vrot.slane %v18414_v3, %v20521_v34 }
 0x5c4   :  { %v6088_v40 = vcombine.high %v6086_v41, %v6086_v41  ;;  %v6103_v50 = vrot.slane %v6089_v20, %v20521_v34  ;;  %v6104_v39 = vcombine.high %v6096_v14, %v6096_v14  ;;  %v11201_v46 = vrot.slane %v6096_v14, 9  ;;  %12073 = vmatmul.mubr.msk.bf16.gmra.mrb[116].mxu1 %vm15816_vm12, %v20549_v53 }
 0x5c5   :  { %v5878_v54 = vadd.f32 %v5638_v31, %v18007_v59  ;;  %v11198_v47 = vrot.slane %v6087_v16, 9  ;;  %v11199_v33 = vrot.slane %v6086_v41, 9  ;;  %5567 = vmatprep.mubr.bf16.mxu1 %v20550_v30  ;;  %v7128_v48 = vadd.f32 %v11197_v51, %v6079_v13 }
 0x5c6   :  { %v6105_v32 = vcombine.high %v6103_v50, %v6103_v50  ;;  %v11202_v4 = vrot.slane %v6104_v39, 9  ;;  %v11203_v45 = vrot.slane %v6103_v50, 9  ;;  %v11200_v20 = vrot.slane %v6088_v40, 9 }
 0x5c7   :  { %v7129_v37 = vadd.f32 %v11198_v47, %v6087_v16  ;;  %v7130_v44 = vadd.f32 %v11199_v33, %v6086_v41  ;;  %v5353_v1 = vpop.f32.mrb[12].mxu1  ;;  %v18445_v53 = vcombine.high %v18421_v18, %v18421_v18  ;;  %v7132_v11 = vadd.f32 %v11201_v46, %v6096_v14  ;;  %v20556_v46 = vld [vmem:[#allocation198_spill] sm:$0xff] }
 0x5c8   :  { %v11204_v59 = vrot.slane %v6105_v32, 9  ;;  %v7131_v31 = vadd.f32 %v11200_v20, %v6088_v40  ;;  %v7133_v30 = vadd.f32 %v11202_v4, %v6104_v39  ;;  %v5355_v0 = vpop.f32.mrb[13].mxu1  ;;  %v7134_v8 = vadd.f32 %v11203_v45, %v6103_v50 }
 0x5c9   :  { %v7256_v3 = vmul.f32 0.25, %v7128_v48  ;;  %v7257_v22 = vmul.f32 0.25, %v7129_v37  ;;  %v7258_v10 = vmul.f32 0.25, %v7130_v44  ;;  %v5356_v25 = vpop.f32.mrb[14].mxu1  ;;  %v7260_v13 = vmul.f32 0.25, %v7132_v11  ;;  %v20554_v11 = vld [vmem:[#allocation116_spill] sm:$0xff] }
 0x5ca   :  { %v7135_v7 = vadd.f32 %v11204_v59, %v6105_v32  ;;  %v7259_v26 = vmul.f32 0.25, %v7131_v31  ;;  %v7261_v16 = vmul.f32 0.25, %v7133_v30  ;;  %v5358_v51 = vpop.f32.mrb[15].mxu1  ;;  %v7262_v41 = vmul.f32 0.25, %v7134_v8  ;;  %v20557_v32 = vld [vmem:[#allocation200_spill] sm:$0xff]  ;;  %v20558_v31 = vld [vmem:[#allocation115_spill] sm:$0xff] }
 0x5cb   :  { %v9996_v47 = vadd.f32 %v18274_v43, %v7256_v3  ;;  %v20551_v33 = vrot.slane %v18274_v43, 1  ;;  %v9998_v40 = vadd.f32 %v18295_v60, %v7258_v10  ;;  %v20552_v45 = vrot.slane %v18295_v60, 1 }
 0x5cc   :  { %v7263_v39 = vmul.f32 0.25, %v7135_v7  ;;  %v10000_v50 = vadd.f32 %v18280_v29, %v7260_v13  ;;  %v20553_v0 = vrot.slane %v18280_v29, 1  ;;  %12077 = vmatmul.mubr.msk.bf16.gmra.mrb[120].mxu1 %vm15816_vm12, %v20554_v11  ;;  %v10002_v8 = vadd.f32 %v18311_v52, %v7262_v41 }
 0x5cd   :  { %v9997_v9 = vadd.f32 %v20551_v33, %v7257_v22  ;;  %v9999_v48 = vadd.f32 %v20552_v45, %v7259_v26  ;;  %v10255_v43 = vrot.slane %v9996_v47, %v18283_v24  ;;  %v10263_v10 = vrot.slane %v9998_v40, %v18283_v24  ;;  %5575 = vmatprep.mubr.bf16.mxu1 %v20424_v23  ;;  %v20559_v47 = vld [vmem:[#allocation30_spill] sm:$0xff] }
 0x5ce   :  { %v10001_v44 = vadd.f32 %v20553_v0, %v7261_v16  ;;  %v20555_v26 = vrot.slane %v18311_v52, 1  ;;  %v18468_v7 = vrot.slane %v9651_v27, %v20521_v34  ;;  %v18472_v36 = vcombine.high %v18441_v56, %v18441_v56 }
 0x5cf   :  { %v10259_v22 = vrot.slane %v9997_v9, %v18283_v24  ;;  %v10267_v29 = vrot.slane %v9999_v48, %v18283_v24  ;;  %v5948_v37 = vadd.f32 %v18362_v61, %v5877_v17  ;;  %v5643_v14 = vadd.f32 %v20556_v46, %v5353_v1  ;;  %v5361_v20 = vpop.f32.mrb[16].mxu1 }
 0x5d0   :  { %v10003_v60 = vadd.f32 %v20555_v26, %v7263_v39  ;;  %v5646_v4 = vadd.f32 %v20557_v32, %v5356_v25  ;;  %v5949_v52 = vadd.f32 %v18362_v61, %v5878_v54  ;;  %v10271_v59 = vrot.slane %v10000_v50, %v18283_v24  ;;  %v5363_v3 = vpop.f32.mrb[17].mxu1  ;;  %v20560_v32 = vld [vmem:[#allocation94_spill] sm:$0xff] }
 0x5d1   :  { %v10764_v9 = vsel %vm9153_vm2, %v10259_v22, %v10255_v43  ;;  %v5651_v30 = vadd.f32 %v20558_v31, %v5361_v20  ;;  %v10275_v13 = vrot.slane %v10001_v44, %v18283_v24  ;;  %v5879_v16 = vadd.f32 %v5643_v14, %v17993_v63  ;;  %v5364_v51 = vpop.f32.mrb[18].mxu1 }
 0x5d2   :  { %v10765_v27 = vsel %vm9156_vm3, %v10263_v10, %v10764_v9  ;;  %v5880_v1 = vadd.f32 %v5646_v4, %v18004_v55  ;;  %v10279_v25 = vrot.slane %v10002_v8, %v18283_v24  ;;  %v5654_v33 = vadd.f32 %v20559_v47, %v5364_v51  ;;  %v5366_v40 = vpop.f32.mrb[19].mxu1  ;;  %v20561_v51 = vld [vmem:[#allocation37_spill] sm:$0xff] }
 0x5d3   :  { %v10766_v17 = vsel %vm9159_vm4, %v10267_v29, %v10765_v27  ;;  %v5881_v41 = vadd.f32 %v5651_v30, %v18017_v35  ;;  %v10283_v39 = vrot.slane %v10003_v60, %v18283_v24  ;;  %v5950_v48 = vadd.f32 %v18362_v61, %v5879_v16 }
 0x5d4   :  { %v10767_v54 = vsel %vm9162_vm5, %v10271_v59, %v10766_v17  ;;  %v5951_v63 = vadd.f32 %v18362_v61, %v5880_v1  ;;  %v18496_v50 = vadd.f32 %v5654_v33, %v18025_v62  ;;  %5576 = vmatmul.mubr.bf16.gmra.mrb[124].mxu1 %v20424_v23  ;;  %v18501_v35 = vcombine.high %v18468_v7, %v18468_v7 }
 0x5d5   :  { %v10768_v45 = vsel %vm9165_vm6, %v10275_v13, %v10767_v54  ;;  %v9824_v0 = vrot.slane %v18404_v49, 1  ;;  %v6010_v11 = vadd.f32 %v5950_v48, %v5948_v37  ;;  %v9825_v43 = vrot.slane %v18425_v19, 1  ;;  %v18512_v37 = vpop.f32.mrb[8].mxu0 }
 0x5d6   :  { %v10769_v55 = vsel %vm9168_vm7, %v10279_v25, %v10768_v45  ;;  %v6011_v8 = vadd.f32 %v5951_v63, %v5949_v52  ;;  %v9832_v22 = vrot.slane %v18441_v56, 1  ;;  %v9826_v10 = vrot.slane %v18421_v18, 1 }
 0x5d7   :  { %v10770_v44 = vsel %vm9171_vm8, %v10283_v39, %v10769_v55  ;;  %v9827_v23 = vrot.slane %v18445_v53, 1  ;;  %v6106_v26 = vcombine.high %v6010_v11, %v6010_v11  ;;  %v6113_v60 = vrot.slane %v6010_v11, %v20521_v34  ;;  %v5369_v46 = vpop.f32.mrb[20].mxu1 }
 0x5d8   :  { %10892 = vst [vmem:[#allocation4] sm:$0xff] %v10770_v44  ;;  %v6123_v29 = vcombine.high %v6011_v8, %v6011_v8  ;;  %v6130_v9 = vrot.slane %v6011_v8, %v20521_v34  ;;  %v18515_v14 = vadd.f32 %v18362_v61, %v5881_v41  ;;  %v5659_v4 = vadd.f32 %v20560_v32, %v5369_v46  ;;  %v5371_v20 = vpop.f32.mrb[21].mxu1  ;;  %v18524_v41 = vpop.f32.mrb[9].mxu0 }
 0x5d9   :  { %v6120_v27 = vrot.slane %v6106_v26, %v20521_v34  ;;  %v6121_v31 = vcombine.high %v6113_v60, %v6113_v60  ;;  %v5372_v13 = vpop.f32.mrb[22].mxu1  ;;  %v11205_v16 = vrot.slane %v6113_v60, 9 }
 0x5da   :  { %v6137_v30 = vrot.slane %v6123_v29, %v20521_v34  ;;  %v6138_v3 = vcombine.high %v6130_v9, %v6130_v9  ;;  %v11209_v17 = vrot.slane %v6130_v9, 9  ;;  %v5883_v1 = vadd.f32 %v5659_v4, %v18014_v5  ;;  %v5374_v54 = vpop.f32.mrb[23].mxu1 }
 0x5db   :  { %v5662_v25 = vadd.f32 %v20561_v51, %v5372_v13  ;;  %v6122_v47 = vcombine.high %v6120_v27, %v6120_v27  ;;  %v11206_v45 = vrot.slane %v6121_v31, 9  ;;  %v11207_v48 = vrot.slane %v6120_v27, 9 }
 0x5dc   :  { %v6139_v33 = vcombine.high %v6137_v30, %v6137_v30  ;;  %v11210_v40 = vrot.slane %v6138_v3, 9  ;;  %v11211_v39 = vrot.slane %v6137_v30, 9  ;;  %v7136_v63 = vadd.f32 %v11205_v16, %v6113_v60 }
 0x5dd   :  { %v7140_v55 = vadd.f32 %v11209_v17, %v6130_v9  ;;  %v11208_v11 = vrot.slane %v6122_v47, 9  ;;  %v7137_v29 = vadd.f32 %v11206_v45, %v6121_v31  ;;  %v7138_v46 = vadd.f32 %v11207_v48, %v6120_v27 }
 0x5de   :  { %v11212_v44 = vrot.slane %v6139_v33, 9  ;;  %v7141_v8 = vadd.f32 %v11210_v40, %v6138_v3  ;;  %v7142_v26 = vadd.f32 %v11211_v39, %v6137_v30  ;;  %v7264_v5 = vmul.f32 0.25, %v7136_v63 }
 0x5df   :  { %v7268_v32 = vmul.f32 0.25, %v7140_v55  ;;  %v7139_v4 = vadd.f32 %v11208_v11, %v6122_v47  ;;  %v5377_v54 = vpop.f32.mrb[24].mxu1  ;;  %v7265_v59 = vmul.f32 0.25, %v7137_v29  ;;  %v7266_v52 = vmul.f32 0.25, %v7138_v46 }
 0x5e0   :  { %v7143_v20 = vadd.f32 %v11212_v44, %v6139_v33  ;;  %v7269_v13 = vmul.f32 0.25, %v7141_v8  ;;  %v7270_v51 = vmul.f32 0.25, %v7142_v26  ;;  %v10004_v62 = vadd.f32 %v18291_v12, %v7264_v5  ;;  %v5379_v9 = vpop.f32.mrb[25].mxu1  ;;  %v20566_v26 = vld [vmem:[#allocation120_spill] sm:$0xff] }
 0x5e1   :  { %v10008_v60 = vadd.f32 %v18319_v15, %v7268_v32  ;;  %v7267_v17 = vmul.f32 0.25, %v7139_v4  ;;  %v20562_v30 = vrot.slane %v18319_v15, 1  ;;  %v5380_v3 = vpop.f32.mrb[26].mxu1  ;;  %v5953_v47 = vadd.f32 %v18362_v61, %v18496_v50 }
 0x5e2   :  { %v7271_v16 = vmul.f32 0.25, %v7143_v20  ;;  %v10010_v27 = vadd.f32 %v18349_v2, %v7270_v51  ;;  %v20563_v33 = vrot.slane %v18291_v12, 1  ;;  %v10006_v39 = vadd.f32 %v18329_v28, %v7266_v52  ;;  %v5382_v48 = vpop.f32.mrb[27].mxu1 }
 0x5e3   :  { %v10009_v31 = vadd.f32 %v20562_v30, %v7269_v13  ;;  %v10287_v45 = vrot.slane %v10004_v62, %v18283_v24  ;;  %v20564_v63 = vrot.slane %v18329_v28, 1  ;;  %v20565_v15 = vrot.slane %v18349_v2, 1  ;;  %v20567_v2 = vld [vmem:[#allocation125_spill] sm:$0xff] }
 0x5e4   :  { %v10005_v40 = vadd.f32 %v20563_v33, %v7265_v59  ;;  %v10303_v11 = vrot.slane %v10008_v60, %v18283_v24  ;;  %v10295_v12 = vrot.slane %v10006_v39, %v18283_v24  ;;  %v5954_v59 = vadd.f32 %v18362_v61, %v5883_v1 }
 0x5e5   :  { %v10007_v55 = vadd.f32 %v20564_v63, %v7267_v17  ;;  %v10011_v44 = vadd.f32 %v20565_v15, %v7271_v16  ;;  %v10307_v8 = vrot.slane %v10009_v31, %v18283_v24  ;;  %v5884_v52 = vadd.f32 %v5662_v25, %v18020_v38 }
 0x5e6   :  { %v10291_v50 = vrot.slane %v10005_v40, %v18283_v24  ;;  %v10311_v28 = vrot.slane %v10010_v27, %v18283_v24  ;;  %v5667_v29 = vadd.f32 %v20566_v26, %v5377_v54  ;;  %v5670_v46 = vadd.f32 %v20567_v2, %v5380_v3 }
 0x5e7   :  { %v10299_v62 = vrot.slane %v10007_v55, %v18283_v24  ;;  %v10315_v5 = vrot.slane %v10011_v44, %v18283_v24  ;;  %v6012_v4 = vadd.f32 %v5954_v59, %v18515_v14  ;;  %v5955_v20 = vadd.f32 %v18362_v61, %v5884_v52  ;;  %v5385_v13 = vpop.f32.mrb[28].mxu1 }
 0x5e8   :  { %v10771_v32 = vsel %vm9153_vm2, %v10291_v50, %v10287_v45  ;;  %v5885_v38 = vadd.f32 %v5667_v29, %v18041_v42  ;;  %v5886_v25 = vadd.f32 %v5670_v46, %v18049_v6  ;;  %v18560_v51 = vadd.f32 %v18512_v37, %v18236_v58  ;;  %v5387_v14 = vpop.f32.mrb[29].mxu1  ;;  %v20568_v6 = vld [vmem:[#allocation124_spill] sm:$0xff]  ;;  %v18576_v50 = vpop.f32.mrb[10].mxu0 }
 0x5e9   :  { %v10772_v1 = vsel %vm9156_vm3, %v10295_v12, %v10771_v32  ;;  %v6140_v60 = vcombine.high %v6012_v4, %v6012_v4  ;;  %v6147_v9 = vrot.slane %v6012_v4, %v20521_v34  ;;  %v6013_v17 = vadd.f32 %v5955_v20, %v5953_v47  ;;  %v5388_v27 = vpop.f32.mrb[30].mxu1 }
 0x5ea   :  { %v10773_v54 = vsel %vm9159_vm4, %v10299_v62, %v10772_v1  ;;  %v5956_v30 = vadd.f32 %v18362_v61, %v5885_v38  ;;  %v18567_v42 = vadd.f32 %v18362_v61, %v5886_v25  ;;  %v5675_v31 = vadd.f32 %v20568_v6, %v5385_v13  ;;  %v5390_v39 = vpop.f32.mrb[31].mxu1  ;;  %v18580_v13 = vpop.f32.mrb[11].mxu0 }
 0x5eb   :  { %v10774_v16 = vsel %vm9162_vm5, %v10303_v11, %v10773_v54  ;;  %v6154_v3 = vrot.slane %v6140_v60, %v20521_v34  ;;  %v6155_v33 = vcombine.high %v6147_v9, %v6147_v9  ;;  %v11213_v40 = vrot.slane %v6147_v9, 9 }
 0x5ec   :  { %v10775_v37 = vsel %vm9165_vm6, %v10307_v8, %v10774_v16  ;;  %v6157_v45 = vcombine.high %v6013_v17, %v6013_v17  ;;  %v6164_v48 = vrot.slane %v6013_v17, %v20521_v34  ;;  %v5887_v63 = vadd.f32 %v5675_v31, %v18038_v57 }
 0x5ed   :  { %v10776_v47 = vsel %vm9168_vm7, %v10311_v28, %v10775_v37  ;;  %v6156_v15 = vcombine.high %v6154_v3, %v6154_v3  ;;  %v11214_v44 = vrot.slane %v6155_v33, 9  ;;  %v11215_v11 = vrot.slane %v6154_v3, 9  ;;  %v20570_v37 = vld [vmem:[#allocation189_spill] sm:$0xff] }
 0x5ee   :  { %v10777_v55 = vsel %vm9171_vm8, %v10315_v5, %v10776_v47  ;;  %v7144_v8 = vadd.f32 %v11213_v40, %v6147_v9  ;;  %v6171_v12 = vrot.slane %v6157_v45, %v20521_v34  ;;  %v6172_v59 = vcombine.high %v6164_v48, %v6164_v48 }
 0x5ef   :  { %10893 = vst [vmem:[#allocation4 + $0x8] sm:$0xff] %v10777_v55  ;;  %v11217_v52 = vrot.slane %v6164_v48, 9  ;;  %v11216_v62 = vrot.slane %v6156_v15, 9  ;;  %v7145_v28 = vadd.f32 %v11214_v44, %v6155_v33  ;;  %v7146_v26 = vadd.f32 %v11215_v11, %v6154_v3  ;;  %v5393_v32 = vpop.f32.mrb[32].mxu1  ;;  %v20572_v11 = vld [vmem:[#allocation36_spill] sm:$0xff] }
 0x5f0   :  { %v5958_v29 = vadd.f32 %v18362_v61, %v5887_v63  ;;  %v7272_v2 = vmul.f32 0.25, %v7144_v8  ;;  %v6173_v57 = vcombine.high %v6171_v12, %v6171_v12  ;;  %v11218_v46 = vrot.slane %v6172_v59, 9  ;;  %v5395_v25 = vpop.f32.mrb[33].mxu1 }
 0x5f1   :  { %v11219_v5 = vrot.slane %v6171_v12, 9  ;;  %v7147_v4 = vadd.f32 %v11216_v62, %v6156_v15  ;;  %v7273_v20 = vmul.f32 0.25, %v7145_v28  ;;  %v7274_v1 = vmul.f32 0.25, %v7146_v26  ;;  %v5396_v14 = vpop.f32.mrb[34].mxu1 }
 0x5f2   :  { %v7148_v38 = vadd.f32 %v11217_v52, %v6164_v48  ;;  %v10012_v54 = vadd.f32 %v18270_v21, %v7272_v2  ;;  %v11220_v60 = vrot.slane %v6173_v57, 9  ;;  %v7149_v9 = vadd.f32 %v11218_v46, %v6172_v59  ;;  %v5398_v40 = vpop.f32.mrb[35].mxu1  ;;  %v20574_v52 = vld [vmem:[#allocation39_spill] sm:$0xff] }
 0x5f3   :  { %v7150_v17 = vadd.f32 %v11219_v5, %v6171_v12  ;;  %v7275_v16 = vmul.f32 0.25, %v7147_v4  ;;  %v20569_v6 = vrot.slane %v18270_v21, 1  ;;  %v10014_v3 = vadd.f32 %v20570_v37, %v7274_v1  ;;  %v20575_v46 = vld [vmem:[#allocation99_spill] sm:$0xff] }
 0x5f4   :  { %v7276_v33 = vmul.f32 0.25, %v7148_v38  ;;  %v10319_v39 = vrot.slane %v10012_v54, %v18283_v24  ;;  %v7151_v47 = vadd.f32 %v11220_v60, %v6173_v57  ;;  %v7277_v45 = vmul.f32 0.25, %v7149_v9  ;;  %v20577_v9 = vld [vmem:[#allocation171_spill] sm:$0xff] }
 0x5f5   :  { %v10013_v31 = vadd.f32 %v20569_v6, %v7273_v20  ;;  %v7278_v48 = vmul.f32 0.25, %v7150_v17  ;;  %v20571_v63 = vrot.slane %v20570_v37, 1  ;;  %v10327_v44 = vrot.slane %v10014_v3, %v18283_v24  ;;  %v20579_v3 = vld [vmem:[#allocation132_spill] sm:$0xff] }
 0x5f6   :  { %v10016_v8 = vadd.f32 %v20572_v11, %v7276_v33  ;;  %v7279_v21 = vmul.f32 0.25, %v7151_v47  ;;  %v20573_v12 = vrot.slane %v20572_v11, 1  ;;  %v6014_v28 = vadd.f32 %v5958_v29, %v5956_v30 }
 0x5f7   :  { %v10015_v55 = vadd.f32 %v20571_v63, %v7275_v16  ;;  %v10323_v15 = vrot.slane %v10013_v31, %v18283_v24  ;;  %v10018_v62 = vadd.f32 %v20574_v52, %v7278_v48  ;;  %v5678_v5 = vadd.f32 %v20575_v46, %v5388_v27  ;;  %v5401_v54 = vpop.f32.mrb[36].mxu1  ;;  %v20578_v31 = vld [vmem:[#allocation136_spill] sm:$0xff] }
 0x5f8   :  { %v10017_v59 = vadd.f32 %v20573_v12, %v7277_v45  ;;  %v10335_v57 = vrot.slane %v10016_v8, %v18283_v24  ;;  %v20576_v20 = vrot.slane %v20574_v52, 1  ;;  %v6174_v29 = vcombine.high %v6014_v28, %v6014_v28  ;;  %v5403_v16 = vpop.f32.mrb[37].mxu1  ;;  %v20581_v8 = vld [vmem:[#allocation173_spill] sm:$0xff] }
 0x5f9   :  { %v10331_v26 = vrot.slane %v10015_v55, %v18283_v24  ;;  %v10778_v2 = vsel %vm9153_vm2, %v10323_v15, %v10319_v39  ;;  %v10343_v25 = vrot.slane %v10018_v62, %v18283_v24  ;;  %v6181_v60 = vrot.slane %v6014_v28, %v20521_v34  ;;  %v5404_v40 = vpop.f32.mrb[38].mxu1 }
 0x5fa   :  { %v10779_v4 = vsel %vm9156_vm3, %v10327_v44, %v10778_v2  ;;  %v10019_v1 = vadd.f32 %v20576_v20, %v7279_v21  ;;  %v10339_v38 = vrot.slane %v10017_v59, %v18283_v24  ;;  %v5888_v17 = vadd.f32 %v5678_v5, %v20577_v9  ;;  %v5406_v63 = vpop.f32.mrb[39].mxu1  ;;  %v20580_v44 = vld [vmem:[#allocation167_spill] sm:$0xff]  ;;  %v20582_v5 = vld [vmem:[#allocation33_spill] sm:$0xff] }
 0x5fb   :  { %v10780_v30 = vsel %vm9159_vm4, %v10331_v26, %v10779_v4  ;;  %v5683_v37 = vadd.f32 %v20578_v31, %v5393_v32  ;;  %v5686_v33 = vadd.f32 %v20579_v3, %v5396_v14  ;;  %v6188_v47 = vrot.slane %v6174_v29, %v20521_v34 }
 0x5fc   :  { %v10347_v27 = vrot.slane %v10019_v1, %v18283_v24  ;;  %v10781_v6 = vsel %vm9162_vm5, %v10335_v57, %v10780_v30  ;;  %v6189_v45 = vcombine.high %v6181_v60, %v6181_v60  ;;  %v11221_v48 = vrot.slane %v6181_v60, 9 }
 0x5fd   :  { %v10782_v39 = vsel %vm9165_vm6, %v10339_v38, %v10781_v6  ;;  %v5959_v15 = vadd.f32 %v18362_v61, %v5888_v17  ;;  %v5889_v11 = vadd.f32 %v5683_v37, %v20580_v44  ;;  %v5890_v21 = vadd.f32 %v5686_v33, %v20581_v8  ;;  %v20584_v17 = vld [vmem:[#allocation172_spill] sm:$0xff]  ;;  %v20585_v6 = vld [vmem:[#allocation119_spill] sm:$0xff] }
 0x5fe   :  { %v10783_v55 = vsel %vm9168_vm7, %v10343_v25, %v10782_v39  ;;  %v6190_v12 = vcombine.high %v6188_v47, %v6188_v47  ;;  %v11222_v14 = vrot.slane %v6189_v45, 9  ;;  %v11223_v59 = vrot.slane %v6188_v47, 9  ;;  %v20583_v25 = vld [vmem:[#allocation131_spill] sm:$0xff] }
 0x5ff   :  { %v10784_v32 = vsel %vm9171_vm8, %v10347_v27, %v10783_v55  ;;  %v7152_v52 = vadd.f32 %v11221_v48, %v6181_v60  ;;  %v6015_v62 = vadd.f32 %v5959_v15, %v18567_v42  ;;  %v5960_v28 = vadd.f32 %v18362_v61, %v5889_v11  ;;  %v5409_v29 = vpop.f32.mrb[40].mxu1  ;;  %v20587_v48 = vld [vmem:[#allocation126_spill] sm:$0xff] }
 0x600   :  { %10894 = vst [vmem:[#allocation4 + $0x10] sm:$0xff] %v10784_v32  ;;  %v18621_v26 = vadd.f32 %v18362_v61, %v5890_v21  ;;  %v11224_v2 = vrot.slane %v6190_v12, 9  ;;  %v7153_v57 = vadd.f32 %v11222_v14, %v6189_v45  ;;  %v7154_v46 = vadd.f32 %v11223_v59, %v6188_v47  ;;  %v5411_v27 = vpop.f32.mrb[41].mxu1 }
 0x601   :  { %v5691_v4 = vadd.f32 %v20582_v5, %v5401_v54  ;;  %v7280_v20 = vmul.f32 0.25, %v7152_v52  ;;  %v6191_v1 = vcombine.high %v6015_v62, %v6015_v62  ;;  %v6198_v38 = vrot.slane %v6015_v62, %v20521_v34  ;;  %v5412_v54 = vpop.f32.mrb[42].mxu1 }
 0x602   :  { %v5694_v30 = vadd.f32 %v20583_v25, %v5404_v40  ;;  %v7155_v60 = vadd.f32 %v11224_v2, %v6190_v12  ;;  %v7281_v9 = vmul.f32 0.25, %v7153_v57  ;;  %v7282_v42 = vmul.f32 0.25, %v7154_v46  ;;  %v5414_v55 = vpop.f32.mrb[43].mxu1 }
 0x603   :  { %v5891_v16 = vadd.f32 %v5691_v4, %v20584_v17  ;;  %v10020_v31 = vadd.f32 %v20585_v6, %v7280_v20  ;;  %v6205_v37 = vrot.slane %v6191_v1, %v20521_v34  ;;  %v6206_v3 = vcombine.high %v6198_v38, %v6198_v38  ;;  %v20589_v20 = vld [vmem:[#allocation69_spill] sm:$0xff] }
 0x604   :  { %v11225_v33 = vrot.slane %v6198_v38, 9  ;;  %v7283_v39 = vmul.f32 0.25, %v7155_v60  ;;  %v20586_v47 = vrot.slane %v20585_v6, 1  ;;  %v10022_v40 = vadd.f32 %v20587_v48, %v7282_v42  ;;  %v20593_v55 = vld [vmem:[#allocation129_spill] sm:$0xff] }
 0x605   :  { %v5962_v63 = vadd.f32 %v18362_v61, %v5891_v16  ;;  %v10351_v15 = vrot.slane %v10020_v31, %v18283_v24  ;;  %v6207_v44 = vcombine.high %v6205_v37, %v6205_v37  ;;  %v11226_v11 = vrot.slane %v6206_v3, 9  ;;  %v20590_v16 = vld [vmem:[#allocation31_spill] sm:$0xff] }
 0x606   :  { %v10021_v45 = vadd.f32 %v20586_v47, %v7281_v9  ;;  %v11227_v8 = vrot.slane %v6205_v37, 9  ;;  %v20588_v21 = vrot.slane %v20587_v48, 1  ;;  %v10359_v14 = vrot.slane %v10022_v40, %v18283_v24 }
 0x607   :  { %v7156_v59 = vadd.f32 %v11225_v33, %v6198_v38  ;;  %v11228_v52 = vrot.slane %v6207_v44, 9  ;;  %v7157_v62 = vadd.f32 %v11226_v11, %v6206_v3  ;;  %v6016_v57 = vadd.f32 %v5962_v63, %v5960_v28  ;;  %v18642_v17 = vpop.f32.mrb[44].mxu1 }
 0x608   :  { %v10023_v32 = vadd.f32 %v20588_v21, %v7283_v39  ;;  %v10355_v12 = vrot.slane %v10021_v45, %v18283_v24  ;;  %v7158_v2 = vadd.f32 %v11227_v8, %v6205_v37  ;;  %v5892_v1 = vadd.f32 %v5694_v30, %v20589_v20  ;;  %v5419_v31 = vpop.f32.mrb[45].mxu1  ;;  %v20592_v30 = vld [vmem:[#allocation54_spill] sm:$0xff] }
 0x609   :  { %v7284_v4 = vmul.f32 0.25, %v7156_v59  ;;  %v7159_v60 = vadd.f32 %v11228_v52, %v6207_v44  ;;  %v7285_v9 = vmul.f32 0.25, %v7157_v62  ;;  %v6208_v6 = vcombine.high %v6016_v57, %v6016_v57  ;;  %v18651_v45 = vpop.f32.mrb[46].mxu1  ;;  %v20595_v52 = vld [vmem:[#allocation169_spill] sm:$0xff] }
 0x60a   :  { %v10363_v46 = vrot.slane %v10023_v32, %v18283_v24  ;;  %v10785_v5 = vsel %vm9153_vm2, %v10355_v12, %v10351_v15  ;;  %v7286_v42 = vmul.f32 0.25, %v7158_v2  ;;  %v6215_v28 = vrot.slane %v6016_v57, %v20521_v34  ;;  %v5422_v44 = vpop.f32.mrb[47].mxu1  ;;  %v20596_v2 = vld [vmem:[#allocation34_spill] sm:$0xff] }
 0x60b   :  { %v10786_v25 = vsel %vm9156_vm3, %v10359_v14, %v10785_v5  ;;  %v10024_v38 = vadd.f32 %v20590_v16, %v7284_v4  ;;  %v7287_v37 = vmul.f32 0.25, %v7159_v60  ;;  %v20591_v3 = vrot.slane %v20590_v16, 1 }
 0x60c   :  { %v10787_v27 = vsel %vm9159_vm4, %v10363_v46, %v10786_v25  ;;  %v10026_v39 = vadd.f32 %v20592_v30, %v7286_v42  ;;  %v5963_v47 = vadd.f32 %v18362_v61, %v5892_v1  ;;  %v6222_v40 = vrot.slane %v6208_v6, %v20521_v34  ;;  %v20597_v1 = vld [vmem:[#allocation57_spill] sm:$0xff] }
 0x60d   :  { %v10025_v33 = vadd.f32 %v20591_v3, %v7285_v9  ;;  %v10367_v48 = vrot.slane %v10024_v38, %v18283_v24  ;;  %v6223_v63 = vcombine.high %v6215_v28, %v6215_v28  ;;  %v5699_v15 = vadd.f32 %v20593_v55, %v5409_v29 }
 0x60e   :  { %v20594_v11 = vrot.slane %v20592_v30, 1  ;;  %v10375_v32 = vrot.slane %v10026_v39, %v18283_v24  ;;  %v6017_v12 = vadd.f32 %v5963_v47, %v18621_v26  ;;  %v6224_v59 = vcombine.high %v6222_v40, %v6222_v40 }
 0x60f   :  { %v10371_v21 = vrot.slane %v10025_v33, %v18283_v24  ;;  %v10788_v14 = vsel %vm9162_vm5, %v10367_v48, %v10787_v27  ;;  %v5893_v62 = vadd.f32 %v5699_v15, %v20595_v52  ;;  %v5702_v57 = vadd.f32 %v20596_v2, %v5412_v54  ;;  %v5425_v38 = vpop.f32.mrb[48].mxu1 }
 0x610   :  { %v10027_v8 = vadd.f32 %v20594_v11, %v7287_v37  ;;  %v6225_v5 = vcombine.high %v6017_v12, %v6017_v12  ;;  %v6232_v4 = vrot.slane %v6017_v12, %v20521_v34  ;;  %v11229_v60 = vrot.slane %v6215_v28, 9  ;;  %v5427_v3 = vpop.f32.mrb[49].mxu1 }
 0x611   :  { %v10789_v29 = vsel %vm9165_vm6, %v10371_v21, %v10788_v14  ;;  %v5894_v25 = vadd.f32 %v5702_v57, %v20597_v1  ;;  %v18671_v26 = vadd.f32 %v18236_v58, %v18524_v41  ;;  %v18676_v27 = vadd.f32 %v18362_v61, %v5893_v62  ;;  %v5428_v41 = vpop.f32.mrb[50].mxu1  ;;  %v20602_v1 = vld [vmem:[#allocation123_spill] sm:$0xff] }
 0x612   :  { %v10379_v46 = vrot.slane %v10027_v8, %v18283_v24  ;;  %v10790_v20 = vsel %vm9168_vm7, %v10375_v32, %v10789_v29  ;;  %v6239_v54 = vrot.slane %v6225_v5, %v20521_v34  ;;  %v6240_v42 = vcombine.high %v6232_v4, %v6232_v4  ;;  %v5430_v44 = vpop.f32.mrb[51].mxu1  ;;  %v20598_v29 = vld [vmem:[#allocation122_spill] sm:$0xff] }
 0x613   :  { %v11233_v16 = vrot.slane %v6232_v4, 9  ;;  %v11230_v6 = vrot.slane %v6223_v63, 9  ;;  %v11231_v31 = vrot.slane %v6222_v40, 9  ;;  %v11232_v37 = vrot.slane %v6224_v59, 9 }
 0x614   :  { %v10791_v9 = vsel %vm9171_vm8, %v10379_v46, %v10790_v20  ;;  %v6241_v33 = vcombine.high %v6239_v54, %v6239_v54  ;;  %v11234_v30 = vrot.slane %v6240_v42, 9  ;;  %v11235_v39 = vrot.slane %v6239_v54, 9 }
 0x615   :  { %10895 = vst [vmem:[#allocation4 + $0x18] sm:$0xff] %v10791_v9  ;;  %v7160_v58 = vadd.f32 %v11229_v60, %v6215_v28  ;;  %v7161_v47 = vadd.f32 %v11230_v6, %v6223_v63  ;;  %v7162_v48 = vadd.f32 %v11231_v31, %v6222_v40  ;;  %v7163_v55 = vadd.f32 %v11232_v37, %v6224_v59  ;;  %v20600_v40 = vld [vmem:[#allocation35_spill] sm:$0xff]  ;;  %v20604_v6 = vld [vmem:[#allocation121_spill] sm:$0xff] }
 0x616   :  { %v7164_v15 = vadd.f32 %v11233_v16, %v6232_v4  ;;  %v11236_v11 = vrot.slane %v6241_v33, 9  ;;  %v7165_v8 = vadd.f32 %v11234_v30, %v6240_v42  ;;  %v7166_v21 = vadd.f32 %v11235_v39, %v6239_v54 }
 0x617   :  { %v7288_v32 = vmul.f32 0.25, %v7160_v58  ;;  %v7289_v12 = vmul.f32 0.25, %v7161_v47  ;;  %v7290_v14 = vmul.f32 0.25, %v7162_v48  ;;  %v7291_v52 = vmul.f32 0.25, %v7163_v55  ;;  %v5433_v37 = vpop.f32.mrb[52].mxu1 }
 0x618   :  { %v7292_v62 = vmul.f32 0.25, %v7164_v15  ;;  %v7167_v2 = vadd.f32 %v11236_v11, %v6241_v33  ;;  %v7293_v57 = vmul.f32 0.25, %v7165_v8  ;;  %v7294_v46 = vmul.f32 0.25, %v7166_v21  ;;  %v5435_v58 = vpop.f32.mrb[53].mxu1  ;;  %v20606_v15 = vld [vmem:[#allocation106_spill] sm:$0xff]  ;;  %v20607_v21 = vld [vmem:[#allocation83_spill] sm:$0xff] }
 0x619   :  { %v10028_v5 = vadd.f32 %v20598_v29, %v7288_v32  ;;  %v20599_v28 = vrot.slane %v20598_v29, 1  ;;  %v10030_v59 = vadd.f32 %v20600_v40, %v7290_v14  ;;  %v20601_v4 = vrot.slane %v20600_v40, 1  ;;  %v5436_v11 = vpop.f32.mrb[54].mxu1  ;;  %v20610_v29 = vld [vmem:[#allocation75_spill] sm:$0xff]  ;;  %v20612_v40 = vld [vmem:[#allocation8_spill] sm:$0xff]  ;;  %v20617_v58 = vld [vmem:[#allocation174_spill] sm:$0xff] }
 0x61a   :  { %v10032_v60 = vadd.f32 %v20602_v1, %v7292_v62  ;;  %v5965_v9 = vadd.f32 %v18362_v61, %v5894_v25  ;;  %v7295_v54 = vmul.f32 0.25, %v7167_v2  ;;  %v20603_v42 = vrot.slane %v20602_v1, 1  ;;  %v5438_v2 = vpop.f32.mrb[55].mxu1 }
 0x61b   :  { %v10029_v63 = vadd.f32 %v20599_v28, %v7289_v12  ;;  %v10031_v20 = vadd.f32 %v20601_v4, %v7291_v52  ;;  %v10034_v31 = vadd.f32 %v20604_v6, %v7294_v46  ;;  %v10383_v3 = vrot.slane %v10028_v5, %v18283_v24  ;;  %v20608_v12 = vld [vmem:[#allocation43_spill] sm:$0xff]  ;;  %v20609_v52 = vld [vmem:[#allocation141_spill] sm:$0xff]  ;;  %v20613_v4 = vld [vmem:[#allocation176_spill] sm:$0xff] }
 0x61c   :  { %v10033_v16 = vadd.f32 %v20603_v42, %v7293_v57  ;;  %v10391_v30 = vrot.slane %v10030_v59, %v18283_v24  ;;  %v20605_v47 = vrot.slane %v20604_v6, 1  ;;  %v10399_v25 = vrot.slane %v10032_v60, %v18283_v24  ;;  %v20611_v28 = vld [vmem:[#allocation135_spill] sm:$0xff]  ;;  %v20619_v2 = vld [vmem:[#allocation177_spill] sm:$0xff] }
 0x61d   :  { %v10387_v33 = vrot.slane %v10029_v63, %v18283_v24  ;;  %v10395_v39 = vrot.slane %v10031_v20, %v18283_v24  ;;  %v5707_v44 = vadd.f32 %v20606_v15, %v18642_v17  ;;  %v5710_v32 = vadd.f32 %v20607_v21, %v18651_v45  ;;  %v20614_v45 = vld [vmem:[#allocation80_spill] sm:$0xff]  ;;  %v20615_v60 = vld [vmem:[#allocation11_spill] sm:$0xff] }
 0x61e   :  { %v10035_v48 = vadd.f32 %v20605_v47, %v7295_v54  ;;  %v10403_v55 = vrot.slane %v10033_v16, %v18283_v24  ;;  %v5715_v14 = vadd.f32 %v20608_v12, %v5425_v38  ;;  %v5718_v62 = vadd.f32 %v20609_v52, %v5428_v41  ;;  %v20616_v42 = vld [vmem:[#allocation111_spill] sm:$0xff] }
 0x61f   :  { %v10792_v8 = vsel %vm9153_vm2, %v10387_v33, %v10383_v3  ;;  %v10407_v57 = vrot.slane %v10034_v31, %v18283_v24  ;;  %v5895_v5 = vadd.f32 %v5707_v44, %v20610_v29  ;;  %v5723_v63 = vadd.f32 %v20611_v28, %v5433_v37 }
 0x620   :  { %v10793_v46 = vsel %vm9156_vm3, %v10391_v30, %v10792_v8  ;;  %v5896_v59 = vadd.f32 %v5710_v32, %v20612_v40  ;;  %v5897_v20 = vadd.f32 %v5715_v14, %v20613_v4  ;;  %v5898_v1 = vadd.f32 %v5718_v62, %v20614_v45 }
 0x621   :  { %v10794_v17 = vsel %vm9159_vm4, %v10395_v39, %v10793_v46  ;;  %v5966_v41 = vadd.f32 %v18362_v61, %v5895_v5  ;;  %v5899_v54 = vadd.f32 %v5723_v63, %v20615_v60  ;;  %v5726_v16 = vadd.f32 %v20616_v42, %v5436_v11 }
 0x622   :  { %v10795_v38 = vsel %vm9162_vm5, %v10399_v25, %v10794_v17  ;;  %v10411_v6 = vrot.slane %v10035_v48, %v18283_v24  ;;  %v5967_v37 = vadd.f32 %v18362_v61, %v5896_v59  ;;  %v5968_v3 = vadd.f32 %v18362_v61, %v5897_v20  ;;  %v5441_v25 = vpop.f32.mrb[56].mxu1 }
 0x623   :  { %v10796_v31 = vsel %vm9165_vm6, %v10403_v55, %v10795_v38  ;;  %v6018_v30 = vadd.f32 %v5966_v41, %v18676_v27  ;;  %v5970_v39 = vadd.f32 %v18362_v61, %v5899_v54  ;;  %v5900_v47 = vadd.f32 %v5726_v16, %v20617_v58  ;;  %v20618_v55 = vld [vmem:[#allocation25_spill] sm:$0xff]  ;;  %v5443_v8 = vpop.f32.mrb[57].mxu1 }
 0x624   :  { %v10797_v33 = vsel %vm9168_vm7, %v10407_v57, %v10796_v31  ;;  %v6019_v44 = vadd.f32 %v5967_v37, %v5965_v9  ;;  %v18726_v48 = vadd.f32 %v18362_v61, %v5898_v1  ;;  %v5731_v11 = vadd.f32 %v20618_v55, %v5441_v25  ;;  %v5444_v27 = vpop.f32.mrb[58].mxu1  ;;  %v20620_v61 = vld [vmem:[#allocation142_spill] sm:$0xff] }
 0x625   :  { %v10798_v15 = vsel %vm9171_vm8, %v10411_v6, %v10797_v33  ;;  %v6242_v21 = vcombine.high %v6018_v30, %v6018_v30  ;;  %v6249_v32 = vrot.slane %v6018_v30, %v20521_v34  ;;  %v6020_v12 = vadd.f32 %v5970_v39, %v5968_v3  ;;  %v5446_v46 = vpop.f32.mrb[59].mxu1 }
 0x626   :  { %10896 = vst [vmem:[#allocation4 + $0x20] sm:$0xff] %v10798_v15  ;;  %v9702_v14 = vcombine.high %v18560_v51, %v18560_v51  ;;  %v6259_v52 = vcombine.high %v6019_v44, %v6019_v44  ;;  %v6266_v62 = vrot.slane %v6019_v44, %v20521_v34  ;;  %v18734_v9 = vadd.f32 %v5731_v11, %v20619_v2  ;;  %v18754_v46 = vld [vmem:[%s19392_s4] ss:$0 sm:$0xff] }
 0x627   :  { %v18737_v57 = vadd.f32 %v20620_v61, %v5444_v27  ;;  %v6256_v29 = vrot.slane %v6242_v21, %v20521_v34  ;;  %v6257_v5 = vcombine.high %v6249_v32, %v6249_v32  ;;  %v11237_v28 = vrot.slane %v6249_v32, 9  ;;  %v18742_v3 = vpop.f32.mrb[60].mxu1 }
 0x628   :  { %v6276_v63 = vcombine.high %v6020_v12, %v6020_v12  ;;  %v6273_v17 = vrot.slane %v6259_v52, %v20521_v34  ;;  %v6274_v40 = vcombine.high %v6266_v62, %v6266_v62  ;;  %v11241_v59 = vrot.slane %v6266_v62, 9  ;;  %v5451_v25 = vpop.f32.mrb[61].mxu1 }
 0x629   :  { %v6283_v4 = vrot.slane %v6020_v12, %v20521_v34  ;;  %v6258_v20 = vcombine.high %v6256_v29, %v6256_v29  ;;  %v11238_v45 = vrot.slane %v6257_v5, 9  ;;  %v11239_v1 = vrot.slane %v6256_v29, 9  ;;  %v18745_v8 = vpop.f32.mrb[62].mxu1 }
 0x62a   :  { %v7168_v38 = vadd.f32 %v11237_v28, %v6249_v32  ;;  %v6275_v41 = vcombine.high %v6273_v17, %v6273_v17  ;;  %v11242_v60 = vrot.slane %v6274_v40, 9  ;;  %v11243_v54 = vrot.slane %v6273_v17, 9  ;;  %v5454_v52 = vpop.f32.mrb[63].mxu1 }
 0x62b   :  { %v7172_v42 = vadd.f32 %v11241_v59, %v6266_v62  ;;  %v11240_v16 = vrot.slane %v6258_v20, 9  ;;  %v7169_v6 = vadd.f32 %v11238_v45, %v6257_v5  ;;  %v7170_v31 = vadd.f32 %v11239_v1, %v6256_v29  ;;  %v18761_v59 = vpop.f32.mrb[12].mxu0 }
 0x62c   :  { %v7296_v37 = vmul.f32 0.25, %v7168_v38  ;;  %v11244_v33 = vrot.slane %v6275_v41, 9  ;;  %v7173_v30 = vadd.f32 %v11242_v60, %v6274_v40  ;;  %v7174_v39 = vadd.f32 %v11243_v54, %v6273_v17 }
 0x62d   :  { %v7300_v58 = vmul.f32 0.25, %v7172_v42  ;;  %v7171_v15 = vadd.f32 %v11240_v16, %v6258_v20  ;;  %v7297_v44 = vmul.f32 0.25, %v7169_v6  ;;  %v7298_v55 = vmul.f32 0.25, %v7170_v31 }
 0x62e   :  { %v10036_v11 = vadd.f32 %v18404_v49, %v7296_v37  ;;  %v7175_v21 = vadd.f32 %v11244_v33, %v6275_v41  ;;  %v7301_v32 = vmul.f32 0.25, %v7173_v30  ;;  %v7302_v12 = vmul.f32 0.25, %v7174_v39 }
 0x62f   :  { %v10040_v27 = vadd.f32 %v18421_v18, %v7300_v58  ;;  %v7299_v62 = vmul.f32 0.25, %v7171_v15  ;;  %v10037_v2 = vadd.f32 %v9824_v0, %v7297_v44  ;;  %v10038_v61 = vadd.f32 %v18425_v19, %v7298_v55  ;;  %v18776_v54 = vpop.f32.mrb[64].mxu1 }
 0x630   :  { %v5971_v29 = vadd.f32 %v18754_v46, %v5900_v47  ;;  %v7303_v5 = vmul.f32 0.25, %v7175_v21  ;;  %v10041_v28 = vadd.f32 %v9826_v10, %v7301_v32  ;;  %v10042_v17 = vadd.f32 %v18445_v53, %v7302_v12  ;;  %v18768_v47 = vpop.f32.mrb[13].mxu0 }
 0x631   :  { %v10415_v40 = vrot.slane %v10036_v11, %v18283_v24  ;;  %v10039_v49 = vadd.f32 %v9825_v43, %v7299_v62  ;;  %v10419_v0 = vrot.slane %v10037_v2, %v18283_v24  ;;  %v10423_v20 = vrot.slane %v10038_v61, %v18283_v24  ;;  %v20621_v2 = vld [vmem:[#allocation52_spill] sm:$0xff] }
 0x632   :  { %v6290_v45 = vrot.slane %v6276_v63, %v20521_v34  ;;  %v10043_v18 = vadd.f32 %v9827_v23, %v7303_v5  ;;  %v10431_v10 = vrot.slane %v10040_v27, %v18283_v24  ;;  %v10435_v1 = vrot.slane %v10041_v28, %v18283_v24  ;;  %v5459_v23 = vpop.f32.mrb[65].mxu1 }
 0x633   :  { %v6291_v38 = vcombine.high %v6283_v4, %v6283_v4  ;;  %v10427_v41 = vrot.slane %v10039_v49, %v18283_v24  ;;  %v10799_v19 = vsel %vm9153_vm2, %v10419_v0, %v10415_v40  ;;  %v11245_v60 = vrot.slane %v6283_v4, 9  ;;  %v5460_v30 = vpop.f32.mrb[66].mxu1  ;;  %v20625_v23 = vld [vmem:[#allocation175_spill] sm:$0xff] }
 0x634   :  { %v6292_v43 = vcombine.high %v6290_v45, %v6290_v45  ;;  %v10439_v63 = vrot.slane %v10042_v17, %v18283_v24  ;;  %v10800_v42 = vsel %vm9156_vm3, %v10423_v20, %v10799_v19  ;;  %v11247_v53 = vrot.slane %v6290_v45, 9  ;;  %v5462_v44 = vpop.f32.mrb[67].mxu1  ;;  %v20623_v17 = vld [vmem:[#allocation45_spill] sm:$0xff] }
 0x635   :  { %v11246_v16 = vrot.slane %v6291_v38, 9  ;;  %v10801_v6 = vsel %vm9159_vm4, %v10427_v41, %v10800_v42  ;;  %v7176_v37 = vadd.f32 %v11245_v60, %v6283_v4  ;;  %v6021_v33 = vadd.f32 %v5971_v29, %v18726_v48 }
 0x636   :  { %v11248_v31 = vrot.slane %v6292_v43, 9  ;;  %v10443_v39 = vrot.slane %v10043_v18, %v18283_v24  ;;  %v10802_v58 = vsel %vm9162_vm5, %v10431_v10, %v10801_v6  ;;  %v7178_v15 = vadd.f32 %v11247_v53, %v6290_v45 }
 0x637   :  { %v7177_v25 = vadd.f32 %v11246_v16, %v6291_v38  ;;  %v10803_v55 = vsel %vm9165_vm6, %v10435_v1, %v10802_v58  ;;  %v7304_v21 = vmul.f32 0.25, %v7176_v37  ;;  %v6293_v32 = vcombine.high %v6021_v33, %v6021_v33  ;;  %v5465_v38 = vpop.f32.mrb[68].mxu1  ;;  %v20626_v58 = vld [vmem:[#allocation147_spill] sm:$0xff] }
 0x638   :  { %v7179_v11 = vadd.f32 %v11248_v31, %v6292_v43  ;;  %v10804_v12 = vsel %vm9168_vm7, %v10439_v63, %v10803_v55  ;;  %v7306_v52 = vmul.f32 0.25, %v7178_v15  ;;  %v6300_v4 = vrot.slane %v6021_v33, %v20521_v34  ;;  %v5467_v63 = vpop.f32.mrb[69].mxu1 }
 0x639   :  { %v7305_v27 = vmul.f32 0.25, %v7177_v25  ;;  %v10805_v48 = vsel %vm9171_vm8, %v10443_v39, %v10804_v12  ;;  %v10044_v61 = vadd.f32 %v20621_v2, %v7304_v21  ;;  %v6307_v29 = vrot.slane %v6293_v32, %v20521_v34  ;;  %v5468_v31 = vpop.f32.mrb[70].mxu1  ;;  %v20627_v12 = vld [vmem:[#allocation128_spill] sm:$0xff]  ;;  %v20637_v63 = vld [vmem:[#allocation182_spill] sm:$0xff] }
 0x63a   :  { %v7307_v62 = vmul.f32 0.25, %v7179_v11  ;;  %10897 = vst [vmem:[#allocation4 + $0x28] sm:$0xff] %v10805_v48  ;;  %v20622_v5 = vrot.slane %v20621_v2, 1  ;;  %v10046_v40 = vadd.f32 %v20623_v17, %v7306_v52  ;;  %v6308_v49 = vcombine.high %v6300_v4, %v6300_v4  ;;  %v5470_v15 = vpop.f32.mrb[71].mxu1  ;;  %v20628_v52 = vld [vmem:[#allocation82_spill] sm:$0xff] }
 0x63b   :  { %v11249_v0 = vrot.slane %v6300_v4, 9  ;;  %v20624_v20 = vrot.slane %v20623_v17, 1  ;;  %v10447_v18 = vrot.slane %v10044_v61, %v18283_v24  ;;  %v6309_v10 = vcombine.high %v6307_v29, %v6307_v29 }
 0x63c   :  { %v10045_v28 = vadd.f32 %v20622_v5, %v7305_v27  ;;  %v11251_v1 = vrot.slane %v6307_v29, 9  ;;  %v10455_v19 = vrot.slane %v10046_v40, %v18283_v24  ;;  %v11250_v43 = vrot.slane %v6308_v49, 9 }
 0x63d   :  { %v10047_v45 = vadd.f32 %v20624_v20, %v7307_v62  ;;  %v7180_v60 = vadd.f32 %v11249_v0, %v6300_v4  ;;  %v11252_v16 = vrot.slane %v6309_v10, 9  ;;  %v5902_v6 = vadd.f32 %v18737_v57, %v20625_v23  ;;  %v20629_v62 = vld [vmem:[#allocation100_spill] sm:$0xff] }
 0x63e   :  { %v10451_v41 = vrot.slane %v10045_v28, %v18283_v24  ;;  %v7182_v53 = vadd.f32 %v11251_v1, %v6307_v29  ;;  %v7181_v33 = vadd.f32 %v11250_v43, %v6308_v49  ;;  %v5739_v25 = vadd.f32 %v20626_v58, %v18742_v3  ;;  %v20630_v3 = vld [vmem:[#allocation145_spill] sm:$0xff]  ;;  %v20631_v29 = vld [vmem:[#allocation144_spill] sm:$0xff]  ;;  %v20633_v49 = vld [vmem:[#allocation38_spill] sm:$0xff] }
 0x63f   :  { %v10459_v42 = vrot.slane %v10047_v45, %v18283_v24  ;;  %v7308_v39 = vmul.f32 0.25, %v7180_v60  ;;  %v7183_v55 = vadd.f32 %v11252_v16, %v6309_v10  ;;  %v5972_v21 = vadd.f32 %v18754_v46, %v18734_v9  ;;  %v20635_v10 = vld [vmem:[#allocation74_spill] sm:$0xff]  ;;  %v18832_v16 = vpop.f32.mrb[14].mxu0 }
 0x640   :  { %v10806_v37 = vsel %vm9153_vm2, %v10451_v41, %v10447_v18  ;;  %v7310_v11 = vmul.f32 0.25, %v7182_v53  ;;  %v7309_v32 = vmul.f32 0.25, %v7181_v33  ;;  %v5903_v4 = vadd.f32 %v5739_v25, %v20628_v52 }
 0x641   :  { %v10807_v44 = vsel %vm9156_vm3, %v10455_v19, %v10806_v37  ;;  %v10048_v27 = vadd.f32 %v20627_v12, %v7308_v39  ;;  %v7311_v48 = vmul.f32 0.25, %v7183_v55  ;;  %v5742_v61 = vadd.f32 %v20630_v3, %v18745_v8  ;;  %v20636_v8 = vld [vmem:[#allocation180_spill] sm:$0xff]  ;;  %v18825_v19 = vpop.f32.mrb[72].mxu1  ;;  %v20638_v37 = vld [vmem:[#allocation61_spill] sm:$0xff] }
 0x642   :  { %v10808_v57 = vsel %vm9159_vm4, %v10459_v42, %v10807_v44  ;;  %v10050_v2 = vadd.f32 %v20629_v62, %v7310_v11  ;;  %v5747_v5 = vadd.f32 %v20631_v29, %v18776_v54  ;;  %v20632_v28 = vrot.slane %v20627_v12, 1  ;;  %v18843_v11 = vpop.f32.mrb[15].mxu0  ;;  %v20639_v12 = vld [vmem:[#allocation60_spill] sm:$0xff]  ;;  %v20641_v29 = vld [vmem:[#allocation181_spill] sm:$0xff] }
 0x643   :  { %v10463_v9 = vrot.slane %v10048_v27, %v18283_v24  ;;  %v5974_v40 = vadd.f32 %v18754_v46, %v5903_v4  ;;  %v5750_v0 = vadd.f32 %v20633_v49, %v5460_v30  ;;  %v20634_v20 = vrot.slane %v20629_v62, 1  ;;  %v5475_v30 = vpop.f32.mrb[73].mxu1 }
 0x644   :  { %v10049_v17 = vadd.f32 %v20632_v28, %v7309_v32  ;;  %v5973_v18 = vadd.f32 %v18754_v46, %v5902_v6  ;;  %v5904_v1 = vadd.f32 %v5742_v61, %v20635_v10  ;;  %v5905_v41 = vadd.f32 %v5747_v5, %v20636_v8  ;;  %v18838_v39 = vpop.f32.mrb[74].mxu1 }
 0x645   :  { %v10051_v45 = vadd.f32 %v20634_v20, %v7311_v48  ;;  %v10809_v43 = vsel %vm9162_vm5, %v10463_v9, %v10808_v57  ;;  %v6022_v60 = vadd.f32 %v5974_v40, %v5972_v21  ;;  %v18830_v42 = vadd.f32 %v5750_v0, %v20637_v63  ;;  %v5478_v55 = vpop.f32.mrb[75].mxu1  ;;  %v20640_v57 = vld [vmem:[#allocation46_spill] sm:$0xff] }
 0x646   :  { %v10467_v54 = vrot.slane %v10049_v17, %v18283_v24  ;;  %v10471_v53 = vrot.slane %v10050_v2, %v18283_v24  ;;  %v5975_v6 = vadd.f32 %v18754_v46, %v5904_v1  ;;  %v5755_v33 = vadd.f32 %v20638_v37, %v5465_v38 }
 0x647   :  { %v10475_v23 = vrot.slane %v10051_v45, %v18283_v24  ;;  %v6310_v25 = vcombine.high %v6022_v60, %v6022_v60  ;;  %v6317_v15 = vrot.slane %v6022_v60, %v20521_v34  ;;  %v5976_v44 = vadd.f32 %v18754_v46, %v5905_v41  ;;  %v18854_v45 = vpop.f32.mrb[76].mxu1 }
 0x648   :  { %v10810_v58 = vsel %vm9165_vm6, %v10467_v54, %v10809_v43  ;;  %v6023_v32 = vadd.f32 %v5975_v6, %v5973_v18  ;;  %v5907_v27 = vadd.f32 %v5755_v33, %v20639_v12  ;;  %v5758_v52 = vadd.f32 %v20640_v57, %v5468_v31  ;;  %v5483_v41 = vpop.f32.mrb[77].mxu1 }
 0x649   :  { %v10811_v21 = vsel %vm9168_vm7, %v10471_v53, %v10810_v58  ;;  %v6324_v4 = vrot.slane %v6310_v25, %v20521_v34  ;;  %v6325_v48 = vcombine.high %v6317_v15, %v6317_v15  ;;  %v11253_v62 = vrot.slane %v6317_v15, 9  ;;  %v18856_v30 = vpop.f32.mrb[78].mxu1 }
 0x64a   :  { %v10812_v38 = vsel %vm9171_vm8, %v10475_v23, %v10811_v21  ;;  %v6327_v2 = vcombine.high %v6023_v32, %v6023_v32  ;;  %v6334_v3 = vrot.slane %v6023_v32, %v20521_v34  ;;  %v5978_v61 = vadd.f32 %v18754_v46, %v5907_v27  ;;  %v5486_v33 = vpop.f32.mrb[79].mxu1 }
 0x64b   :  { %10898 = vst [vmem:[#allocation4 + $0x30] sm:$0xff] %v10812_v38  ;;  %v5908_v5 = vadd.f32 %v5758_v52, %v20641_v29  ;;  %v6326_v28 = vcombine.high %v6324_v4, %v6324_v4  ;;  %v11254_v17 = vrot.slane %v6325_v48, 9  ;;  %v11255_v9 = vrot.slane %v6324_v4, 9 }
 0x64c   :  { %v7184_v40 = vadd.f32 %v11253_v62, %v6317_v15  ;;  %v6341_v31 = vrot.slane %v6327_v2, %v20521_v34  ;;  %v6342_v49 = vcombine.high %v6334_v3, %v6334_v3  ;;  %v11257_v0 = vrot.slane %v6334_v3, 9 }
 0x64d   :  { %v6024_v20 = vadd.f32 %v5978_v61, %v5976_v44  ;;  %v11256_v18 = vrot.slane %v6326_v28, 9  ;;  %v7185_v10 = vadd.f32 %v11254_v17, %v6325_v48  ;;  %v7186_v1 = vadd.f32 %v11255_v9, %v6324_v4 }
 0x64e   :  { %v7312_v8 = vmul.f32 0.25, %v7184_v40  ;;  %v6343_v54 = vcombine.high %v6341_v31, %v6341_v31  ;;  %v11258_v43 = vrot.slane %v6342_v49, 9  ;;  %v11259_v60 = vrot.slane %v6341_v31, 9 }
 0x64f   :  { %v7188_v63 = vadd.f32 %v11257_v0, %v6334_v3  ;;  %v7187_v53 = vadd.f32 %v11256_v18, %v6326_v28  ;;  %v7313_v23 = vmul.f32 0.25, %v7185_v10  ;;  %v7314_v6 = vmul.f32 0.25, %v7186_v1  ;;  %v18873_v17 = vpop.f32.mrb[80].mxu1 }
 0x650   :  { %v10052_v37 = vadd.f32 %v18441_v56, %v7312_v8  ;;  %v11260_v58 = vrot.slane %v6343_v54, 9  ;;  %v7189_v25 = vadd.f32 %v11258_v43, %v6342_v49  ;;  %v7190_v15 = vadd.f32 %v11259_v60, %v6341_v31  ;;  %v5491_v49 = vpop.f32.mrb[81].mxu1 }
 0x651   :  { %v7316_v44 = vmul.f32 0.25, %v7188_v63  ;;  %v7315_v55 = vmul.f32 0.25, %v7187_v53  ;;  %v10053_v21 = vadd.f32 %v9832_v22, %v7313_v23  ;;  %v10054_v32 = vadd.f32 %v18472_v36, %v7314_v6  ;;  %v18884_v1 = vpop.f32.mrb[82].mxu1  ;;  %v20646_v23 = vld [vmem:[#allocation32_spill] sm:$0xff] }
 0x652   :  { %v10479_v12 = vrot.slane %v10052_v37, %v18283_v24  ;;  %v7191_v27 = vadd.f32 %v11260_v58, %v6343_v54  ;;  %v7317_v57 = vmul.f32 0.25, %v7189_v25  ;;  %v7318_v52 = vmul.f32 0.25, %v7190_v15 }
 0x653   :  { %v10056_v38 = vadd.f32 %v18468_v7, %v7316_v44  ;;  %v20642_v4 = vrot.slane %v18472_v36, 1  ;;  %v10483_v62 = vrot.slane %v10053_v21, %v18283_v24  ;;  %v10487_v2 = vrot.slane %v10054_v32, %v18283_v24 }
 0x654   :  { %v6344_v3 = vcombine.high %v6024_v20, %v6024_v20  ;;  %v7319_v61 = vmul.f32 0.25, %v7191_v27  ;;  %v20643_v56 = vrot.slane %v18468_v7, 1  ;;  %v10058_v29 = vadd.f32 %v18501_v35, %v7318_v52 }
 0x655   :  { %v10055_v48 = vadd.f32 %v20642_v4, %v7315_v55  ;;  %v5977_v28 = vadd.f32 %v18754_v46, %v18830_v42  ;;  %v10813_v36 = vsel %vm9153_vm2, %v10483_v62, %v10479_v12  ;;  %v10495_v40 = vrot.slane %v10056_v38, %v18283_v24  ;;  %v20648_v55 = vld [vmem:[#allocation183_spill] sm:$0xff] }
 0x656   :  { %v10057_v22 = vadd.f32 %v20643_v56, %v7317_v57  ;;  %v6351_v31 = vrot.slane %v6024_v20, %v20521_v34  ;;  %v10814_v0 = vsel %vm9156_vm3, %v10487_v2, %v10813_v36  ;;  %v20644_v7 = vrot.slane %v18501_v35, 1  ;;  %v5494_v20 = vpop.f32.mrb[83].mxu1  ;;  %v20645_v35 = vld [vmem:[#allocation41_spill] sm:$0xff] }
 0x657   :  { %v10491_v9 = vrot.slane %v10055_v48, %v18283_v24  ;;  %v6358_v42 = vrot.slane %v6344_v3, %v20521_v34  ;;  %v10503_v8 = vrot.slane %v10058_v29, %v18283_v24  ;;  %v5979_v43 = vadd.f32 %v18754_v46, %v5908_v5  ;;  %v18925_v38 = vpop.f32.mrb[84].mxu1 }
 0x658   :  { %v10059_v18 = vadd.f32 %v20644_v7, %v7319_v61  ;;  %v10499_v10 = vrot.slane %v10057_v22, %v18283_v24  ;;  %v6359_v54 = vcombine.high %v6351_v31, %v6351_v31  ;;  %v5763_v53 = vadd.f32 %v20645_v35, %v18825_v19  ;;  %v20647_v19 = vld [vmem:[#allocation81_spill] sm:$0xff]  ;;  %v5499_v3 = vpop.f32.mrb[85].mxu1 }
 0x659   :  { %v10815_v41 = vsel %vm9159_vm4, %v10491_v9, %v10814_v0  ;;  %v5766_v6 = vadd.f32 %v20646_v23, %v18838_v39  ;;  %v6025_v33 = vadd.f32 %v5979_v43, %v5977_v28  ;;  %v18898_v58 = vrot.slane %v18560_v51, %v20521_v34  ;;  %v18931_v28 = vpop.f32.mrb[86].mxu1 }
 0x65a   :  { %v10507_v60 = vrot.slane %v10059_v18, %v18283_v24  ;;  %v10816_v63 = vsel %vm9162_vm5, %v10495_v40, %v10815_v41  ;;  %v18904_v5 = vrot.slane %v9702_v14, %v20521_v34  ;;  %v6360_v15 = vcombine.high %v6358_v42, %v6358_v42  ;;  %v5502_v0 = vpop.f32.mrb[87].mxu1 }
 0x65b   :  { %v10817_v37 = vsel %vm9165_vm6, %v10499_v10, %v10816_v63  ;;  %v5909_v44 = vadd.f32 %v5763_v53, %v20647_v19  ;;  %v5910_v39 = vadd.f32 %v5766_v6, %v20648_v55  ;;  %v6361_v32 = vcombine.high %v6025_v33, %v6025_v33  ;;  %v20656_v0 = vld [vmem:[#allocation17_spill] sm:$0xff] }
 0x65c   :  { %v10818_v25 = vsel %vm9168_vm7, %v10503_v8, %v10817_v37  ;;  %v6368_v12 = vrot.slane %v6025_v33, %v20521_v34  ;;  %v18913_v27 = vcombine.high %v18898_v58, %v18898_v58  ;;  %v18923_v57 = vcombine.high %v18904_v5, %v18904_v5 }
 0x65d   :  { %v10819_v21 = vsel %vm9171_vm8, %v10507_v60, %v10818_v25  ;;  %v18916_v51 = vadd.f32 %v18754_v46, %v5909_v44  ;;  %v18919_v14 = vadd.f32 %v18754_v46, %v5910_v39  ;;  %v11261_v52 = vrot.slane %v6351_v31, 9 }
 0x65e   :  { %10899 = vst [vmem:[#allocation4 + $0x38] sm:$0xff] %v10819_v21  ;;  %v6375_v4 = vrot.slane %v6361_v32, %v20521_v34  ;;  %v6376_v48 = vcombine.high %v6368_v12, %v6368_v12  ;;  %v11265_v62 = vrot.slane %v6368_v12, 9  ;;  %v9844_v2 = vrot.slane %v18898_v58, 1  ;;  %v20651_v32 = vld [vmem:[#allocation63_spill] sm:$0xff] }
 0x65f   :  { %v9845_v61 = vrot.slane %v18913_v27, 1  ;;  %v9846_v56 = vrot.slane %v18904_v5, 1  ;;  %v11262_v22 = vrot.slane %v6359_v54, 9  ;;  %v11263_v29 = vrot.slane %v6358_v42, 9  ;;  %v18942_v55 = vpop.f32.mrb[88].mxu1 }
 0x660   :  { %v6377_v9 = vcombine.high %v6375_v4, %v6375_v4  ;;  %v11266_v36 = vrot.slane %v6376_v48, 9  ;;  %v11267_v40 = vrot.slane %v6375_v4, 9  ;;  %v11264_v49 = vrot.slane %v6360_v15, 9 }
 0x661   :  { %v7192_v7 = vadd.f32 %v11261_v52, %v6351_v31  ;;  %v7193_v18 = vadd.f32 %v11262_v22, %v6359_v54  ;;  %v7194_v10 = vadd.f32 %v11263_v29, %v6358_v42  ;;  %v7196_v8 = vadd.f32 %v11265_v62, %v6368_v12  ;;  %v20649_v42 = vld [vmem:[#allocation151_spill] sm:$0xff]  ;;  %v20652_v52 = vld [vmem:[#allocation66_spill] sm:$0xff] }
 0x662   :  { %v11268_v41 = vrot.slane %v6377_v9, 9  ;;  %v7195_v43 = vadd.f32 %v11264_v49, %v6360_v15  ;;  %v7197_v20 = vadd.f32 %v11266_v36, %v6376_v48  ;;  %v7198_v60 = vadd.f32 %v11267_v40, %v6375_v4  ;;  %v20650_v15 = vld [vmem:[#allocation149_spill] sm:$0xff]  ;;  %v5507_v48 = vpop.f32.mrb[89].mxu1  ;;  %v20653_v29 = vld [vmem:[#allocation178_spill] sm:$0xff]  ;;  %v20655_v40 = vld [vmem:[#allocation179_spill] sm:$0xff] }
 0x663   :  { %v9847_v63 = vrot.slane %v18923_v57, 1  ;;  %v7320_v35 = vmul.f32 0.25, %v7192_v7  ;;  %v7321_v53 = vmul.f32 0.25, %v7193_v18  ;;  %v7322_v23 = vmul.f32 0.25, %v7194_v10 }
 0x664   :  { %v7199_v6 = vadd.f32 %v11268_v41, %v6377_v9  ;;  %v7323_v37 = vmul.f32 0.25, %v7195_v43  ;;  %v7324_v33 = vmul.f32 0.25, %v7196_v8  ;;  %v7325_v25 = vmul.f32 0.25, %v7197_v20  ;;  %v20654_v9 = vld [vmem:[#allocation76_spill] sm:$0xff] }
 0x665   :  { %v9668_v19 = vcombine.high %v18671_v26, %v18671_v26  ;;  %v9675_v31 = vrot.slane %v18671_v26, %v20521_v34  ;;  %v5771_v54 = vadd.f32 %v20649_v42, %v18854_v45  ;;  %v5774_v44 = vadd.f32 %v20650_v15, %v18856_v30  ;;  %v18949_v45 = vpop.f32.mrb[90].mxu1 }
 0x666   :  { %v7326_v39 = vmul.f32 0.25, %v7198_v60  ;;  %v7327_v21 = vmul.f32 0.25, %v7199_v6  ;;  %v5779_v12 = vadd.f32 %v20651_v32, %v18873_v17  ;;  %v5782_v4 = vadd.f32 %v20652_v52, %v18884_v1  ;;  %v5510_v17 = vpop.f32.mrb[91].mxu1  ;;  %v18959_v60 = vld [vmem:[%s19394_s6] ss:$0 sm:$0xff] }
 0x667   :  { %v9682_v62 = vrot.slane %v9668_v19, %v20521_v34  ;;  %v9683_v26 = vcombine.high %v9675_v31, %v9675_v31  ;;  %v9836_v3 = vrot.slane %v9675_v31, 1  ;;  %v10060_v22 = vadd.f32 %v9675_v31, %v7320_v35 }
 0x668   :  { %v5911_v30 = vadd.f32 %v5771_v54, %v20653_v29  ;;  %v5912_v36 = vadd.f32 %v5774_v44, %v20654_v9  ;;  %v5913_v49 = vadd.f32 %v5779_v12, %v20655_v40  ;;  %v5914_v7 = vadd.f32 %v5782_v4, %v20656_v0 }
 0x669   :  { %v9684_v18 = vcombine.high %v9682_v62, %v9682_v62  ;;  %v9837_v10 = vrot.slane %v9683_v26, 1  ;;  %v9838_v1 = vrot.slane %v9682_v62, 1  ;;  %v10061_v8 = vadd.f32 %v9836_v3, %v7321_v53 }
 0x66a   :  { %v10062_v41 = vadd.f32 %v9683_v26, %v7322_v23  ;;  %v10064_v43 = vadd.f32 %v9682_v62, %v7324_v33  ;;  %v5982_v20 = vadd.f32 %v18754_v46, %v5911_v30  ;;  %v9497_v35 = vadd.f32 %v18959_v60, %v18576_v50  ;;  %v18970_v50 = vpop.f32.mrb[92].mxu1 }
 0x66b   :  { %v9839_v6 = vrot.slane %v9684_v18, 1  ;;  %v10063_v19 = vadd.f32 %v9837_v10, %v7323_v37  ;;  %v10065_v31 = vadd.f32 %v9838_v1, %v7325_v25  ;;  %v10066_v42 = vadd.f32 %v9684_v18, %v7326_v39  ;;  %v5515_v4 = vpop.f32.mrb[93].mxu1 }
 0x66c   :  { %v10511_v54 = vrot.slane %v10060_v22, %v18283_v24  ;;  %v10515_v53 = vrot.slane %v10061_v8, %v18283_v24  ;;  %v10519_v23 = vrot.slane %v10062_v41, %v18283_v24  ;;  %v6026_v33 = vadd.f32 %v5982_v20, %v18916_v51  ;;  %v18981_v26 = vpop.f32.mrb[94].mxu1 }
 0x66d   :  { %v10067_v15 = vadd.f32 %v9839_v6, %v7327_v21  ;;  %v10523_v44 = vrot.slane %v10063_v19, %v18283_v24  ;;  %v10527_v32 = vrot.slane %v10064_v43, %v18283_v24  ;;  %v10531_v12 = vrot.slane %v10065_v31, %v18283_v24  ;;  %v5518_v9 = vpop.f32.mrb[95].mxu1 }
 0x66e   :  { %v10820_v37 = vsel %vm9153_vm2, %v10515_v53, %v10511_v54  ;;  %v6378_v25 = vcombine.high %v6026_v33, %v6026_v33  ;;  %v6385_v39 = vrot.slane %v6026_v33, %v20521_v34  ;;  %v5983_v52 = vadd.f32 %v18754_v46, %v5912_v36 }
 0x66f   :  { %v10535_v48 = vrot.slane %v10066_v42, %v18283_v24  ;;  %v10539_v51 = vrot.slane %v10067_v15, %v18283_v24  ;;  %v10821_v21 = vsel %vm9156_vm3, %v10519_v23, %v10820_v37  ;;  %v18979_v62 = vadd.f32 %v18754_v46, %v5913_v49  ;;  %v19011_v53 = vpop.f32.mrb[96].mxu1 }
 0x670   :  { %v10822_v3 = vsel %vm9159_vm4, %v10523_v44, %v10821_v21  ;;  %v6392_v22 = vrot.slane %v6378_v25, %v20521_v34  ;;  %v6027_v29 = vadd.f32 %v5983_v52, %v18919_v14  ;;  %v18987_v30 = vadd.f32 %v18754_v46, %v5914_v7 }
 0x671   :  { %v10823_v36 = vsel %vm9162_vm5, %v10527_v32, %v10822_v3  ;;  %v6393_v40 = vcombine.high %v6385_v39, %v6385_v39  ;;  %v9719_v0 = vcombine.high %v9497_v35, %v9497_v35  ;;  %v18991_v17 = vrot.slane %v9497_v35, %v20521_v34  ;;  %v5523_v32 = vpop.f32.mrb[97].mxu1 }
 0x672   :  { %v10824_v49 = vsel %vm9165_vm6, %v10531_v12, %v10823_v36  ;;  %v6395_v18 = vcombine.high %v6027_v29, %v6027_v29  ;;  %v6402_v10 = vrot.slane %v6027_v29, %v20521_v34  ;;  %v11269_v1 = vrot.slane %v6385_v39, 9  ;;  %v19014_v4 = vpop.f32.mrb[98].mxu1 }
 0x673   :  { %v10825_v8 = vsel %vm9168_vm7, %v10535_v48, %v10824_v49  ;;  %v6394_v14 = vcombine.high %v6392_v22, %v6392_v22  ;;  %v18997_v7 = vrot.slane %v9719_v0, %v20521_v34  ;;  %v19001_v41 = vcombine.high %v18991_v17, %v18991_v17  ;;  %v5526_v29 = vpop.f32.mrb[99].mxu1 }
 0x674   :  { %v10826_v43 = vsel %vm9171_vm8, %v10539_v51, %v10825_v8  ;;  %v6409_v20 = vrot.slane %v6395_v18, %v20521_v34  ;;  %v6410_v35 = vcombine.high %v6402_v10, %v6402_v10  ;;  %v11273_v6 = vrot.slane %v6402_v10, 9 }
 0x675   :  { %10900 = vst [vmem:[#allocation4 + $0x40] sm:$0xff] %v10826_v43  ;;  %v19007_v19 = vcombine.high %v18997_v7, %v18997_v7  ;;  %v9848_v31 = vrot.slane %v18991_v17, 1  ;;  %v11270_v54 = vrot.slane %v6393_v40, 9  ;;  %v11271_v44 = vrot.slane %v6392_v22, 9 }
 0x676   :  { %v6411_v23 = vcombine.high %v6409_v20, %v6409_v20  ;;  %v11274_v33 = vrot.slane %v6410_v35, 9  ;;  %v11275_v15 = vrot.slane %v6409_v20, 9  ;;  %v11272_v37 = vrot.slane %v6394_v14, 9 }
 0x677   :  { %v7200_v25 = vadd.f32 %v11269_v1, %v6385_v39  ;;  %v7201_v52 = vadd.f32 %v11270_v54, %v6393_v40  ;;  %v7202_v51 = vadd.f32 %v11271_v44, %v6392_v22  ;;  %v7204_v21 = vadd.f32 %v11273_v6, %v6402_v10  ;;  %v20657_v40 = vld [vmem:[#allocation64_spill] sm:$0xff]  ;;  %v20658_v10 = vld [vmem:[#allocation150_spill] sm:$0xff]  ;;  %v20660_v6 = vld [vmem:[#allocation73_spill] sm:$0xff] }
 0x678   :  { %v11276_v48 = vrot.slane %v6411_v23, 9  ;;  %v7205_v3 = vadd.f32 %v11274_v33, %v6410_v35  ;;  %v7203_v9 = vadd.f32 %v11272_v37, %v6394_v14  ;;  %v7206_v36 = vadd.f32 %v11275_v15, %v6409_v20  ;;  %v20659_v14 = vld [vmem:[#allocation154_spill] sm:$0xff]  ;;  %v20661_v15 = vld [vmem:[#allocation19_spill] sm:$0xff] }
 0x679   :  { %v7328_v0 = vmul.f32 0.25, %v7200_v25  ;;  %v7329_v49 = vmul.f32 0.25, %v7201_v52  ;;  %v7330_v8 = vmul.f32 0.25, %v7202_v51  ;;  %v7332_v43 = vmul.f32 0.25, %v7204_v21  ;;  %v19030_v25 = vpop.f32.mrb[100].mxu1  ;;  %v20665_v51 = vld [vmem:[#allocation16_spill] sm:$0xff] }
 0x67a   :  { %v7207_v18 = vadd.f32 %v11276_v48, %v6411_v23  ;;  %v7333_v32 = vmul.f32 0.25, %v7205_v3  ;;  %v7331_v42 = vmul.f32 0.25, %v7203_v9  ;;  %v7334_v12 = vmul.f32 0.25, %v7206_v36  ;;  %v20664_v48 = vld [vmem:[#allocation13_spill] sm:$0xff] }
 0x67b   :  { %v9489_v39 = vadd.f32 %v18959_v60, %v18580_v13  ;;  %v5787_v1 = vadd.f32 %v20657_v40, %v18925_v38  ;;  %v5790_v35 = vadd.f32 %v20658_v10, %v18931_v28  ;;  %v5795_v20 = vadd.f32 %v20659_v14, %v18942_v55  ;;  %v20662_v13 = vld [vmem:[#allocation153_spill] sm:$0xff]  ;;  %v20663_v38 = vld [vmem:[#allocation23_spill] sm:$0xff] }
 0x67c   :  { %v7335_v22 = vmul.f32 0.25, %v7207_v18  ;;  %v5798_v54 = vadd.f32 %v20660_v6, %v18949_v45  ;;  %v5803_v37 = vadd.f32 %v20662_v13, %v18970_v50  ;;  %v20666_v55 = vld [vmem:[#allocation49_spill] sm:$0xff]  ;;  %v5531_v45 = vpop.f32.mrb[101].mxu1 }
 0x67d   :  { %v9685_v23 = vcombine.high %v9489_v39, %v9489_v39  ;;  %v9692_v33 = vrot.slane %v9489_v39, %v20521_v34  ;;  %v5915_v44 = vadd.f32 %v5787_v1, %v20661_v15  ;;  %v5916_v52 = vadd.f32 %v5790_v35, %v20663_v38  ;;  %v19038_v39 = vpop.f32.mrb[102].mxu1 }
 0x67e   :  { %v5917_v28 = vadd.f32 %v5795_v20, %v20664_v48  ;;  %v5918_v21 = vadd.f32 %v5798_v54, %v20665_v51  ;;  %v5806_v3 = vadd.f32 %v20666_v55, %v18981_v26  ;;  %v5534_v35 = vpop.f32.mrb[103].mxu1 }
 0x67f   :  { %v9699_v29 = vrot.slane %v9685_v23, %v20521_v34  ;;  %v9700_v9 = vcombine.high %v9692_v33, %v9692_v33  ;;  %v9840_v36 = vrot.slane %v9692_v33, 1  ;;  %v10068_v18 = vadd.f32 %v9692_v33, %v7328_v0  ;;  %v19056_v55 = vpop.f32.mrb[104].mxu1 }
 0x680   :  { %v5986_v50 = vadd.f32 %v18754_v46, %v5915_v44  ;;  %v5987_v40 = vadd.f32 %v18754_v46, %v5916_v52  ;;  %v19043_v1 = vadd.f32 %v18754_v46, %v5917_v28  ;;  %v19046_v10 = vadd.f32 %v18754_v46, %v5918_v21  ;;  %v5539_v45 = vpop.f32.mrb[105].mxu1 }
 0x681   :  { %v9701_v26 = vcombine.high %v9699_v29, %v9699_v29  ;;  %v9841_v14 = vrot.slane %v9700_v9, 1  ;;  %v9842_v20 = vrot.slane %v9699_v29, 1  ;;  %v10069_v6 = vadd.f32 %v9840_v36, %v7329_v49  ;;  %v19066_v35 = vpop.f32.mrb[106].mxu1 }
 0x682   :  { %v10070_v54 = vadd.f32 %v9700_v9, %v7330_v8  ;;  %v10072_v23 = vadd.f32 %v9699_v29, %v7332_v43  ;;  %v10543_v0 = vrot.slane %v10068_v18, %v18283_v24  ;;  %v6028_v33 = vadd.f32 %v5986_v50, %v18979_v62  ;;  %v20667_v9 = vld [vmem:[#allocation18_spill] sm:$0xff]  ;;  %v20668_v18 = vld [vmem:[#allocation27_spill] sm:$0xff] }
 0x683   :  { %v9843_v15 = vrot.slane %v9701_v26, 1  ;;  %v10071_v44 = vadd.f32 %v9841_v14, %v7331_v42  ;;  %v10073_v13 = vadd.f32 %v9842_v20, %v7333_v32  ;;  %v10074_v38 = vadd.f32 %v9701_v26, %v7334_v12 }
 0x684   :  { %v10547_v52 = vrot.slane %v10069_v6, %v18283_v24  ;;  %v10551_v48 = vrot.slane %v10070_v54, %v18283_v24  ;;  %v10559_v28 = vrot.slane %v10072_v23, %v18283_v24  ;;  %v6412_v51 = vcombine.high %v6028_v33, %v6028_v33  ;;  %v5542_v54 = vpop.f32.mrb[107].mxu1 }
 0x685   :  { %v10075_v21 = vadd.f32 %v9843_v15, %v7335_v22  ;;  %v10555_v49 = vrot.slane %v10071_v44, %v18283_v24  ;;  %v10563_v8 = vrot.slane %v10073_v13, %v18283_v24  ;;  %v10567_v43 = vrot.slane %v10074_v38, %v18283_v24 }
 0x686   :  { %v10827_v62 = vsel %vm9153_vm2, %v10547_v52, %v10543_v0  ;;  %v6419_v42 = vrot.slane %v6028_v33, %v20521_v34  ;;  %v6426_v12 = vrot.slane %v6412_v51, %v20521_v34  ;;  %v6029_v32 = vadd.f32 %v5987_v40, %v18987_v30 }
 0x687   :  { %v10571_v29 = vrot.slane %v10075_v21, %v18283_v24  ;;  %v10828_v22 = vsel %vm9156_vm3, %v10551_v48, %v10827_v62  ;;  %v5919_v36 = vadd.f32 %v5803_v37, %v20667_v9  ;;  %v5920_v50 = vadd.f32 %v5806_v3, %v20668_v18 }
 0x688   :  { %v10829_v26 = vsel %vm9159_vm4, %v10555_v49, %v10828_v22  ;;  %v6427_v14 = vcombine.high %v6419_v42, %v6419_v42  ;;  %v6428_v20 = vcombine.high %v6426_v12, %v6426_v12  ;;  %v11277_v6 = vrot.slane %v6419_v42, 9 }
 0x689   :  { %v10830_v23 = vsel %vm9162_vm5, %v10559_v28, %v10829_v26  ;;  %v11279_v30 = vrot.slane %v6426_v12, 9  ;;  %v6429_v40 = vcombine.high %v6029_v32, %v6029_v32  ;;  %v6436_v0 = vrot.slane %v6029_v32, %v20521_v34 }
 0x68a   :  { %v10831_v33 = vsel %vm9165_vm6, %v10563_v8, %v10830_v23  ;;  %v11278_v15 = vrot.slane %v6427_v14, 9  ;;  %v11280_v37 = vrot.slane %v6428_v20, 9  ;;  %v7208_v44 = vadd.f32 %v11277_v6, %v6419_v42  ;;  %v19075_v8 = vpop.f32.mrb[108].mxu1 }
 0x68b   :  { %v10832_v3 = vsel %vm9168_vm7, %v10567_v43, %v10831_v33  ;;  %v7210_v13 = vadd.f32 %v11279_v30, %v6426_v12  ;;  %v6443_v38 = vrot.slane %v6429_v40, %v20521_v34  ;;  %v6444_v52 = vcombine.high %v6436_v0, %v6436_v0  ;;  %v5547_v9 = vpop.f32.mrb[109].mxu1 }
 0x68c   :  { %v10833_v48 = vsel %vm9171_vm8, %v10571_v29, %v10832_v3  ;;  %v7209_v51 = vadd.f32 %v11278_v15, %v6427_v14  ;;  %v7211_v21 = vadd.f32 %v11280_v37, %v6428_v20  ;;  %v7336_v28 = vmul.f32 0.25, %v7208_v44  ;;  %v19079_v20 = vpop.f32.mrb[110].mxu1 }
 0x68d   :  { %10901 = vst [vmem:[#allocation4 + $0x48] sm:$0xff] %v10833_v48  ;;  %v7338_v49 = vmul.f32 0.25, %v7210_v13  ;;  %v6445_v62 = vcombine.high %v6443_v38, %v6443_v38  ;;  %v11281_v32 = vrot.slane %v6436_v0, 9  ;;  %v11282_v45 = vrot.slane %v6444_v52, 9  ;;  %v5550_v40 = vpop.f32.mrb[111].mxu1 }
 0x68e   :  { %v7337_v22 = vmul.f32 0.25, %v7209_v51  ;;  %v7339_v42 = vmul.f32 0.25, %v7211_v21  ;;  %v10076_v43 = vadd.f32 %v18898_v58, %v7336_v28  ;;  %v11283_v12 = vrot.slane %v6443_v38, 9  ;;  %v20669_v21 = vld [vmem:[#allocation160_spill] sm:$0xff] }
 0x68f   :  { %v10078_v18 = vadd.f32 %v18913_v27, %v7338_v49  ;;  %v11284_v26 = vrot.slane %v6445_v62, 9  ;;  %v7212_v29 = vadd.f32 %v11281_v32, %v6436_v0  ;;  %v7213_v14 = vadd.f32 %v11282_v45, %v6444_v52 }
 0x690   :  { %v10077_v6 = vadd.f32 %v9844_v2, %v7337_v22  ;;  %v10079_v54 = vadd.f32 %v9845_v61, %v7339_v42  ;;  %v10575_v23 = vrot.slane %v10076_v43, %v18283_v24  ;;  %v7214_v30 = vadd.f32 %v11283_v12, %v6443_v38 }
 0x691   :  { %v10583_v33 = vrot.slane %v10078_v18, %v18283_v24  ;;  %v7215_v15 = vadd.f32 %v11284_v26, %v6445_v62  ;;  %v7340_v37 = vmul.f32 0.25, %v7212_v29  ;;  %v7341_v44 = vmul.f32 0.25, %v7213_v14 }
 0x692   :  { %v10579_v0 = vrot.slane %v10077_v6, %v18283_v24  ;;  %v10587_v3 = vrot.slane %v10079_v54, %v18283_v24  ;;  %v7342_v13 = vmul.f32 0.25, %v7214_v30  ;;  %v5990_v58 = vadd.f32 %v18754_v46, %v5919_v36 }
 0x693   :  { %v7343_v2 = vmul.f32 0.25, %v7215_v15  ;;  %v10080_v27 = vadd.f32 %v18904_v5, %v7340_v37  ;;  %v10081_v61 = vadd.f32 %v9846_v56, %v7341_v44  ;;  %v5991_v38 = vadd.f32 %v18754_v46, %v5920_v50  ;;  %v19104_v56 = vpop.f32.mrb[112].mxu1 }
 0x694   :  { %v10834_v52 = vsel %vm9153_vm2, %v10579_v0, %v10575_v23  ;;  %v10082_v48 = vadd.f32 %v18923_v57, %v7342_v13  ;;  %v6030_v51 = vadd.f32 %v5990_v58, %v19043_v1  ;;  %v5811_v28 = vadd.f32 %v20669_v21, %v19011_v53  ;;  %v5555_v45 = vpop.f32.mrb[113].mxu1 }
 0x695   :  { %v10835_v49 = vsel %vm9156_vm3, %v10583_v33, %v10834_v52  ;;  %v10083_v36 = vadd.f32 %v9847_v63, %v7343_v2  ;;  %v10591_v62 = vrot.slane %v10080_v27, %v18283_v24  ;;  %v10595_v5 = vrot.slane %v10081_v61, %v18283_v24  ;;  %v20670_v63 = vld [vmem:[#allocation15_spill] sm:$0xff]  ;;  %v19113_v43 = vpop.f32.mrb[114].mxu1  ;;  %v20671_v2 = vld [vmem:[#allocation157_spill] sm:$0xff] }
 0x696   :  { %v10599_v46 = vrot.slane %v10082_v48, %v18283_v24  ;;  %v10836_v50 = vsel %vm9159_vm4, %v10587_v3, %v10835_v49  ;;  %v6446_v32 = vcombine.high %v6030_v51, %v6030_v51  ;;  %v6453_v1 = vrot.slane %v6030_v51, %v20521_v34  ;;  %v5558_v29 = vpop.f32.mrb[115].mxu1 }
 0x697   :  { %v10603_v53 = vrot.slane %v10083_v36, %v18283_v24  ;;  %v10837_v22 = vsel %vm9162_vm5, %v10591_v62, %v10836_v50  ;;  %v6031_v57 = vadd.f32 %v5991_v38, %v19046_v10  ;;  %v5921_v42 = vadd.f32 %v5811_v28, %v20670_v63  ;;  %v19124_v51 = vpop.f32.mrb[116].mxu1 }
 0x698   :  { %v10838_v12 = vsel %vm9165_vm6, %v10595_v5, %v10837_v22  ;;  %v6460_v9 = vrot.slane %v6446_v32, %v20521_v34  ;;  %v6461_v18 = vcombine.high %v6453_v1, %v6453_v1  ;;  %v11285_v26 = vrot.slane %v6453_v1, 9  ;;  %v5563_v62 = vpop.f32.mrb[117].mxu1 }
 0x699   :  { %v9851_v14 = vrot.slane %v19007_v19, 1  ;;  %v10839_v6 = vsel %vm9168_vm7, %v10599_v46, %v10838_v12  ;;  %v6463_v54 = vcombine.high %v6031_v57, %v6031_v57  ;;  %v6470_v23 = vrot.slane %v6031_v57, %v20521_v34 }
 0x69a   :  { %v10840_v10 = vsel %vm9171_vm8, %v10603_v53, %v10839_v6  ;;  %v6462_v30 = vcombine.high %v6460_v9, %v6460_v9  ;;  %v11286_v40 = vrot.slane %v6461_v18, 9  ;;  %v11287_v33 = vrot.slane %v6460_v9, 9 }
 0x69b   :  { %10902 = vst [vmem:[#allocation4 + $0x50] sm:$0xff] %v10840_v10  ;;  %v7216_v15 = vadd.f32 %v11285_v26, %v6453_v1  ;;  %v6477_v37 = vrot.slane %v6463_v54, %v20521_v34  ;;  %v6478_v44 = vcombine.high %v6470_v23, %v6470_v23  ;;  %v11289_v0 = vrot.slane %v6470_v23, 9  ;;  %v19127_v1 = vpop.f32.mrb[118].mxu1 }
 0x69c   :  { %v11288_v3 = vrot.slane %v6462_v30, 9  ;;  %v7217_v13 = vadd.f32 %v11286_v40, %v6461_v18  ;;  %v7218_v58 = vadd.f32 %v11287_v33, %v6460_v9  ;;  %v5814_v27 = vadd.f32 %v20671_v2, %v19014_v4  ;;  %v5566_v57 = vpop.f32.mrb[119].mxu1  ;;  %v20674_v40 = vld [vmem:[#allocation21_spill] sm:$0xff] }
 0x69d   :  { %v7344_v61 = vmul.f32 0.25, %v7216_v15  ;;  %v6479_v38 = vcombine.high %v6477_v37, %v6477_v37  ;;  %v11290_v52 = vrot.slane %v6478_v44, 9  ;;  %v11291_v48 = vrot.slane %v6477_v37, 9 }
 0x69e   :  { %v7219_v21 = vadd.f32 %v11288_v3, %v6462_v30  ;;  %v7345_v28 = vmul.f32 0.25, %v7217_v13  ;;  %v7346_v49 = vmul.f32 0.25, %v7218_v58  ;;  %v7220_v36 = vadd.f32 %v11289_v0, %v6470_v23  ;;  %v20675_v0 = vld [vmem:[#allocation87_spill] sm:$0xff] }
 0x69f   :  { %v10084_v5 = vadd.f32 %v18991_v17, %v7344_v61  ;;  %v11292_v46 = vrot.slane %v6479_v38, 9  ;;  %v7221_v50 = vadd.f32 %v11290_v52, %v6478_v44  ;;  %v7222_v32 = vadd.f32 %v11291_v48, %v6477_v37  ;;  %v19155_v2 = vpop.f32.mrb[120].mxu1 }
 0x6a0   :  { %v7347_v45 = vmul.f32 0.25, %v7219_v21  ;;  %v10085_v4 = vadd.f32 %v9848_v31, %v7345_v28  ;;  %v10086_v53 = vadd.f32 %v19001_v41, %v7346_v49  ;;  %v7348_v22 = vmul.f32 0.25, %v7220_v36  ;;  %v5571_v21 = vpop.f32.mrb[121].mxu1  ;;  %v20678_v28 = vld [vmem:[#allocation156_spill] sm:$0xff]  ;;  %v20679_v36 = vld [vmem:[#allocation162_spill] sm:$0xff] }
 0x6a1   :  { %v10607_v63 = vrot.slane %v10084_v5, %v18283_v24  ;;  %v7223_v12 = vadd.f32 %v11292_v46, %v6479_v38  ;;  %v7349_v9 = vmul.f32 0.25, %v7221_v50  ;;  %v7350_v18 = vmul.f32 0.25, %v7222_v32  ;;  %v20676_v38 = vld [vmem:[#allocation186_spill] sm:$0xff]  ;;  %v19168_v5 = vpop.f32.mrb[122].mxu1  ;;  %v20680_v32 = vld [vmem:[#allocation188_spill] sm:$0xff] }
 0x6a2   :  { %v20672_v26 = vrot.slane %v19001_v41, 1  ;;  %v10611_v6 = vrot.slane %v10085_v4, %v18283_v24  ;;  %v10615_v54 = vrot.slane %v10086_v53, %v18283_v24  ;;  %v10088_v23 = vadd.f32 %v18997_v7, %v7348_v22  ;;  %v19147_v41 = vld [vmem:[%s19392_s4] ss:$0 sm:$0xff]  ;;  %v5574_v4 = vpop.f32.mrb[123].mxu1  ;;  %v20681_v22 = vld [vmem:[#allocation14_spill] sm:$0xff]  ;;  %s13472_s4 = smov [#allocation4]  }
 0x6a3   :  { %v7351_v17 = vmul.f32 0.25, %v7223_v12  ;;  %v20673_v31 = vrot.slane %v18997_v7, 1  ;;  %v10090_v30 = vadd.f32 %v19007_v19, %v7350_v18  ;;  %v5922_v33 = vadd.f32 %v5814_v27, %v20674_v40  ;;  %s10913_s19 = sshll.u32 %s13472_s4, 4  ;;  %s10914_s19 = int_to_ptr.vmem [resolvable:$true] %s10913_s19 }
 0x6a4   :  { %v10087_v29 = vadd.f32 %v20672_v26, %v7347_v45  ;;  %v10841_v37 = vsel %vm9153_vm2, %v10611_v6, %v10607_v63  ;;  %v5992_v44 = vadd.f32 %v19147_v41, %v5921_v42  ;;  %v5819_v3 = vadd.f32 %v20675_v0, %v19030_v25  ;;  %v20677_v42 = vld [vmem:[#allocation88_spill] sm:$0xff]  ;;  %s13443_s20 = scalar_lea.vmem %s10914_s19, 2048  ;;  %p13448_p1 = scmp.lt.s32.totalorder %s10914_s19, %s10914_s19 }
 0x6a5   :  { %v10089_v10 = vadd.f32 %v20673_v31, %v7349_v9  ;;  %v10842_v7 = vsel %vm9156_vm3, %v10615_v54, %v10841_v37  ;;  %v10091_v13 = vadd.f32 %v9851_v14, %v7351_v17  ;;  %v10623_v19 = vrot.slane %v10088_v23, %v18283_v24  ;;  %p13444_p0 = scmp.ne.s32.totalorder %s10914_s19, %s13443_s20  ;;  %p13449_p2 = scmp.lt.s32.totalorder %s13443_s20, %s13443_s20 }
 0x6a6   :  { %v10619_v15 = vrot.slane %v10087_v29, %v18283_v24  ;;  %v10631_v27 = vrot.slane %v10090_v30, %v18283_v24  ;;  %v5923_v52 = vadd.f32 %v5819_v3, %v20676_v38  ;;  %v5822_v48 = vadd.f32 %v20677_v42, %v19038_v39 }
 0x6a7   :  { %v10627_v58 = vrot.slane %v10089_v10, %v18283_v24  ;;  %v10635_v25 = vrot.slane %v10091_v13, %v18283_v24  ;;  %v5827_v49 = vadd.f32 %v20678_v28, %v19056_v55  ;;  %v5830_v62 = vadd.f32 %v20679_v36, %v19066_v35  ;;  %v20682_v55 = vld [vmem:[#allocation185_spill] sm:$0xff]  ;;  %v19188_v17 = vpop.f32.mrb[124].mxu1  ;;  %p13450_p3 = por %p13449_p2, %p13448_p1 }
 0x6a8   :  { %v10843_v61 = vsel %vm9159_vm4, %v10619_v15, %v10842_v7  ;;  %v5994_v50 = vadd.f32 %v19147_v41, %v5923_v52  ;;  %v5924_v45 = vadd.f32 %v5822_v48, %v20680_v32  ;;  %v9510_v39 = vadd.f32 %v18959_v60, %v18761_v59  ;;  %v5579_v40 = vpop.f32.mrb[125].mxu1 }
 0x6a9   :  { %v10844_v14 = vsel %vm9162_vm5, %v10623_v19, %v10843_v61  ;;  %v19177_v57 = vadd.f32 %v5827_v49, %v20681_v22  ;;  %v19180_v63 = vadd.f32 %v5830_v62, %v20682_v55  ;;  %v9502_v35 = vadd.f32 %v18959_v60, %v18768_v47  ;;  %v19199_v0 = vpop.f32.mrb[126].mxu1  ;;  %p13451_p4 = pnand %p13450_p3, %p13444_p0 }
 0x6aa   :  { %v10845_v46 = vsel %vm9165_vm6, %v10627_v58, %v10844_v14  ;;  %v5993_v9 = vadd.f32 %v19147_v41, %v5922_v33  ;;  %v6032_v18 = vadd.f32 %v5994_v50, %v5992_v44  ;;  %v5995_v26 = vadd.f32 %v19147_v41, %v5924_v45  ;;  %v5582_v58 = vpop.f32.mrb[127].mxu1 }
 0x6ab   :  { %v10846_v53 = vsel %vm9168_vm7, %v10631_v27, %v10845_v46  ;;  %v9770_v59 = vcombine.high %v9510_v39, %v9510_v39  ;;  %v9736_v23 = vcombine.high %v9502_v35, %v9502_v35  ;;  %v19193_v33 = vrot.slane %v9510_v39, %v20521_v34 }
 0x6ac   :  { %v10847_v12 = vsel %vm9171_vm8, %v10635_v25, %v10846_v53  ;;  %v6480_v29 = vcombine.high %v6032_v18, %v6032_v18  ;;  %v6487_v6 = vrot.slane %v6032_v18, %v20521_v34  ;;  %v6033_v54 = vadd.f32 %v5995_v26, %v5993_v9 }
 0x6ad   :  { %10903 = vst [vmem:[#allocation4 + $0x58] sm:$0xff] %v10847_v12  ;;  %v19196_v15 = vrot.slane %v9770_v59, %v20521_v34  ;;  %v9743_v44 = vrot.slane %v9502_v35, %v20521_v34  ;;  %v9750_v52 = vrot.slane %v9736_v23, %v20521_v34  ;;  %v5996_v40 = vadd.f32 %v19147_v41, %v19177_v57 }
 0x6ae   :  { %v6494_v31 = vrot.slane %v6480_v29, %v20521_v34  ;;  %v6495_v10 = vcombine.high %v6487_v6, %v6487_v6  ;;  %v6497_v47 = vcombine.high %v6033_v54, %v6033_v54  ;;  %v6504_v30 = vrot.slane %v6033_v54, %v20521_v34 }
 0x6af   :  { %v11293_v37 = vrot.slane %v6487_v6, 9  ;;  %v9751_v53 = vcombine.high %v9743_v44, %v9743_v44  ;;  %v9752_v9 = vcombine.high %v9750_v52, %v9750_v52  ;;  %v9852_v18 = vrot.slane %v9743_v44, 1 }
 0x6b0   :  { %v6496_v3 = vcombine.high %v6494_v31, %v6494_v31  ;;  %v6511_v7 = vrot.slane %v6497_v47, %v20521_v34  ;;  %v6512_v13 = vcombine.high %v6504_v30, %v6504_v30  ;;  %v11297_v19 = vrot.slane %v6504_v30, 9 }
 0x6b1   :  { %v11294_v27 = vrot.slane %v6495_v10, 9  ;;  %v11295_v61 = vrot.slane %v6494_v31, 9  ;;  %v7224_v38 = vadd.f32 %v11293_v37, %v6487_v6  ;;  %v9853_v26 = vrot.slane %v9751_v53, 1 }
 0x6b2   :  { %v6513_v42 = vcombine.high %v6511_v7, %v6511_v7  ;;  %v11298_v48 = vrot.slane %v6512_v13, 9  ;;  %v11299_v21 = vrot.slane %v6511_v7, 9  ;;  %v11296_v25 = vrot.slane %v6496_v3, 9 }
 0x6b3   :  { %v7225_v14 = vadd.f32 %v11294_v27, %v6495_v10  ;;  %v7226_v28 = vadd.f32 %v11295_v61, %v6494_v31  ;;  %v7228_v49 = vadd.f32 %v11297_v19, %v6504_v30  ;;  %v7352_v36 = vmul.f32 0.25, %v7224_v38  ;;  %v20683_v61 = vld [vmem:[#allocation79_spill] sm:$0xff]  ;;  %v20684_v38 = vld [vmem:[#allocation166_spill] sm:$0xff] }
 0x6b4   :  { %v11300_v62 = vrot.slane %v6513_v42, 9  ;;  %v7227_v46 = vadd.f32 %v11296_v25, %v6496_v3  ;;  %v7229_v50 = vadd.f32 %v11298_v48, %v6512_v13  ;;  %v7230_v32 = vadd.f32 %v11299_v21, %v6511_v7 }
 0x6b5   :  { %v7353_v45 = vmul.f32 0.25, %v7225_v14  ;;  %v7354_v39 = vmul.f32 0.25, %v7226_v28  ;;  %v7356_v4 = vmul.f32 0.25, %v7228_v49  ;;  %v9854_v59 = vrot.slane %v9750_v52, 1  ;;  %v20686_v14 = vld [vmem:[#allocation163_spill] sm:$0xff] }
 0x6b6   :  { %v7231_v22 = vadd.f32 %v11300_v62, %v6513_v42  ;;  %v7355_v55 = vmul.f32 0.25, %v7227_v46  ;;  %v7357_v35 = vmul.f32 0.25, %v7229_v50  ;;  %v7358_v12 = vmul.f32 0.25, %v7230_v32  ;;  %v20688_v62 = vld [vmem:[#allocation29_spill] sm:$0xff]  ;;  %v20689_v46 = vld [vmem:[#allocation20_spill] sm:$0xff] }
 0x6b7   :  { %v10092_v6 = vadd.f32 %v9743_v44, %v7352_v36  ;;  %v10094_v54 = vadd.f32 %v9751_v53, %v7354_v39  ;;  %v10096_v23 = vadd.f32 %v9750_v52, %v7356_v4  ;;  %v9855_v31 = vrot.slane %v9752_v9, 1  ;;  %v20685_v52 = vld [vmem:[#allocation164_spill] sm:$0xff] }
 0x6b8   :  { %v7359_v29 = vmul.f32 0.25, %v7231_v22  ;;  %v10093_v10 = vadd.f32 %v9852_v18, %v7353_v45  ;;  %v10095_v47 = vadd.f32 %v9853_v26, %v7355_v55  ;;  %v10097_v30 = vadd.f32 %v9854_v59, %v7357_v35  ;;  %v20690_v45 = vld [vmem:[#allocation191_spill] sm:$0xff] }
 0x6b9   :  { %v5997_v37 = vadd.f32 %v19147_v41, %v19180_v63  ;;  %v10098_v3 = vadd.f32 %v9752_v9, %v7358_v12  ;;  %v10647_v7 = vrot.slane %v10094_v54, %v18283_v24  ;;  %v10639_v19 = vrot.slane %v10092_v6, %v18283_v24 }
 0x6ba   :  { %v10099_v13 = vadd.f32 %v9855_v31, %v7359_v29  ;;  %v10643_v44 = vrot.slane %v10093_v10, %v18283_v24  ;;  %v10651_v58 = vrot.slane %v10095_v47, %v18283_v24  ;;  %v19213_v27 = vcombine.high %v19193_v33, %v19193_v33 }
 0x6bb   :  { %v5835_v57 = vadd.f32 %v20683_v61, %v19075_v8  ;;  %v5838_v63 = vadd.f32 %v20684_v38, %v19079_v20  ;;  %v5843_v42 = vadd.f32 %v20685_v52, %v19104_v56  ;;  %v19223_v48 = vcombine.high %v19196_v15, %v19196_v15  ;;  %v20687_v8 = vld [vmem:[#allocation184_spill] sm:$0xff] }
 0x6bc   :  { %v10655_v21 = vrot.slane %v10096_v23, %v18283_v24  ;;  %v10848_v25 = vsel %vm9153_vm2, %v10643_v44, %v10639_v19  ;;  %v5846_v28 = vadd.f32 %v20686_v14, %v19113_v43  ;;  %v10659_v56 = vrot.slane %v10097_v30, %v18283_v24  ;;  %v20692_v19 = vld [vmem:[#allocation72_spill] sm:$0xff] }
 0x6bd   :  { %v10849_v49 = vsel %vm9156_vm3, %v10647_v7, %v10848_v25  ;;  %v5927_v36 = vadd.f32 %v5835_v57, %v20687_v8  ;;  %v5928_v20 = vadd.f32 %v5838_v63, %v20688_v62  ;;  %v5929_v50 = vadd.f32 %v5843_v42, %v20689_v46  ;;  %v20691_v7 = vld [vmem:[#allocation168_spill] sm:$0xff] }
 0x6be   :  { %v10850_v32 = vsel %vm9159_vm4, %v10651_v58, %v10849_v49  ;;  %v5930_v39 = vadd.f32 %v5846_v28, %v20690_v45  ;;  %v19238_v4 = vadd.f32 %v18959_v60, %v18832_v16  ;;  %v10663_v43 = vrot.slane %v10098_v3, %v18283_v24 }
 0x6bf   :  { %v10851_v53 = vsel %vm9162_vm5, %v10655_v21, %v10850_v32  ;;  %v5998_v22 = vadd.f32 %v19147_v41, %v5927_v36  ;;  %v5999_v55 = vadd.f32 %v19147_v41, %v5928_v20  ;;  %v9860_v35 = vrot.slane %v19193_v33, 1 }
 0x6c0   :  { %v9861_v12 = vrot.slane %v19213_v27, 1  ;;  %v10667_v9 = vrot.slane %v10099_v13, %v18283_v24  ;;  %v10852_v18 = vsel %vm9165_vm6, %v10659_v56, %v10851_v53  ;;  %v9862_v26 = vrot.slane %v19196_v15, 1 }
 0x6c1   :  { %v10853_v16 = vsel %vm9168_vm7, %v10663_v43, %v10852_v18  ;;  %v6034_v59 = vadd.f32 %v5998_v22, %v5996_v40  ;;  %v6035_v29 = vadd.f32 %v5999_v55, %v5997_v37  ;;  %v9863_v6 = vrot.slane %v19223_v48, 1 }
 0x6c2   :  { %v10854_v54 = vsel %vm9171_vm8, %v10667_v9, %v10853_v16  ;;  %v19253_v23 = vadd.f32 %v19147_v41, %v5929_v50  ;;  %v19257_v31 = vrot.slane %v19238_v4, %v20521_v34  ;;  %v19262_v40 = vadd.f32 %v19147_v41, %v5930_v39 }
 0x6c3   :  { %10904 = vst [vmem:[#allocation4 + $0x60] sm:$0xff] %v10854_v54  ;;  %v6514_v10 = vcombine.high %v6034_v59, %v6034_v59  ;;  %v6521_v47 = vrot.slane %v6034_v59, %v20521_v34  ;;  %v6531_v30 = vcombine.high %v6035_v29, %v6035_v29  ;;  %v6538_v3 = vrot.slane %v6035_v29, %v20521_v34 }
 0x6c4   :  { %v9505_v37 = vadd.f32 %v18959_v60, %v18843_v11  ;;  %v5851_v13 = vadd.f32 %v20691_v7, %v19124_v51  ;;  %v5854_v44 = vadd.f32 %v20692_v19, %v19127_v1 }
 0x6c5   :  { %v6528_v58 = vrot.slane %v6514_v10, %v20521_v34  ;;  %v6529_v61 = vcombine.high %v6521_v47, %v6521_v47  ;;  %v6545_v57 = vrot.slane %v6531_v30, %v20521_v34  ;;  %v6546_v38 = vcombine.high %v6538_v3, %v6538_v3 }
 0x6c6   :  { %v11305_v63 = vrot.slane %v6538_v3, 9  ;;  %v11301_v52 = vrot.slane %v6521_v47, 9  ;;  %v9753_v42 = vcombine.high %v9505_v37, %v9505_v37  ;;  %v9760_v21 = vrot.slane %v9505_v37, %v20521_v34 }
 0x6c7   :  { %v6530_v25 = vcombine.high %v6528_v58, %v6528_v58  ;;  %v6547_v14 = vcombine.high %v6545_v57, %v6545_v57  ;;  %v11306_v11 = vrot.slane %v6546_v38, 9  ;;  %v11307_v60 = vrot.slane %v6545_v57, 9 }
 0x6c8   :  { %v11302_v28 = vrot.slane %v6529_v61, 9  ;;  %v11303_v51 = vrot.slane %v6528_v58, 9  ;;  %v7232_v49 = vadd.f32 %v11301_v52, %v6521_v47  ;;  %v7236_v8 = vadd.f32 %v11305_v63, %v6538_v3 }
 0x6c9   :  { %v11308_v1 = vrot.slane %v6547_v14, 9  ;;  %v11304_v36 = vrot.slane %v6530_v25, 9  ;;  %v7237_v62 = vadd.f32 %v11306_v11, %v6546_v38  ;;  %v7238_v20 = vadd.f32 %v11307_v60, %v6545_v57 }
 0x6ca   :  { %v7233_v46 = vadd.f32 %v11302_v28, %v6529_v61  ;;  %v7234_v50 = vadd.f32 %v11303_v51, %v6528_v58  ;;  %v7360_v56 = vmul.f32 0.25, %v7232_v49  ;;  %v7364_v32 = vmul.f32 0.25, %v7236_v8  ;;  %v20693_v58 = vld [vmem:[#allocation24_spill] sm:$0xff]  ;;  %v20694_v8 = vld [vmem:[#allocation190_spill] sm:$0xff] }
 0x6cb   :  { %v7235_v45 = vadd.f32 %v11304_v36, %v6530_v25  ;;  %v7239_v39 = vadd.f32 %v11308_v1, %v6547_v14  ;;  %v7365_v43 = vmul.f32 0.25, %v7237_v62  ;;  %v7366_v53 = vmul.f32 0.25, %v7238_v20  ;;  %v20695_v36 = vld [vmem:[#allocation62_spill] sm:$0xff] }
 0x6cc   :  { %v7361_v22 = vmul.f32 0.25, %v7233_v46  ;;  %v7362_v55 = vmul.f32 0.25, %v7234_v50  ;;  %v9767_v9 = vrot.slane %v9753_v42, %v20521_v34  ;;  %v9768_v18 = vcombine.high %v9760_v21, %v9760_v21  ;;  %v20696_v50 = vld [vmem:[#allocation10_spill] sm:$0xff] }
 0x6cd   :  { %v7363_v16 = vmul.f32 0.25, %v7235_v45  ;;  %v7367_v59 = vmul.f32 0.25, %v7239_v39  ;;  %v9856_v29 = vrot.slane %v9760_v21, 1  ;;  %v10100_v54 = vadd.f32 %v9760_v21, %v7360_v56 }
 0x6ce   :  { %v9769_v10 = vcombine.high %v9767_v9, %v9767_v9  ;;  %v9857_v47 = vrot.slane %v9768_v18, 1  ;;  %v9858_v30 = vrot.slane %v9767_v9, 1  ;;  %v10102_v3 = vadd.f32 %v9768_v18, %v7362_v55  ;;  %v20699_v55 = vld [vmem:[#allocation193_spill] sm:$0xff]  ;;  %v20700_v18 = vld [vmem:[#allocation192_spill] sm:$0xff] }
 0x6cf   :  { %v10101_v37 = vadd.f32 %v9856_v29, %v7361_v22  ;;  %v10104_v7 = vadd.f32 %v9767_v9, %v7364_v32  ;;  %v10671_v19 = vrot.slane %v10100_v54, %v18283_v24  ;;  %v5931_v61 = vadd.f32 %v5851_v13, %v20693_v58  ;;  %v20697_v32 = vld [vmem:[#allocation170_spill] sm:$0xff] }
 0x6d0   :  { %v9859_v57 = vrot.slane %v9769_v10, 1  ;;  %v10103_v38 = vadd.f32 %v9857_v47, %v7363_v16  ;;  %v10105_v63 = vadd.f32 %v9858_v30, %v7365_v43  ;;  %v10106_v52 = vadd.f32 %v9769_v10, %v7366_v53 }
 0x6d1   :  { %v10675_v42 = vrot.slane %v10101_v37, %v18283_v24  ;;  %v10679_v25 = vrot.slane %v10102_v3, %v18283_v24  ;;  %v10687_v21 = vrot.slane %v10104_v7, %v18283_v24  ;;  %v6002_v14 = vadd.f32 %v19147_v41, %v5931_v61 }
 0x6d2   :  { %v10107_v11 = vadd.f32 %v9859_v57, %v7367_v59  ;;  %v10683_v60 = vrot.slane %v10103_v38, %v18283_v24  ;;  %v10691_v28 = vrot.slane %v10105_v63, %v18283_v24  ;;  %v10695_v51 = vrot.slane %v10106_v52, %v18283_v24 }
 0x6d3   :  { %v10855_v13 = vsel %vm9153_vm2, %v10675_v42, %v10671_v19  ;;  %v6036_v49 = vadd.f32 %v6002_v14, %v19253_v23  ;;  %v5932_v1 = vadd.f32 %v5854_v44, %v20694_v8  ;;  %v5859_v62 = vadd.f32 %v20695_v36, %v19155_v2  ;;  %v20698_v2 = vld [vmem:[#allocation187_spill] sm:$0xff] }
 0x6d4   :  { %v10699_v20 = vrot.slane %v10107_v11, %v18283_v24  ;;  %v10856_v46 = vsel %vm9156_vm3, %v10679_v25, %v10855_v13  ;;  %v5862_v56 = vadd.f32 %v20696_v50, %v19168_v5  ;;  %v5867_v45 = vadd.f32 %v20697_v32, %v19188_v17  ;;  %v20701_v25 = vld [vmem:[#allocation53_spill] sm:$0xff] }
 0x6d5   :  { %v10857_v39 = vsel %vm9159_vm4, %v10683_v60, %v10856_v46  ;;  %v6548_v43 = vcombine.high %v6036_v49, %v6036_v49  ;;  %v6555_v23 = vrot.slane %v6036_v49, %v20521_v34  ;;  %v6003_v44 = vadd.f32 %v19147_v41, %v5932_v1 }
 0x6d6   :  { %v10858_v53 = vsel %vm9162_vm5, %v10687_v21, %v10857_v39  ;;  %v5933_v22 = vadd.f32 %v5859_v62, %v20698_v2  ;;  %v19300_v9 = vadd.f32 %v5862_v56, %v20699_v55  ;;  %v5935_v16 = vadd.f32 %v5867_v45, %v20700_v18 }
 0x6d7   :  { %v10859_v5 = vsel %vm9165_vm6, %v10691_v28, %v10858_v53  ;;  %v6562_v17 = vrot.slane %v6548_v43, %v20521_v34  ;;  %v6563_v59 = vcombine.high %v6555_v23, %v6555_v23  ;;  %v11309_v29 = vrot.slane %v6555_v23, 9 }
 0x6d8   :  { %v19307_v54 = vcombine.high %v19257_v31, %v19257_v31  ;;  %v10860_v10 = vsel %vm9168_vm7, %v10695_v51, %v10859_v5  ;;  %v6037_v47 = vadd.f32 %v6003_v44, %v19262_v40  ;;  %v6004_v30 = vadd.f32 %v19147_v41, %v5933_v22 }
 0x6d9   :  { %v10861_v3 = vsel %vm9171_vm8, %v10699_v20, %v10860_v10  ;;  %v6564_v37 = vcombine.high %v6562_v17, %v6562_v17  ;;  %v11310_v7 = vrot.slane %v6563_v59, 9  ;;  %v11311_v19 = vrot.slane %v6562_v17, 9 }
 0x6da   :  { %10905 = vst [vmem:[#allocation4 + $0x68] sm:$0xff] %v10861_v3  ;;  %v7240_v58 = vadd.f32 %v11309_v29, %v6555_v23  ;;  %v6565_v61 = vcombine.high %v6037_v47, %v6037_v47  ;;  %v6572_v57 = vrot.slane %v6037_v47, %v20521_v34  ;;  %v6006_v38 = vadd.f32 %v19147_v41, %v5935_v16 }
 0x6db   :  { %v11312_v63 = vrot.slane %v6564_v37, 9  ;;  %v7241_v52 = vadd.f32 %v11310_v7, %v6563_v59  ;;  %v7242_v42 = vadd.f32 %v11311_v19, %v6562_v17  ;;  %v5870_v40 = vadd.f32 %v20701_v25, %v19199_v0 }
 0x6dc   :  { %v7368_v21 = vmul.f32 0.25, %v7240_v58  ;;  %v6579_v14 = vrot.slane %v6565_v61, %v20521_v34  ;;  %v6580_v11 = vcombine.high %v6572_v57, %v6572_v57  ;;  %v11313_v60 = vrot.slane %v6572_v57, 9 }
 0x6dd   :  { %v7243_v28 = vadd.f32 %v11312_v63, %v6564_v37  ;;  %v7369_v51 = vmul.f32 0.25, %v7241_v52  ;;  %v7370_v13 = vmul.f32 0.25, %v7242_v42  ;;  %v6038_v49 = vadd.f32 %v6006_v38, %v6004_v30  ;;  %v20702_v52 = vld [vmem:[#allocation26_spill] sm:$0xff] }
 0x6de   :  { %v10108_v8 = vadd.f32 %v19193_v33, %v7368_v21  ;;  %v6581_v1 = vcombine.high %v6579_v14, %v6579_v14  ;;  %v11314_v36 = vrot.slane %v6580_v11, 9  ;;  %v11315_v62 = vrot.slane %v6579_v14, 9 }
 0x6df   :  { %v7371_v20 = vmul.f32 0.25, %v7243_v28  ;;  %v10109_v46 = vadd.f32 %v9860_v35, %v7369_v51  ;;  %v10110_v0 = vadd.f32 %v19213_v27, %v7370_v13  ;;  %v7244_v50 = vadd.f32 %v11313_v60, %v6572_v57 }
 0x6e0   :  { %v10703_v56 = vrot.slane %v10108_v8, %v18283_v24  ;;  %v11316_v32 = vrot.slane %v6581_v1, 9  ;;  %v7245_v45 = vadd.f32 %v11314_v36, %v6580_v11  ;;  %v7246_v39 = vadd.f32 %v11315_v62, %v6579_v14 }
 0x6e1   :  { %v10111_v43 = vadd.f32 %v9861_v12, %v7371_v20  ;;  %v10707_v23 = vrot.slane %v10109_v46, %v18283_v24  ;;  %v10711_v44 = vrot.slane %v10110_v0, %v18283_v24  ;;  %v7372_v53 = vmul.f32 0.25, %v7244_v50 }
 0x6e2   :  { %v7247_v2 = vadd.f32 %v11316_v32, %v6581_v1  ;;  %v7373_v22 = vmul.f32 0.25, %v7245_v45  ;;  %v7374_v33 = vmul.f32 0.25, %v7246_v39  ;;  %v6582_v35 = vcombine.high %v6038_v49, %v6038_v49 }
 0x6e3   :  { %v10715_v55 = vrot.slane %v10111_v43, %v18283_v24  ;;  %v10862_v18 = vsel %vm9153_vm2, %v10707_v23, %v10703_v56  ;;  %v10112_v16 = vadd.f32 %v19196_v15, %v7372_v53  ;;  %v6589_v5 = vrot.slane %v6038_v49, %v20521_v34 }
 0x6e4   :  { %v10863_v27 = vsel %vm9156_vm3, %v10711_v44, %v10862_v18  ;;  %v7375_v12 = vmul.f32 0.25, %v7247_v2  ;;  %v10113_v17 = vadd.f32 %v9862_v26, %v7373_v22  ;;  %v10114_v59 = vadd.f32 %v19223_v48, %v7374_v33 }
 0x6e5   :  { %v10719_v29 = vrot.slane %v10112_v16, %v18283_v24  ;;  %v10864_v10 = vsel %vm9159_vm4, %v10715_v55, %v10863_v27  ;;  %v6596_v47 = vrot.slane %v6582_v35, %v20521_v34  ;;  %v6597_v30 = vcombine.high %v6589_v5, %v6589_v5 }
 0x6e6   :  { %v10115_v3 = vadd.f32 %v9863_v6, %v7375_v12  ;;  %v10723_v37 = vrot.slane %v10113_v17, %v18283_v24  ;;  %v10727_v7 = vrot.slane %v10114_v59, %v18283_v24  ;;  %v11317_v19 = vrot.slane %v6589_v5, 9 }
 0x6e7   :  { %v10865_v15 = vsel %vm9162_vm5, %v10719_v29, %v10864_v10  ;;  %v6598_v26 = vcombine.high %v6596_v47, %v6596_v47  ;;  %v11318_v58 = vrot.slane %v6597_v30, 9  ;;  %v11319_v61 = vrot.slane %v6596_v47, 9 }
 0x6e8   :  { %v10731_v57 = vrot.slane %v10115_v3, %v18283_v24  ;;  %v10866_v38 = vsel %vm9165_vm6, %v10723_v37, %v10865_v15  ;;  %v7248_v63 = vadd.f32 %v11317_v19, %v6589_v5  ;;  %v5936_v42 = vadd.f32 %v5870_v40, %v20702_v52 }
 0x6e9   :  { %v10867_v48 = vsel %vm9168_vm7, %v10727_v7, %v10866_v38  ;;  %v11320_v6 = vrot.slane %v6598_v26, 9  ;;  %v7249_v25 = vadd.f32 %v11318_v58, %v6597_v30  ;;  %v7250_v21 = vadd.f32 %v11319_v61, %v6596_v47 }
 0x6ea   :  { %v10868_v14 = vsel %vm9171_vm8, %v10731_v57, %v10867_v48  ;;  %v6005_v11 = vadd.f32 %v19147_v41, %v19300_v9  ;;  %v7376_v60 = vmul.f32 0.25, %v7248_v63  ;;  %v6007_v28 = vadd.f32 %v19147_v41, %v5936_v42 }
 0x6eb   :  { %v9864_v51 = vrot.slane %v19257_v31, 1  ;;  %10906 = vst [vmem:[#allocation4 + $0x70] sm:$0xff] %v10868_v14  ;;  %v7251_v13 = vadd.f32 %v11320_v6, %v6598_v26  ;;  %v7377_v49 = vmul.f32 0.25, %v7249_v25  ;;  %v7378_v8 = vmul.f32 0.25, %v7250_v21 }
 0x6ec   :  { %v9787_v40 = vcombine.high %v19238_v4, %v19238_v4  ;;  %v10116_v1 = vadd.f32 %v19257_v31, %v7376_v60  ;;  %v6039_v36 = vadd.f32 %v6007_v28, %v6005_v11  ;;  %v9865_v62 = vrot.slane %v19307_v54, 1 }
 0x6ed   :  { %v7379_v20 = vmul.f32 0.25, %v7251_v13  ;;  %v10117_v46 = vadd.f32 %v9864_v51, %v7377_v49  ;;  %v10118_v9 = vadd.f32 %v19307_v54, %v7378_v8 }
 0x6ee   :  { %v6599_v0 = vcombine.high %v6039_v36, %v6039_v36  ;;  %v6606_v41 = vrot.slane %v6039_v36, %v20521_v34  ;;  %v10735_v56 = vrot.slane %v10116_v1, %v18283_v24  ;;  %v9801_v4 = vrot.slane %v9787_v40, %v20521_v34 }
 0x6ef   :  { %v10119_v50 = vadd.f32 %v9865_v62, %v7379_v20  ;;  %v10739_v32 = vrot.slane %v10117_v46, %v18283_v24  ;;  %v10743_v45 = vrot.slane %v10118_v9, %v18283_v24 }
 0x6f0   :  { %v6613_v31 = vrot.slane %v6599_v0, %v20521_v34  ;;  %v6614_v39 = vcombine.high %v6606_v41, %v6606_v41  ;;  %v11321_v43 = vrot.slane %v6606_v41, 9  ;;  %v9803_v55 = vcombine.high %v9801_v4, %v9801_v4 }
 0x6f1   :  { %v10747_v23 = vrot.slane %v10119_v50, %v18283_v24  ;;  %v10869_v54 = vsel %vm9153_vm2, %v10739_v32, %v10735_v56  ;;  %v9866_v34 = vrot.slane %v9801_v4, 1 }
 0x6f2   :  { %v10870_v44 = vsel %vm9156_vm3, %v10743_v45, %v10869_v54  ;;  %v6615_v53 = vcombine.high %v6613_v31, %v6613_v31  ;;  %v11322_v2 = vrot.slane %v6614_v39, 9  ;;  %v11323_v22 = vrot.slane %v6613_v31, 9 }
 0x6f3   :  { %v7252_v33 = vadd.f32 %v11321_v43, %v6606_v41  ;;  %v10871_v35 = vsel %vm9159_vm4, %v10747_v23, %v10870_v44  ;;  %v9867_v10 = vrot.slane %v9803_v55, 1 }
 0x6f4   :  { %v11324_v18 = vrot.slane %v6615_v53, 9  ;;  %v7253_v16 = vadd.f32 %v11322_v2, %v6614_v39  ;;  %v7254_v5 = vadd.f32 %v11323_v22, %v6613_v31 }
 0x6f5   :  { %v7380_v27 = vmul.f32 0.25, %v7252_v33 }
 0x6f6   :  { %v7255_v12 = vadd.f32 %v11324_v18, %v6615_v53  ;;  %v7381_v17 = vmul.f32 0.25, %v7253_v16  ;;  %v7382_v59 = vmul.f32 0.25, %v7254_v5 }
 0x6f7   :  { %v10120_v29 = vadd.f32 %v9801_v4, %v7380_v27 }
 0x6f8   :  { %v7383_v47 = vmul.f32 0.25, %v7255_v12  ;;  %v10121_v30 = vadd.f32 %v9866_v34, %v7381_v17  ;;  %v10122_v3 = vadd.f32 %v9803_v55, %v7382_v59 }
 0x6f9   :  { %v10751_v37 = vrot.slane %v10120_v29, %v18283_v24 }
 0x6fa   :  { %v10123_v7 = vadd.f32 %v9867_v10, %v7383_v47  ;;  %v10755_v19 = vrot.slane %v10121_v30, %v18283_v24  ;;  %v10759_v15 = vrot.slane %v10122_v3, %v18283_v24 }
 0x6fb   :  { %v10872_v26 = vsel %vm9162_vm5, %v10751_v37, %v10871_v35 }
 0x6fc   :  { %v10763_v58 = vrot.slane %v10123_v7, %v18283_v24  ;;  %v10873_v61 = vsel %vm9165_vm6, %v10755_v19, %v10872_v26 }
 0x6fd   :  { %v10874_v57 = vsel %vm9168_vm7, %v10759_v15, %v10873_v61 }
 0x6fe   :  { %v10875_v38 = vsel %vm9171_vm8, %v10763_v58, %v10874_v57 }
 0x6ff   :  { %10907 = vst [vmem:[#allocation4 + $0x78] sm:$0xff] %v10875_v38 }
 0x700   :  { %13454 = shalt.err (!%p13451_p4)
}
 0x701   :  { %s13455_s23 = scalar_lea.hbm %s19395_s7, 2048 }
 0x702   :  { %p13456_p5 = scmp.ne.s32.totalorder %s19395_s7, %s13455_s23  ;;  %p13459_p6 = scmp.lt.u32.totalorder %s13455_s23, %s19395_s7 }
 0x704   :  { %p13461_p7 = pnand %p13459_p6, %p13456_p5 }
 0x706   :  { %13464 = shalt.err (!%p13461_p7)
}
 0x707   :  { %s13473_s27 = smov 128  }
 0x708   :  { %10919 = dma.vmem_to_hbm [thread:$0]  %s10914_s19, 2048, %s19395_s7, [#allocation5], %s13473_s27, %s13473_s27, %s13468_s16  }
 0x709   :  { %13465 = dma.done.wait [#allocation5], 2048  }
 0x70a   :  { %13466 = vsyncadd [#allocation5], 4294965248 }
 0x70b   :  { %10923 = vsyncpa [#allocation5], 1 }

</bundles_post_ra>
